<compile_context>
chip_gen: v5e
topology: v5e:2x2
jax: 0.10.0
libtpu: 0.0.40
codegen_flags: <defaults>
</compile_context>

<pallas_src>
import jax
import jax.numpy as jnp
from jax.experimental import pallas as pl
from jax.experimental.pallas import tpu as pltpu

C = 512        # fixed by nn.Linear(512, 512) in Channel_group_sub
NUM_HEADS = 4  # channelgroup_1 .. channelgroup_4
HEADS_PAD = 8  # pad the head dim to the native sublane count for the MXU


def channel_group_kernel(x_gap_ref, w1_ref, w2_ref, x_ref, out_ref, g_ref):
    # x_gap_ref: (BB, 1, C)  f32   global-average-pooled x for this batch block
    # w1_ref   : (C, 4*C)    bf16  first Linear weights, 4 heads concatenated
    # w2_ref   : (4, C, C)   bf16  second Linear weights, one (C, C) per head
    # x_ref    : (BB, C, T)  f32   one spatial tile of x in (B, C, HW) layout
    # out_ref  : (BB, 4, HW) f32   VMEM-resident output block (mask per head)
    # g_ref    : (BB, 8, C)  f32   scratch: per-head channel gates (rows 4..7 = 0)
    t = pl.program_id(1)
    _, c, tile = x_ref.shape

    # ---- once per batch block: the shared "group" MLP (GAP -> gates) --------
    @pl.when(t == 0)
    def _():
        xg = x_gap_ref[:, 0, :].astype(jnp.bfloat16)                     # (BB, C)
        # Fused first Linear over all heads: (BB, C) @ (C, 4C), then Tanh.
        h = jnp.tanh(jnp.dot(xg, w1_ref[...],
                             preferred_element_type=jnp.float32))        # (BB, 4C)
        h = h.astype(jnp.bfloat16)
        g_ref[...] = jnp.zeros_like(g_ref)
        for head in range(NUM_HEADS):
            hh = h[:, head * c:(head + 1) * c]                           # (BB, C)
            gh = jnp.dot(hh, w2_ref[head],
                         preferred_element_type=jnp.float32)             # (BB, C)
            # Sigmoid gate; fold the 1/C of the channel-mean into the gate.
            g_ref[:, head, :] = jax.nn.sigmoid(gh) * (1.0 / c)

    # ---- every spatial tile: channel-weighted mean on the MXU ---------------
    # s[b, h, p] = sum_c g[b, h, c] * x[b, c, p]     (already scaled by 1/C)
    s = jnp.einsum(
        "bhc,bcp->bhp",
        g_ref[...].astype(jnp.bfloat16),
        x_ref[...].astype(jnp.bfloat16),
        preferred_element_type=jnp.float32,
    )                                                                     # (BB, 8, T)
    start = pl.multiple_of(t * tile, tile)
    out_ref[:, :, pl.ds(start, tile)] = s[:, :NUM_HEADS, :]

    # ---- last tile: sigmoid + softmax over the full spatial axis ------------
    @pl.when(t == pl.num_programs(1) - 1)
    def _():
        m = jax.nn.sigmoid(out_ref[...])
        # sigmoid output lies in (0, 1): exp is safe without max-subtraction.
        e = jnp.exp(m)
        denom = jnp.sum(e, axis=-1, keepdims=True)                        # (BB, 4, 1)
        out_ref[...] = e * pl.reciprocal(denom, approx=True)


def channel_group(x, w1, w2):
    """x: (B, 512, H, W) f32 NCHW.  w1, w2: (4, 512, 512) pre-transposed Linear
    weights (y = x @ w, i.e. torch weight.T).  Returns a list of 4 (B, H*W) masks."""
    B, Cc, H, W = x.shape
    assert Cc == C
    HW = H * W

    # GAP computed once for all 4 heads (hoisted out of the per-head work).
    x_gap = jnp.mean(x, axis=(2, 3)).reshape(B, 1, Cc).astype(jnp.float32)
    # NCHW -> (B, C, HW): pure reshape, no transpose / extra HBM round-trip.
    x_flat = x.reshape(B, Cc, HW)

    # Weights stored & DMA'd as bf16; fuse the first Linear across heads: (C, 4C).
    w1_cat = jnp.transpose(w1, (1, 0, 2)).reshape(Cc, NUM_HEADS * Cc)
    w1_cat = w1_cat.astype(jnp.bfloat16)
    w2_b = w2.astype(jnp.bfloat16)

    # Batch block: 8 rows when possible (native MXU sublane count), else 1.
    BB = 8 if B % 8 == 0 else 1
    # Spatial tile: lane-dense multiple of 128 (bigger when HW allows it).
    if HW % 512 == 0:
        T = 512
    elif HW % 128 == 0:
        T = 128
    else:
        T = HW
    nb, nt = B // BB, HW // T

    flops = 2 * B * Cc * (NUM_HEADS * Cc)       # fused first Linear
    flops += 2 * NUM_HEADS * B * Cc * Cc        # per-head second Linear
    flops += 2 * B * NUM_HEADS * Cc * HW        # channel contraction (MXU)
    transcendentals = 2 * NUM_HEADS * B * Cc + 2 * NUM_HEADS * B * HW
    bytes_accessed = (x_flat.size * 4 + x_gap.size * 4
                      + w1_cat.size * 2 + w2_b.size * 2
                      + B * NUM_HEADS * HW * 4)

    out = pl.pallas_call(
        channel_group_kernel,
        out_shape=jax.ShapeDtypeStruct((B, NUM_HEADS, HW), jnp.float32),
        grid_spec=pltpu.PrefetchScalarGridSpec(
            num_scalar_prefetch=0,
            grid=(nb, nt),  # (batch blocks [parallel], HW tiles [arbitrary])
            in_specs=[
                pl.BlockSpec((BB, 1, Cc), lambda b, t: (b, 0, 0)),
                pl.BlockSpec((Cc, NUM_HEADS * Cc), lambda b, t: (0, 0)),
                pl.BlockSpec((NUM_HEADS, Cc, Cc), lambda b, t: (0, 0, 0)),
                pl.BlockSpec((BB, Cc, T), lambda b, t: (b, 0, t)),
            ],
            out_specs=pl.BlockSpec((BB, NUM_HEADS, HW), lambda b, t: (b, 0, 0)),
            scratch_shapes=[pltpu.VMEM((BB, HEADS_PAD, Cc), jnp.float32)],
        ),
        compiler_params=pltpu.CompilerParams(
            dimension_semantics=("parallel", "arbitrary"),
            vmem_limit_bytes=48 * 1024 * 1024,
        ),
        cost_estimate=pl.CostEstimate(
            flops=flops,
            transcendentals=transcendentals,
            bytes_accessed=bytes_accessed,
        ),
    )(x_gap, w1_cat, w2_b, x_flat)

    # The module returns a list of 4 masks, each (B, HW).
    return [out[:, i, :] for i in range(NUM_HEADS)]


def channel_group_reference(x, w1, w2):
    """Pure-JAX f32 reference mirroring the PyTorch forward exactly."""
    B, Cc, H, W = x.shape
    HW = H * W
    x_gap = jnp.mean(x, axis=(2, 3))                        # (B, C)
    x_flat = x.reshape(B, Cc, HW)                           # (B, C, HW)
    masks = []
    for i in range(NUM_HEADS):
        h = jnp.tanh(x_gap @ w1[i])
        g = jax.nn.sigmoid(h @ w2[i])                       # (B, C)
        s = jnp.mean(g[:, :, None] * x_flat, axis=1)        # (B, HW)
        m = jax.nn.sigmoid(s)
        masks.append(jax.nn.softmax(m, axis=1))
    return masks


if __name__ == "__main__":
    key = jax.random.PRNGKey(0)
    k1, k2, kx = jax.random.split(key, 3)

    # Deterministic xavier-normal-style init; weights are stored pre-transposed
    # (y = x @ w, matching torch's x @ weight.T convention).
    std = (2.0 / (C + C)) ** 0.5
    w1 = jax.random.normal(k1, (NUM_HEADS, C, C), jnp.float32) * std
    w2 = jax.random.normal(k2, (NUM_HEADS, C, C), jnp.float32) * std

    # Small spatial extent; the channel count is fixed at 512 by the module.
    B, H, W = 2, 16, 16
    x = jax.random.normal(kx, (B, C, H, W), jnp.float32)

    masks = channel_group(x, w1, w2)
    masks = [jax.block_until_ready(m) for m in masks]

    ref = channel_group_reference(x, w1, w2)
    for got, want in zip(masks, ref):
        assert got.shape == (B, H * W)
        # The kernel uses bf16 weights / bf16 MXU operands and an approximate
        # EUP reciprocal in the softmax, so compare against the f32 reference
        # with a correspondingly relaxed (but still discriminating) tolerance.
        max_err = float(jnp.max(jnp.abs(got - want)))
        assert jnp.allclose(got, want, atol=1e-5, rtol=5e-3), max_err
        # each mask is a softmax over spatial positions -> rows sum to ~1
        assert jnp.allclose(jnp.sum(got, axis=1), 1.0, atol=1e-2)
    print("KERNEL_OK")
</pallas_src>

<mosaic_0001>
module attributes {stable_mosaic.version = 11 : i64} {
  func.func @channel_group_kernel(%arg0: i32, %arg1: i32, %arg2: memref<1x1x512xf32, #tpu.memory_space<vmem>>, %arg3: memref<512x2048xbf16, #tpu.memory_space<vmem>>, %arg4: memref<4x512x512xbf16, #tpu.memory_space<vmem>>, %arg5: memref<1x512x128xf32, #tpu.memory_space<vmem>>, %arg6: memref<1x4x256xf32, #tpu.memory_space<vmem>>, %arg7: memref<1x8x512xf32, #tpu.memory_space<vmem>>) attributes {dimension_semantics = [#tpu.dimension_semantics<parallel>, #tpu.dimension_semantics<arbitrary>], iteration_bounds = array<i64: 2, 2>, scalar_prefetch = 0 : i64, scratch_operands = 1 : i64, tpu.core_type = #tpu.core_type<tc>, window_params = [{transform_indices = @transform_0, window_bounds = array<i64: 1, 1, 512>}, {pipeline_mode = #tpu.pipeline_mode<synchronous>, transform_indices = @transform_1, window_bounds = array<i64: 512, 2048>}, {pipeline_mode = #tpu.pipeline_mode<synchronous>, transform_indices = @transform_2, window_bounds = array<i64: 4, 512, 512>}, {transform_indices = @transform_3, window_bounds = array<i64: 1, 512, 128>}, {transform_indices = @transform_4, window_bounds = array<i64: 1, 4, 256>}]} {
    %c0_i32 = arith.constant 0 : i32
    %0 = arith.cmpi eq, %arg1, %c0_i32 : i32
    %1 = arith.extui %0 : i1 to i32
    %c0_i32_0 = arith.constant 0 : i32
    %2 = arith.cmpi ne, %1, %c0_i32_0 : i32
    scf.if %2 {
      %c0_9 = arith.constant 0 : index
      %c0_10 = arith.constant 0 : index
      %c0_11 = arith.constant 0 : index
      %16 = vector.load %arg2[%c0_9, %c0_10, %c0_11] : memref<1x1x512xf32, #tpu.memory_space<vmem>>, vector<1x1x512xf32>
      %17 = vector.shape_cast %16 : vector<1x1x512xf32> to vector<1x512xf32>
      %18 = arith.truncf %17 : vector<1x512xf32> to vector<1x512xbf16>
      %c0_12 = arith.constant 0 : index
      %c0_13 = arith.constant 0 : index
      %19 = vector.load %arg3[%c0_12, %c0_13] : memref<512x2048xbf16, #tpu.memory_space<vmem>>, vector<512x2048xbf16>
      %cst_14 = arith.constant dense<0.000000e+00> : vector<1x2048xf32>
      %20 = tpu.matmul %18, %19, %cst_14 {dimension_numbers = #tpu.dot_dimension_numbers<[1], [0], [0], [1], [0, 0, 1, 1], [], []>} : vector<1x512xbf16>, vector<512x2048xbf16>, vector<1x2048xf32> -> vector<1x2048xf32>
      %21 = math.tanh %20 : vector<1x2048xf32>
      %22 = arith.truncf %21 : vector<1x2048xf32> to vector<1x2048xbf16>
      %cst_15 = arith.constant 0.000000e+00 : f32
      %23 = vector.broadcast %cst_15 : f32 to vector<1x8x512xf32>
      %c0_16 = arith.constant 0 : index
      %c0_17 = arith.constant 0 : index
      %c0_18 = arith.constant 0 : index
      %24 = vector.load %arg7[%c0_16, %c0_17, %c0_18] : memref<1x8x512xf32, #tpu.memory_space<vmem>>, vector<1x8x512xf32>
      tpu.vector_store %arg7[%c0_16, %c0_17, %c0_18], %23 {strides = array<i32>} : memref<1x8x512xf32, #tpu.memory_space<vmem>>, vector<1x8x512xf32>,
      %25 = vector.extract_strided_slice %22 {offsets = [0, 0], sizes = [1, 512], strides = [1, 1]} : vector<1x2048xbf16> to vector<1x512xbf16>
      %c0_19 = arith.constant 0 : index
      %c0_20 = arith.constant 0 : index
      %c0_21 = arith.constant 0 : index
      %26 = vector.load %arg4[%c0_19, %c0_20, %c0_21] : memref<4x512x512xbf16, #tpu.memory_space<vmem>>, vector<1x512x512xbf16>
      %27 = vector.shape_cast %26 : vector<1x512x512xbf16> to vector<512x512xbf16>
      %cst_22 = arith.constant dense<0.000000e+00> : vector<1x512xf32>
      %28 = tpu.matmul %25, %27, %cst_22 {dimension_numbers = #tpu.dot_dimension_numbers<[1], [0], [0], [1], [0, 0, 1, 1], [], []>} : vector<1x512xbf16>, vector<512x512xbf16>, vector<1x512xf32> -> vector<1x512xf32>
      %29 = arith.negf %28 : vector<1x512xf32>
      %30 = math.exp %29 : vector<1x512xf32>
      %cst_23 = arith.constant 1.000000e+00 : f32
      %31 = vector.broadcast %cst_23 : f32 to vector<1x512xf32>
      %32 = arith.addf %31, %30 : vector<1x512xf32>
      %33 = arith.divf %31, %32 : vector<1x512xf32>
      %cst_24 = arith.constant 0.001953125 : f32
      %34 = vector.broadcast %cst_24 : f32 to vector<1x512xf32>
      %35 = arith.mulf %33, %34 : vector<1x512xf32>
      %c0_25 = arith.constant 0 : index
      %c0_26 = arith.constant 0 : index
      %c0_27 = arith.constant 0 : index
      %36 = vector.load %arg7[%c0_25, %c0_26, %c0_27] : memref<1x8x512xf32, #tpu.memory_space<vmem>>, vector<1x1x512xf32>
      %37 = vector.shape_cast %36 : vector<1x1x512xf32> to vector<1x512xf32>
      %38 = vector.shape_cast %35 : vector<1x512xf32> to vector<1x1x512xf32>
      tpu.vector_store %arg7[%c0_25, %c0_26, %c0_27], %38 {strides = array<i32>} : memref<1x8x512xf32, #tpu.memory_space<vmem>>, vector<1x1x512xf32>,
      %39 = vector.extract_strided_slice %22 {offsets = [0, 512], sizes = [1, 512], strides = [1, 1]} : vector<1x2048xbf16> to vector<1x512xbf16>
      %c1 = arith.constant 1 : index
      %c0_28 = arith.constant 0 : index
      %c0_29 = arith.constant 0 : index
      %40 = vector.load %arg4[%c1, %c0_28, %c0_29] : memref<4x512x512xbf16, #tpu.memory_space<vmem>>, vector<1x512x512xbf16>
      %41 = vector.shape_cast %40 : vector<1x512x512xbf16> to vector<512x512xbf16>
      %cst_30 = arith.constant dense<0.000000e+00> : vector<1x512xf32>
      %42 = tpu.matmul %39, %41, %cst_30 {dimension_numbers = #tpu.dot_dimension_numbers<[1], [0], [0], [1], [0, 0, 1, 1], [], []>} : vector<1x512xbf16>, vector<512x512xbf16>, vector<1x512xf32> -> vector<1x512xf32>
      %43 = arith.negf %42 : vector<1x512xf32>
      %44 = math.exp %43 : vector<1x512xf32>
      %cst_31 = arith.constant 1.000000e+00 : f32
      %45 = vector.broadcast %cst_31 : f32 to vector<1x512xf32>
      %46 = arith.addf %45, %44 : vector<1x512xf32>
      %47 = arith.divf %45, %46 : vector<1x512xf32>
      %cst_32 = arith.constant 0.001953125 : f32
      %48 = vector.broadcast %cst_32 : f32 to vector<1x512xf32>
      %49 = arith.mulf %47, %48 : vector<1x512xf32>
      %c0_33 = arith.constant 0 : index
      %c1_34 = arith.constant 1 : index
      %c0_35 = arith.constant 0 : index
      %50 = vector.load %arg7[%c0_33, %c1_34, %c0_35] : memref<1x8x512xf32, #tpu.memory_space<vmem>>, vector<1x1x512xf32>
      %51 = vector.shape_cast %50 : vector<1x1x512xf32> to vector<1x512xf32>
      %52 = vector.shape_cast %49 : vector<1x512xf32> to vector<1x1x512xf32>
      tpu.vector_store %arg7[%c0_33, %c1_34, %c0_35], %52 {strides = array<i32>} : memref<1x8x512xf32, #tpu.memory_space<vmem>>, vector<1x1x512xf32>,
      %53 = vector.extract_strided_slice %22 {offsets = [0, 1024], sizes = [1, 512], strides = [1, 1]} : vector<1x2048xbf16> to vector<1x512xbf16>
      %c2 = arith.constant 2 : index
      %c0_36 = arith.constant 0 : index
      %c0_37 = arith.constant 0 : index
      %54 = vector.load %arg4[%c2, %c0_36, %c0_37] : memref<4x512x512xbf16, #tpu.memory_space<vmem>>, vector<1x512x512xbf16>
      %55 = vector.shape_cast %54 : vector<1x512x512xbf16> to vector<512x512xbf16>
      %cst_38 = arith.constant dense<0.000000e+00> : vector<1x512xf32>
      %56 = tpu.matmul %53, %55, %cst_38 {dimension_numbers = #tpu.dot_dimension_numbers<[1], [0], [0], [1], [0, 0, 1, 1], [], []>} : vector<1x512xbf16>, vector<512x512xbf16>, vector<1x512xf32> -> vector<1x512xf32>
      %57 = arith.negf %56 : vector<1x512xf32>
      %58 = math.exp %57 : vector<1x512xf32>
      %cst_39 = arith.constant 1.000000e+00 : f32
      %59 = vector.broadcast %cst_39 : f32 to vector<1x512xf32>
      %60 = arith.addf %59, %58 : vector<1x512xf32>
      %61 = arith.divf %59, %60 : vector<1x512xf32>
      %cst_40 = arith.constant 0.001953125 : f32
      %62 = vector.broadcast %cst_40 : f32 to vector<1x512xf32>
      %63 = arith.mulf %61, %62 : vector<1x512xf32>
      %c0_41 = arith.constant 0 : index
      %c2_42 = arith.constant 2 : index
      %c0_43 = arith.constant 0 : index
      %64 = vector.load %arg7[%c0_41, %c2_42, %c0_43] : memref<1x8x512xf32, #tpu.memory_space<vmem>>, vector<1x1x512xf32>
      %65 = vector.shape_cast %64 : vector<1x1x512xf32> to vector<1x512xf32>
      %66 = vector.shape_cast %63 : vector<1x512xf32> to vector<1x1x512xf32>
      tpu.vector_store %arg7[%c0_41, %c2_42, %c0_43], %66 {strides = array<i32>} : memref<1x8x512xf32, #tpu.memory_space<vmem>>, vector<1x1x512xf32>,
      %67 = vector.extract_strided_slice %22 {offsets = [0, 1536], sizes = [1, 512], strides = [1, 1]} : vector<1x2048xbf16> to vector<1x512xbf16>
      %c3 = arith.constant 3 : index
      %c0_44 = arith.constant 0 : index
      %c0_45 = arith.constant 0 : index
      %68 = vector.load %arg4[%c3, %c0_44, %c0_45] : memref<4x512x512xbf16, #tpu.memory_space<vmem>>, vector<1x512x512xbf16>
      %69 = vector.shape_cast %68 : vector<1x512x512xbf16> to vector<512x512xbf16>
      %cst_46 = arith.constant dense<0.000000e+00> : vector<1x512xf32>
      %70 = tpu.matmul %67, %69, %cst_46 {dimension_numbers = #tpu.dot_dimension_numbers<[1], [0], [0], [1], [0, 0, 1, 1], [], []>} : vector<1x512xbf16>, vector<512x512xbf16>, vector<1x512xf32> -> vector<1x512xf32>
      %71 = arith.negf %70 : vector<1x512xf32>
      %72 = math.exp %71 : vector<1x512xf32>
      %cst_47 = arith.constant 1.000000e+00 : f32
      %73 = vector.broadcast %cst_47 : f32 to vector<1x512xf32>
      %74 = arith.addf %73, %72 : vector<1x512xf32>
      %75 = arith.divf %73, %74 : vector<1x512xf32>
      %cst_48 = arith.constant 0.001953125 : f32
      %76 = vector.broadcast %cst_48 : f32 to vector<1x512xf32>
      %77 = arith.mulf %75, %76 : vector<1x512xf32>
      %c0_49 = arith.constant 0 : index
      %c3_50 = arith.constant 3 : index
      %c0_51 = arith.constant 0 : index
      %78 = vector.load %arg7[%c0_49, %c3_50, %c0_51] : memref<1x8x512xf32, #tpu.memory_space<vmem>>, vector<1x1x512xf32>
      %79 = vector.shape_cast %78 : vector<1x1x512xf32> to vector<1x512xf32>
      %80 = vector.shape_cast %77 : vector<1x512xf32> to vector<1x1x512xf32>
      tpu.vector_store %arg7[%c0_49, %c3_50, %c0_51], %80 {strides = array<i32>} : memref<1x8x512xf32, #tpu.memory_space<vmem>>, vector<1x1x512xf32>,
    } else {
    }
    %c0 = arith.constant 0 : index
    %c0_1 = arith.constant 0 : index
    %c0_2 = arith.constant 0 : index
    %3 = vector.load %arg7[%c0, %c0_1, %c0_2] : memref<1x8x512xf32, #tpu.memory_space<vmem>>, vector<1x8x512xf32>
    %4 = arith.truncf %3 : vector<1x8x512xf32> to vector<1x8x512xbf16>
    %c0_3 = arith.constant 0 : index
    %c0_4 = arith.constant 0 : index
    %c0_5 = arith.constant 0 : index
    %5 = vector.load %arg5[%c0_3, %c0_4, %c0_5] : memref<1x512x128xf32, #tpu.memory_space<vmem>>, vector<1x512x128xf32>
    %6 = arith.truncf %5 : vector<1x512x128xf32> to vector<1x512x128xbf16>
    "tpu.trace_start"() <{level = 10 : i32, message = "bhc,bcp->bhp"}> : () -> ()
    %cst = arith.constant dense<0.000000e+00> : vector<1x8x128xf32>
    %7 = tpu.matmul %4, %6, %cst {dimension_numbers = #tpu.dot_dimension_numbers<[2], [1], [1], [2], [0, 0, 0, 1, 1, 2], [0], [0]>} : vector<1x8x512xbf16>, vector<1x512x128xbf16>, vector<1x8x128xf32> -> vector<1x8x128xf32>
    "tpu.trace_stop"() : () -> ()
    %c128_i32 = arith.constant 128 : i32
    %8 = arith.muli %arg1, %c128_i32 : i32
    %9 = tpu.assume_multiple %8, 128 : i32
    %10 = vector.extract_strided_slice %7 {offsets = [0, 0, 0], sizes = [1, 4, 128], strides = [1, 1, 1]} : vector<1x8x128xf32> to vector<1x4x128xf32>
    %c0_6 = arith.constant 0 : index
    %c0_7 = arith.constant 0 : index
    %11 = arith.index_cast %9 : i32 to index
    %12 = vector.load %arg6[%c0_6, %c0_7, %11] : memref<1x4x256xf32, #tpu.memory_space<vmem>>, vector<1x4x128xf32>
    tpu.vector_store %arg6[%c0_6, %c0_7, %11], %10 {strides = array<i32>} : memref<1x4x256xf32, #tpu.memory_space<vmem>>, vector<1x4x128xf32>,
    %c1_i32 = arith.constant 1 : i32
    %13 = arith.cmpi eq, %arg1, %c1_i32 : i32
    %14 = arith.extui %13 : i1 to i32
    %c0_i32_8 = arith.constant 0 : i32
    %15 = arith.cmpi ne, %14, %c0_i32_8 : i32
    scf.if %15 {
      %c0_9 = arith.constant 0 : index
      %c0_10 = arith.constant 0 : index
      %c0_11 = arith.constant 0 : index
      %16 = vector.load %arg6[%c0_9, %c0_10, %c0_11] : memref<1x4x256xf32, #tpu.memory_space<vmem>>, vector<1x4x256xf32>
      %17 = arith.negf %16 : vector<1x4x256xf32>
      %18 = math.exp %17 : vector<1x4x256xf32>
      %cst_12 = arith.constant 1.000000e+00 : f32
      %19 = vector.broadcast %cst_12 : f32 to vector<1x4x256xf32>
      %20 = arith.addf %19, %18 : vector<1x4x256xf32>
      %21 = arith.divf %19, %20 : vector<1x4x256xf32>
      %22 = math.exp %21 : vector<1x4x256xf32>
      %cst_13 = arith.constant dense<0.000000e+00> : vector<1x4xf32>
      %23 = vector.multi_reduction <add>, %22, %cst_13 [2] : vector<1x4x256xf32> to vector<1x4xf32>
      %24 = vector.shape_cast %23 : vector<1x4xf32> to vector<1x4x1xf32>
      %25 = tpu.reciprocal %24 {approx = true} : vector<1x4x1xf32> -> vector<1x4x1xf32>
      %26 = vector.broadcast %25 : vector<1x4x1xf32> to vector<1x4x256xf32>
      %27 = arith.mulf %22, %26 : vector<1x4x256xf32>
      %c0_14 = arith.constant 0 : index
      %c0_15 = arith.constant 0 : index
      %c0_16 = arith.constant 0 : index
      %28 = vector.load %arg6[%c0_14, %c0_15, %c0_16] : memref<1x4x256xf32, #tpu.memory_space<vmem>>, vector<1x4x256xf32>
      tpu.vector_store %arg6[%c0_14, %c0_15, %c0_16], %27 {strides = array<i32>} : memref<1x4x256xf32, #tpu.memory_space<vmem>>, vector<1x4x256xf32>,
    } else {
    }
    return
  }
  func.func @transform_0(%arg0: i32, %arg1: i32) -> (i32, i32, i32) {
    %c0_i32 = arith.constant 0 : i32
    %c0_i32_0 = arith.constant 0 : i32
    %c0_i32_1 = arith.constant 0 : i32
    return %arg0, %c0_i32, %c0_i32_0 : i32, i32, i32
  }
  func.func @transform_1(%arg0: i32, %arg1: i32) -> (i32, i32) {
    %c0_i32 = arith.constant 0 : i32
    %c0_i32_0 = arith.constant 0 : i32
    %c0_i32_1 = arith.constant 0 : i32
    return %c0_i32, %c0_i32_0 : i32, i32
  }
  func.func @transform_2(%arg0: i32, %arg1: i32) -> (i32, i32, i32) {
    %c0_i32 = arith.constant 0 : i32
    %c0_i32_0 = arith.constant 0 : i32
    %c0_i32_1 = arith.constant 0 : i32
    %c0_i32_2 = arith.constant 0 : i32
    return %c0_i32, %c0_i32_0, %c0_i32_1 : i32, i32, i32
  }
  func.func @transform_3(%arg0: i32, %arg1: i32) -> (i32, i32, i32) {
    %c0_i32 = arith.constant 0 : i32
    %c0_i32_0 = arith.constant 0 : i32
    return %arg0, %c0_i32, %arg1 : i32, i32, i32
  }
  func.func @transform_4(%arg0: i32, %arg1: i32) -> (i32, i32, i32) {
    %c0_i32 = arith.constant 0 : i32
    %c0_i32_0 = arith.constant 0 : i32
    %c0_i32_1 = arith.constant 0 : i32
    return %arg0, %c0_i32, %c0_i32_0 : i32, i32, i32
  }
}

</mosaic_0001>

<bundles_post_ra>
// kernel: tpu_custom_call.1
= control target key start
LH: loop header
LB: loop body
LE: loop exit
PB: predicated region body
PF: predicated region fallthrough
CT: control target
= control target key end

     0   :  { %s15714_s0 = inlined_call_operand.hbm [shape: f32[2,1,512], index: 0, kind: input, shape index: {}]   ;;  %s15715_s1 = inlined_call_operand.hbm [shape: bf16[512,2048], index: 1, kind: input, shape index: {}]   ;;  %s15716_s2 = inlined_call_operand.hbm [shape: bf16[4,512,512], index: 2, kind: input, shape index: {}]   ;;  %s15717_s3 = inlined_call_operand.hbm [shape: f32[2,512,256], index: 3, kind: input, shape index: {}]   ;;  %s15718_s4 = inlined_call_operand.hbm [shape: f32[2,4,256], index: 4, kind: output, shape index: {}]  }
   0x1   :  { %15732 = sst [smem:[#allocation26_spill]] %s15714_s0 }
   0x2   :  { %15733 = sst [smem:[#allocation27_spill]] %s15715_s1 }
   0x3   :  { %15734 = sst [smem:[#allocation28_spill]] %s15716_s2 }
   0x4   :  { %15735 = sst [smem:[#allocation29_spill]] %s15718_s4 }
   0x5   :  { %9 = vsyncpa [#allocation4], 0 }
   0x6   :  { %11 = vsyncpa [#allocation4 + $0x1], 0 }
   0x7   :  { %12 = vsyncpa [#allocation7], 0 }
   0x8   :  { %13 = vsyncpa [#allocation10], 0 }
   0x9   :  { %15 = vsyncpa [#allocation10 + $0x1], 0 }
   0xa   :  { %16 = vsyncpa [#allocation5], 0 }
   0xb   :  { %18 = vsyncpa [#allocation5 + $0x1], 0  ;;  %s14880_s15 = smov 0   ;;  %s14882_s16 = smov 0  }
   0xc   :  { %s14884_s17 = smov 0   ;;  %s14886_s18 = smov 0  }
   0xd   :  { %s14888_s19 = smov 0   ;;  %s14890_s20 = smov 0  }
   0xe   :  { %s14892_s21 = smov 0   ;;  %s14894_s22 = smov 0  }
   0xf   :  { %s14896_s23 = smov 0   ;;  %s14898_s24 = smov 0  }
  0x10   :  { %s14900_s25 = smov 0  }
  0x11 LB: > { %15736 = sst [smem:[#allocation16_spill]] %s14811_s17  ;;  %s15720_s26 = sadd.s32 4294967295, %s14843_s25   ;;  %s14843_s25 = sphi %s14900_s25, %s24_s25   ;;  %s14839_s24 = sphi %s14898_s24, %s15804_s24   ;;  %s14835_s23 = sphi %s14896_s23, %s15803_s23   ;;  %s14831_s22 = sphi %s14894_s22, %s15802_s22   ;;  %s14827_s21 = sphi %s14892_s21, %s15801_s21   ;;  %s14823_s20 = sphi %s14890_s20, %s15794_s20   ;;  %s14819_s19 = sphi %s14888_s19, %s15800_s19   ;;  %s14815_s18 = sphi %s14886_s18, %s15799_s18   ;;  %s14811_s17 = sphi %s14884_s17, %s15792_s17   ;;  %s14807_s16 = sphi %s14882_s16, %s15798_s16   ;;  %s14803_s15 = sphi %s14880_s15, %s15797_s15  }
  0x12   : > { %15737 = sst [smem:[#allocation17_spill]] %s14815_s18  ;;  %p9191_p0 = scmp.ge.s32.totalorder %s14843_s25, 1 }
  0x13   : > { %15738 = sst [smem:[#allocation18_spill]] %s14823_s20  ;;  %p14939_p1 = scmp.eq.s32.totalorder %s15720_s26, 0 }
  0x14   : > { %15739 = sst [smem:[#allocation19_spill]] %s14843_s25  ;;  %p163_p2 = scmp.lt.s32.totalorder %s14843_s25, 5 }
  0x15   : > { %s15741_s1 = sld [smem:[#allocation27_spill]]  ;;  %s14845_s6 = smov [#allocation6]  }
  0x16   : > { %p14947_p3 = pnand %p9191_p0, %p163_p2  ;;  %s176_s7 = sshll.u32 %s14845_s6, 4  ;;  %s177_s7 = int_to_ptr.vmem [resolvable:$true] %s176_s7 }
  0x17   : > { %s15743_s2 = sld [smem:[#allocation28_spill]]  ;;  %s14846_s11 = smov 1024  }
  0x18   : > { %p14367_p4 = pneg %p14947_p3  ;;  %s14847_s12 = smov 64  }
  0x19   : > { %s14848_s13 = smov [#allocation8]   ;;  %s15719_s28 = smov 256  }
  0x1a   : > { %p14368_p5 = pnand %p14367_p4, %p14939_p1  ;;  %s190_s14 = sshll.u32 %s14848_s13, 4  ;;  %s191_s14 = int_to_ptr.vmem [resolvable:$true] %s190_s14 }
  0x1b   : > { %s174_s30 = sshll.u32 %s15741_s1, 4  ;;  %s14850_s29 = smov 16   ;;  %s175_s30 = int_to_ptr.hbm [resolvable:$true] %s174_s30 }
  0x1c   : > { %14370 = dma.hbm_to_vmem [thread:$0]  (!%p14368_p5), %s175_s30, 65536, %s177_s7, [#allocation7], %s14846_s11, %s14846_s11, %s14847_s12  }
  0x1d   : > { %s188_s10 = sshll.u32 %s15743_s2, 4  ;;  %s9190_s6 = sadd.s32 4294967294, %s14843_s25   ;;  %s189_s10 = int_to_ptr.hbm [resolvable:$true] %s188_s10 }
  0x1e   : > { %14373 = dma.hbm_to_vmem [thread:$0]  (!%p14368_p5), %s189_s10, 65536, %s191_s14, [#allocation7], %s15719_s28, %s15719_s28, %s14850_s29  }
  0x1f   : > { %s33_s30 = sadd.s32 1, %s14835_s23  ;;  %s36_s7 = sadd.s32 1, %s14839_s24 }
  0x20   : > { %p34_p6 = scmp.ge.s32.totalorder %s33_s30, 2  ;;  %s43_s8 = sadd.s32 1, %s14823_s20 }
  0x21   : > { %p50_p7 = scmp.ne.s32.totalorder %s14823_s20, %s14819_s19  ;;  %p51_p8 = scmp.eq.s32.totalorder %s14843_s25, 0 }
  0x22   : > { %s15806_s30 = smov (%p34_p6, %s33_s30), 0  ;;  %s15808_s7 = smov (!%p34_p6, %s36_s7), %s14839_s24 }
  0x23   : > { %15744 = sst [smem:[#allocation20_spill]] %s15806_s30  ;;  %p56_p9 = scmp.ne.s32.totalorder %s14819_s19, %s14815_s18 }
  0x24   : > { %p38_p10 = scmp.ge.s32.totalorder %s15808_s7, 2  ;;  %s109_s9 = ssub.s32 %s14835_s23, %s15806_s30 }
  0x25   : > { %p14979_p11 = por %p51_p8, %p50_p7  ;;  %p14988_p12 = por %p14939_p1, %p56_p9 }
  0x26   : > { %s15810_s7 = smov (%p38_p10, %s15808_s7), 0  ;;  %s113_s12 = sadd.s32 1, %s14811_s17 }
  0x27   : > { %15747 = sst [smem:[#allocation21_spill]] %s15810_s7  ;;  %p120_p13 = scmp.ne.s32.totalorder %s14811_s17, %s14807_s16 }
  0x28   : > { %s40_s13 = ssub.s32 %s14839_s24, %s15810_s7  ;;  %p126_p0 = scmp.ne.s32.totalorder %s14807_s16, %s14803_s15 }
  0x29   : > { %p41_p2 = scmp.eq.s32.totalorder %s40_s13, 0  ;;  %s110_s14 = sor.u32 %s109_s9, %s40_s13 }
  0x2a   : > { %p111_p4 = scmp.eq.s32.totalorder %s110_s14, 0  ;;  %p15003_p5 = por %p120_p13, %p51_p8 }
  0x2b   : > { %s15008_s28 = scalar_select %p41_p2, %s14823_s20, %s43_s8  }
  0x2c   : > { %s15011_s26 = scalar_select %p111_p4, %s14811_s17, %s113_s12  }
  0x2d   : > { %15749 = sst [smem:[#allocation22_spill]] %s15008_s28  ;;  %p15015_p6 = por %p126_p0, %p14939_p1 }
  0x2e   : > { %15750 = sst [smem:[#allocation23_spill]] %s15011_s26  ;;  %s15752_s15 = sadd.s32 4294967295, %s14843_s25  }
  0x2f   : > { %p150_p10 = scmp.eq.s32.totalorder %s15752_s15, 3  ;;  %p156_p8 = scmp.eq.s32.totalorder %s9190_s6, 3 }
  0x30   : > { %p14387_p13 = scmp.lt.s32.totalorder %s14843_s25, 4  ;;  %s204_s9 = sand.u32 1, %s14823_s20  }
  0x31   : > { %p15025_p2 = por %p150_p10, %p50_p7  ;;  %p15033_p4 = por %p156_p8, %p56_p9 }
  0x32   : > { %s9195_s13 = sshll.u32 %s204_s9, 2  ;;  %s9196_s14 = sshll.u32 %s14839_s24, 2 }
  0x33   : > { %s15753_s8 = scalar_select %p15025_p2, 1, 0 }
  0x34   : > { %s15755_s12 = scalar_select %p15033_p4, 1, 0 }
  0x35   : > { %15754 = sst [smem:[#allocation24_spill]] %s15753_s8  ;;  %s208_s30 = scalar_lea.vmem [#allocation3], %s9195_s13 }
  0x36   : > { %15756 = sst [smem:[#allocation25_spill]] %s15755_s12  ;;  %s216_s28 = sshll.u32 %s208_s30, 4  ;;  %s217_s28 = int_to_ptr.vmem [resolvable:$true] %s216_s28 }
  0x37   : > { %s15757_s0 = sld [smem:[#allocation26_spill]]  ;;  %p14375_p7 = pnand %p14387_p13, %p14979_p11 }
  0x38   : > { %p15049_p9 = pnand %p14387_p13, %p15003_p5  ;;  %s223_s26 = sand.u32 1, %s14811_s17  }
  0x39   : > { %s9198_s12 = sshll.u32 %s14839_s24, 7  ;;  %s205_s18 = scalar_lea.sflag [#allocation4], %s204_s9 }
  0x3a   : > { %s9197_s2 = sshll.u32 %s223_s26, 9  ;;  %s224_s25 = scalar_lea.sflag [#allocation10], %s223_s26 }
  0x3b   : > { %s227_s30 = scalar_lea.vmem [#allocation9], %s9197_s2  ;;  %s14851_s4 = smov 128  }
  0x3c   : > { %s236_s15 = sshll.u32 %s227_s30, 4  ;;  %s14852_s8 = smov 8   ;;  %s237_s15 = int_to_ptr.vmem [resolvable:$true] %s236_s15 }
  0x3d   : > { %s212_s6 = scalar_lea.hbm %s15757_s0, %s9196_s14  ;;  %s231_s14 = sadd.s32 %s14835_s23, %s9198_s12 }
  0x3e   : > { %s214_s7 = sshll.u32 %s212_s6, 4  ;;  %s9199_s13 = sshll.u32 %s231_s14, 3  ;;  %s215_s7 = int_to_ptr.hbm [resolvable:$true] %s214_s7 }
  0x3f   : > { %14377 = dma.hbm_to_vmem [thread:$0]  (!%p14375_p7), %s215_s7, 64, %s217_s28, %s205_s18  }
  0x40   : > { %s233_s0 = scalar_lea.hbm %s15717_s3, %s9199_s13  ;;  %s15759_s17 = smov 256  }
  0x41   : > { %s234_s29 = sshll.u32 %s233_s0, 4  ;;  %248 = sbr.rel (%p14947_p3) target bundleno = 1714 (0x6b2), region = 36  ;;  %s235_s29 = int_to_ptr.hbm [resolvable:$true] %s234_s29 }
  0x42   : > { %14380 = dma.hbm_to_vmem [thread:$0]  (!%p15049_p9), %s235_s29, 8192, %s237_s15, %s224_s25, %s15759_s17, %s14851_s4, %s14852_s8  }
  0x43   : > { %s15065_s18 = sand.u32 (!%p14947_p3), 1, %s14819_s19  }
  0x44   : > { %s9201_s28 = sshll.u32 (!%p14947_p3), %s15065_s18, 2  ;;  %s251_s7 = scalar_lea.sflag (!%p14947_p3), [#allocation4], %s15065_s18 }
  0x45   : > { %s15069_s9 = scalar_lea.vmem (!%p14947_p3), [#allocation3], %s9201_s28 }
  0x46   : > { %14786 = dma.done.wait (%p14988_p12), %s251_s7, 64  }
  0x47   : > { %14788 = vsyncadd (%p14988_p12), %s251_s7, 4294967232 }
  0x48   : > { %14790 = dma.done.wait (%p14939_p1), [#allocation7], 131072  }
  0x49   : > { %14792 = vsyncadd (%p14939_p1), [#allocation7], 4294836224  ;;  %s270_s0 = sand.u32 1, %s14807_s16  }
  0x4a   : > { %s9204_s4 = sshll.u32 %s270_s0, 9  ;;  %s271_s17 = scalar_lea.sflag [#allocation10], %s270_s0 }
  0x4b   : > { %s15080_s20 = scalar_lea.vmem [#allocation9], %s9204_s4 }
  0x4c   : > { %14794 = dma.done.wait (%p15015_p6), %s271_s17, 8192  }
  0x4d   : > { %14796 = vsyncadd (%p15015_p6), %s271_s17, 4294959104  ;;  %s9205_s25 = sshll.u32 %s15065_s18, 3  ;;  %p9206_p3 = scmp.ne.s32.totalorder %s14827_s21, 0 }
  0x4e   : > { %s15087_s26 = scalar_lea.vmem [#allocation11], %s9205_s25 }
  0x4f   : > { %308 = sbr.rel (%p9206_p3) target bundleno = 1327 (0x52f), region = 56 }
  0x54   : > { %v9657_v0 = vld [vmem:[#allocation6 + $0x380] sm:$0xf]  ;;  %vm5332_vm8 = vcmask 1040384  }
  0x55   : > { %v13448_v1 = vld [vmem:[#allocation6 + $0x3bc] sm:$0xf0] }
  0x56   : > { %v10169_v2 = vld [vmem:[#allocation6 + $0x780] sm:$0xf]  ;;  %v9658_v3 = vor.u32 %v13448_v1, %v9657_v0 }
  0x57   : > { %v13576_v4 = vld [vmem:[#allocation6 + $0x7bc] sm:$0xf0] }
  0x58   : > { %v10681_v5 = vld [vmem:[#allocation6 + $0xb80] sm:$0xf]  ;;  %v10170_v7 = vor.u32 %v13576_v4, %v10169_v2  ;;  %3395 = vmatpush.bf16.msra.mxu0 %v9658_v3 }
  0x59   : > { %v13704_v6 = vld [vmem:[#allocation6 + $0xbbc] sm:$0xf0] }
  0x5a   : > { %v10682_v8 = vor.u32 %v13704_v6, %v10681_v5  ;;  %v11193_v9 = vld [vmem:[#allocation6 + $0xf80] sm:$0xf]  ;;  %3408 = vmatpush.bf16.msra.mxu1 %v10170_v7 }
  0x5b   : > { %v13832_v10 = vld [vmem:[#allocation6 + $0xfbc] sm:$0xf0] }
  0x5c   : > { %v9593_v11 = vld [vmem:[#allocation6 + $0x300] sm:$0xf]  ;;  %v11194_v12 = vor.u32 %v13832_v10, %v11193_v9  ;;  %3421 = vmatpush.bf16.msra.mxu2 %v10682_v8 }
  0x5d   : > { %v13432_v13 = vld [vmem:[#allocation6 + $0x33c] sm:$0xf0] }
  0x5e   : > { %v10105_v14 = vld [vmem:[#allocation6 + $0x700] sm:$0xf]  ;;  %v9594_v16 = vor.u32 %v13432_v13, %v9593_v11  ;;  %3434 = vmatpush.bf16.msra.mxu3 %v11194_v12 }
  0x5f   : > { %v13560_v15 = vld [vmem:[#allocation6 + $0x73c] sm:$0xf0] }
  0x60   : > { %v10106_v17 = vor.u32 %v13560_v15, %v10105_v14  ;;  %v10617_v18 = vld [vmem:[#allocation6 + $0xb00] sm:$0xf]  ;;  %3396 = vmatpush.bf16.msra.mxu0 %v9594_v16 }
  0x61   : > { %v13688_v19 = vld [vmem:[#allocation6 + $0xb3c] sm:$0xf0] }
  0x62   : > { %v11129_v20 = vld [vmem:[#allocation6 + $0xf00] sm:$0xf]  ;;  %v10618_v21 = vor.u32 %v13688_v19, %v10617_v18  ;;  %3409 = vmatpush.bf16.msra.mxu1 %v10106_v17 }
  0x63   : > { %v13816_v22 = vld [vmem:[#allocation6 + $0xf3c] sm:$0xf0] }
  0x64   : > { %v9529_v23 = vld [vmem:[#allocation6 + $0x280] sm:$0xf]  ;;  %v11130_v25 = vor.u32 %v13816_v22, %v11129_v20  ;;  %3422 = vmatpush.bf16.msra.mxu2 %v10618_v21 }
  0x65   : > { %v13416_v24 = vld [vmem:[#allocation6 + $0x2bc] sm:$0xf0] }
  0x66   : > { %v10041_v26 = vld [vmem:[#allocation6 + $0x680] sm:$0xf]  ;;  %v9530_v29 = vor.u32 %v13416_v24, %v9529_v23  ;;  %3435 = vmatpush.bf16.msra.mxu3 %v11130_v25 }
  0x67   : > { %v13544_v27 = vld [vmem:[#allocation6 + $0x6bc] sm:$0xf0] }
  0x68   : > { %v10553_v28 = vld [vmem:[#allocation6 + $0xa80] sm:$0xf]  ;;  %v10042_v33 = vor.u32 %v13544_v27, %v10041_v26  ;;  %3397 = vmatpush.bf16.msra.mxu0 %v9530_v29  ;;  %v9659_v29 = vld [vmem:[#allocation6 + $0x3c0] sm:$0xf0] }
  0x69   : > { %v13672_v30 = vld [vmem:[#allocation6 + $0xabc] sm:$0xf0] }
  0x6a   : > { %v11065_v31 = vld [vmem:[#allocation6 + $0xe80] sm:$0xf]  ;;  %v10554_v34 = vor.u32 %v13672_v30, %v10553_v28  ;;  %3410 = vmatpush.bf16.msra.mxu1 %v10042_v33  ;;  %v13440_v28 = vld [vmem:[#allocation6 + $0x384] sm:$0xf] }
  0x6b   : > { %v13800_v32 = vld [vmem:[#allocation6 + $0xebc] sm:$0xf0]  ;;  %v13568_v30 = vld [vmem:[#allocation6 + $0x784] sm:$0xf] }
  0x6c   : > { %v9465_v35 = vld [vmem:[#allocation6 + $0x200] sm:$0xf]  ;;  %v11066_v38 = vor.u32 %v13800_v32, %v11065_v31  ;;  %3423 = vmatpush.bf16.msra.mxu2 %v10554_v34  ;;  %v10171_v32 = vld [vmem:[#allocation6 + $0x7c0] sm:$0xf0] }
  0x6d   : > { %v13400_v36 = vld [vmem:[#allocation6 + $0x23c] sm:$0xf0]  ;;  %v13696_v33 = vld [vmem:[#allocation6 + $0xb84] sm:$0xf] }
  0x6e   : > { %v9977_v37 = vld [vmem:[#allocation6 + $0x600] sm:$0xf]  ;;  %v9466_v44 = vor.u32 %v13400_v36, %v9465_v35  ;;  %3436 = vmatpush.bf16.msra.mxu3 %v11066_v38  ;;  %v10683_v34 = vld [vmem:[#allocation6 + $0xbc0] sm:$0xf0] }
  0x6f   : > { %v13528_v39 = vld [vmem:[#allocation6 + $0x63c] sm:$0xf0]  ;;  %v11195_v38 = vld [vmem:[#allocation6 + $0xfc0] sm:$0xf0] }
  0x70   : > { %v10489_v40 = vld [vmem:[#allocation6 + $0xa00] sm:$0xf]  ;;  %v9978_v45 = vor.u32 %v13528_v39, %v9977_v37  ;;  %3398 = vmatpush.bf16.msra.mxu0 %v9466_v44  ;;  %v13824_v37 = vld [vmem:[#allocation6 + $0xf84] sm:$0xf] }
  0x71   : > { %v13656_v41 = vld [vmem:[#allocation6 + $0xa3c] sm:$0xf0]  ;;  %v9595_v44 = vld [vmem:[#allocation6 + $0x340] sm:$0xf0] }
  0x72   : > { %v11001_v42 = vld [vmem:[#allocation6 + $0xe00] sm:$0xf]  ;;  %v10490_v46 = vor.u32 %v13656_v41, %v10489_v40  ;;  %3411 = vmatpush.bf16.msra.mxu1 %v9978_v45  ;;  %v9662_v40 = vor.u32 %v13440_v28, %v9659_v29  ;;  %v10174_v41 = vor.u32 %v13568_v30, %v10171_v32  ;;  %v13552_v45 = vld [vmem:[#allocation6 + $0x704] sm:$0xf] }
  0x73   : > { %v13784_v43 = vld [vmem:[#allocation6 + $0xe3c] sm:$0xf0]  ;;  %v9915_v28 = vld [vmem:[#allocation6 + $0x5c0] sm:$0xf0] }
  0x74   : > { %v9401_v47 = vld [vmem:[#allocation6 + $0x180] sm:$0xf]  ;;  %v11002_v50 = vor.u32 %v13784_v43, %v11001_v42  ;;  %3424 = vmatpush.bf16.msra.mxu2 %v10490_v46  ;;  %v10686_v42 = vor.u32 %v13696_v33, %v10683_v34  ;;  %v13424_v43 = vld [vmem:[#allocation6 + $0x304] sm:$0xf]  ;;  %v11198_v46 = vor.u32 %v13824_v37, %v11195_v38 }
  0x75   : > { %v13384_v48 = vld [vmem:[#allocation6 + $0x1bc] sm:$0xf0]  ;;  %v13632_v29 = vld [vmem:[#allocation6 + $0x984] sm:$0xf] }
  0x76   : > { %v9913_v49 = vld [vmem:[#allocation6 + $0x580] sm:$0xf]  ;;  %v9402_v56 = vor.u32 %v13384_v48, %v9401_v47  ;;  %3437 = vmatpush.bf16.msra.mxu3 %v11002_v50  ;;  %v10107_v47 = vld [vmem:[#allocation6 + $0x740] sm:$0xf0] }
  0x77   : > { %v13512_v51 = vld [vmem:[#allocation6 + $0x5bc] sm:$0xf0]  ;;  %v13680_v48 = vld [vmem:[#allocation6 + $0xb04] sm:$0xf] }
  0x78   : > { %v10425_v52 = vld [vmem:[#allocation6 + $0x980] sm:$0xf]  ;;  %v9914_v57 = vor.u32 %v13512_v51, %v9913_v49  ;;  %3399 = vmatpush.bf16.msra.mxu0 %v9402_v56  ;;  %v10619_v49 = vld [vmem:[#allocation6 + $0xb40] sm:$0xf0] }
  0x79   : > { %v13640_v53 = vld [vmem:[#allocation6 + $0x9bc] sm:$0xf0]  ;;  %v13808_v50 = vld [vmem:[#allocation6 + $0xf04] sm:$0xf] }
  0x7a   : > { %v10937_v54 = vld [vmem:[#allocation6 + $0xd80] sm:$0xf]  ;;  %v10426_v58 = vor.u32 %v13640_v53, %v10425_v52  ;;  %3412 = vmatpush.bf16.msra.mxu1 %v9914_v57  ;;  %v11131_v51 = vld [vmem:[#allocation6 + $0xf40] sm:$0xf0]  ;;  %v309_v52 = vld [vmem:[%s15069_s9] sm:$0xf]  ;;  %v9598_v53 = vor.u32 %v13424_v43, %v9595_v44  ;;  %v10110_v57 = vor.u32 %v13552_v45, %v10107_v47 }
  0x7b   : > { %v13768_v55 = vld [vmem:[#allocation6 + $0xdbc] sm:$0xf0]  ;;  %v314_v56 = vperm.slane %v309_v52, 3  ;;  %v10427_v30 = vld [vmem:[#allocation6 + $0x9c0] sm:$0xf0] }
  0x7c   : > { %v9337_v59 = vld [vmem:[#allocation6 + $0x100] sm:$0xf]  ;;  %v10938_v62 = vor.u32 %v13768_v55, %v10937_v54  ;;  %3425 = vmatpush.bf16.msra.mxu2 %v10426_v58  ;;  %v13408_v54 = vld [vmem:[#allocation6 + $0x284] sm:$0xf]  ;;  %v313_v55 = vperm.slane %v309_v52, 2  ;;  %v10622_v58 = vor.u32 %v13680_v48, %v10619_v49 }
  0x7d   : > { %v13368_v60 = vld [vmem:[#allocation6 + $0x13c] sm:$0xf0]  ;;  %v10939_v32 = vld [vmem:[#allocation6 + $0xdc0] sm:$0xf0] }
  0x7e   : > { %v9849_v61 = vld [vmem:[#allocation6 + $0x500] sm:$0xf]  ;;  %v9338_v4 = vor.u32 %v13368_v60, %v9337_v59  ;;  %3438 = vmatpush.bf16.msra.mxu3 %v10938_v62  ;;  %v9531_v59 = vld [vmem:[#allocation6 + $0x2c0] sm:$0xf0]  ;;  %v11134_v62 = vor.u32 %v13808_v50, %v11131_v51 }
  0x7f   : > { %v13496_v63 = vld [vmem:[#allocation6 + $0x53c] sm:$0xf0]  ;;  %v13536_v60 = vld [vmem:[#allocation6 + $0x684] sm:$0xf] }
  0x80   : > { %v10361_v0 = vld [vmem:[#allocation6 + $0x900] sm:$0xf]  ;;  %v9850_v5 = vor.u32 %v13496_v63, %v9849_v61  ;;  %3400 = vmatpush.bf16.msra.mxu0 %v9338_v4  ;;  %v10043_v61 = vld [vmem:[#allocation6 + $0x6c0] sm:$0xf0] }
  0x81   : > { %v13624_v1 = vld [vmem:[#allocation6 + $0x93c] sm:$0xf0]  ;;  %v13664_v63 = vld [vmem:[#allocation6 + $0xa84] sm:$0xf] }
  0x82   : > { %v10873_v2 = vld [vmem:[#allocation6 + $0xd00] sm:$0xf]  ;;  %v10362_v6 = vor.u32 %v13624_v1, %v10361_v0  ;;  %3413 = vmatpush.bf16.msra.mxu1 %v9850_v5  ;;  %v10555_v0 = vld [vmem:[#allocation6 + $0xac0] sm:$0xf0]  ;;  %v15091_v1 = vpack.c.bf16 %v313_v55, %v313_v55  ;;  %v15093_v5 = vpack.c.bf16 %v314_v56, %v314_v56 }
  0x83   : > { %v13752_v3 = vld [vmem:[#allocation6 + $0xd3c] sm:$0xf0]  ;;  %v11067_v4 = vld [vmem:[#allocation6 + $0xec0] sm:$0xf0] }
  0x84   : > { %v9273_v7 = vld [vmem:[#allocation6 + $0x80] sm:$0xf]  ;;  %v10874_v10 = vor.u32 %v13752_v3, %v10873_v2  ;;  %3426 = vmatpush.bf16.msra.mxu2 %v10362_v6  ;;  %v311_v2 = vperm.slane %v309_v52, 0  ;;  %v13792_v3 = vld [vmem:[#allocation6 + $0xe84] sm:$0xf]  ;;  %v312_v6 = vperm.slane %v309_v52, 1 }
  0x85   : > { %v13352_v8 = vld [vmem:[#allocation6 + $0xbc] sm:$0xf0]  ;;  %v9339_v37 = vld [vmem:[#allocation6 + $0x140] sm:$0xf0] }
  0x86   : > { %v9785_v9 = vld [vmem:[#allocation6 + $0x480] sm:$0xf]  ;;  %v9274_v16 = vor.u32 %v13352_v8, %v9273_v7  ;;  %3439 = vmatpush.bf16.msra.mxu3 %v10874_v10  ;;  %v9534_v7 = vor.u32 %v13408_v54, %v9531_v59  ;;  %v15096_v8 = vpack.c.bf16 %v311_v2, %v311_v2  ;;  %v10558_v10 = vor.u32 %v13664_v63, %v10555_v0  ;;  %v13488_v38 = vld [vmem:[#allocation6 + $0x504] sm:$0xf] }
  0x87   : > { %v13480_v11 = vld [vmem:[#allocation6 + $0x4bc] sm:$0xf0]  ;;  %v13744_v43 = vld [vmem:[#allocation6 + $0xd04] sm:$0xf] }
  0x88   : > { %v10297_v12 = vld [vmem:[#allocation6 + $0x880] sm:$0xf]  ;;  %v9786_v19 = vor.u32 %v13480_v11, %v9785_v9  ;;  %3401 = vmatpush.bf16.msra.mxu0 %v9274_v16  ;;  %v10046_v9 = vor.u32 %v13536_v60, %v10043_v61  ;;  %v13392_v11 = vld [vmem:[#allocation6 + $0x204] sm:$0xf] }
  0x89   : > { %v13608_v13 = vld [vmem:[#allocation6 + $0x8bc] sm:$0xf0]  ;;  %v9979_v16 = vld [vmem:[#allocation6 + $0x640] sm:$0xf0] }
  0x8a   : > { %v10809_v14 = vld [vmem:[#allocation6 + $0xc80] sm:$0xf]  ;;  %v10298_v20 = vor.u32 %v13608_v13, %v10297_v12  ;;  %3414 = vmatpush.bf16.msra.mxu1 %v9786_v19  ;;  %v9467_v12 = vld [vmem:[#allocation6 + $0x240] sm:$0xf0] }
  0x8b   : > { %v13736_v15 = vld [vmem:[#allocation6 + $0xcbc] sm:$0xf0]  ;;  %v13520_v13 = vld [vmem:[#allocation6 + $0x604] sm:$0xf] }
  0x8c   : > { %v9209_v17 = vld [vmem:[#allocation6] sm:$0xf]  ;;  %v10810_v24 = vor.u32 %v13736_v15, %v10809_v14  ;;  %3427 = vmatpush.bf16.msra.mxu2 %v10298_v20  ;;  %v15098_v14 = vpack.c.bf16 %v312_v6, %v312_v6  ;;  %v11070_v15 = vor.u32 %v13792_v3, %v11067_v4  ;;  %v13776_v19 = vld [vmem:[#allocation6 + $0xe04] sm:$0xf] }
  0x8d   : > { %v13336_v18 = vld [vmem:[#allocation6 + $0x3c] sm:$0xf0]  ;;  %v11003_v20 = vld [vmem:[#allocation6 + $0xe40] sm:$0xf0] }
  0x8e   : > { %v9721_v21 = vld [vmem:[#allocation6 + $0x400] sm:$0xf]  ;;  %v9210_v31 = vor.u32 %v13336_v18, %v9209_v17  ;;  %3440 = vmatpush.bf16.msra.mxu3 %v10810_v24  ;;  %v13648_v17 = vld [vmem:[#allocation6 + $0xa04] sm:$0xf] }
  0x8f   : > { %v13464_v22 = vld [vmem:[#allocation6 + $0x43c] sm:$0xf0]  ;;  %v10491_v18 = vld [vmem:[#allocation6 + $0xa40] sm:$0xf0] }
  0x90   : > { %v10233_v23 = vld [vmem:[#allocation6 + $0x800] sm:$0xf]  ;;  %v9722_v35 = vor.u32 %v13464_v22, %v9721_v21  ;;  %3402 = vmatpush.bf16.msra.mxu0 %v9210_v31  ;;  %v9470_v21 = vor.u32 %v13392_v11, %v9467_v12  ;;  %v9982_v22 = vor.u32 %v13520_v13, %v9979_v16  ;;  %v13376_v24 = vld [vmem:[#allocation6 + $0x184] sm:$0xf]  ;;  %v13577_v12 = vld [vmem:[#allocation6 + $0x7c4] sm:$0xf0] }
  0x91   : > { %v13592_v25 = vld [vmem:[#allocation6 + $0x83c] sm:$0xf0]  ;;  %v13760_v31 = vld [vmem:[#allocation6 + $0xd84] sm:$0xf]  ;;  %v10689_v13 = vld [vmem:[#allocation6 + $0xb88] sm:$0xf] }
  0x92   : > { %v10745_v26 = vld [vmem:[#allocation6 + $0xc00] sm:$0xf]  ;;  %v10234_v36 = vor.u32 %v13592_v25, %v10233_v23  ;;  %3415 = vmatpush.bf16.msra.mxu1 %v9722_v35  ;;  %v10494_v23 = vor.u32 %v13648_v17, %v10491_v18  ;;  %v9403_v25 = vld [vmem:[#allocation6 + $0x1c0] sm:$0xf0]  ;;  %v10430_v35 = vor.u32 %v13632_v29, %v10427_v30  ;;  %v11201_v18 = vld [vmem:[#allocation6 + $0xf88] sm:$0xf] }
  0x93   : > { %v13720_v27 = vld [vmem:[#allocation6 + $0xc3c] sm:$0xf0]  ;;  %3403 = vmatmul.bf16.vlgmr.msra.gmra.mxu0 %v15096_v8  ;;  %v9406_v33 = vor.u32 %v13376_v24, %v9403_v25  ;;  %v10875_v44 = vld [vmem:[#allocation6 + $0xd40] sm:$0xf0]  ;;  %v9601_v24 = vld [vmem:[#allocation6 + $0x308] sm:$0xf] }
  0x94   : > { %v10746_v39 = vor.u32 %v13720_v27, %v10745_v26  ;;  %3428 = vmatpush.bf16.msra.mxu2 %v10234_v36  ;;  %3447 = vmatpush.bf16.msrb.mxu0 %v9662_v40  ;;  %v13504_v26 = vld [vmem:[#allocation6 + $0x584] sm:$0xf]  ;;  %v11006_v27 = vor.u32 %v13776_v19, %v11003_v20  ;;  %v10878_v51 = vor.u32 %v13744_v43, %v10875_v44  ;;  %v13833_v19 = vld [vmem:[#allocation6 + $0xfc4] sm:$0xf0] }
  0x95   : > { %3416 = vmatmul.bf16.vlgmr.msra.gmra.mxu1 %v15098_v14  ;;  %v9918_v34 = vor.u32 %v13504_v26, %v9915_v28  ;;  %v13360_v36 = vld [vmem:[#allocation6 + $0x104] sm:$0xf]  ;;  %v13433_v25 = vld [vmem:[#allocation6 + $0x344] sm:$0xf0] }
  0x96   : > { %3441 = vmatpush.bf16.msra.mxu3 %v10746_v39  ;;  %3460 = vmatpush.bf16.msrb.mxu1 %v10174_v41  ;;  %v10942_v39 = vor.u32 %v13760_v31, %v10939_v32  ;;  %v9851_v40 = vld [vmem:[#allocation6 + $0x540] sm:$0xf0]  ;;  %v9342_v45 = vor.u32 %v13360_v36, %v9339_v37  ;;  %v10113_v26 = vld [vmem:[#allocation6 + $0x708] sm:$0xf] }
  0x97   : > { %3429 = vmatmul.bf16.vlgmr.msra.gmra.mxu2 %v15091_v1  ;;  %v13616_v41 = vld [vmem:[#allocation6 + $0x904] sm:$0xf]  ;;  %v13561_v28 = vld [vmem:[#allocation6 + $0x744] sm:$0xf0] }
  0x98   : > { %3473 = vmatpush.bf16.msrb.mxu2 %v10686_v42  ;;  %3448 = vmatpush.bf16.msrb.mxu0 %v9598_v53  ;;  %v10363_v42 = vld [vmem:[#allocation6 + $0x940] sm:$0xf0]  ;;  %v10625_v29 = vld [vmem:[#allocation6 + $0xb08] sm:$0xf] }
  0x99   : > { %3442 = vmatmul.bf16.vlgmr.msra.gmra.mxu3 %v15093_v5  ;;  %v10366_v47 = vor.u32 %v13616_v41, %v10363_v42  ;;  %v13344_v48 = vld [vmem:[#allocation6 + $0x84] sm:$0xf]  ;;  %v13689_v30 = vld [vmem:[#allocation6 + $0xb44] sm:$0xf0] }
  0x9a   : > { %3486 = vmatpush.bf16.msrb.mxu3 %v11198_v46  ;;  %3461 = vmatpush.bf16.msrb.mxu1 %v10110_v57  ;;  %v9854_v46 = vor.u32 %v13488_v38, %v9851_v40  ;;  %v9275_v49 = vld [vmem:[#allocation6 + $0xc0] sm:$0xf0]  ;;  %v11137_v31 = vld [vmem:[#allocation6 + $0xf08] sm:$0xf] }
  0x9b   : > { %v13472_v50 = vld [vmem:[#allocation6 + $0x484] sm:$0xf]  ;;  %v9278_v57 = vor.u32 %v13344_v48, %v9275_v49  ;;  %v13817_v32 = vld [vmem:[#allocation6 + $0xf44] sm:$0xf0] }
  0x9c   : > { %3474 = vmatpush.bf16.msrb.mxu2 %v10622_v58  ;;  %3449 = vmatpush.bf16.msrb.mxu0 %v9534_v7  ;;  %v9787_v52 = vld [vmem:[#allocation6 + $0x4c0] sm:$0xf0]  ;;  %v9665_v7 = vld [vmem:[#allocation6 + $0x388] sm:$0xf] }
  0x9d   : > { %v13600_v53 = vld [vmem:[#allocation6 + $0x884] sm:$0xf]  ;;  %v9790_v60 = vor.u32 %v13472_v50, %v9787_v52  ;;  %v9537_v36 = vld [vmem:[#allocation6 + $0x288] sm:$0xf] }
  0x9e   : > { %3487 = vmatpush.bf16.msrb.mxu3 %v11134_v62  ;;  %3462 = vmatpush.bf16.msrb.mxu1 %v10046_v9  ;;  %v10299_v54 = vld [vmem:[#allocation6 + $0x8c0] sm:$0xf0]  ;;  %v13449_v9 = vld [vmem:[#allocation6 + $0x3c4] sm:$0xf0] }
  0x9f   : > { %v13728_v55 = vld [vmem:[#allocation6 + $0xc84] sm:$0xf]  ;;  %v10302_v61 = vor.u32 %v13600_v53, %v10299_v54  ;;  %v13417_v37 = vld [vmem:[#allocation6 + $0x2c4] sm:$0xf0] }
  0xa0   : > { %3475 = vmatpush.bf16.msrb.mxu2 %v10558_v10  ;;  %3450 = vmatpush.bf16.msrb.mxu0 %v9470_v21  ;;  %v10811_v56 = vld [vmem:[#allocation6 + $0xcc0] sm:$0xf0]  ;;  %v10177_v10 = vld [vmem:[#allocation6 + $0x788] sm:$0xf]  ;;  %v9666_v21 = vor.u32 %v13449_v9, %v9665_v7 }
  0xa1   : > { %v13328_v58 = vld [vmem:[#allocation6 + $0x4] sm:$0xf]  ;;  %v10814_v2 = vor.u32 %v13728_v55, %v10811_v56  ;;  %v10049_v38 = vld [vmem:[#allocation6 + $0x688] sm:$0xf] }
  0xa2   : > { %3488 = vmatpush.bf16.msrb.mxu3 %v11070_v15  ;;  %3463 = vmatpush.bf16.msrb.mxu1 %v9982_v22  ;;  %v9211_v59 = vld [vmem:[#allocation6 + $0x40] sm:$0xf0]  ;;  %v13705_v15 = vld [vmem:[#allocation6 + $0xbc4] sm:$0xf0]  ;;  %v10178_v22 = vor.u32 %v13577_v12, %v10177_v10 }
  0xa3   : > { %v13456_v62 = vld [vmem:[#allocation6 + $0x404] sm:$0xf]  ;;  %v9214_v11 = vor.u32 %v13328_v58, %v9211_v59  ;;  %v13545_v40 = vld [vmem:[#allocation6 + $0x6c4] sm:$0xf0] }
  0xa4   : > { %3476 = vmatpush.bf16.msrb.mxu2 %v10494_v23  ;;  %3451 = vmatpush.bf16.msrb.mxu0 %v9406_v33  ;;  %v9723_v63 = vld [vmem:[#allocation6 + $0x440] sm:$0xf0]  ;;  %v10690_v23 = vor.u32 %v13705_v15, %v10689_v13  ;;  %v9602_v33 = vor.u32 %v13433_v25, %v9601_v24  ;;  %v10561_v41 = vld [vmem:[#allocation6 + $0xa88] sm:$0xf] }
  0xa5   : > { %v13584_v0 = vld [vmem:[#allocation6 + $0x804] sm:$0xf]  ;;  %v9726_v16 = vor.u32 %v13456_v62, %v9723_v63  ;;  %v13673_v42 = vld [vmem:[#allocation6 + $0xac4] sm:$0xf0] }
  0xa6   : > { %3489 = vmatpush.bf16.msrb.mxu3 %v11006_v27  ;;  %3464 = vmatpush.bf16.msrb.mxu1 %v9918_v34  ;;  %v10235_v3 = vld [vmem:[#allocation6 + $0x840] sm:$0xf0]  ;;  %v11202_v27 = vor.u32 %v13833_v19, %v11201_v18  ;;  %v10114_v34 = vor.u32 %v13561_v28, %v10113_v26  ;;  %v11073_v43 = vld [vmem:[#allocation6 + $0xe88] sm:$0xf] }
  0xa7   : > { %v13712_v4 = vld [vmem:[#allocation6 + $0xc04] sm:$0xf]  ;;  %v10238_v17 = vor.u32 %v13584_v0, %v10235_v3  ;;  %v13801_v44 = vld [vmem:[#allocation6 + $0xec4] sm:$0xf0] }
  0xa8   : > { %3477 = vmatpush.bf16.msrb.mxu2 %v10430_v35  ;;  %3452 = vmatpush.bf16.msrb.mxu0 %v9342_v45  ;;  %v10747_v6 = vld [vmem:[#allocation6 + $0xc40] sm:$0xf0]  ;;  %v10626_v35 = vor.u32 %v13689_v30, %v10625_v29  ;;  %v9538_v45 = vor.u32 %v13417_v37, %v9537_v36  ;;  %v9473_v48 = vld [vmem:[#allocation6 + $0x208] sm:$0xf] }
  0xa9   : > { %v10750_v20 = vor.u32 %v13712_v4, %v10747_v6  ;;  %v13401_v49 = vld [vmem:[#allocation6 + $0x244] sm:$0xf0] }
  0xaa   : > { %3490 = vmatpush.bf16.msrb.mxu3 %v10942_v39  ;;  %3465 = vmatpush.bf16.msrb.mxu1 %v9854_v46  ;;  %v11138_v39 = vor.u32 %v13817_v32, %v11137_v31  ;;  %v10050_v46 = vor.u32 %v13545_v40, %v10049_v38  ;;  %v9985_v50 = vld [vmem:[#allocation6 + $0x608] sm:$0xf] }
  0xab   : > { %v13529_v52 = vld [vmem:[#allocation6 + $0x644] sm:$0xf0] }
  0xac   : > { %3478 = vmatpush.bf16.msrb.mxu2 %v10366_v47  ;;  %3453 = vmatpush.bf16.msrb.mxu0 %v9278_v57  ;;  %v10562_v47 = vor.u32 %v13673_v42, %v10561_v41  ;;  %v10497_v53 = vld [vmem:[#allocation6 + $0xa08] sm:$0xf]  ;;  %v9474_v57 = vor.u32 %v13401_v49, %v9473_v48  ;;  %v9986_v58 = vor.u32 %v13529_v52, %v9985_v50  ;;  %v10179_v49 = vld [vmem:[#allocation6 + $0x7c8] sm:$0xf0] }
  0xad   : > { %v13657_v54 = vld [vmem:[#allocation6 + $0xa44] sm:$0xf0]  ;;  %v13697_v50 = vld [vmem:[#allocation6 + $0xb8c] sm:$0xf] }
  0xae   : > { %3491 = vmatpush.bf16.msrb.mxu3 %v10878_v51  ;;  %3466 = vmatpush.bf16.msrb.mxu1 %v9790_v60  ;;  %v11074_v51 = vor.u32 %v13801_v44, %v11073_v43  ;;  %v11009_v55 = vld [vmem:[#allocation6 + $0xe08] sm:$0xf]  ;;  %v10498_v59 = vor.u32 %v13657_v54, %v10497_v53  ;;  %v13825_v54 = vld [vmem:[#allocation6 + $0xf8c] sm:$0xf] }
  0xaf   : > { %v13785_v56 = vld [vmem:[#allocation6 + $0xe44] sm:$0xf0] }
  0xb0   : > { %3479 = vmatpush.bf16.msrb.mxu2 %v10302_v61  ;;  %3454 = vmatpush.bf16.msrb.mxu0 %v9214_v11  ;;  %v9409_v60 = vld [vmem:[#allocation6 + $0x188] sm:$0xf]  ;;  %v11010_v63 = vor.u32 %v13785_v56, %v11009_v55  ;;  %v11203_v55 = vld [vmem:[#allocation6 + $0xfc8] sm:$0xf0] }
  0xb1   : > { %v13385_v61 = vld [vmem:[#allocation6 + $0x1c4] sm:$0xf0] }
  0xb2   : > { %3492 = vmatpush.bf16.msrb.mxu3 %v10814_v2  ;;  %3467 = vmatpush.bf16.msrb.mxu1 %v9726_v16  ;;  %v9921_v62 = vld [vmem:[#allocation6 + $0x588] sm:$0xf]  ;;  %v9410_v7 = vor.u32 %v13385_v61, %v9409_v60  ;;  %v13425_v60 = vld [vmem:[#allocation6 + $0x30c] sm:$0xf] }
  0xb3   : > { %3455 = vmatmul.bf16.vlgmr.msrb.gmra.mxu0 %v15096_v8  ;;  %v13513_v0 = vld [vmem:[#allocation6 + $0x5c4] sm:$0xf0]  ;;  %v9603_v61 = vld [vmem:[#allocation6 + $0x348] sm:$0xf0] }
  0xb4   : > { %3480 = vmatpush.bf16.msrb.mxu2 %v10238_v17  ;;  %3499 = vmatpush.bf16.msra.mxu0 %v9666_v21  ;;  %v10433_v2 = vld [vmem:[#allocation6 + $0x988] sm:$0xf]  ;;  %v9922_v9 = vor.u32 %v13513_v0, %v9921_v62  ;;  %v13553_v62 = vld [vmem:[#allocation6 + $0x70c] sm:$0xf] }
  0xb5   : > { %3468 = vmatmul.bf16.vlgmr.msrb.gmra.mxu1 %v15098_v14  ;;  %v13641_v3 = vld [vmem:[#allocation6 + $0x9c4] sm:$0xf0]  ;;  %v10115_v0 = vld [vmem:[#allocation6 + $0x748] sm:$0xf0] }
  0xb6   : > { %3493 = vmatpush.bf16.msrb.mxu3 %v10750_v20  ;;  %3512 = vmatpush.bf16.msra.mxu1 %v10178_v22  ;;  %v10945_v4 = vld [vmem:[#allocation6 + $0xd88] sm:$0xf]  ;;  %v10434_v10 = vor.u32 %v13641_v3, %v10433_v2  ;;  %v13681_v2 = vld [vmem:[#allocation6 + $0xb0c] sm:$0xf] }
  0xb7   : > { %3481 = vmatmul.bf16.vlgmr.msrb.gmra.mxu2 %v15091_v1  ;;  %v13769_v6 = vld [vmem:[#allocation6 + $0xdc4] sm:$0xf0]  ;;  %v10627_v3 = vld [vmem:[#allocation6 + $0xb48] sm:$0xf0] }
  0xb8   : > { %3525 = vmatpush.bf16.msra.mxu2 %v10690_v23  ;;  %3500 = vmatpush.bf16.msra.mxu0 %v9602_v33  ;;  %v9345_v11 = vld [vmem:[#allocation6 + $0x108] sm:$0xf]  ;;  %v10946_v15 = vor.u32 %v13769_v6, %v10945_v4  ;;  %v13809_v4 = vld [vmem:[#allocation6 + $0xf0c] sm:$0xf] }
  0xb9   : > { %3494 = vmatmul.bf16.vlgmr.msrb.gmra.mxu3 %v15093_v5  ;;  %v13369_v12 = vld [vmem:[#allocation6 + $0x144] sm:$0xf0]  ;;  %v11139_v6 = vld [vmem:[#allocation6 + $0xf48] sm:$0xf0] }
  0xba   : > { %3538 = vmatpush.bf16.msra.mxu3 %v11202_v27  ;;  %3513 = vmatpush.bf16.msra.mxu1 %v10114_v34  ;;  %v9857_v13 = vld [vmem:[#allocation6 + $0x508] sm:$0xf]  ;;  %v9346_v21 = vor.u32 %v13369_v12, %v9345_v11  ;;  %v13409_v11 = vld [vmem:[#allocation6 + $0x28c] sm:$0xf] }
  0xbb   : > { %v13497_v16 = vld [vmem:[#allocation6 + $0x544] sm:$0xf0]  ;;  %v9539_v12 = vld [vmem:[#allocation6 + $0x2c8] sm:$0xf0] }
  0xbc   : > { %3526 = vmatpush.bf16.msra.mxu2 %v10626_v35  ;;  %3501 = vmatpush.bf16.msra.mxu0 %v9538_v45  ;;  %v10369_v17 = vld [vmem:[#allocation6 + $0x908] sm:$0xf]  ;;  %v9858_v22 = vor.u32 %v13497_v16, %v9857_v13  ;;  %v13441_v45 = vld [vmem:[#allocation6 + $0x38c] sm:$0xf] }
  0xbd   : > { %v13625_v18 = vld [vmem:[#allocation6 + $0x944] sm:$0xf0]  ;;  %v13537_v13 = vld [vmem:[#allocation6 + $0x68c] sm:$0xf] }
  0xbe   : > { %3539 = vmatpush.bf16.msra.mxu3 %v11138_v39  ;;  %3514 = vmatpush.bf16.msra.mxu1 %v10050_v46  ;;  %v10881_v19 = vld [vmem:[#allocation6 + $0xd08] sm:$0xf]  ;;  %v10370_v23 = vor.u32 %v13625_v18, %v10369_v17  ;;  %v9667_v46 = vld [vmem:[#allocation6 + $0x3c8] sm:$0xf0] }
  0xbf   : > { %v13753_v20 = vld [vmem:[#allocation6 + $0xd44] sm:$0xf0]  ;;  %v10051_v16 = vld [vmem:[#allocation6 + $0x6c8] sm:$0xf0] }
  0xc0   : > { %3527 = vmatpush.bf16.msra.mxu2 %v10562_v47  ;;  %3502 = vmatpush.bf16.msra.mxu0 %v9474_v57  ;;  %v9281_v24 = vld [vmem:[#allocation6 + $0x88] sm:$0xf]  ;;  %v10882_v27 = vor.u32 %v13753_v20, %v10881_v19  ;;  %v13569_v47 = vld [vmem:[#allocation6 + $0x78c] sm:$0xf]  ;;  %v9670_v57 = vor.u32 %v13441_v45, %v9667_v46 }
  0xc1   : > { %v13353_v25 = vld [vmem:[#allocation6 + $0xc4] sm:$0xf0]  ;;  %v13665_v17 = vld [vmem:[#allocation6 + $0xa8c] sm:$0xf] }
  0xc2   : > { %3540 = vmatpush.bf16.msra.mxu3 %v11074_v51  ;;  %3515 = vmatpush.bf16.msra.mxu1 %v9986_v58  ;;  %v9793_v26 = vld [vmem:[#allocation6 + $0x488] sm:$0xf]  ;;  %v9282_v33 = vor.u32 %v13353_v25, %v9281_v24  ;;  %v10691_v51 = vld [vmem:[#allocation6 + $0xbc8] sm:$0xf0]  ;;  %v10182_v58 = vor.u32 %v13569_v47, %v10179_v49 }
  0xc3   : > { %v13481_v28 = vld [vmem:[#allocation6 + $0x4c4] sm:$0xf0]  ;;  %v10563_v18 = vld [vmem:[#allocation6 + $0xac8] sm:$0xf0] }
  0xc4   : > { %3528 = vmatpush.bf16.msra.mxu2 %v10498_v59  ;;  %3503 = vmatpush.bf16.msra.mxu0 %v9410_v7  ;;  %v10305_v29 = vld [vmem:[#allocation6 + $0x888] sm:$0xf]  ;;  %v9794_v36 = vor.u32 %v13481_v28, %v9793_v26  ;;  %v10694_v59 = vor.u32 %v13697_v50, %v10691_v51  ;;  %v9606_v7 = vor.u32 %v13425_v60, %v9603_v61  ;;  %v13793_v19 = vld [vmem:[#allocation6 + $0xe8c] sm:$0xf] }
  0xc5   : > { %v13609_v30 = vld [vmem:[#allocation6 + $0x8c4] sm:$0xf0]  ;;  %v11075_v20 = vld [vmem:[#allocation6 + $0xec8] sm:$0xf0] }
  0xc6   : > { %3541 = vmatpush.bf16.msra.mxu3 %v11010_v63  ;;  %3516 = vmatpush.bf16.msra.mxu1 %v9922_v9  ;;  %v10817_v31 = vld [vmem:[#allocation6 + $0xc88] sm:$0xf]  ;;  %v10306_v37 = vor.u32 %v13609_v30, %v10305_v29  ;;  %v11206_v63 = vor.u32 %v13825_v54, %v11203_v55  ;;  %v10118_v9 = vor.u32 %v13553_v62, %v10115_v0  ;;  %v13393_v24 = vld [vmem:[#allocation6 + $0x20c] sm:$0xf] }
  0xc7   : > { %v13737_v32 = vld [vmem:[#allocation6 + $0xcc4] sm:$0xf0]  ;;  %v9475_v25 = vld [vmem:[#allocation6 + $0x248] sm:$0xf0] }
  0xc8   : > { %3529 = vmatpush.bf16.msra.mxu2 %v10434_v10  ;;  %3504 = vmatpush.bf16.msra.mxu0 %v9346_v21  ;;  %v9217_v34 = vld [vmem:[#allocation6 + $0x8] sm:$0xf]  ;;  %v10818_v41 = vor.u32 %v13737_v32, %v10817_v31  ;;  %v10630_v10 = vor.u32 %v13681_v2, %v10627_v3  ;;  %v9542_v21 = vor.u32 %v13409_v11, %v9539_v12  ;;  %v13521_v26 = vld [vmem:[#allocation6 + $0x60c] sm:$0xf] }
  0xc9   : > { %v13337_v35 = vld [vmem:[#allocation6 + $0x44] sm:$0xf0]  ;;  %v9987_v28 = vld [vmem:[#allocation6 + $0x648] sm:$0xf0] }
  0xca   : > { %3542 = vmatpush.bf16.msra.mxu3 %v10946_v15  ;;  %3517 = vmatpush.bf16.msra.mxu1 %v9858_v22  ;;  %v9729_v38 = vld [vmem:[#allocation6 + $0x408] sm:$0xf]  ;;  %v9218_v48 = vor.u32 %v13337_v35, %v9217_v34  ;;  %v11142_v15 = vor.u32 %v13809_v4, %v11139_v6  ;;  %v10054_v22 = vor.u32 %v13537_v13, %v10051_v16  ;;  %v13649_v29 = vld [vmem:[#allocation6 + $0xa0c] sm:$0xf] }
  0xcb   : > { %v13465_v39 = vld [vmem:[#allocation6 + $0x444] sm:$0xf0]  ;;  %v10499_v30 = vld [vmem:[#allocation6 + $0xa48] sm:$0xf0]  ;;  %v9990_v34 = vor.u32 %v13521_v26, %v9987_v28  ;;  %v10697_v26 = vld [vmem:[#allocation6 + $0xb90] sm:$0xf] }
  0xcc   : > { %3530 = vmatpush.bf16.msra.mxu2 %v10370_v23  ;;  %v10241_v40 = vld [vmem:[#allocation6 + $0x808] sm:$0xf]  ;;  %3505 = vmatpush.bf16.msra.mxu0 %v9282_v33  ;;  %v9730_v52 = vor.u32 %v13465_v39, %v9729_v38  ;;  %v10566_v23 = vor.u32 %v13665_v17, %v10563_v18  ;;  %v13777_v31 = vld [vmem:[#allocation6 + $0xe0c] sm:$0xf]  ;;  %v9478_v33 = vor.u32 %v13393_v24, %v9475_v25  ;;  %v13578_v25 = vld [vmem:[#allocation6 + $0x7cc] sm:$0xf0] }
  0xcd   : > { %v13593_v42 = vld [vmem:[#allocation6 + $0x844] sm:$0xf0]  ;;  %v11011_v32 = vld [vmem:[#allocation6 + $0xe48] sm:$0xf0]  ;;  %v10502_v35 = vor.u32 %v13649_v29, %v10499_v30  ;;  %v11209_v30 = vld [vmem:[#allocation6 + $0xf90] sm:$0xf] }
  0xce   : > { %3543 = vmatpush.bf16.msra.mxu3 %v10882_v27  ;;  %v10753_v43 = vld [vmem:[#allocation6 + $0xc08] sm:$0xf]  ;;  %3518 = vmatpush.bf16.msra.mxu1 %v9794_v36  ;;  %v10242_v53 = vor.u32 %v13593_v42, %v10241_v40  ;;  %v11078_v27 = vor.u32 %v13793_v19, %v11075_v20  ;;  %v13377_v36 = vld [vmem:[#allocation6 + $0x18c] sm:$0xf]  ;;  %v11014_v39 = vor.u32 %v13777_v31, %v11011_v32  ;;  %v13834_v31 = vld [vmem:[#allocation6 + $0xfcc] sm:$0xf0] }
  0xcf   : > { %v13721_v44 = vld [vmem:[#allocation6 + $0xc44] sm:$0xf0]  ;;  %v13505_v38 = vld [vmem:[#allocation6 + $0x58c] sm:$0xf] }
  0xd0   : > { %3531 = vmatpush.bf16.msra.mxu2 %v10306_v37  ;;  %v10754_v56 = vor.u32 %v13721_v44, %v10753_v43  ;;  %3506 = vmatpush.bf16.msra.mxu0 %v9218_v48  ;;  %v9411_v37 = vld [vmem:[#allocation6 + $0x1c8] sm:$0xf0] }
  0xd1   : > { %v9923_v40 = vld [vmem:[#allocation6 + $0x5c8] sm:$0xf0]  ;;  %v9414_v45 = vor.u32 %v13377_v36, %v9411_v37  ;;  %v9609_v36 = vld [vmem:[#allocation6 + $0x310] sm:$0xf] }
  0xd2   : > { %3544 = vmatpush.bf16.msra.mxu3 %v10818_v41  ;;  %3519 = vmatpush.bf16.msra.mxu1 %v9730_v52  ;;  %v13633_v41 = vld [vmem:[#allocation6 + $0x98c] sm:$0xf]  ;;  %v9926_v46 = vor.u32 %v13505_v38, %v9923_v40  ;;  %v13434_v37 = vld [vmem:[#allocation6 + $0x34c] sm:$0xf0] }
  0xd3   : > { %3507 = vmatmul.bf16.vlgmr.msra.gmra.mxu0 %v15096_v8  ;;  %v10435_v42 = vld [vmem:[#allocation6 + $0x9c8] sm:$0xf0]  ;;  %v10121_v38 = vld [vmem:[#allocation6 + $0x710] sm:$0xf] }
  0xd4   : > { %3532 = vmatpush.bf16.msra.mxu2 %v10242_v53  ;;  %3551 = vmatpush.bf16.msrb.mxu0 %v9670_v57  ;;  %v13761_v43 = vld [vmem:[#allocation6 + $0xd8c] sm:$0xf]  ;;  %v10438_v47 = vor.u32 %v13633_v41, %v10435_v42  ;;  %v13562_v40 = vld [vmem:[#allocation6 + $0x74c] sm:$0xf0] }
  0xd5   : > { %3520 = vmatmul.bf16.vlgmr.msra.gmra.mxu1 %v15098_v14  ;;  %v10947_v44 = vld [vmem:[#allocation6 + $0xdc8] sm:$0xf0]  ;;  %v10633_v41 = vld [vmem:[#allocation6 + $0xb10] sm:$0xf] }
  0xd6   : > { %3545 = vmatpush.bf16.msra.mxu3 %v10754_v56  ;;  %3564 = vmatpush.bf16.msrb.mxu1 %v10182_v58  ;;  %v13361_v48 = vld [vmem:[#allocation6 + $0x10c] sm:$0xf]  ;;  %v10950_v51 = vor.u32 %v13761_v43, %v10947_v44  ;;  %v13690_v42 = vld [vmem:[#allocation6 + $0xb4c] sm:$0xf0] }
  0xd7   : > { %3533 = vmatmul.bf16.vlgmr.msra.gmra.mxu2 %v15091_v1  ;;  %v9347_v49 = vld [vmem:[#allocation6 + $0x148] sm:$0xf0]  ;;  %v11145_v43 = vld [vmem:[#allocation6 + $0xf10] sm:$0xf] }
  0xd8   : > { %3577 = vmatpush.bf16.msrb.mxu2 %v10694_v59  ;;  %3552 = vmatpush.bf16.msrb.mxu0 %v9606_v7  ;;  %v13489_v50 = vld [vmem:[#allocation6 + $0x50c] sm:$0xf]  ;;  %v9350_v57 = vor.u32 %v13361_v48, %v9347_v49  ;;  %v13818_v44 = vld [vmem:[#allocation6 + $0xf4c] sm:$0xf0] }
  0xd9   : > { %3546 = vmatmul.bf16.vlgmr.msra.gmra.mxu3 %v15093_v5  ;;  %v9859_v52 = vld [vmem:[#allocation6 + $0x548] sm:$0xf0]  ;;  %v9545_v48 = vld [vmem:[#allocation6 + $0x290] sm:$0xf] }
  0xda   : > { %3590 = vmatpush.bf16.msrb.mxu3 %v11206_v63  ;;  %3565 = vmatpush.bf16.msrb.mxu1 %v10118_v9  ;;  %v13617_v53 = vld [vmem:[#allocation6 + $0x90c] sm:$0xf]  ;;  %v9862_v58 = vor.u32 %v13489_v50, %v9859_v52  ;;  %v13418_v49 = vld [vmem:[#allocation6 + $0x2cc] sm:$0xf0] }
  0xdb   : > { %v10371_v54 = vld [vmem:[#allocation6 + $0x948] sm:$0xf0]  ;;  %v10057_v50 = vld [vmem:[#allocation6 + $0x690] sm:$0xf] }
  0xdc   : > { %3578 = vmatpush.bf16.msrb.mxu2 %v10630_v10  ;;  %3553 = vmatpush.bf16.msrb.mxu0 %v9542_v21  ;;  %v13745_v55 = vld [vmem:[#allocation6 + $0xd0c] sm:$0xf]  ;;  %v10374_v59 = vor.u32 %v13617_v53, %v10371_v54  ;;  %v9673_v21 = vld [vmem:[#allocation6 + $0x390] sm:$0xf] }
  0xdd   : > { %v10883_v56 = vld [vmem:[#allocation6 + $0xd48] sm:$0xf0]  ;;  %v13546_v52 = vld [vmem:[#allocation6 + $0x6cc] sm:$0xf0] }
  0xde   : > { %3591 = vmatpush.bf16.msrb.mxu3 %v11142_v15  ;;  %3566 = vmatpush.bf16.msrb.mxu1 %v10054_v22  ;;  %v13345_v60 = vld [vmem:[#allocation6 + $0x8c] sm:$0xf]  ;;  %v10886_v63 = vor.u32 %v13745_v55, %v10883_v56  ;;  %v13450_v22 = vld [vmem:[#allocation6 + $0x3cc] sm:$0xf0] }
  0xdf   : > { %v9283_v61 = vld [vmem:[#allocation6 + $0xc8] sm:$0xf0]  ;;  %v10569_v53 = vld [vmem:[#allocation6 + $0xa90] sm:$0xf] }
  0xe0   : > { %3579 = vmatpush.bf16.msrb.mxu2 %v10566_v23  ;;  %3554 = vmatpush.bf16.msrb.mxu0 %v9478_v33  ;;  %v13473_v62 = vld [vmem:[#allocation6 + $0x48c] sm:$0xf]  ;;  %v9286_v7 = vor.u32 %v13345_v60, %v9283_v61  ;;  %v10185_v23 = vld [vmem:[#allocation6 + $0x790] sm:$0xf]  ;;  %v9674_v33 = vor.u32 %v13450_v22, %v9673_v21 }
  0xe1   : > { %v9795_v0 = vld [vmem:[#allocation6 + $0x4c8] sm:$0xf0]  ;;  %v13674_v54 = vld [vmem:[#allocation6 + $0xacc] sm:$0xf0] }
  0xe2   : > { %3592 = vmatpush.bf16.msrb.mxu3 %v11078_v27  ;;  %3567 = vmatpush.bf16.msrb.mxu1 %v9990_v34  ;;  %v13601_v2 = vld [vmem:[#allocation6 + $0x88c] sm:$0xf]  ;;  %v9798_v11 = vor.u32 %v13473_v62, %v9795_v0  ;;  %v13706_v27 = vld [vmem:[#allocation6 + $0xbcc] sm:$0xf0]  ;;  %v10186_v34 = vor.u32 %v13578_v25, %v10185_v23 }
  0xe3   : > { %v10307_v3 = vld [vmem:[#allocation6 + $0x8c8] sm:$0xf0]  ;;  %v11081_v55 = vld [vmem:[#allocation6 + $0xe90] sm:$0xf] }
  0xe4   : > { %3580 = vmatpush.bf16.msrb.mxu2 %v10502_v35  ;;  %3555 = vmatpush.bf16.msrb.mxu0 %v9414_v45  ;;  %v13729_v4 = vld [vmem:[#allocation6 + $0xc8c] sm:$0xf]  ;;  %v10310_v12 = vor.u32 %v13601_v2, %v10307_v3  ;;  %v10698_v35 = vor.u32 %v13706_v27, %v10697_v26  ;;  %v9610_v45 = vor.u32 %v13434_v37, %v9609_v36  ;;  %v13802_v56 = vld [vmem:[#allocation6 + $0xecc] sm:$0xf0] }
  0xe5   : > { %v10819_v6 = vld [vmem:[#allocation6 + $0xcc8] sm:$0xf0]  ;;  %v9481_v60 = vld [vmem:[#allocation6 + $0x210] sm:$0xf] }
  0xe6   : > { %3593 = vmatpush.bf16.msrb.mxu3 %v11014_v39  ;;  %3568 = vmatpush.bf16.msrb.mxu1 %v9926_v46  ;;  %v13329_v9 = vld [vmem:[#allocation6 + $0xc] sm:$0xf]  ;;  %v10822_v17 = vor.u32 %v13729_v4, %v10819_v6  ;;  %v11210_v39 = vor.u32 %v13834_v31, %v11209_v30  ;;  %v10122_v46 = vor.u32 %v13562_v40, %v10121_v38  ;;  %v13402_v61 = vld [vmem:[#allocation6 + $0x24c] sm:$0xf0] }
  0xe7   : > { %v9219_v10 = vld [vmem:[#allocation6 + $0x48] sm:$0xf0]  ;;  %v9993_v62 = vld [vmem:[#allocation6 + $0x610] sm:$0xf] }
  0xe8   : > { %3581 = vmatpush.bf16.msrb.mxu2 %v10438_v47  ;;  %3556 = vmatpush.bf16.msrb.mxu0 %v9350_v57  ;;  %v13457_v13 = vld [vmem:[#allocation6 + $0x40c] sm:$0xf]  ;;  %v9222_v24 = vor.u32 %v13329_v9, %v9219_v10  ;;  %v10634_v47 = vor.u32 %v13690_v42, %v10633_v41  ;;  %v9546_v57 = vor.u32 %v13418_v49, %v9545_v48  ;;  %v13530_v0 = vld [vmem:[#allocation6 + $0x64c] sm:$0xf0] }
  0xe9   : > { %v9731_v15 = vld [vmem:[#allocation6 + $0x448] sm:$0xf0]  ;;  %v10505_v2 = vld [vmem:[#allocation6 + $0xa10] sm:$0xf]  ;;  %v9994_v9 = vor.u32 %v13530_v0, %v9993_v62  ;;  %v13698_v62 = vld [vmem:[#allocation6 + $0xb94] sm:$0xf] }
  0xea   : > { %3594 = vmatpush.bf16.msrb.mxu3 %v10950_v51  ;;  %3569 = vmatpush.bf16.msrb.mxu1 %v9862_v58  ;;  %v13585_v16 = vld [vmem:[#allocation6 + $0x80c] sm:$0xf]  ;;  %v9734_v28 = vor.u32 %v13457_v13, %v9731_v15  ;;  %v11146_v51 = vor.u32 %v13818_v44, %v11145_v43  ;;  %v10058_v58 = vor.u32 %v13546_v52, %v10057_v50  ;;  %v13658_v3 = vld [vmem:[#allocation6 + $0xa4c] sm:$0xf0] }
  0xeb   : > { %v10243_v18 = vld [vmem:[#allocation6 + $0x848] sm:$0xf0]  ;;  %v11017_v4 = vld [vmem:[#allocation6 + $0xe10] sm:$0xf]  ;;  %v10506_v10 = vor.u32 %v13658_v3, %v10505_v2  ;;  %v13826_v3 = vld [vmem:[#allocation6 + $0xf94] sm:$0xf] }
  0xec   : > { %3582 = vmatpush.bf16.msrb.mxu2 %v10374_v59  ;;  %v13713_v19 = vld [vmem:[#allocation6 + $0xc0c] sm:$0xf]  ;;  %3557 = vmatpush.bf16.msrb.mxu0 %v9286_v7  ;;  %v10246_v29 = vor.u32 %v13585_v16, %v10243_v18  ;;  %v10570_v59 = vor.u32 %v13674_v54, %v10569_v53  ;;  %v13786_v6 = vld [vmem:[#allocation6 + $0xe4c] sm:$0xf0]  ;;  %v9482_v7 = vor.u32 %v13402_v61, %v9481_v60  ;;  %v10187_v61 = vld [vmem:[#allocation6 + $0x7d0] sm:$0xf0] }
  0xed   : > { %v10755_v20 = vld [vmem:[#allocation6 + $0xc48] sm:$0xf0]  ;;  %v9929_v13 = vld [vmem:[#allocation6 + $0x590] sm:$0xf]  ;;  %v11018_v15 = vor.u32 %v13786_v6, %v11017_v4  ;;  %v11211_v4 = vld [vmem:[#allocation6 + $0xfd0] sm:$0xf0] }
  0xee   : > { %3595 = vmatpush.bf16.msrb.mxu3 %v10886_v63  ;;  %3570 = vmatpush.bf16.msrb.mxu1 %v9798_v11  ;;  %v10758_v32 = vor.u32 %v13713_v19, %v10755_v20  ;;  %v11082_v63 = vor.u32 %v13802_v56, %v11081_v55  ;;  %v9417_v11 = vld [vmem:[#allocation6 + $0x190] sm:$0xf] }
  0xef   : > { %v13514_v16 = vld [vmem:[#allocation6 + $0x5cc] sm:$0xf0] }
  0xf0   : > { %3583 = vmatpush.bf16.msrb.mxu2 %v10310_v12  ;;  %3558 = vmatpush.bf16.msrb.mxu0 %v9222_v24  ;;  %v13386_v12 = vld [vmem:[#allocation6 + $0x1cc] sm:$0xf0]  ;;  %v9930_v22 = vor.u32 %v13514_v16, %v9929_v13  ;;  %v13554_v13 = vld [vmem:[#allocation6 + $0x714] sm:$0xf] }
  0xf1   : > { %v13642_v18 = vld [vmem:[#allocation6 + $0x9cc] sm:$0xf0]  ;;  %v9418_v21 = vor.u32 %v13386_v12, %v9417_v11  ;;  %v13426_v11 = vld [vmem:[#allocation6 + $0x314] sm:$0xf] }
  0xf2   : > { %3596 = vmatpush.bf16.msrb.mxu3 %v10822_v17  ;;  %3571 = vmatpush.bf16.msrb.mxu1 %v9734_v28  ;;  %v10441_v17 = vld [vmem:[#allocation6 + $0x990] sm:$0xf]  ;;  %v9611_v12 = vld [vmem:[#allocation6 + $0x350] sm:$0xf0] }
  0xf3   : > { %3559 = vmatmul.bf16.vlgmr.msrb.gmra.mxu0 %v15096_v8  ;;  %v10953_v19 = vld [vmem:[#allocation6 + $0xd90] sm:$0xf]  ;;  %v10442_v23 = vor.u32 %v13642_v18, %v10441_v17  ;;  %v10123_v16 = vld [vmem:[#allocation6 + $0x750] sm:$0xf0] }
  0xf4   : > { %3584 = vmatpush.bf16.msrb.mxu2 %v10246_v29  ;;  %3603 = vmatpush.bf16.msra.mxu0 %v9674_v33  ;;  %v13770_v20 = vld [vmem:[#allocation6 + $0xdcc] sm:$0xf0]  ;;  %v13682_v17 = vld [vmem:[#allocation6 + $0xb14] sm:$0xf] }
  0xf5   : > { %3572 = vmatmul.bf16.vlgmr.msrb.gmra.mxu1 %v15098_v14  ;;  %v9353_v24 = vld [vmem:[#allocation6 + $0x110] sm:$0xf]  ;;  %v10954_v27 = vor.u32 %v13770_v20, %v10953_v19  ;;  %v10635_v18 = vld [vmem:[#allocation6 + $0xb50] sm:$0xf0] }
  0xf6   : > { %3597 = vmatpush.bf16.msrb.mxu3 %v10758_v32  ;;  %3616 = vmatpush.bf16.msra.mxu1 %v10186_v34  ;;  %v13370_v25 = vld [vmem:[#allocation6 + $0x14c] sm:$0xf0]  ;;  %v13810_v19 = vld [vmem:[#allocation6 + $0xf14] sm:$0xf] }
  0xf7   : > { %3585 = vmatmul.bf16.vlgmr.msrb.gmra.mxu2 %v15091_v1  ;;  %v9865_v26 = vld [vmem:[#allocation6 + $0x510] sm:$0xf]  ;;  %v9354_v33 = vor.u32 %v13370_v25, %v9353_v24  ;;  %v11147_v20 = vld [vmem:[#allocation6 + $0xf50] sm:$0xf0] }
  0xf8   : > { %3629 = vmatpush.bf16.msra.mxu2 %v10698_v35  ;;  %3604 = vmatpush.bf16.msra.mxu0 %v9610_v45  ;;  %v13498_v28 = vld [vmem:[#allocation6 + $0x54c] sm:$0xf0]  ;;  %v13410_v24 = vld [vmem:[#allocation6 + $0x294] sm:$0xf] }
  0xf9   : > { %3598 = vmatmul.bf16.vlgmr.msrb.gmra.mxu3 %v15093_v5  ;;  %v10377_v29 = vld [vmem:[#allocation6 + $0x910] sm:$0xf]  ;;  %v9866_v34 = vor.u32 %v13498_v28, %v9865_v26  ;;  %v9547_v25 = vld [vmem:[#allocation6 + $0x2d0] sm:$0xf0] }
  0xfa   : > { %3642 = vmatpush.bf16.msra.mxu3 %v11210_v39  ;;  %3617 = vmatpush.bf16.msra.mxu1 %v10122_v46  ;;  %v13626_v30 = vld [vmem:[#allocation6 + $0x94c] sm:$0xf0]  ;;  %v13538_v26 = vld [vmem:[#allocation6 + $0x694] sm:$0xf] }
  0xfb   : > { %v10889_v31 = vld [vmem:[#allocation6 + $0xd10] sm:$0xf]  ;;  %v10378_v35 = vor.u32 %v13626_v30, %v10377_v29  ;;  %v10059_v28 = vld [vmem:[#allocation6 + $0x6d0] sm:$0xf0] }
  0xfc   : > { %3630 = vmatpush.bf16.msra.mxu2 %v10634_v47  ;;  %3605 = vmatpush.bf16.msra.mxu0 %v9546_v57  ;;  %v13754_v32 = vld [vmem:[#allocation6 + $0xd4c] sm:$0xf0]  ;;  %v13442_v57 = vld [vmem:[#allocation6 + $0x394] sm:$0xf] }
  0xfd   : > { %v9289_v36 = vld [vmem:[#allocation6 + $0x90] sm:$0xf]  ;;  %v10890_v39 = vor.u32 %v13754_v32, %v10889_v31  ;;  %v13666_v29 = vld [vmem:[#allocation6 + $0xa94] sm:$0xf] }
  0xfe   : > { %3643 = vmatpush.bf16.msra.mxu3 %v11146_v51  ;;  %3618 = vmatpush.bf16.msra.mxu1 %v10058_v58  ;;  %v13354_v37 = vld [vmem:[#allocation6 + $0xcc] sm:$0xf0]  ;;  %v9675_v58 = vld [vmem:[#allocation6 + $0x3d0] sm:$0xf0] }
  0xff   : > { %v9801_v38 = vld [vmem:[#allocation6 + $0x490] sm:$0xf]  ;;  %v9290_v45 = vor.u32 %v13354_v37, %v9289_v36  ;;  %v10571_v30 = vld [vmem:[#allocation6 + $0xad0] sm:$0xf0] }
 0x100   : > { %3631 = vmatpush.bf16.msra.mxu2 %v10570_v59  ;;  %3606 = vmatpush.bf16.msra.mxu0 %v9482_v7  ;;  %v13482_v40 = vld [vmem:[#allocation6 + $0x4cc] sm:$0xf0]  ;;  %v13570_v59 = vld [vmem:[#allocation6 + $0x794] sm:$0xf]  ;;  %v9678_v7 = vor.u32 %v13442_v57, %v9675_v58 }
 0x101   : > { %v10313_v41 = vld [vmem:[#allocation6 + $0x890] sm:$0xf]  ;;  %v9802_v48 = vor.u32 %v13482_v40, %v9801_v38  ;;  %v13794_v31 = vld [vmem:[#allocation6 + $0xe94] sm:$0xf] }
 0x102   : > { %3644 = vmatpush.bf16.msra.mxu3 %v11082_v63  ;;  %3619 = vmatpush.bf16.msra.mxu1 %v9994_v9  ;;  %v13610_v42 = vld [vmem:[#allocation6 + $0x8cc] sm:$0xf0]  ;;  %v10699_v63 = vld [vmem:[#allocation6 + $0xbd0] sm:$0xf0]  ;;  %v10190_v9 = vor.u32 %v13570_v59, %v10187_v61 }
 0x103   : > { %v10825_v43 = vld [vmem:[#allocation6 + $0xc90] sm:$0xf]  ;;  %v10314_v49 = vor.u32 %v13610_v42, %v10313_v41  ;;  %v11083_v32 = vld [vmem:[#allocation6 + $0xed0] sm:$0xf0] }
 0x104   : > { %3632 = vmatpush.bf16.msra.mxu2 %v10506_v10  ;;  %3607 = vmatpush.bf16.msra.mxu0 %v9418_v21  ;;  %v13738_v44 = vld [vmem:[#allocation6 + $0xccc] sm:$0xf0]  ;;  %v10702_v10 = vor.u32 %v13698_v62, %v10699_v63  ;;  %v9614_v21 = vor.u32 %v13426_v11, %v9611_v12  ;;  %v13394_v36 = vld [vmem:[#allocation6 + $0x214] sm:$0xf] }
 0x105   : > { %v9225_v46 = vld [vmem:[#allocation6 + $0x10] sm:$0xf]  ;;  %v10826_v53 = vor.u32 %v13738_v44, %v10825_v43  ;;  %v9483_v37 = vld [vmem:[#allocation6 + $0x250] sm:$0xf0] }
 0x106   : > { %3645 = vmatpush.bf16.msra.mxu3 %v11018_v15  ;;  %3620 = vmatpush.bf16.msra.mxu1 %v9930_v22  ;;  %v13338_v47 = vld [vmem:[#allocation6 + $0x4c] sm:$0xf0]  ;;  %v11214_v15 = vor.u32 %v13826_v3, %v11211_v4  ;;  %v10126_v22 = vor.u32 %v13554_v13, %v10123_v16  ;;  %v13522_v38 = vld [vmem:[#allocation6 + $0x614] sm:$0xf] }
 0x107   : > { %v9737_v50 = vld [vmem:[#allocation6 + $0x410] sm:$0xf]  ;;  %v9226_v60 = vor.u32 %v13338_v47, %v9225_v46  ;;  %v9995_v40 = vld [vmem:[#allocation6 + $0x650] sm:$0xf0] }
 0x108   : > { %3633 = vmatpush.bf16.msra.mxu2 %v10442_v23  ;;  %3608 = vmatpush.bf16.msra.mxu0 %v9354_v33  ;;  %v13466_v51 = vld [vmem:[#allocation6 + $0x44c] sm:$0xf0]  ;;  %v10638_v23 = vor.u32 %v13682_v17, %v10635_v18  ;;  %v9550_v33 = vor.u32 %v13410_v24, %v9547_v25  ;;  %v13650_v41 = vld [vmem:[#allocation6 + $0xa14] sm:$0xf]  ;;  %v9998_v46 = vor.u32 %v13522_v38, %v9995_v40 }
 0x109   : > { %v10249_v52 = vld [vmem:[#allocation6 + $0x810] sm:$0xf]  ;;  %v9738_v0 = vor.u32 %v13466_v51, %v9737_v50  ;;  %v10507_v42 = vld [vmem:[#allocation6 + $0xa50] sm:$0xf0] }
 0x10a   : > { %3646 = vmatpush.bf16.msra.mxu3 %v10954_v27  ;;  %3621 = vmatpush.bf16.msra.mxu1 %v9866_v34  ;;  %v13594_v54 = vld [vmem:[#allocation6 + $0x84c] sm:$0xf0]  ;;  %v11150_v27 = vor.u32 %v13810_v19, %v11147_v20  ;;  %v10062_v34 = vor.u32 %v13538_v26, %v10059_v28  ;;  %v13778_v43 = vld [vmem:[#allocation6 + $0xe14] sm:$0xf]  ;;  %v10510_v47 = vor.u32 %v13650_v41, %v10507_v42  ;;  %v9681_v42 = vld [vmem:[#allocation6 + $0x398] sm:$0xf] }
 0x10b   : > { %v10761_v55 = vld [vmem:[#allocation6 + $0xc10] sm:$0xf]  ;;  %v10250_v2 = vor.u32 %v13594_v54, %v10249_v52  ;;  %v11019_v44 = vld [vmem:[#allocation6 + $0xe50] sm:$0xf0] }
 0x10c   : > { %3634 = vmatpush.bf16.msra.mxu2 %v10378_v35  ;;  %v13722_v56 = vld [vmem:[#allocation6 + $0xc4c] sm:$0xf0]  ;;  %3609 = vmatpush.bf16.msra.mxu0 %v9290_v45  ;;  %v10574_v35 = vor.u32 %v13666_v29, %v10571_v30  ;;  %v9486_v45 = vor.u32 %v13394_v36, %v9483_v37  ;;  %v13506_v50 = vld [vmem:[#allocation6 + $0x594] sm:$0xf]  ;;  %v11022_v51 = vor.u32 %v13778_v43, %v11019_v44  ;;  %v13451_v43 = vld [vmem:[#allocation6 + $0x3d4] sm:$0xf0] }
 0x10d   : > { %v10762_v6 = vor.u32 %v13722_v56, %v10761_v55  ;;  %v9931_v52 = vld [vmem:[#allocation6 + $0x5d0] sm:$0xf0]  ;;  %v10193_v44 = vld [vmem:[#allocation6 + $0x798] sm:$0xf] }
 0x10e   : > { %3647 = vmatpush.bf16.msra.mxu3 %v10890_v39  ;;  %3622 = vmatpush.bf16.msra.mxu1 %v9802_v48  ;;  %v11086_v39 = vor.u32 %v13794_v31, %v11083_v32  ;;  %v13378_v48 = vld [vmem:[#allocation6 + $0x194] sm:$0xf] }
 0x10f   : > { %v10443_v54 = vld [vmem:[#allocation6 + $0x9d0] sm:$0xf0] }
 0x110   : > { %3635 = vmatpush.bf16.msra.mxu2 %v10314_v49  ;;  %3610 = vmatpush.bf16.msra.mxu0 %v9226_v60  ;;  %v9419_v49 = vld [vmem:[#allocation6 + $0x1d0] sm:$0xf0]  ;;  %v3404_v57 = vpop.f32.mrf.mxu0  ;;  %v9934_v60 = vor.u32 %v13506_v50, %v9931_v52  ;;  %v11217_v52 = vld [vmem:[#allocation6 + $0xf98] sm:$0xf] }
 0x111   : > { %v13762_v55 = vld [vmem:[#allocation6 + $0xd94] sm:$0xf]  ;;  %v9422_v58 = vor.u32 %v13378_v48, %v9419_v49  ;;  %v10705_v48 = vld [vmem:[#allocation6 + $0xb98] sm:$0xf] }
 0x112   : > { %3648 = vmatpush.bf16.msra.mxu3 %v10826_v53  ;;  %3623 = vmatpush.bf16.msra.mxu1 %v9738_v0  ;;  %v13634_v53 = vld [vmem:[#allocation6 + $0x994] sm:$0xf]  ;;  %v3417_v59 = vpop.f32.mrf.mxu1  ;;  %v13707_v49 = vld [vmem:[#allocation6 + $0xbd4] sm:$0xf0] }
 0x113   : > { %3611 = vmatmul.bf16.vlgmr.msra.gmra.mxu0 %v15096_v8  ;;  %v10955_v56 = vld [vmem:[#allocation6 + $0xdd0] sm:$0xf0]  ;;  %v10446_v61 = vor.u32 %v13634_v53, %v10443_v54  ;;  %v13835_v53 = vld [vmem:[#allocation6 + $0xfd4] sm:$0xf0] }
 0x114   : > { %3636 = vmatpush.bf16.msra.mxu2 %v10250_v2  ;;  %3655 = vmatpush.bf16.msrb.mxu0 %v9678_v7  ;;  %v13362_v62 = vld [vmem:[#allocation6 + $0x114] sm:$0xf]  ;;  %v3418_v2 = vadd.f32 %v3417_v59, %v3404_v57  ;;  %v10958_v3 = vor.u32 %v13762_v55, %v10955_v56  ;;  %v9682_v55 = vor.u32 %v13451_v43, %v9681_v42  ;;  %v9617_v59 = vld [vmem:[#allocation6 + $0x318] sm:$0xf] }
 0x115   : > { %3624 = vmatmul.bf16.vlgmr.msra.gmra.mxu1 %v15098_v14  ;;  %v9355_v63 = vld [vmem:[#allocation6 + $0x150] sm:$0xf0]  ;;  %v13515_v43 = vld [vmem:[#allocation6 + $0x5d4] sm:$0xf0] }
 0x116   : > { %3649 = vmatpush.bf16.msra.mxu3 %v10762_v6  ;;  %3668 = vmatpush.bf16.msrb.mxu1 %v10190_v9  ;;  %v13490_v0 = vld [vmem:[#allocation6 + $0x514] sm:$0xf]  ;;  %v9358_v12 = vor.u32 %v13362_v62, %v9355_v63  ;;  %v11218_v62 = vor.u32 %v13835_v53, %v11217_v52  ;;  %v13563_v63 = vld [vmem:[#allocation6 + $0x754] sm:$0xf0] }
 0x117   : > { %3637 = vmatmul.bf16.vlgmr.msra.gmra.mxu2 %v15091_v1  ;;  %v9867_v4 = vld [vmem:[#allocation6 + $0x550] sm:$0xf0]  ;;  %v9361_v52 = vld [vmem:[#allocation6 + $0x118] sm:$0xf] }
 0x118   : > { %3681 = vmatpush.bf16.msrb.mxu2 %v10702_v10  ;;  %3656 = vmatpush.bf16.msrb.mxu0 %v9614_v21  ;;  %v13618_v6 = vld [vmem:[#allocation6 + $0x914] sm:$0xf]  ;;  %v3406_v28 = vpop.f32.mrf.mxu0  ;;  %v13371_v53 = vld [vmem:[#allocation6 + $0x154] sm:$0xf0] }
 0x119   : > { %3650 = vmatmul.bf16.vlgmr.msra.gmra.mxu3 %v15093_v5  ;;  %v10379_v7 = vld [vmem:[#allocation6 + $0x950] sm:$0xf0]  ;;  %v13531_v28 = vld [vmem:[#allocation6 + $0x654] sm:$0xf0] }
 0x11a   : > { %3694 = vmatpush.bf16.msrb.mxu3 %v11214_v15  ;;  %3669 = vmatpush.bf16.msrb.mxu1 %v10126_v22  ;;  %v13746_v9 = vld [vmem:[#allocation6 + $0xd14] sm:$0xf]  ;;  %v3430_v11 = vpop.f32.mrf.mxu2  ;;  %v9870_v15 = vor.u32 %v13490_v0, %v9867_v4  ;;  %v10382_v16 = vor.u32 %v13618_v6, %v10379_v7  ;;  %v3419_v32 = vpop.f32.mrf.mxu1  ;;  %v10641_v0 = vld [vmem:[#allocation6 + $0xb18] sm:$0xf] }
 0x11b   : > { %v10891_v10 = vld [vmem:[#allocation6 + $0xd50] sm:$0xf0]  ;;  %v3431_v13 = vadd.f32 %v3430_v11, %v3418_v2  ;;  %v13691_v2 = vld [vmem:[#allocation6 + $0xb54] sm:$0xf0] }
 0x11c   : > { %3682 = vmatpush.bf16.msrb.mxu2 %v10638_v23  ;;  %3657 = vmatpush.bf16.msrb.mxu0 %v9550_v33  ;;  %v13346_v17 = vld [vmem:[#allocation6 + $0x94] sm:$0xf]  ;;  %v10894_v20 = vor.u32 %v13746_v9, %v10891_v10  ;;  %v3443_v24 = vpop.f32.mrf.mxu3  ;;  %v13819_v4 = vld [vmem:[#allocation6 + $0xf54] sm:$0xf0]  ;;  %v10642_v9 = vor.u32 %v13691_v2, %v10641_v0  ;;  %v9362_v0 = vor.u32 %v13371_v53, %v9361_v52  ;;  %v13555_v52 = vld [vmem:[#allocation6 + $0x71c] sm:$0xf] }
 0x11d   : > { %v9291_v18 = vld [vmem:[#allocation6 + $0xd0] sm:$0xf0]  ;;  %v9553_v10 = vld [vmem:[#allocation6 + $0x298] sm:$0xf] }
 0x11e   : > { %3695 = vmatpush.bf16.msrb.mxu3 %v11150_v27  ;;  %3670 = vmatpush.bf16.msrb.mxu1 %v10062_v34  ;;  %v13474_v19 = vld [vmem:[#allocation6 + $0x494] sm:$0xf]  ;;  %v15119_v27 = vadd.f32 %v3443_v24, %v3431_v13  ;;  %v9294_v29 = vor.u32 %v13346_v17, %v9291_v18  ;;  %v13419_v11 = vld [vmem:[#allocation6 + $0x2d4] sm:$0xf0] }
 0x11f   : > { %v9803_v21 = vld [vmem:[#allocation6 + $0x4d0] sm:$0xf0]  ;;  %v13675_v17 = vld [vmem:[#allocation6 + $0xad4] sm:$0xf0] }
 0x120   : > { %3683 = vmatpush.bf16.msrb.mxu2 %v10574_v35  ;;  %3658 = vmatpush.bf16.msrb.mxu0 %v9486_v45  ;;  %v13602_v22 = vld [vmem:[#allocation6 + $0x894] sm:$0xf]  ;;  %v9806_v33 = vor.u32 %v13474_v19, %v9803_v21  ;;  %v11089_v18 = vld [vmem:[#allocation6 + $0xe98] sm:$0xf]  ;;  %14489 = vtanh.f32 %v15119_v27 }
 0x121   : > { %v10315_v23 = vld [vmem:[#allocation6 + $0x8d0] sm:$0xf0]  ;;  %v13803_v19 = vld [vmem:[#allocation6 + $0xed4] sm:$0xf0] }
 0x122   : > { %3696 = vmatpush.bf16.msrb.mxu3 %v11086_v39  ;;  %3671 = vmatpush.bf16.msrb.mxu1 %v9998_v46  ;;  %v13730_v25 = vld [vmem:[#allocation6 + $0xc94] sm:$0xf]  ;;  %v10318_v34 = vor.u32 %v13602_v22, %v10315_v23  ;;  %v3432_v45 = vpop.f32.mrf.mxu2  ;;  %v9489_v23 = vld [vmem:[#allocation6 + $0x218] sm:$0xf] }
 0x123   : > { %v10827_v26 = vld [vmem:[#allocation6 + $0xcd0] sm:$0xf0]  ;;  %v13403_v24 = vld [vmem:[#allocation6 + $0x254] sm:$0xf0] }
 0x124   : > { %3684 = vmatpush.bf16.msrb.mxu2 %v10510_v47  ;;  %3659 = vmatpush.bf16.msrb.mxu0 %v9422_v58  ;;  %v13330_v30 = vld [vmem:[#allocation6 + $0x14] sm:$0xf]  ;;  %v10830_v38 = vor.u32 %v13730_v25, %v10827_v26  ;;  %v13579_v47 = vld [vmem:[#allocation6 + $0x7d4] sm:$0xf0]  ;;  %v3445_v56 = vpop.f32.mrf.mxu3  ;;  %v10706_v58 = vor.u32 %v13707_v49, %v10705_v48  ;;  %v11090_v26 = vor.u32 %v13803_v19, %v11089_v18 }
 0x125   : > { %v9227_v31 = vld [vmem:[#allocation6 + $0x50] sm:$0xf0]  ;;  %v10194_v57 = vor.u32 %v13579_v47, %v10193_v44  ;;  %v10001_v25 = vld [vmem:[#allocation6 + $0x618] sm:$0xf] }
 0x126   : > { %3697 = vmatpush.bf16.msrb.mxu3 %v11022_v51  ;;  %3672 = vmatpush.bf16.msrb.mxu1 %v9934_v60  ;;  %v13458_v35 = vld [vmem:[#allocation6 + $0x414] sm:$0xf]  ;;  %v9230_v46 = vor.u32 %v13330_v30, %v9227_v31  ;;  %v13435_v60 = vld [vmem:[#allocation6 + $0x354] sm:$0xf0] }
 0x127   : > { %v9739_v36 = vld [vmem:[#allocation6 + $0x450] sm:$0xf0]  ;;  %v9618_v6 = vor.u32 %v13435_v60, %v9617_v59  ;;  %v13659_v30 = vld [vmem:[#allocation6 + $0xa54] sm:$0xf0] }
 0x128   : > { %3685 = vmatpush.bf16.msrb.mxu2 %v10446_v61  ;;  %3660 = vmatpush.bf16.msrb.mxu0 %v9358_v12  ;;  %v13586_v37 = vld [vmem:[#allocation6 + $0x814] sm:$0xf]  ;;  %v9742_v50 = vor.u32 %v13458_v35, %v9739_v36  ;;  %v10129_v61 = vld [vmem:[#allocation6 + $0x718] sm:$0xf]  ;;  %v10002_v35 = vor.u32 %v13531_v28, %v10001_v25 }
 0x129   : > { %v10251_v39 = vld [vmem:[#allocation6 + $0x850] sm:$0xf0]  ;;  %v10130_v7 = vor.u32 %v13563_v63, %v10129_v61  ;;  %v10065_v12 = vld [vmem:[#allocation6 + $0x698] sm:$0xf] }
 0x12a   : > { %3698 = vmatpush.bf16.msrb.mxu3 %v10958_v3  ;;  %3673 = vmatpush.bf16.msrb.mxu1 %v9870_v15  ;;  %v13714_v40 = vld [vmem:[#allocation6 + $0xc14] sm:$0xf]  ;;  %v10254_v51 = vor.u32 %v13586_v37, %v10251_v39  ;;  %v11153_v3 = vld [vmem:[#allocation6 + $0xf18] sm:$0xf] }
 0x12b   : > { %v10763_v41 = vld [vmem:[#allocation6 + $0xc50] sm:$0xf0]  ;;  %v11154_v13 = vor.u32 %v13819_v4, %v11153_v3  ;;  %v13547_v15 = vld [vmem:[#allocation6 + $0x6d4] sm:$0xf0] }
 0x12c   : > { %3686 = vmatpush.bf16.msrb.mxu2 %v10382_v16  ;;  %3661 = vmatpush.bf16.msrb.mxu0 %v9294_v29  ;;  %v10766_v54 = vor.u32 %v13714_v40, %v10763_v41  ;;  %v10577_v16 = vld [vmem:[#allocation6 + $0xa98] sm:$0xf]  ;;  %v10066_v21 = vor.u32 %v13547_v15, %v10065_v12 }
 0x12d   : > { %v10578_v22 = vor.u32 %v13675_v17, %v10577_v16  ;;  %v10513_v29 = vld [vmem:[#allocation6 + $0xa18] sm:$0xf] }
 0x12e   : > { %3699 = vmatpush.bf16.msrb.mxu3 %v10894_v20  ;;  %3674 = vmatpush.bf16.msrb.mxu1 %v9806_v33  ;;  %v9554_v20 = vor.u32 %v13419_v11, %v9553_v10  ;;  %v11025_v31 = vld [vmem:[#allocation6 + $0xe18] sm:$0xf]  ;;  %v9490_v33 = vor.u32 %v13403_v24, %v9489_v23  ;;  %v10514_v36 = vor.u32 %v13659_v30, %v10513_v29 }
 0x12f   : > { %v13787_v32 = vld [vmem:[#allocation6 + $0xe54] sm:$0xf0] }
 0x130   : > { %3687 = vmatpush.bf16.msrb.mxu2 %v10318_v34  ;;  %3662 = vmatpush.bf16.msrb.mxu0 %v9230_v46  ;;  %v3456_v34 = vpop.f32.mrf.mxu0  ;;  %v13387_v39 = vld [vmem:[#allocation6 + $0x1d4] sm:$0xf0]  ;;  %v11026_v41 = vor.u32 %v13787_v32, %v11025_v31  ;;  %v14490_v32 = vpop.eup %14489 }
 0x131   : > { %v9937_v40 = vld [vmem:[#allocation6 + $0x598] sm:$0xf] }
 0x132   : > { %3700 = vmatpush.bf16.msrb.mxu3 %v10830_v38  ;;  %3675 = vmatpush.bf16.msrb.mxu1 %v9742_v50  ;;  %v3469_v37 = vpop.f32.mrf.mxu1  ;;  %v9425_v38 = vld [vmem:[#allocation6 + $0x198] sm:$0xf]  ;;  %v9938_v49 = vor.u32 %v13515_v43, %v9937_v40  ;;  %v10707_v40 = vld [vmem:[#allocation6 + $0xbd8] sm:$0xf0] }
 0x133   : > { %3663 = vmatmul.bf16.vlgmr.msrb.gmra.mxu0 %v15096_v8  ;;  %v3470_v42 = vadd.f32 %v3469_v37, %v3456_v34  ;;  %v10449_v44 = vld [vmem:[#allocation6 + $0x998] sm:$0xf]  ;;  %v9426_v48 = vor.u32 %v13387_v39, %v9425_v38  ;;  %v9683_v34 = vld [vmem:[#allocation6 + $0x3d8] sm:$0xf0] }
 0x134   : > { %3688 = vmatpush.bf16.msrb.mxu2 %v10254_v51  ;;  %3707 = vmatpush.bf16.msra.mxu0 %v9682_v55  ;;  %v13643_v45 = vld [vmem:[#allocation6 + $0x9d4] sm:$0xf0]  ;;  %v10195_v38 = vld [vmem:[#allocation6 + $0x7d8] sm:$0xf0] }
 0x135   : > { %3676 = vmatmul.bf16.vlgmr.msrb.gmra.mxu1 %v15098_v14  ;;  %v10961_v46 = vld [vmem:[#allocation6 + $0xd98] sm:$0xf]  ;;  %v10450_v50 = vor.u32 %v13643_v45, %v10449_v44  ;;  %v13699_v39 = vld [vmem:[#allocation6 + $0xb9c] sm:$0xf] }
 0x136   : > { %3701 = vmatpush.bf16.msrb.mxu3 %v10766_v54  ;;  %3720 = vmatpush.bf16.msra.mxu1 %v10194_v57  ;;  %v13771_v47 = vld [vmem:[#allocation6 + $0xdd4] sm:$0xf0]  ;;  %v13827_v44 = vld [vmem:[#allocation6 + $0xf9c] sm:$0xf] }
 0x137   : > { %3689 = vmatmul.bf16.vlgmr.msrb.gmra.mxu2 %v15091_v1  ;;  %v9873_v54 = vld [vmem:[#allocation6 + $0x518] sm:$0xf]  ;;  %v10962_v55 = vor.u32 %v13771_v47, %v10961_v46  ;;  %v11219_v45 = vld [vmem:[#allocation6 + $0xfd8] sm:$0xf0] }
 0x138   : > { %3733 = vmatpush.bf16.msra.mxu2 %v10706_v58  ;;  %3708 = vmatpush.bf16.msra.mxu0 %v9618_v6  ;;  %v13499_v58 = vld [vmem:[#allocation6 + $0x554] sm:$0xf0]  ;;  %v3458_v2 = vpop.f32.mrf.mxu0  ;;  %v11222_v53 = vor.u32 %v13827_v44, %v11219_v45  ;;  %v13491_v44 = vld [vmem:[#allocation6 + $0x51c] sm:$0xf] }
 0x139   : > { %3702 = vmatmul.bf16.vlgmr.msrb.gmra.mxu3 %v15093_v5  ;;  %v10385_v59 = vld [vmem:[#allocation6 + $0x918] sm:$0xf]  ;;  %v9874_v3 = vor.u32 %v13499_v58, %v9873_v54  ;;  %v10131_v54 = vld [vmem:[#allocation6 + $0x758] sm:$0xf0] }
 0x13a   : > { %3746 = vmatpush.bf16.msra.mxu3 %v11218_v62  ;;  %3721 = vmatpush.bf16.msra.mxu1 %v10130_v7  ;;  %v3482_v51 = vpop.f32.mrf.mxu2  ;;  %v13627_v60 = vld [vmem:[#allocation6 + $0x954] sm:$0xf0]  ;;  %v3471_v10 = vpop.f32.mrf.mxu1  ;;  %v11155_v58 = vld [vmem:[#allocation6 + $0xf58] sm:$0xf0] }
 0x13b   : > { %v3483_v56 = vadd.f32 %v3482_v51, %v3470_v42  ;;  %v10897_v61 = vld [vmem:[#allocation6 + $0xd18] sm:$0xf]  ;;  %v10386_v4 = vor.u32 %v13627_v60, %v10385_v59  ;;  %v9619_v51 = vld [vmem:[#allocation6 + $0x358] sm:$0xf0]  ;;  %v10134_v60 = vor.u32 %v13555_v52, %v10131_v54 }
 0x13c   : > { %3734 = vmatpush.bf16.msra.mxu2 %v10642_v9  ;;  %3709 = vmatpush.bf16.msra.mxu0 %v9554_v20  ;;  %v3495_v57 = vpop.f32.mrf.mxu3  ;;  %v13755_v62 = vld [vmem:[#allocation6 + $0xd54] sm:$0xf0]  ;;  %v13747_v52 = vld [vmem:[#allocation6 + $0xd1c] sm:$0xf] }
 0x13d   : > { %v3496_v63 = vadd.f32 %v3495_v57, %v3483_v56  ;;  %v9297_v6 = vld [vmem:[#allocation6 + $0x98] sm:$0xf]  ;;  %v10898_v11 = vor.u32 %v13755_v62, %v10897_v61  ;;  %v10643_v56 = vld [vmem:[#allocation6 + $0xb58] sm:$0xf0] }
 0x13e   : > { %3747 = vmatpush.bf16.msra.mxu3 %v11154_v13  ;;  %3722 = vmatpush.bf16.msra.mxu1 %v10066_v21  ;;  %v13355_v7 = vld [vmem:[#allocation6 + $0xd4] sm:$0xf0]  ;;  %v13811_v57 = vld [vmem:[#allocation6 + $0xf1c] sm:$0xf] }
 0x13f   : > { %v9809_v9 = vld [vmem:[#allocation6 + $0x498] sm:$0xf]  ;;  %14491 = vtanh.f32 %v3496_v63  ;;  %v9298_v18 = vor.u32 %v13355_v7, %v9297_v6  ;;  %v13411_v62 = vld [vmem:[#allocation6 + $0x29c] sm:$0xf]  ;;  %v11158_v2 = vor.u32 %v13811_v57, %v11155_v58 }
 0x140   : > { %3735 = vmatpush.bf16.msra.mxu2 %v10578_v22  ;;  %3710 = vmatpush.bf16.msra.mxu0 %v9490_v33  ;;  %v13483_v12 = vld [vmem:[#allocation6 + $0x4d4] sm:$0xf0]  ;;  %v13443_v33 = vld [vmem:[#allocation6 + $0x39c] sm:$0xf] }
 0x141   : > { %v10321_v13 = vld [vmem:[#allocation6 + $0x898] sm:$0xf]  ;;  %v9810_v20 = vor.u32 %v13483_v12, %v9809_v9  ;;  %v9686_v47 = vor.u32 %v13443_v33, %v9683_v34  ;;  %v9555_v63 = vld [vmem:[#allocation6 + $0x2d8] sm:$0xf0] }
 0x142   : > { %3748 = vmatpush.bf16.msra.mxu3 %v11090_v26  ;;  %3723 = vmatpush.bf16.msra.mxu1 %v10002_v35  ;;  %v13611_v15 = vld [vmem:[#allocation6 + $0x8d4] sm:$0xf0]  ;;  %v3484_v25 = vpop.f32.mrf.mxu2  ;;  %v13571_v35 = vld [vmem:[#allocation6 + $0x79c] sm:$0xf]  ;;  %v9558_v10 = vor.u32 %v13411_v62, %v9555_v63 }
 0x143   : > { %v10833_v16 = vld [vmem:[#allocation6 + $0xc98] sm:$0xf]  ;;  %v10322_v21 = vor.u32 %v13611_v15, %v10321_v13  ;;  %v10579_v6 = vld [vmem:[#allocation6 + $0xad8] sm:$0xf0] }
 0x144   : > { %3736 = vmatpush.bf16.msra.mxu2 %v10514_v36  ;;  %3711 = vmatpush.bf16.msra.mxu0 %v9426_v48  ;;  %v13739_v17 = vld [vmem:[#allocation6 + $0xcd4] sm:$0xf0]  ;;  %v3497_v31 = vpop.f32.mrf.mxu3  ;;  %v10198_v48 = vor.u32 %v13571_v35, %v10195_v38  ;;  %v13795_v7 = vld [vmem:[#allocation6 + $0xe9c] sm:$0xf] }
 0x145   : > { %v9233_v19 = vld [vmem:[#allocation6 + $0x18] sm:$0xf]  ;;  %v10834_v26 = vor.u32 %v13739_v17, %v10833_v16  ;;  %v14492_v36 = vpop.eup %14491  ;;  %v11091_v9 = vld [vmem:[#allocation6 + $0xed8] sm:$0xf0] }
 0x146   : > { %3749 = vmatpush.bf16.msra.mxu3 %v11026_v41  ;;  %3724 = vmatpush.bf16.msra.mxu1 %v9938_v49  ;;  %v13339_v27 = vld [vmem:[#allocation6 + $0x54] sm:$0xf0]  ;;  %v15126_v41 = vpack.c.bf16 %v14492_v36, %v14490_v32  ;;  %v10710_v49 = vor.u32 %v13699_v39, %v10707_v40  ;;  %v13395_v13 = vld [vmem:[#allocation6 + $0x21c] sm:$0xf]  ;;  %v11094_v17 = vor.u32 %v13795_v7, %v11091_v9 }
 0x147   : > { %v9745_v22 = vld [vmem:[#allocation6 + $0x418] sm:$0xf]  ;;  %v9234_v37 = vor.u32 %v13339_v27, %v9233_v19  ;;  %v9491_v15 = vld [vmem:[#allocation6 + $0x258] sm:$0xf0] }
 0x148   : > { %3737 = vmatpush.bf16.msra.mxu2 %v10450_v50  ;;  %3712 = vmatpush.bf16.msra.mxu0 %v9362_v0  ;;  %v13467_v23 = vld [vmem:[#allocation6 + $0x454] sm:$0xf0]  ;;  %v13427_v50 = vld [vmem:[#allocation6 + $0x31c] sm:$0xf] }
 0x149   : > { %v10257_v24 = vld [vmem:[#allocation6 + $0x818] sm:$0xf]  ;;  %v9746_v42 = vor.u32 %v13467_v23, %v9745_v22  ;;  %v9622_v59 = vor.u32 %v13427_v50, %v9619_v51  ;;  %v13539_v0 = vld [vmem:[#allocation6 + $0x69c] sm:$0xf]  ;;  %v9494_v22 = vor.u32 %v13395_v13, %v9491_v15 }
 0x14a   : > { %3750 = vmatpush.bf16.msra.mxu3 %v10962_v55  ;;  %3725 = vmatpush.bf16.msra.mxu1 %v9874_v3  ;;  %v13595_v28 = vld [vmem:[#allocation6 + $0x854] sm:$0xf0]  ;;  %v13683_v55 = vld [vmem:[#allocation6 + $0xb1c] sm:$0xf] }
 0x14b   : > { %v10769_v29 = vld [vmem:[#allocation6 + $0xc18] sm:$0xf]  ;;  %v10258_v43 = vor.u32 %v13595_v28, %v10257_v24  ;;  %v10646_v61 = vor.u32 %v13683_v55, %v10643_v56  ;;  %v10067_v3 = vld [vmem:[#allocation6 + $0x6d8] sm:$0xf0] }
 0x14c   : > { %3738 = vmatpush.bf16.msra.mxu2 %v10386_v4  ;;  %v13723_v30 = vld [vmem:[#allocation6 + $0xc54] sm:$0xf0]  ;;  %3713 = vmatpush.bf16.msra.mxu0 %v9298_v18  ;;  %v13667_v4 = vld [vmem:[#allocation6 + $0xa9c] sm:$0xf] }
 0x14d   : > { %v10770_v46 = vor.u32 %v13723_v30, %v10769_v29  ;;  %v10582_v12 = vor.u32 %v13667_v4, %v10579_v6  ;;  %v13523_v16 = vld [vmem:[#allocation6 + $0x61c] sm:$0xf] }
 0x14e   : > { %3751 = vmatpush.bf16.msra.mxu3 %v10898_v11  ;;  %3726 = vmatpush.bf16.msra.mxu1 %v9810_v20  ;;  %v10070_v11 = vor.u32 %v13539_v0, %v10067_v3  ;;  %v10003_v18 = vld [vmem:[#allocation6 + $0x658] sm:$0xf0] }
 0x14f   : > { %v13651_v19 = vld [vmem:[#allocation6 + $0xa1c] sm:$0xf]  ;;  %v10006_v24 = vor.u32 %v13523_v16, %v10003_v18 }
 0x150   : > { %3739 = vmatpush.bf16.msra.mxu2 %v10322_v21  ;;  %3714 = vmatpush.bf16.msra.mxu0 %v9234_v37  ;;  %v10515_v27 = vld [vmem:[#allocation6 + $0xa58] sm:$0xf0]  ;;  %v3508_v23 = vpop.f32.mrf.mxu0 }
 0x151   : > { %v13779_v20 = vld [vmem:[#allocation6 + $0xe1c] sm:$0xf]  ;;  %v10518_v25 = vor.u32 %v13651_v19, %v10515_v27 }
 0x152   : > { %3752 = vmatpush.bf16.msra.mxu3 %v10834_v26  ;;  %3727 = vmatpush.bf16.msra.mxu1 %v9746_v42  ;;  %v11027_v21 = vld [vmem:[#allocation6 + $0xe58] sm:$0xf0]  ;;  %v3521_v30 = vpop.f32.mrf.mxu1 }
 0x153   : > { %3715 = vmatmul.bf16.vlgmr.msra.gmra.mxu0 %v15096_v8  ;;  %v13379_v26 = vld [vmem:[#allocation6 + $0x19c] sm:$0xf]  ;;  %v11030_v31 = vor.u32 %v13779_v20, %v11027_v21  ;;  %v3522_v35 = vadd.f32 %v3521_v30, %v3508_v23  ;;  %v13452_v23 = vld [vmem:[#allocation6 + $0x3dc] sm:$0xf0] }
 0x154   : > { %3740 = vmatpush.bf16.msra.mxu2 %v10258_v43  ;;  %3759 = vmatpush.bf16.msrb.mxu0 %v9686_v47  ;;  %v9427_v28 = vld [vmem:[#allocation6 + $0x1d8] sm:$0xf0] }
 0x155   : > { %3728 = vmatmul.bf16.vlgmr.msra.gmra.mxu1 %v15098_v14  ;;  %v13507_v29 = vld [vmem:[#allocation6 + $0x59c] sm:$0xf]  ;;  %v9430_v38 = vor.u32 %v13379_v26, %v9427_v28  ;;  %v13580_v26 = vld [vmem:[#allocation6 + $0x7dc] sm:$0xf0] }
 0x156   : > { %3753 = vmatpush.bf16.msra.mxu3 %v10770_v46  ;;  %3772 = vmatpush.bf16.msrb.mxu1 %v10198_v48  ;;  %v9939_v32 = vld [vmem:[#allocation6 + $0x5d8] sm:$0xf0]  ;;  %v10713_v28 = vld [vmem:[#allocation6 + $0xba0] sm:$0xf] }
 0x157   : > { %3741 = vmatmul.bf16.vlgmr.msra.gmra.mxu2 %v15091_v1  ;;  %v13635_v33 = vld [vmem:[#allocation6 + $0x99c] sm:$0xf]  ;;  %v9942_v39 = vor.u32 %v13507_v29, %v9939_v32  ;;  %v13708_v29 = vld [vmem:[#allocation6 + $0xbdc] sm:$0xf0] }
 0x158   : > { %3785 = vmatpush.bf16.msrb.mxu2 %v10710_v49  ;;  %3760 = vmatpush.bf16.msrb.mxu0 %v9622_v59  ;;  %v10451_v34 = vld [vmem:[#allocation6 + $0x9d8] sm:$0xf0]  ;;  %v3510_v56 = vpop.f32.mrf.mxu0  ;;  %v11225_v32 = vld [vmem:[#allocation6 + $0xfa0] sm:$0xf] }
 0x159   : > { %3754 = vmatmul.bf16.vlgmr.msra.gmra.mxu3 %v15093_v5  ;;  %v13763_v36 = vld [vmem:[#allocation6 + $0xd9c] sm:$0xf]  ;;  %v10454_v40 = vor.u32 %v13635_v33, %v10451_v34  ;;  %v13836_v33 = vld [vmem:[#allocation6 + $0xfdc] sm:$0xf0] }
 0x15a   : > { %3798 = vmatpush.bf16.msrb.mxu3 %v11222_v53  ;;  %3773 = vmatpush.bf16.msrb.mxu1 %v10134_v60  ;;  %v10963_v37 = vld [vmem:[#allocation6 + $0xdd8] sm:$0xf0]  ;;  %v3534_v45 = vpop.f32.mrf.mxu2  ;;  %v3523_v62 = vpop.f32.mrf.mxu1  ;;  %v13548_v56 = vld [vmem:[#allocation6 + $0x6dc] sm:$0xf0] }
 0x15b   : > { %v13363_v42 = vld [vmem:[#allocation6 + $0x11c] sm:$0xf]  ;;  %v10966_v46 = vor.u32 %v13763_v36, %v10963_v37  ;;  %v3535_v50 = vadd.f32 %v3534_v45, %v3522_v35  ;;  %v10714_v37 = vor.u32 %v13708_v29, %v10713_v28  ;;  %v13692_v45 = vld [vmem:[#allocation6 + $0xb5c] sm:$0xf0] }
 0x15c   : > { %3786 = vmatpush.bf16.msrb.mxu2 %v10646_v61  ;;  %3761 = vmatpush.bf16.msrb.mxu0 %v9558_v10  ;;  %v9363_v43 = vld [vmem:[#allocation6 + $0x158] sm:$0xf0]  ;;  %v3547_v51 = vpop.f32.mrf.mxu3 }
 0x15d   : > { %v9875_v47 = vld [vmem:[#allocation6 + $0x558] sm:$0xf0]  ;;  %v9366_v54 = vor.u32 %v13363_v42, %v9363_v43  ;;  %v15132_v55 = vadd.f32 %v3547_v51, %v3535_v50  ;;  %v11226_v42 = vor.u32 %v13836_v33, %v11225_v32  ;;  %v13564_v43 = vld [vmem:[#allocation6 + $0x75c] sm:$0xf0] }
 0x15e   : > { %3799 = vmatpush.bf16.msrb.mxu3 %v11158_v2  ;;  %3774 = vmatpush.bf16.msrb.mxu1 %v10070_v11  ;;  %v13619_v48 = vld [vmem:[#allocation6 + $0x91c] sm:$0xf]  ;;  %v9878_v57 = vor.u32 %v13491_v44, %v9875_v47  ;;  %v10649_v44 = vld [vmem:[#allocation6 + $0xb20] sm:$0xf] }
 0x15f   : > { %v10387_v49 = vld [vmem:[#allocation6 + $0x958] sm:$0xf0]  ;;  %v13820_v47 = vld [vmem:[#allocation6 + $0xf5c] sm:$0xf0]  ;;  %v10650_v50 = vor.u32 %v13692_v45, %v10649_v44  ;;  %14493 = vtanh.f32 %v15132_v55 }
 0x160   : > { %3787 = vmatpush.bf16.msrb.mxu2 %v10582_v12  ;;  %3762 = vmatpush.bf16.msrb.mxu0 %v9494_v22  ;;  %v10899_v53 = vld [vmem:[#allocation6 + $0xd58] sm:$0xf0]  ;;  %v10390_v58 = vor.u32 %v13619_v48, %v10387_v49  ;;  %v9689_v22 = vld [vmem:[#allocation6 + $0x3a0] sm:$0xf] }
 0x161   : > { %v13347_v59 = vld [vmem:[#allocation6 + $0x9c] sm:$0xf]  ;;  %v10902_v63 = vor.u32 %v13747_v52, %v10899_v53  ;;  %v9690_v35 = vor.u32 %v13452_v23, %v9689_v22  ;;  %v9561_v51 = vld [vmem:[#allocation6 + $0x2a0] sm:$0xf] }
 0x162   : > { %3800 = vmatpush.bf16.msrb.mxu3 %v11094_v17  ;;  %3775 = vmatpush.bf16.msrb.mxu1 %v10006_v24  ;;  %v9299_v60 = vld [vmem:[#allocation6 + $0xd8] sm:$0xf0]  ;;  %v3536_v17 = vpop.f32.mrf.mxu2  ;;  %v10201_v24 = vld [vmem:[#allocation6 + $0x7a0] sm:$0xf] }
 0x163   : > { %v13475_v61 = vld [vmem:[#allocation6 + $0x49c] sm:$0xf]  ;;  %v9302_v7 = vor.u32 %v13347_v59, %v9299_v60  ;;  %v10202_v36 = vor.u32 %v13580_v26, %v10201_v24  ;;  %v13420_v52 = vld [vmem:[#allocation6 + $0x2dc] sm:$0xf0] }
 0x164   : > { %3788 = vmatpush.bf16.msrb.mxu2 %v10518_v25  ;;  %3763 = vmatpush.bf16.msrb.mxu0 %v9430_v38  ;;  %v9811_v0 = vld [vmem:[#allocation6 + $0x4d8] sm:$0xf0]  ;;  %v3549_v21 = vpop.f32.mrf.mxu3  ;;  %v9625_v38 = vld [vmem:[#allocation6 + $0x320] sm:$0xf] }
 0x165   : > { %v13603_v2 = vld [vmem:[#allocation6 + $0x89c] sm:$0xf]  ;;  %v9814_v11 = vor.u32 %v13475_v61, %v9811_v0  ;;  %v10073_v53 = vld [vmem:[#allocation6 + $0x6a0] sm:$0xf]  ;;  %v9562_v61 = vor.u32 %v13420_v52, %v9561_v51 }
 0x166   : > { %3801 = vmatpush.bf16.msrb.mxu3 %v11030_v31  ;;  %3776 = vmatpush.bf16.msrb.mxu1 %v9942_v39  ;;  %v10323_v3 = vld [vmem:[#allocation6 + $0x8d8] sm:$0xf0]  ;;  %v13436_v39 = vld [vmem:[#allocation6 + $0x35c] sm:$0xf0]  ;;  %v10074_v62 = vor.u32 %v13548_v56, %v10073_v53 }
 0x167   : > { %v13731_v4 = vld [vmem:[#allocation6 + $0xc9c] sm:$0xf]  ;;  %v10326_v12 = vor.u32 %v13603_v2, %v10323_v3  ;;  %v9626_v48 = vor.u32 %v13436_v39, %v9625_v38  ;;  %v11097_v59 = vld [vmem:[#allocation6 + $0xea0] sm:$0xf] }
 0x168   : > { %3789 = vmatpush.bf16.msrb.mxu2 %v10454_v40  ;;  %v10835_v6 = vld [vmem:[#allocation6 + $0xcd8] sm:$0xf0]  ;;  %3764 = vmatpush.bf16.msrb.mxu0 %v9366_v54  ;;  %v10137_v40 = vld [vmem:[#allocation6 + $0x720] sm:$0xf] }
 0x169   : > { %v13331_v9 = vld [vmem:[#allocation6 + $0x1c] sm:$0xf]  ;;  %v10838_v18 = vor.u32 %v13731_v4, %v10835_v6  ;;  %v10138_v49 = vor.u32 %v13564_v43, %v10137_v40  ;;  %v13804_v60 = vld [vmem:[#allocation6 + $0xedc] sm:$0xf0] }
 0x16a   : > { %3802 = vmatpush.bf16.msrb.mxu3 %v10966_v46  ;;  %v9235_v10 = vld [vmem:[#allocation6 + $0x58] sm:$0xf0]  ;;  %3777 = vmatpush.bf16.msrb.mxu1 %v9878_v57  ;;  %v11161_v46 = vld [vmem:[#allocation6 + $0xf20] sm:$0xf]  ;;  %v11098_v4 = vor.u32 %v13804_v60, %v11097_v59 }
 0x16b   : > { %v13459_v13 = vld [vmem:[#allocation6 + $0x41c] sm:$0xf]  ;;  %v9238_v25 = vor.u32 %v13331_v9, %v9235_v10  ;;  %v11162_v54 = vor.u32 %v13820_v47, %v11161_v46  ;;  %v10585_v57 = vld [vmem:[#allocation6 + $0xaa0] sm:$0xf] }
 0x16c   : > { %3790 = vmatpush.bf16.msrb.mxu2 %v10390_v58  ;;  %v9747_v15 = vld [vmem:[#allocation6 + $0x458] sm:$0xf0]  ;;  %3765 = vmatpush.bf16.msrb.mxu0 %v9302_v7  ;;  %v13676_v58 = vld [vmem:[#allocation6 + $0xadc] sm:$0xf0] }
 0x16d   : > { %v13587_v16 = vld [vmem:[#allocation6 + $0x81c] sm:$0xf]  ;;  %v9750_v30 = vor.u32 %v13459_v13, %v9747_v15  ;;  %v9497_v0 = vld [vmem:[#allocation6 + $0x220] sm:$0xf] }
 0x16e   : > { %3803 = vmatpush.bf16.msrb.mxu3 %v10902_v63  ;;  %v10259_v19 = vld [vmem:[#allocation6 + $0x858] sm:$0xf0]  ;;  %3778 = vmatpush.bf16.msrb.mxu1 %v9814_v11  ;;  %v10586_v63 = vor.u32 %v13676_v58, %v10585_v57  ;;  %v13404_v2 = vld [vmem:[#allocation6 + $0x25c] sm:$0xf0] }
 0x16f   : > { %v13715_v27 = vld [vmem:[#allocation6 + $0xc1c] sm:$0xf]  ;;  %v10262_v31 = vor.u32 %v13587_v16, %v10259_v19  ;;  %v10009_v3 = vld [vmem:[#allocation6 + $0x620] sm:$0xf] }
 0x170   : > { %v10771_v20 = vld [vmem:[#allocation6 + $0xc58] sm:$0xf0]  ;;  %3791 = vmatpush.bf16.msrb.mxu2 %v10326_v12  ;;  %3766 = vmatpush.bf16.msrb.mxu0 %v9238_v25  ;;  %v13532_v6 = vld [vmem:[#allocation6 + $0x65c] sm:$0xf0]  ;;  %v9498_v12 = vor.u32 %v13404_v2, %v9497_v0  ;;  %v3560_v13 = vpop.f32.mrf.mxu0 }
 0x171   : > { %v10774_v34 = vor.u32 %v13715_v27, %v10771_v20  ;;  %v10521_v7 = vld [vmem:[#allocation6 + $0xa20] sm:$0xf]  ;;  %v10010_v15 = vor.u32 %v13532_v6, %v10009_v3 }
 0x172   : > { %3804 = vmatpush.bf16.msrb.mxu3 %v10838_v18  ;;  %3779 = vmatpush.bf16.msrb.mxu1 %v9750_v30  ;;  %v13660_v9 = vld [vmem:[#allocation6 + $0xa5c] sm:$0xf0]  ;;  %v3573_v17 = vpop.f32.mrf.mxu1 }
 0x173   : > { %3767 = vmatmul.bf16.vlgmr.msrb.gmra.mxu0 %v15096_v8  ;;  %v11033_v10 = vld [vmem:[#allocation6 + $0xe20] sm:$0xf]  ;;  %v10522_v16 = vor.u32 %v13660_v9, %v10521_v7  ;;  %v3574_v21 = vadd.f32 %v3573_v17, %v3560_v13  ;;  %v13444_v13 = vld [vmem:[#allocation6 + $0x3a4] sm:$0xf] }
 0x174   : > { %3792 = vmatpush.bf16.msrb.mxu2 %v10262_v31  ;;  %3811 = vmatpush.bf16.msra.mxu0 %v9690_v35  ;;  %v13788_v11 = vld [vmem:[#allocation6 + $0xe5c] sm:$0xf0] }
 0x175   : > { %3780 = vmatmul.bf16.vlgmr.msrb.gmra.mxu1 %v15098_v14  ;;  %v9433_v18 = vld [vmem:[#allocation6 + $0x1a0] sm:$0xf]  ;;  %v11034_v20 = vor.u32 %v13788_v11, %v11033_v10 }
 0x176   : > { %3805 = vmatpush.bf16.msrb.mxu3 %v10774_v34  ;;  %3824 = vmatpush.bf16.msra.mxu1 %v10202_v36  ;;  %v13388_v19 = vld [vmem:[#allocation6 + $0x1dc] sm:$0xf0] }
 0x177   : > { %3793 = vmatmul.bf16.vlgmr.msrb.gmra.mxu2 %v15091_v1  ;;  %v9945_v27 = vld [vmem:[#allocation6 + $0x5a0] sm:$0xf]  ;;  %v9434_v28 = vor.u32 %v13388_v19, %v9433_v18  ;;  %v10203_v19 = vld [vmem:[#allocation6 + $0x7e0] sm:$0xf0] }
 0x178   : > { %3837 = vmatpush.bf16.msra.mxu2 %v10714_v37  ;;  %3812 = vmatpush.bf16.msra.mxu0 %v9626_v48  ;;  %v13516_v22 = vld [vmem:[#allocation6 + $0x5dc] sm:$0xf0]  ;;  %v3562_v46 = vpop.f32.mrf.mxu0 }
 0x179   : > { %3806 = vmatmul.bf16.vlgmr.msrb.gmra.mxu3 %v15093_v5  ;;  %v10457_v23 = vld [vmem:[#allocation6 + $0x9a0] sm:$0xf]  ;;  %v9946_v29 = vor.u32 %v13516_v22, %v9945_v27  ;;  %v13700_v27 = vld [vmem:[#allocation6 + $0xba4] sm:$0xf] }
 0x17a   : > { %3850 = vmatpush.bf16.msra.mxu3 %v11226_v42  ;;  %3825 = vmatpush.bf16.msra.mxu1 %v10138_v49  ;;  %v13644_v24 = vld [vmem:[#allocation6 + $0x9dc] sm:$0xf0]  ;;  %v3586_v31 = vpop.f32.mrf.mxu2  ;;  %v3575_v52 = vpop.f32.mrf.mxu1  ;;  %v13540_v46 = vld [vmem:[#allocation6 + $0x6a4] sm:$0xf] }
 0x17b   : > { %v10969_v25 = vld [vmem:[#allocation6 + $0xda0] sm:$0xf]  ;;  %v10458_v30 = vor.u32 %v13644_v24, %v10457_v23  ;;  %v3587_v36 = vadd.f32 %v3586_v31, %v3574_v21  ;;  %v13828_v24 = vld [vmem:[#allocation6 + $0xfa4] sm:$0xf] }
 0x17c   : > { %3838 = vmatpush.bf16.msra.mxu2 %v10650_v50  ;;  %3813 = vmatpush.bf16.msra.mxu0 %v9562_v61  ;;  %v13772_v26 = vld [vmem:[#allocation6 + $0xddc] sm:$0xf0]  ;;  %v3599_v37 = vpop.f32.mrf.mxu3  ;;  %v13428_v31 = vld [vmem:[#allocation6 + $0x324] sm:$0xf] }
 0x17d   : > { %v9369_v32 = vld [vmem:[#allocation6 + $0x120] sm:$0xf]  ;;  %v10970_v35 = vor.u32 %v13772_v26, %v10969_v25  ;;  %v3600_v44 = vadd.f32 %v3599_v37, %v3587_v36  ;;  %v11227_v25 = vld [vmem:[#allocation6 + $0xfe0] sm:$0xf0] }
 0x17e   : > { %3851 = vmatpush.bf16.msra.mxu3 %v11162_v54  ;;  %3826 = vmatpush.bf16.msra.mxu1 %v10074_v62  ;;  %v13372_v33 = vld [vmem:[#allocation6 + $0x15c] sm:$0xf0]  ;;  %v13684_v36 = vld [vmem:[#allocation6 + $0xb24] sm:$0xf] }
 0x17f   : > { %v9881_v34 = vld [vmem:[#allocation6 + $0x520] sm:$0xf]  ;;  %v9370_v45 = vor.u32 %v13372_v33, %v9369_v32  ;;  %14495 = vtanh.f32 %v3600_v44  ;;  %v9627_v32 = vld [vmem:[#allocation6 + $0x360] sm:$0xf0] }
 0x180   : > { %3839 = vmatpush.bf16.msra.mxu2 %v10586_v63  ;;  %3814 = vmatpush.bf16.msra.mxu0 %v9498_v12  ;;  %v13500_v38 = vld [vmem:[#allocation6 + $0x55c] sm:$0xf0]  ;;  %v14494_v12 = vpop.eup %14493  ;;  %v13556_v33 = vld [vmem:[#allocation6 + $0x724] sm:$0xf] }
 0x181   : > { %v10393_v39 = vld [vmem:[#allocation6 + $0x920] sm:$0xf]  ;;  %v9882_v47 = vor.u32 %v13500_v38, %v9881_v34  ;;  %v11230_v34 = vor.u32 %v13828_v24, %v11227_v25  ;;  %v10651_v37 = vld [vmem:[#allocation6 + $0xb60] sm:$0xf0] }
 0x182   : > { %3852 = vmatpush.bf16.msra.mxu3 %v11098_v4  ;;  %3827 = vmatpush.bf16.msra.mxu1 %v10010_v15  ;;  %v13628_v40 = vld [vmem:[#allocation6 + $0x95c] sm:$0xf0]  ;;  %v3588_v4 = vpop.f32.mrf.mxu2  ;;  %v9691_v15 = vld [vmem:[#allocation6 + $0x3e0] sm:$0xf0] }
 0x183   : > { %v10905_v42 = vld [vmem:[#allocation6 + $0xd20] sm:$0xf]  ;;  %v10394_v48 = vor.u32 %v13628_v40, %v10393_v39  ;;  %v13812_v38 = vld [vmem:[#allocation6 + $0xf24] sm:$0xf]  ;;  %v9630_v40 = vor.u32 %v13428_v31, %v9627_v32 }
 0x184   : > { %3840 = vmatpush.bf16.msra.mxu2 %v10522_v16  ;;  %v13756_v43 = vld [vmem:[#allocation6 + $0xd5c] sm:$0xf0]  ;;  %3815 = vmatpush.bf16.msra.mxu0 %v9434_v28  ;;  %v3601_v11 = vpop.f32.mrf.mxu3  ;;  %v13572_v16 = vld [vmem:[#allocation6 + $0x7a4] sm:$0xf]  ;;  %v9694_v28 = vor.u32 %v13444_v13, %v9691_v15 }
 0x185   : > { %v9305_v49 = vld [vmem:[#allocation6 + $0xa0] sm:$0xf]  ;;  %v10906_v53 = vor.u32 %v13756_v43, %v10905_v42  ;;  %v14496_v17 = vpop.eup %14495  ;;  %v11163_v39 = vld [vmem:[#allocation6 + $0xf60] sm:$0xf0]  ;;  %v10654_v43 = vor.u32 %v13684_v36, %v10651_v37 }
 0x186   : > { %3853 = vmatpush.bf16.msra.mxu3 %v11034_v20  ;;  %3828 = vmatpush.bf16.msra.mxu1 %v9946_v29  ;;  %v13356_v50 = vld [vmem:[#allocation6 + $0xdc] sm:$0xf0]  ;;  %v10715_v20 = vld [vmem:[#allocation6 + $0xbe0] sm:$0xf0]  ;;  %v15139_v21 = vpack.c.bf16 %v14496_v17, %v14494_v12  ;;  %v10206_v29 = vor.u32 %v13572_v16, %v10203_v19 }
 0x187   : > { %v9817_v51 = vld [vmem:[#allocation6 + $0x4a0] sm:$0xf]  ;;  %v9306_v60 = vor.u32 %v13356_v50, %v9305_v49  ;;  %v13412_v44 = vld [vmem:[#allocation6 + $0x2a4] sm:$0xf] }
 0x188   : > { %3841 = vmatpush.bf16.msra.mxu2 %v10458_v30  ;;  %v13484_v54 = vld [vmem:[#allocation6 + $0x4dc] sm:$0xf0]  ;;  %3816 = vmatpush.bf16.msra.mxu0 %v9370_v45  ;;  %v10718_v30 = vor.u32 %v13700_v27, %v10715_v20  ;;  %v9563_v45 = vld [vmem:[#allocation6 + $0x2e0] sm:$0xf0] }
 0x189   : > { %v10329_v56 = vld [vmem:[#allocation6 + $0x8a0] sm:$0xf]  ;;  %v9818_v62 = vor.u32 %v13484_v54, %v9817_v51  ;;  %v13668_v49 = vld [vmem:[#allocation6 + $0xaa4] sm:$0xf] }
 0x18a   : > { %3854 = vmatpush.bf16.msra.mxu3 %v10970_v35  ;;  %v13612_v57 = vld [vmem:[#allocation6 + $0x8dc] sm:$0xf0]  ;;  %3829 = vmatpush.bf16.msra.mxu1 %v9882_v47  ;;  %v10139_v35 = vld [vmem:[#allocation6 + $0x760] sm:$0xf0]  ;;  %v11166_v47 = vor.u32 %v13812_v38, %v11163_v39 }
 0x18b   : > { %v10841_v58 = vld [vmem:[#allocation6 + $0xca0] sm:$0xf]  ;;  %v10330_v63 = vor.u32 %v13612_v57, %v10329_v56  ;;  %v10142_v42 = vor.u32 %v13556_v33, %v10139_v35  ;;  %v10587_v50 = vld [vmem:[#allocation6 + $0xae0] sm:$0xf0] }
 0x18c   : > { %v13740_v59 = vld [vmem:[#allocation6 + $0xcdc] sm:$0xf0]  ;;  %3842 = vmatpush.bf16.msra.mxu2 %v10394_v48  ;;  %3817 = vmatpush.bf16.msra.mxu0 %v9306_v60  ;;  %v10075_v48 = vld [vmem:[#allocation6 + $0x6e0] sm:$0xf0]  ;;  %v10590_v56 = vor.u32 %v13668_v49, %v10587_v50 }
 0x18d   : > { %v9241_v61 = vld [vmem:[#allocation6 + $0x20] sm:$0xf]  ;;  %v10842_v6 = vor.u32 %v13740_v59, %v10841_v58  ;;  %v13796_v51 = vld [vmem:[#allocation6 + $0xea4] sm:$0xf]  ;;  %v10078_v54 = vor.u32 %v13540_v46, %v10075_v48 }
 0x18e   : > { %v13340_v55 = vld [vmem:[#allocation6 + $0x5c] sm:$0xf0]  ;;  %3855 = vmatpush.bf16.msra.mxu3 %v10906_v53  ;;  %3830 = vmatpush.bf16.msra.mxu1 %v9818_v62  ;;  %v11099_v52 = vld [vmem:[#allocation6 + $0xee0] sm:$0xf0]  ;;  %v9566_v53 = vor.u32 %v13412_v44, %v9563_v45 }
 0x18f   : > { %v9753_v0 = vld [vmem:[#allocation6 + $0x420] sm:$0xf]  ;;  %v9242_v18 = vor.u32 %v13340_v55, %v9241_v61  ;;  %v13396_v57 = vld [vmem:[#allocation6 + $0x224] sm:$0xf]  ;;  %v11102_v60 = vor.u32 %v13796_v51, %v11099_v52 }
 0x190   : > { %v13468_v2 = vld [vmem:[#allocation6 + $0x45c] sm:$0xf0]  ;;  %3843 = vmatpush.bf16.msra.mxu2 %v10330_v63  ;;  %v9499_v58 = vld [vmem:[#allocation6 + $0x260] sm:$0xf0] }
 0x191   : > { %v10265_v3 = vld [vmem:[#allocation6 + $0x820] sm:$0xf]  ;;  %v9754_v22 = vor.u32 %v13468_v2, %v9753_v0  ;;  %3818 = vmatpush.bf16.msra.mxu0 %v9242_v18  ;;  %v13524_v59 = vld [vmem:[#allocation6 + $0x624] sm:$0xf]  ;;  %v9502_v2 = vor.u32 %v13396_v57, %v9499_v58 }
 0x192   : > { %v13596_v7 = vld [vmem:[#allocation6 + $0x85c] sm:$0xf0]  ;;  %3856 = vmatpush.bf16.msra.mxu3 %v10842_v6  ;;  %v10011_v61 = vld [vmem:[#allocation6 + $0x660] sm:$0xf0]  ;;  %v3625_v11 = vpop.f32.mrf.mxu1 }
 0x193   : > { %v10777_v9 = vld [vmem:[#allocation6 + $0xc20] sm:$0xf]  ;;  %v10266_v23 = vor.u32 %v13596_v7, %v10265_v3  ;;  %3831 = vmatpush.bf16.msra.mxu1 %v9754_v22  ;;  %v13652_v55 = vld [vmem:[#allocation6 + $0xa24] sm:$0xf]  ;;  %v3612_v3 = vpop.f32.mrf.mxu0  ;;  %v10014_v4 = vor.u32 %v13524_v59, %v10011_v61 }
 0x194   : > { %v13724_v10 = vld [vmem:[#allocation6 + $0xc5c] sm:$0xf0]  ;;  %3819 = vmatmul.bf16.vlgmr.msra.gmra.mxu0 %v15096_v8  ;;  %v10523_v62 = vld [vmem:[#allocation6 + $0xa60] sm:$0xf0]  ;;  %v3626_v17 = vadd.f32 %v3625_v11, %v3612_v3  ;;  %v9697_v3 = vld [vmem:[#allocation6 + $0x3a8] sm:$0xf] }
 0x195   : > { %v10778_v26 = vor.u32 %v13724_v10, %v10777_v9  ;;  %3844 = vmatpush.bf16.msra.mxu2 %v10266_v23  ;;  %3863 = vmatpush.bf16.msrb.mxu0 %v9694_v28  ;;  %v13780_v63 = vld [vmem:[#allocation6 + $0xe24] sm:$0xf]  ;;  %v10526_v6 = vor.u32 %v13652_v55, %v10523_v62  ;;  %v13709_v11 = vld [vmem:[#allocation6 + $0xbe4] sm:$0xf0] }
 0x196   : > { %3832 = vmatmul.bf16.vlgmr.msra.gmra.mxu1 %v15098_v14  ;;  %v11035_v0 = vld [vmem:[#allocation6 + $0xe60] sm:$0xf0] }
 0x197   : > { %3857 = vmatpush.bf16.msra.mxu3 %v10778_v26  ;;  %3876 = vmatpush.bf16.msrb.mxu1 %v10206_v29  ;;  %v13380_v7 = vld [vmem:[#allocation6 + $0x1a4] sm:$0xf]  ;;  %v11038_v12 = vor.u32 %v13780_v63, %v11035_v0 }
 0x198   : > { %3845 = vmatmul.bf16.vlgmr.msra.gmra.mxu2 %v15091_v1  ;;  %v9435_v9 = vld [vmem:[#allocation6 + $0x1e0] sm:$0xf0] }
 0x199   : > { %3889 = vmatpush.bf16.msrb.mxu2 %v10718_v30  ;;  %3864 = vmatpush.bf16.msrb.mxu0 %v9630_v40  ;;  %v13508_v10 = vld [vmem:[#allocation6 + $0x5a4] sm:$0xf]  ;;  %v9438_v27 = vor.u32 %v13380_v7, %v9435_v9  ;;  %v13581_v9 = vld [vmem:[#allocation6 + $0x7e4] sm:$0xf0] }
 0x19a   : > { %3858 = vmatmul.bf16.vlgmr.msra.gmra.mxu3 %v15093_v5  ;;  %v9947_v13 = vld [vmem:[#allocation6 + $0x5e0] sm:$0xf0]  ;;  %v3638_v26 = vpop.f32.mrf.mxu2  ;;  %v3627_v45 = vpop.f32.mrf.mxu1 }
 0x19b   : > { %3902 = vmatpush.bf16.msrb.mxu3 %v11230_v34  ;;  %3877 = vmatpush.bf16.msrb.mxu1 %v10142_v42  ;;  %v13636_v15 = vld [vmem:[#allocation6 + $0x9a4] sm:$0xf]  ;;  %v9950_v20 = vor.u32 %v13508_v10, %v9947_v13  ;;  %v3639_v32 = vadd.f32 %v3638_v26, %v3626_v17  ;;  %v3614_v38 = vpop.f32.mrf.mxu0  ;;  %v10721_v10 = vld [vmem:[#allocation6 + $0xba8] sm:$0xf] }
 0x19c   : > { %v10459_v16 = vld [vmem:[#allocation6 + $0x9e0] sm:$0xf0]  ;;  %v3651_v33 = vpop.f32.mrf.mxu3  ;;  %v10657_v26 = vld [vmem:[#allocation6 + $0xb28] sm:$0xf] }
 0x19d   : > { %3890 = vmatpush.bf16.msrb.mxu2 %v10654_v43  ;;  %3865 = vmatpush.bf16.msrb.mxu0 %v9566_v53  ;;  %v13764_v18 = vld [vmem:[#allocation6 + $0xda4] sm:$0xf]  ;;  %v10462_v22 = vor.u32 %v13636_v15, %v10459_v16  ;;  %v15145_v37 = vadd.f32 %v3651_v33, %v3639_v32  ;;  %v11233_v15 = vld [vmem:[#allocation6 + $0xfa8] sm:$0xf] }
 0x19e   : > { %v10971_v19 = vld [vmem:[#allocation6 + $0xde0] sm:$0xf0]  ;;  %v13837_v16 = vld [vmem:[#allocation6 + $0xfe4] sm:$0xf0] }
 0x19f   : > { %3903 = vmatpush.bf16.msrb.mxu3 %v11166_v47  ;;  %3878 = vmatpush.bf16.msrb.mxu1 %v10078_v54  ;;  %v13364_v23 = vld [vmem:[#allocation6 + $0x124] sm:$0xf]  ;;  %v10974_v28 = vor.u32 %v13764_v18, %v10971_v19  ;;  %14497 = vtanh.f32 %v15145_v37  ;;  %v13341_v37 = vld [vmem:[#allocation6 + $0x64] sm:$0xf0] }
 0x1a0   : > { %v9371_v24 = vld [vmem:[#allocation6 + $0x160] sm:$0xf0] }
 0x1a1   : > { %3891 = vmatpush.bf16.msrb.mxu2 %v10590_v56  ;;  %3866 = vmatpush.bf16.msrb.mxu0 %v9502_v2  ;;  %v13492_v25 = vld [vmem:[#allocation6 + $0x524] sm:$0xf]  ;;  %v9374_v36 = vor.u32 %v13364_v23, %v9371_v24  ;;  %v10145_v23 = vld [vmem:[#allocation6 + $0x728] sm:$0xf]  ;;  %v11234_v24 = vor.u32 %v13837_v16, %v11233_v15 }
 0x1a2   : > { %v9883_v29 = vld [vmem:[#allocation6 + $0x560] sm:$0xf0]  ;;  %v3640_v61 = vpop.f32.mrf.mxu2  ;;  %v9377_v16 = vld [vmem:[#allocation6 + $0x128] sm:$0xf] }
 0x1a3   : > { %3904 = vmatpush.bf16.msrb.mxu3 %v11102_v60  ;;  %3879 = vmatpush.bf16.msrb.mxu1 %v10014_v4  ;;  %v13620_v30 = vld [vmem:[#allocation6 + $0x924] sm:$0xf]  ;;  %v9886_v39 = vor.u32 %v13492_v25, %v9883_v29  ;;  %v13453_v4 = vld [vmem:[#allocation6 + $0x3e4] sm:$0xf0] }
 0x1a4   : > { %v10395_v31 = vld [vmem:[#allocation6 + $0x960] sm:$0xf0]  ;;  %v3653_v2 = vpop.f32.mrf.mxu3  ;;  %v9698_v18 = vor.u32 %v13453_v4, %v9697_v3  ;;  %v13565_v25 = vld [vmem:[#allocation6 + $0x764] sm:$0xf0] }
 0x1a5   : > { %3892 = vmatpush.bf16.msrb.mxu2 %v10526_v6  ;;  %v13748_v34 = vld [vmem:[#allocation6 + $0xd24] sm:$0xf]  ;;  %3867 = vmatpush.bf16.msrb.mxu0 %v9438_v27  ;;  %v10398_v40 = vor.u32 %v13620_v30, %v10395_v31  ;;  %v10209_v6 = vld [vmem:[#allocation6 + $0x7a8] sm:$0xf]  ;;  %v10722_v27 = vor.u32 %v13709_v11, %v10721_v10  ;;  %v10146_v32 = vor.u32 %v13565_v25, %v10145_v23 }
 0x1a6   : > { %v10907_v35 = vld [vmem:[#allocation6 + $0xd60] sm:$0xf0]  ;;  %v10210_v19 = vor.u32 %v13581_v9, %v10209_v6  ;;  %v11169_v29 = vld [vmem:[#allocation6 + $0xf28] sm:$0xf] }
 0x1a7   : > { %3905 = vmatpush.bf16.msrb.mxu3 %v11038_v12  ;;  %3880 = vmatpush.bf16.msrb.mxu1 %v9950_v20  ;;  %v13348_v42 = vld [vmem:[#allocation6 + $0xa4] sm:$0xf]  ;;  %v10910_v46 = vor.u32 %v13748_v34, %v10907_v35  ;;  %v9633_v20 = vld [vmem:[#allocation6 + $0x328] sm:$0xf] }
 0x1a8   : > { %v9307_v43 = vld [vmem:[#allocation6 + $0xe0] sm:$0xf0]  ;;  %v13821_v30 = vld [vmem:[#allocation6 + $0xf64] sm:$0xf0] }
 0x1a9   : > { %3893 = vmatpush.bf16.msrb.mxu2 %v10462_v22  ;;  %v13476_v44 = vld [vmem:[#allocation6 + $0x4a4] sm:$0xf]  ;;  %3868 = vmatpush.bf16.msrb.mxu0 %v9374_v36  ;;  %v9310_v52 = vor.u32 %v13348_v42, %v9307_v43  ;;  %v13437_v22 = vld [vmem:[#allocation6 + $0x364] sm:$0xf0]  ;;  %v11170_v38 = vor.u32 %v13821_v30, %v11169_v29 }
 0x1aa   : > { %v9819_v47 = vld [vmem:[#allocation6 + $0x4e0] sm:$0xf0]  ;;  %v9634_v31 = vor.u32 %v13437_v22, %v9633_v20  ;;  %v9569_v34 = vld [vmem:[#allocation6 + $0x2a8] sm:$0xf] }
 0x1ab   : > { %3906 = vmatpush.bf16.msrb.mxu3 %v10974_v28  ;;  %v13604_v48 = vld [vmem:[#allocation6 + $0x8a4] sm:$0xf]  ;;  %3881 = vmatpush.bf16.msrb.mxu1 %v9886_v39  ;;  %v9822_v56 = vor.u32 %v13476_v44, %v9819_v47  ;;  %v13693_v28 = vld [vmem:[#allocation6 + $0xb64] sm:$0xf0] }
 0x1ac   : > { %v10331_v49 = vld [vmem:[#allocation6 + $0x8e0] sm:$0xf0]  ;;  %v10658_v33 = vor.u32 %v13693_v28, %v10657_v26  ;;  %v13421_v35 = vld [vmem:[#allocation6 + $0x2e4] sm:$0xf0] }
 0x1ad   : > { %v13732_v50 = vld [vmem:[#allocation6 + $0xca4] sm:$0xf]  ;;  %3894 = vmatpush.bf16.msrb.mxu2 %v10398_v40  ;;  %v10334_v57 = vor.u32 %v13604_v48, %v10331_v49  ;;  %3869 = vmatpush.bf16.msrb.mxu0 %v9310_v52  ;;  %v10081_v36 = vld [vmem:[#allocation6 + $0x6a8] sm:$0xf]  ;;  %v9570_v45 = vor.u32 %v13421_v35, %v9569_v34 }
 0x1ae   : > { %v10843_v51 = vld [vmem:[#allocation6 + $0xce0] sm:$0xf0]  ;;  %v13549_v39 = vld [vmem:[#allocation6 + $0x6e4] sm:$0xf0] }
 0x1af   : > { %v13332_v53 = vld [vmem:[#allocation6 + $0x24] sm:$0xf]  ;;  %3907 = vmatpush.bf16.msrb.mxu3 %v10910_v46  ;;  %v10846_v55 = vor.u32 %v13732_v50, %v10843_v51  ;;  %3882 = vmatpush.bf16.msrb.mxu1 %v9822_v56  ;;  %v10593_v40 = vld [vmem:[#allocation6 + $0xaa8] sm:$0xf]  ;;  %v10082_v46 = vor.u32 %v13549_v39, %v10081_v36 }
 0x1b0   : > { %v9243_v54 = vld [vmem:[#allocation6 + $0x60] sm:$0xf0]  ;;  %v13677_v42 = vld [vmem:[#allocation6 + $0xae4] sm:$0xf0] }
 0x1b1   : > { %v13460_v58 = vld [vmem:[#allocation6 + $0x424] sm:$0xf]  ;;  %v9246_v7 = vor.u32 %v13332_v53, %v9243_v54  ;;  %3895 = vmatpush.bf16.msrb.mxu2 %v10334_v57  ;;  %v11105_v43 = vld [vmem:[#allocation6 + $0xea8] sm:$0xf]  ;;  %v10594_v47 = vor.u32 %v13677_v42, %v10593_v40 }
 0x1b2   : > { %v9755_v59 = vld [vmem:[#allocation6 + $0x460] sm:$0xf0]  ;;  %v13805_v44 = vld [vmem:[#allocation6 + $0xee4] sm:$0xf0] }
 0x1b3   : > { %v13588_v60 = vld [vmem:[#allocation6 + $0x824] sm:$0xf]  ;;  %v9758_v12 = vor.u32 %v13460_v58, %v9755_v59  ;;  %3908 = vmatpush.bf16.msrb.mxu3 %v10846_v55  ;;  %3870 = vmatpush.bf16.msrb.mxu0 %v9246_v7  ;;  %v9505_v48 = vld [vmem:[#allocation6 + $0x228] sm:$0xf]  ;;  %v11106_v51 = vor.u32 %v13805_v44, %v11105_v43  ;;  %v3664_v59 = vpop.f32.mrf.mxu0  ;;  %v3677_v55 = vpop.f32.mrf.mxu1 }
 0x1b4   : > { %v10267_v62 = vld [vmem:[#allocation6 + $0x860] sm:$0xf0]  ;;  %v13405_v49 = vld [vmem:[#allocation6 + $0x264] sm:$0xf0]  ;;  %v3678_v3 = vadd.f32 %v3677_v55, %v3664_v59  ;;  %v14498_v59 = vpop.eup %14497  ;;  %v13573_v55 = vld [vmem:[#allocation6 + $0x7ac] sm:$0xf] }
 0x1b5   : > { %v13716_v63 = vld [vmem:[#allocation6 + $0xc24] sm:$0xf]  ;;  %v10270_v13 = vor.u32 %v13588_v60, %v10267_v62  ;;  %3883 = vmatpush.bf16.msrb.mxu1 %v9758_v12  ;;  %v10017_v50 = vld [vmem:[#allocation6 + $0x628] sm:$0xf]  ;;  %v9506_v58 = vor.u32 %v13405_v49, %v9505_v48 }
 0x1b6   : > { %v10779_v0 = vld [vmem:[#allocation6 + $0xc60] sm:$0xf0]  ;;  %3871 = vmatmul.bf16.vlgmr.msrb.gmra.mxu0 %v15096_v8  ;;  %v13533_v52 = vld [vmem:[#allocation6 + $0x664] sm:$0xf0] }
 0x1b7   : > { %v10782_v17 = vor.u32 %v13716_v63, %v10779_v0  ;;  %3896 = vmatpush.bf16.msrb.mxu2 %v10270_v13  ;;  %3915 = vmatpush.bf16.msra.mxu0 %v9698_v18  ;;  %v10529_v53 = vld [vmem:[#allocation6 + $0xa28] sm:$0xf]  ;;  %v10018_v60 = vor.u32 %v13533_v52, %v10017_v50 }
 0x1b8   : > { %3884 = vmatmul.bf16.vlgmr.msrb.gmra.mxu1 %v15098_v14  ;;  %v13661_v54 = vld [vmem:[#allocation6 + $0xa64] sm:$0xf0] }
 0x1b9   : > { %3909 = vmatpush.bf16.msrb.mxu3 %v10782_v17  ;;  %3928 = vmatpush.bf16.msra.mxu1 %v10210_v19  ;;  %v11041_v56 = vld [vmem:[#allocation6 + $0xe28] sm:$0xf]  ;;  %v10530_v61 = vor.u32 %v13661_v54, %v10529_v53 }
 0x1ba   : > { %3897 = vmatmul.bf16.vlgmr.msrb.gmra.mxu2 %v15091_v1  ;;  %v13789_v57 = vld [vmem:[#allocation6 + $0xe64] sm:$0xf0]  ;;  %v3690_v15 = vpop.f32.mrf.mxu2 }
 0x1bb   : > { %3941 = vmatpush.bf16.msra.mxu2 %v10722_v27  ;;  %3916 = vmatpush.bf16.msra.mxu0 %v9634_v31  ;;  %v9441_v62 = vld [vmem:[#allocation6 + $0x1a8] sm:$0xf]  ;;  %v11042_v2 = vor.u32 %v13789_v57, %v11041_v56  ;;  %v3691_v27 = vadd.f32 %v3690_v15, %v3678_v3  ;;  %v3666_v30 = vpop.f32.mrf.mxu0  ;;  %v3679_v36 = vpop.f32.mrf.mxu1  ;;  %v10723_v3 = vld [vmem:[#allocation6 + $0xbe8] sm:$0xf0] }
 0x1bc   : > { %3910 = vmatmul.bf16.vlgmr.msrb.gmra.mxu3 %v15093_v5  ;;  %v13389_v63 = vld [vmem:[#allocation6 + $0x1e4] sm:$0xf0]  ;;  %v3703_v20 = vpop.f32.mrf.mxu3  ;;  %v9571_v30 = vld [vmem:[#allocation6 + $0x2e8] sm:$0xf0] }
 0x1bd   : > { %3954 = vmatpush.bf16.msra.mxu3 %v11234_v24  ;;  %3929 = vmatpush.bf16.msra.mxu1 %v10146_v32  ;;  %v9953_v0 = vld [vmem:[#allocation6 + $0x5a8] sm:$0xf]  ;;  %v9442_v11 = vor.u32 %v13389_v63, %v9441_v62  ;;  %v3704_v28 = vadd.f32 %v3703_v20, %v3691_v27  ;;  %v10147_v27 = vld [vmem:[#allocation6 + $0x768] sm:$0xf0] }
 0x1be   : > { %v13517_v4 = vld [vmem:[#allocation6 + $0x5e4] sm:$0xf0]  ;;  %v13685_v20 = vld [vmem:[#allocation6 + $0xb2c] sm:$0xf] }
 0x1bf   : > { %3942 = vmatpush.bf16.msra.mxu2 %v10658_v33  ;;  %3917 = vmatpush.bf16.msra.mxu0 %v9570_v45  ;;  %v10465_v6 = vld [vmem:[#allocation6 + $0x9a8] sm:$0xf]  ;;  %v9954_v12 = vor.u32 %v13517_v4, %v9953_v0  ;;  %14499 = vtanh.f32 %v3704_v28  ;;  %v10211_v0 = vld [vmem:[#allocation6 + $0x7e8] sm:$0xf0] }
 0x1c0   : > { %v13645_v7 = vld [vmem:[#allocation6 + $0x9e4] sm:$0xf0]  ;;  %v13797_v36 = vld [vmem:[#allocation6 + $0xeac] sm:$0xf] }
 0x1c1   : > { %3955 = vmatpush.bf16.msra.mxu3 %v11170_v38  ;;  %3930 = vmatpush.bf16.msra.mxu1 %v10082_v46  ;;  %v10977_v9 = vld [vmem:[#allocation6 + $0xda8] sm:$0xf]  ;;  %v10466_v13 = vor.u32 %v13645_v7, %v10465_v6 }
 0x1c2   : > { %v13773_v10 = vld [vmem:[#allocation6 + $0xde4] sm:$0xf0]  ;;  %v3692_v52 = vpop.f32.mrf.mxu2 }
 0x1c3   : > { %3943 = vmatpush.bf16.msra.mxu2 %v10594_v47  ;;  %3918 = vmatpush.bf16.msra.mxu0 %v9506_v58  ;;  %v13373_v17 = vld [vmem:[#allocation6 + $0x164] sm:$0xf0]  ;;  %v10978_v19 = vor.u32 %v13773_v10, %v10977_v9  ;;  %v13829_v9 = vld [vmem:[#allocation6 + $0xfac] sm:$0xf] }
 0x1c4   : > { %v9889_v18 = vld [vmem:[#allocation6 + $0x528] sm:$0xf]  ;;  %v9378_v29 = vor.u32 %v13373_v17, %v9377_v16  ;;  %v3705_v58 = vpop.f32.mrf.mxu3  ;;  %v11235_v10 = vld [vmem:[#allocation6 + $0xfe8] sm:$0xf0] }
 0x1c5   : > { %3956 = vmatpush.bf16.msra.mxu3 %v11106_v51  ;;  %3931 = vmatpush.bf16.msra.mxu1 %v10018_v60  ;;  %v13501_v22 = vld [vmem:[#allocation6 + $0x564] sm:$0xf0]  ;;  %v13445_v60 = vld [vmem:[#allocation6 + $0x3ac] sm:$0xf]  ;;  %v14500_v62 = vpop.eup %14499 }
 0x1c6   : > { %v10401_v23 = vld [vmem:[#allocation6 + $0x928] sm:$0xf]  ;;  %v9890_v31 = vor.u32 %v13501_v22, %v9889_v18  ;;  %v15152_v4 = vpack.c.bf16 %v14500_v62, %v14498_v59  ;;  %v13429_v16 = vld [vmem:[#allocation6 + $0x32c] sm:$0xf] }
 0x1c7   : > { %3944 = vmatpush.bf16.msra.mxu2 %v10530_v61  ;;  %v13629_v24 = vld [vmem:[#allocation6 + $0x964] sm:$0xf0]  ;;  %3919 = vmatpush.bf16.msra.mxu0 %v9442_v11  ;;  %v9699_v61 = vld [vmem:[#allocation6 + $0x3e8] sm:$0xf0] }
 0x1c8   : > { %v10913_v25 = vld [vmem:[#allocation6 + $0xd28] sm:$0xf]  ;;  %v10402_v32 = vor.u32 %v13629_v24, %v10401_v23  ;;  %v9635_v17 = vld [vmem:[#allocation6 + $0x368] sm:$0xf0] }
 0x1c9   : > { %3957 = vmatpush.bf16.msra.mxu3 %v11042_v2  ;;  %v13757_v26 = vld [vmem:[#allocation6 + $0xd64] sm:$0xf0]  ;;  %3932 = vmatpush.bf16.msra.mxu1 %v9954_v12  ;;  %v13701_v2 = vld [vmem:[#allocation6 + $0xbac] sm:$0xf]  ;;  %v9702_v12 = vor.u32 %v13445_v60, %v9699_v61 }
 0x1ca   : > { %v9313_v33 = vld [vmem:[#allocation6 + $0xa8] sm:$0xf]  ;;  %v10914_v38 = vor.u32 %v13757_v26, %v10913_v25  ;;  %v10726_v15 = vor.u32 %v13701_v2, %v10723_v3  ;;  %v13557_v18 = vld [vmem:[#allocation6 + $0x72c] sm:$0xf]  ;;  %v9638_v25 = vor.u32 %v13429_v16, %v9635_v17 }
 0x1cb   : > { %3945 = vmatpush.bf16.msra.mxu2 %v10466_v13  ;;  %v13357_v34 = vld [vmem:[#allocation6 + $0xe4] sm:$0xf0]  ;;  %3920 = vmatpush.bf16.msra.mxu0 %v9378_v29  ;;  %v10214_v13 = vor.u32 %v13573_v55, %v10211_v0  ;;  %v10659_v22 = vld [vmem:[#allocation6 + $0xb68] sm:$0xf0]  ;;  %v10150_v26 = vor.u32 %v13557_v18, %v10147_v27 }
 0x1cc   : > { %v9825_v35 = vld [vmem:[#allocation6 + $0x4a8] sm:$0xf]  ;;  %v9314_v45 = vor.u32 %v13357_v34, %v9313_v33  ;;  %v13813_v23 = vld [vmem:[#allocation6 + $0xf2c] sm:$0xf]  ;;  %v10662_v28 = vor.u32 %v13685_v20, %v10659_v22 }
 0x1cd   : > { %3958 = vmatpush.bf16.msra.mxu3 %v10978_v19  ;;  %v13485_v39 = vld [vmem:[#allocation6 + $0x4e4] sm:$0xf0]  ;;  %3933 = vmatpush.bf16.msra.mxu1 %v9890_v31  ;;  %v11238_v19 = vor.u32 %v13829_v9, %v11235_v10  ;;  %v11171_v24 = vld [vmem:[#allocation6 + $0xf68] sm:$0xf0] }
 0x1ce   : > { %v10337_v40 = vld [vmem:[#allocation6 + $0x8a8] sm:$0xf]  ;;  %v9826_v47 = vor.u32 %v13485_v39, %v9825_v35  ;;  %v13413_v29 = vld [vmem:[#allocation6 + $0x2ac] sm:$0xf] }
 0x1cf   : > { %v13613_v42 = vld [vmem:[#allocation6 + $0x8e4] sm:$0xf0]  ;;  %3946 = vmatpush.bf16.msra.mxu2 %v10402_v32  ;;  %3921 = vmatpush.bf16.msra.mxu0 %v9314_v45  ;;  %v13541_v31 = vld [vmem:[#allocation6 + $0x6ac] sm:$0xf]  ;;  %v11174_v32 = vor.u32 %v13813_v23, %v11171_v24  ;;  %v9574_v39 = vor.u32 %v13413_v29, %v9571_v30 }
 0x1d0   : > { %v10849_v43 = vld [vmem:[#allocation6 + $0xca8] sm:$0xf]  ;;  %v10338_v48 = vor.u32 %v13613_v42, %v10337_v40  ;;  %v10083_v33 = vld [vmem:[#allocation6 + $0x6e8] sm:$0xf0]  ;;  %v3716_v52 = vpop.f32.mrf.mxu0 }
 0x1d1   : > { %v13741_v44 = vld [vmem:[#allocation6 + $0xce4] sm:$0xf0]  ;;  %3959 = vmatpush.bf16.msra.mxu3 %v10914_v38  ;;  %3934 = vmatpush.bf16.msra.mxu1 %v9826_v47  ;;  %v13669_v34 = vld [vmem:[#allocation6 + $0xaac] sm:$0xf]  ;;  %v10086_v40 = vor.u32 %v13541_v31, %v10083_v33 }
 0x1d2   : > { %v9249_v46 = vld [vmem:[#allocation6 + $0x28] sm:$0xf]  ;;  %v10850_v53 = vor.u32 %v13741_v44, %v10849_v43  ;;  %v10595_v35 = vld [vmem:[#allocation6 + $0xae8] sm:$0xf0]  ;;  %v3729_v59 = vpop.f32.mrf.mxu1 }
 0x1d3   : > { %v9761_v49 = vld [vmem:[#allocation6 + $0x428] sm:$0xf]  ;;  %v9250_v63 = vor.u32 %v13341_v37, %v9249_v46  ;;  %3947 = vmatpush.bf16.msra.mxu2 %v10338_v48  ;;  %v11107_v38 = vld [vmem:[#allocation6 + $0xee8] sm:$0xf0]  ;;  %v10598_v42 = vor.u32 %v13669_v34, %v10595_v35 }
 0x1d4   : > { %v13469_v50 = vld [vmem:[#allocation6 + $0x464] sm:$0xf0]  ;;  %v13397_v43 = vld [vmem:[#allocation6 + $0x22c] sm:$0xf]  ;;  %v11110_v46 = vor.u32 %v13797_v36, %v11107_v38 }
 0x1d5   : > { %v10273_v51 = vld [vmem:[#allocation6 + $0x828] sm:$0xf]  ;;  %v9762_v6 = vor.u32 %v13469_v50, %v9761_v49  ;;  %3960 = vmatpush.bf16.msra.mxu3 %v10850_v53  ;;  %3922 = vmatpush.bf16.msra.mxu0 %v9250_v63  ;;  %v9507_v44 = vld [vmem:[#allocation6 + $0x268] sm:$0xf0]  ;;  %v3730_v63 = vadd.f32 %v3729_v59, %v3716_v52  ;;  %v10729_v59 = vld [vmem:[#allocation6 + $0xbb0] sm:$0xf] }
 0x1d6   : > { %v13597_v54 = vld [vmem:[#allocation6 + $0x864] sm:$0xf0]  ;;  %v13525_v45 = vld [vmem:[#allocation6 + $0x62c] sm:$0xf] }
 0x1d7   : > { %v10785_v56 = vld [vmem:[#allocation6 + $0xc28] sm:$0xf]  ;;  %v10274_v7 = vor.u32 %v13597_v54, %v10273_v51  ;;  %3935 = vmatpush.bf16.msra.mxu1 %v9762_v6  ;;  %v10019_v37 = vld [vmem:[#allocation6 + $0x668] sm:$0xf0]  ;;  %v9510_v51 = vor.u32 %v13397_v43, %v9507_v44 }
 0x1d8   : > { %v13725_v57 = vld [vmem:[#allocation6 + $0xc64] sm:$0xf0]  ;;  %3923 = vmatmul.bf16.vlgmr.msra.gmra.mxu0 %v15096_v8  ;;  %v13653_v47 = vld [vmem:[#allocation6 + $0xa2c] sm:$0xf]  ;;  %v10022_v53 = vor.u32 %v13525_v45, %v10019_v37  ;;  %v3718_v24 = vpop.f32.mrf.mxu0 }
 0x1d9   : > { %v10786_v11 = vor.u32 %v13725_v57, %v10785_v56  ;;  %3948 = vmatpush.bf16.msra.mxu2 %v10274_v7  ;;  %3967 = vmatpush.bf16.msrb.mxu0 %v9702_v12  ;;  %v10531_v48 = vld [vmem:[#allocation6 + $0xa68] sm:$0xf0]  ;;  %v10089_v24 = vld [vmem:[#allocation6 + $0x6b0] sm:$0xf] }
 0x1da   : > { %3936 = vmatmul.bf16.vlgmr.msra.gmra.mxu1 %v15098_v14  ;;  %v13781_v49 = vld [vmem:[#allocation6 + $0xe2c] sm:$0xf]  ;;  %v10534_v54 = vor.u32 %v13653_v47, %v10531_v48  ;;  %v3742_v12 = vpop.f32.mrf.mxu2  ;;  %v3731_v31 = vpop.f32.mrf.mxu1 }
 0x1db   : > { %3961 = vmatpush.bf16.msra.mxu3 %v10786_v11  ;;  %3980 = vmatpush.bf16.msrb.mxu1 %v10214_v13  ;;  %v11043_v50 = vld [vmem:[#allocation6 + $0xe68] sm:$0xf0]  ;;  %v3743_v18 = vadd.f32 %v3742_v12, %v3730_v63  ;;  %v13838_v63 = vld [vmem:[#allocation6 + $0xfec] sm:$0xf0] }
 0x1dc   : > { %3949 = vmatmul.bf16.vlgmr.msra.gmra.mxu2 %v15091_v1  ;;  %v13381_v56 = vld [vmem:[#allocation6 + $0x1ac] sm:$0xf]  ;;  %v11046_v60 = vor.u32 %v13781_v49, %v11043_v50  ;;  %v13566_v12 = vld [vmem:[#allocation6 + $0x76c] sm:$0xf0] }
 0x1dd   : > { %3993 = vmatpush.bf16.msrb.mxu2 %v10726_v15  ;;  %3968 = vmatpush.bf16.msrb.mxu0 %v9638_v25  ;;  %v9443_v57 = vld [vmem:[#allocation6 + $0x1e8] sm:$0xf0]  ;;  %v13806_v31 = vld [vmem:[#allocation6 + $0xeec] sm:$0xf0] }
 0x1de   : > { %3962 = vmatmul.bf16.vlgmr.msra.gmra.mxu3 %v15093_v5  ;;  %v13509_v58 = vld [vmem:[#allocation6 + $0x5ac] sm:$0xf]  ;;  %v9446_v3 = vor.u32 %v13381_v56, %v9443_v57  ;;  %v10217_v56 = vld [vmem:[#allocation6 + $0x7b0] sm:$0xf] }
 0x1df   : > { %4006 = vmatpush.bf16.msrb.mxu3 %v11238_v19  ;;  %3981 = vmatpush.bf16.msrb.mxu1 %v10150_v26  ;;  %v9955_v61 = vld [vmem:[#allocation6 + $0x5e8] sm:$0xf0]  ;;  %v3755_v19 = vpop.f32.mrf.mxu3 }
 0x1e0   : > { %v13637_v55 = vld [vmem:[#allocation6 + $0x9ac] sm:$0xf]  ;;  %v9958_v6 = vor.u32 %v13509_v58, %v9955_v61  ;;  %v15158_v23 = vadd.f32 %v3755_v19, %v3743_v18  ;;  %v13582_v58 = vld [vmem:[#allocation6 + $0x7ec] sm:$0xf0] }
 0x1e1   : > { %3994 = vmatpush.bf16.msrb.mxu2 %v10662_v28  ;;  %3969 = vmatpush.bf16.msrb.mxu0 %v9574_v39  ;;  %v10467_v62 = vld [vmem:[#allocation6 + $0x9e8] sm:$0xf0] }
 0x1e2   : > { %v13765_v0 = vld [vmem:[#allocation6 + $0xdac] sm:$0xf]  ;;  %v10470_v7 = vor.u32 %v13637_v55, %v10467_v62  ;;  %v3744_v47 = vpop.f32.mrf.mxu2  ;;  %v11241_v62 = vld [vmem:[#allocation6 + $0xfb0] sm:$0xf]  ;;  %14501 = vtanh.f32 %v15158_v23 }
 0x1e3   : > { %4007 = vmatpush.bf16.msrb.mxu3 %v11174_v32  ;;  %3982 = vmatpush.bf16.msrb.mxu1 %v10086_v40  ;;  %v10979_v2 = vld [vmem:[#allocation6 + $0xde8] sm:$0xf0]  ;;  %v13342_v23 = vld [vmem:[#allocation6 + $0x6c] sm:$0xf0] }
 0x1e4   : > { %v13365_v9 = vld [vmem:[#allocation6 + $0x12c] sm:$0xf]  ;;  %v10982_v13 = vor.u32 %v13765_v0, %v10979_v2 }
 0x1e5   : > { %3995 = vmatpush.bf16.msrb.mxu2 %v10598_v42  ;;  %3970 = vmatpush.bf16.msrb.mxu0 %v9510_v51  ;;  %v9379_v10 = vld [vmem:[#allocation6 + $0x168] sm:$0xf0] }
 0x1e6   : > { %v13493_v11 = vld [vmem:[#allocation6 + $0x52c] sm:$0xf]  ;;  %v9382_v22 = vor.u32 %v13365_v9, %v9379_v10  ;;  %v13438_v9 = vld [vmem:[#allocation6 + $0x36c] sm:$0xf0] }
 0x1e7   : > { %4008 = vmatpush.bf16.msrb.mxu3 %v11110_v46  ;;  %3983 = vmatpush.bf16.msrb.mxu1 %v10022_v53  ;;  %v9891_v15 = vld [vmem:[#allocation6 + $0x568] sm:$0xf0]  ;;  %v3757_v52 = vpop.f32.mrf.mxu3  ;;  %v9705_v53 = vld [vmem:[#allocation6 + $0x3b0] sm:$0xf] }
 0x1e8   : > { %v13621_v16 = vld [vmem:[#allocation6 + $0x92c] sm:$0xf]  ;;  %v9894_v25 = vor.u32 %v13493_v11, %v9891_v15  ;;  %v10153_v10 = vld [vmem:[#allocation6 + $0x730] sm:$0xf]  ;;  %v11242_v11 = vor.u32 %v13838_v63, %v11241_v62 }
 0x1e9   : > { %3996 = vmatpush.bf16.msrb.mxu2 %v10534_v54  ;;  %v10403_v17 = vld [vmem:[#allocation6 + $0x968] sm:$0xf0]  ;;  %3971 = vmatpush.bf16.msrb.mxu0 %v9446_v3  ;;  %v13454_v54 = vld [vmem:[#allocation6 + $0x3ec] sm:$0xf0]  ;;  %v10218_v3 = vor.u32 %v13582_v58, %v10217_v56  ;;  %v10154_v19 = vor.u32 %v13566_v12, %v10153_v10 }
 0x1ea   : > { %v13749_v27 = vld [vmem:[#allocation6 + $0xd2c] sm:$0xf]  ;;  %v10406_v26 = vor.u32 %v13621_v16, %v10403_v17  ;;  %v9706_v2 = vor.u32 %v13454_v54, %v9705_v53  ;;  %v13694_v15 = vld [vmem:[#allocation6 + $0xb6c] sm:$0xf0] }
 0x1eb   : > { %4009 = vmatpush.bf16.msrb.mxu3 %v11046_v60  ;;  %v10915_v20 = vld [vmem:[#allocation6 + $0xd68] sm:$0xf0]  ;;  %3984 = vmatpush.bf16.msrb.mxu1 %v9958_v6  ;;  %v13710_v60 = vld [vmem:[#allocation6 + $0xbec] sm:$0xf0] }
 0x1ec   : > { %v13349_v28 = vld [vmem:[#allocation6 + $0xac] sm:$0xf]  ;;  %v10918_v32 = vor.u32 %v13749_v27, %v10915_v20  ;;  %v10730_v6 = vor.u32 %v13710_v60, %v10729_v59  ;;  %v11177_v16 = vld [vmem:[#allocation6 + $0xf30] sm:$0xf] }
 0x1ed   : > { %3997 = vmatpush.bf16.msrb.mxu2 %v10470_v7  ;;  %v9315_v29 = vld [vmem:[#allocation6 + $0xe8] sm:$0xf0]  ;;  %3972 = vmatpush.bf16.msrb.mxu0 %v9382_v22  ;;  %v9641_v7 = vld [vmem:[#allocation6 + $0x330] sm:$0xf] }
 0x1ee   : > { %v13477_v30 = vld [vmem:[#allocation6 + $0x4ac] sm:$0xf]  ;;  %v9318_v39 = vor.u32 %v13349_v28, %v9315_v29  ;;  %v13822_v17 = vld [vmem:[#allocation6 + $0xf6c] sm:$0xf0]  ;;  %v9642_v18 = vor.u32 %v13438_v9, %v9641_v7 }
 0x1ef   : > { %4010 = vmatpush.bf16.msrb.mxu3 %v10982_v13  ;;  %v9827_v33 = vld [vmem:[#allocation6 + $0x4e8] sm:$0xf0]  ;;  %3985 = vmatpush.bf16.msrb.mxu1 %v9894_v25  ;;  %v10665_v13 = vld [vmem:[#allocation6 + $0xb30] sm:$0xf]  ;;  %v11178_v25 = vor.u32 %v13822_v17, %v11177_v16 }
 0x1f0   : > { %v13605_v34 = vld [vmem:[#allocation6 + $0x8ac] sm:$0xf]  ;;  %v9830_v43 = vor.u32 %v13477_v30, %v9827_v33  ;;  %v10666_v27 = vor.u32 %v13694_v15, %v10665_v13  ;;  %v9577_v20 = vld [vmem:[#allocation6 + $0x2b0] sm:$0xf] }
 0x1f1   : > { %v10339_v35 = vld [vmem:[#allocation6 + $0x8e8] sm:$0xf0]  ;;  %3998 = vmatpush.bf16.msrb.mxu2 %v10406_v26  ;;  %3973 = vmatpush.bf16.msrb.mxu0 %v9318_v39  ;;  %v13422_v22 = vld [vmem:[#allocation6 + $0x2ec] sm:$0xf0] }
 0x1f2   : > { %v13733_v36 = vld [vmem:[#allocation6 + $0xcac] sm:$0xf]  ;;  %v10342_v44 = vor.u32 %v13605_v34, %v10339_v35  ;;  %v13550_v26 = vld [vmem:[#allocation6 + $0x6ec] sm:$0xf0] }
 0x1f3   : > { %v10851_v38 = vld [vmem:[#allocation6 + $0xce8] sm:$0xf0]  ;;  %4011 = vmatpush.bf16.msrb.mxu3 %v10918_v32  ;;  %3986 = vmatpush.bf16.msrb.mxu1 %v9830_v43  ;;  %v10601_v28 = vld [vmem:[#allocation6 + $0xab0] sm:$0xf]  ;;  %v9578_v32 = vor.u32 %v13422_v22, %v9577_v20  ;;  %v10090_v33 = vor.u32 %v13550_v26, %v10089_v24 }
 0x1f4   : > { %v13333_v40 = vld [vmem:[#allocation6 + $0x2c] sm:$0xf]  ;;  %v10854_v48 = vor.u32 %v13733_v36, %v10851_v38  ;;  %v13678_v29 = vld [vmem:[#allocation6 + $0xaec] sm:$0xf0] }
 0x1f5   : > { %v9251_v42 = vld [vmem:[#allocation6 + $0x68] sm:$0xf0]  ;;  %3999 = vmatpush.bf16.msrb.mxu2 %v10342_v44  ;;  %v11113_v30 = vld [vmem:[#allocation6 + $0xeb0] sm:$0xf]  ;;  %v10602_v34 = vor.u32 %v13678_v29, %v10601_v28 }
 0x1f6   : > { %v13461_v45 = vld [vmem:[#allocation6 + $0x42c] sm:$0xf]  ;;  %v9254_v57 = vor.u32 %v13333_v40, %v9251_v42  ;;  %v9513_v35 = vld [vmem:[#allocation6 + $0x230] sm:$0xf]  ;;  %v11114_v39 = vor.u32 %v13806_v31, %v11113_v30 }
 0x1f7   : > { %v9763_v46 = vld [vmem:[#allocation6 + $0x468] sm:$0xf0]  ;;  %4012 = vmatpush.bf16.msrb.mxu3 %v10854_v48  ;;  %v13406_v36 = vld [vmem:[#allocation6 + $0x26c] sm:$0xf0] }
 0x1f8   : > { %v13589_v37 = vld [vmem:[#allocation6 + $0x82c] sm:$0xf]  ;;  %v9766_v61 = vor.u32 %v13461_v45, %v9763_v46  ;;  %3974 = vmatpush.bf16.msrb.mxu0 %v9254_v57  ;;  %v10025_v38 = vld [vmem:[#allocation6 + $0x630] sm:$0xf]  ;;  %v9514_v46 = vor.u32 %v13406_v36, %v9513_v35 }
 0x1f9   : > { %v10275_v49 = vld [vmem:[#allocation6 + $0x868] sm:$0xf0]  ;;  %v13534_v40 = vld [vmem:[#allocation6 + $0x66c] sm:$0xf0] }
 0x1fa   : > { %v13717_v50 = vld [vmem:[#allocation6 + $0xc2c] sm:$0xf]  ;;  %v10278_v55 = vor.u32 %v13589_v37, %v10275_v49  ;;  %3987 = vmatpush.bf16.msrb.mxu1 %v9766_v61  ;;  %v10537_v42 = vld [vmem:[#allocation6 + $0xa30] sm:$0xf]  ;;  %v3768_v37 = vpop.f32.mrf.mxu0  ;;  %v10026_v47 = vor.u32 %v13534_v40, %v10025_v38  ;;  %v3781_v49 = vpop.f32.mrf.mxu1 }
 0x1fb   : > { %v10787_v51 = vld [vmem:[#allocation6 + $0xc68] sm:$0xf0]  ;;  %3975 = vmatmul.bf16.vlgmr.msrb.gmra.mxu0 %v15096_v8  ;;  %v13662_v43 = vld [vmem:[#allocation6 + $0xa6c] sm:$0xf0]  ;;  %v3782_v54 = vadd.f32 %v3781_v49, %v3768_v37  ;;  %v3794_v63 = vpop.f32.mrf.mxu2  ;;  %v9707_v49 = vld [vmem:[#allocation6 + $0x3f0] sm:$0xf0] }
 0x1fc   : > { %v10790_v0 = vor.u32 %v13717_v50, %v10787_v51  ;;  %4000 = vmatpush.bf16.msrb.mxu2 %v10278_v55  ;;  %4019 = vmatpush.bf16.msra.mxu0 %v9706_v2  ;;  %v11049_v44 = vld [vmem:[#allocation6 + $0xe30] sm:$0xf]  ;;  %v10538_v48 = vor.u32 %v13662_v43, %v10537_v42  ;;  %v3807_v9 = vpop.f32.mrf.mxu3 }
 0x1fd   : > { %3988 = vmatmul.bf16.vlgmr.msrb.gmra.mxu1 %v15098_v14  ;;  %v13790_v45 = vld [vmem:[#allocation6 + $0xe6c] sm:$0xf0]  ;;  %v3795_v7 = vadd.f32 %v3794_v63, %v3782_v54  ;;  %v13702_v54 = vld [vmem:[#allocation6 + $0xbb4] sm:$0xf] }
 0x1fe   : > { %4013 = vmatpush.bf16.msrb.mxu3 %v10790_v0  ;;  %4032 = vmatpush.bf16.msra.mxu1 %v10218_v3  ;;  %v9449_v50 = vld [vmem:[#allocation6 + $0x1b0] sm:$0xf]  ;;  %v11050_v53 = vor.u32 %v13790_v45, %v11049_v44 }
 0x1ff   : > { %4001 = vmatmul.bf16.vlgmr.msrb.gmra.mxu2 %v15091_v1  ;;  %v13390_v51 = vld [vmem:[#allocation6 + $0x1ec] sm:$0xf0]  ;;  %v3808_v16 = vadd.f32 %v3807_v9, %v3795_v7  ;;  %v10155_v9 = vld [vmem:[#allocation6 + $0x770] sm:$0xf0] }
 0x200   : > { %4045 = vmatpush.bf16.msra.mxu2 %v10730_v6  ;;  %4020 = vmatpush.bf16.msra.mxu0 %v9642_v18  ;;  %v9961_v52 = vld [vmem:[#allocation6 + $0x5b0] sm:$0xf]  ;;  %v9450_v61 = vor.u32 %v13390_v51, %v9449_v50  ;;  %v13574_v50 = vld [vmem:[#allocation6 + $0x7b4] sm:$0xf] }
 0x201   : > { %4014 = vmatmul.bf16.vlgmr.msrb.gmra.mxu3 %v15093_v5  ;;  %v13518_v56 = vld [vmem:[#allocation6 + $0x5ec] sm:$0xf0]  ;;  %14503 = vtanh.f32 %v3808_v16 }
 0x202   : > { %4058 = vmatpush.bf16.msra.mxu3 %v11242_v11  ;;  %4033 = vmatpush.bf16.msra.mxu1 %v10154_v19  ;;  %v10473_v57 = vld [vmem:[#allocation6 + $0x9b0] sm:$0xf]  ;;  %v9962_v55 = vor.u32 %v13518_v56, %v9961_v52  ;;  %v3770_v18 = vpop.f32.mrf.mxu0  ;;  %v10731_v56 = vld [vmem:[#allocation6 + $0xbf0] sm:$0xf0] }
 0x203   : > { %v13646_v58 = vld [vmem:[#allocation6 + $0x9ec] sm:$0xf0]  ;;  %v3796_v42 = vpop.f32.mrf.mxu2  ;;  %v13414_v18 = vld [vmem:[#allocation6 + $0x2b4] sm:$0xf] }
 0x204   : > { %4046 = vmatpush.bf16.msra.mxu2 %v10666_v27  ;;  %4021 = vmatpush.bf16.msra.mxu0 %v9578_v32  ;;  %v10985_v59 = vld [vmem:[#allocation6 + $0xdb0] sm:$0xf]  ;;  %v10474_v62 = vor.u32 %v13646_v58, %v10473_v57  ;;  %v3809_v37 = vpop.f32.mrf.mxu3 }
 0x205   : > { %v13774_v60 = vld [vmem:[#allocation6 + $0xdec] sm:$0xf0]  ;;  %v9451_v37 = vld [vmem:[#allocation6 + $0x1f0] sm:$0xf0] }
 0x206   : > { %4059 = vmatpush.bf16.msra.mxu3 %v11178_v25  ;;  %4034 = vmatpush.bf16.msra.mxu1 %v10090_v33  ;;  %v9385_v0 = vld [vmem:[#allocation6 + $0x130] sm:$0xf]  ;;  %v10986_v6 = vor.u32 %v13774_v60, %v10985_v59  ;;  %v3783_v25 = vpop.f32.mrf.mxu1  ;;  %v13830_v60 = vld [vmem:[#allocation6 + $0xfb4] sm:$0xf] }
 0x207   : > { %v13374_v2 = vld [vmem:[#allocation6 + $0x16c] sm:$0xf0]  ;;  %v10603_v25 = vld [vmem:[#allocation6 + $0xaf0] sm:$0xf0] }
 0x208   : > { %4047 = vmatpush.bf16.msra.mxu2 %v10602_v34  ;;  %4022 = vmatpush.bf16.msra.mxu0 %v9514_v46  ;;  %v9897_v3 = vld [vmem:[#allocation6 + $0x530] sm:$0xf]  ;;  %v9386_v17 = vor.u32 %v13374_v2, %v9385_v0  ;;  %v10734_v0 = vor.u32 %v13702_v54, %v10731_v56  ;;  %v13430_v2 = vld [vmem:[#allocation6 + $0x334] sm:$0xf] }
 0x209   : > { %v13502_v10 = vld [vmem:[#allocation6 + $0x56c] sm:$0xf0]  ;;  %v13766_v54 = vld [vmem:[#allocation6 + $0xdb4] sm:$0xf] }
 0x20a   : > { %4060 = vmatpush.bf16.msra.mxu3 %v11114_v39  ;;  %4035 = vmatpush.bf16.msra.mxu1 %v10026_v47  ;;  %v10409_v11 = vld [vmem:[#allocation6 + $0x930] sm:$0xf]  ;;  %v9898_v19 = vor.u32 %v13502_v10, %v9897_v3  ;;  %v14502_v47 = vpop.eup %14501  ;;  %v9643_v3 = vld [vmem:[#allocation6 + $0x370] sm:$0xf0] }
 0x20b   : > { %v13630_v12 = vld [vmem:[#allocation6 + $0x96c] sm:$0xf0]  ;;  %v14504_v51 = vpop.eup %14503  ;;  %v13686_v10 = vld [vmem:[#allocation6 + $0xb34] sm:$0xf] }
 0x20c   : > { %4048 = vmatpush.bf16.msra.mxu2 %v10538_v48  ;;  %v10921_v13 = vld [vmem:[#allocation6 + $0xd30] sm:$0xf]  ;;  %4023 = vmatpush.bf16.msra.mxu0 %v9450_v61  ;;  %v10410_v27 = vor.u32 %v13630_v12, %v10409_v11  ;;  %v13446_v48 = vld [vmem:[#allocation6 + $0x3b4] sm:$0xf]  ;;  %v15165_v57 = vpack.c.bf16 %v14504_v51, %v14502_v47 }
 0x20d   : > { %v13758_v15 = vld [vmem:[#allocation6 + $0xd6c] sm:$0xf0]  ;;  %v11243_v61 = vld [vmem:[#allocation6 + $0xff0] sm:$0xf0] }
 0x20e   : > { %4061 = vmatpush.bf16.msra.mxu3 %v11050_v53  ;;  %4036 = vmatpush.bf16.msra.mxu1 %v9962_v55  ;;  %v9321_v20 = vld [vmem:[#allocation6 + $0xb0] sm:$0xf]  ;;  %v10922_v26 = vor.u32 %v13758_v15, %v10921_v13  ;;  %v10219_v53 = vld [vmem:[#allocation6 + $0x7f0] sm:$0xf0]  ;;  %v11246_v7 = vor.u32 %v13830_v60, %v11243_v61  ;;  %v9646_v15 = vor.u32 %v13430_v2, %v9643_v3 }
 0x20f   : > { %v13358_v22 = vld [vmem:[#allocation6 + $0xec] sm:$0xf0]  ;;  %v10222_v63 = vor.u32 %v13574_v50, %v10219_v53  ;;  %v10667_v11 = vld [vmem:[#allocation6 + $0xb70] sm:$0xf0] }
 0x210   : > { %4049 = vmatpush.bf16.msra.mxu2 %v10474_v62  ;;  %v9833_v24 = vld [vmem:[#allocation6 + $0x4b0] sm:$0xf]  ;;  %4024 = vmatpush.bf16.msra.mxu0 %v9386_v17  ;;  %v9322_v33 = vor.u32 %v13358_v22, %v9321_v20  ;;  %v9710_v62 = vor.u32 %v13446_v48, %v9707_v49  ;;  %v13814_v12 = vld [vmem:[#allocation6 + $0xf34] sm:$0xf]  ;;  %v10670_v17 = vor.u32 %v13686_v10, %v10667_v11 }
 0x211   : > { %v13486_v28 = vld [vmem:[#allocation6 + $0x4ec] sm:$0xf0]  ;;  %v11179_v13 = vld [vmem:[#allocation6 + $0xf70] sm:$0xf0] }
 0x212   : > { %4062 = vmatpush.bf16.msra.mxu3 %v10986_v6  ;;  %v10345_v29 = vld [vmem:[#allocation6 + $0x8b0] sm:$0xf]  ;;  %4037 = vmatpush.bf16.msra.mxu1 %v9898_v19  ;;  %v9834_v35 = vor.u32 %v13486_v28, %v9833_v24  ;;  %v13558_v6 = vld [vmem:[#allocation6 + $0x734] sm:$0xf]  ;;  %v11182_v20 = vor.u32 %v13814_v12, %v11179_v13 }
 0x213   : > { %v13614_v30 = vld [vmem:[#allocation6 + $0x8ec] sm:$0xf0]  ;;  %v10158_v16 = vor.u32 %v13558_v6, %v10155_v9  ;;  %v9579_v19 = vld [vmem:[#allocation6 + $0x2f0] sm:$0xf0]  ;;  %v3833_v48 = vpop.f32.mrf.mxu1 }
 0x214   : > { %v10857_v31 = vld [vmem:[#allocation6 + $0xcb0] sm:$0xf]  ;;  %4050 = vmatpush.bf16.msra.mxu2 %v10410_v27  ;;  %v10346_v36 = vor.u32 %v13614_v30, %v10345_v29  ;;  %4025 = vmatpush.bf16.msra.mxu0 %v9322_v33  ;;  %v13542_v27 = vld [vmem:[#allocation6 + $0x6b4] sm:$0xf]  ;;  %v9582_v29 = vor.u32 %v13414_v18, %v9579_v19 }
 0x215   : > { %v13742_v32 = vld [vmem:[#allocation6 + $0xcec] sm:$0xf0]  ;;  %v10091_v22 = vld [vmem:[#allocation6 + $0x6f0] sm:$0xf0] }
 0x216   : > { %v9257_v34 = vld [vmem:[#allocation6 + $0x30] sm:$0xf]  ;;  %4063 = vmatpush.bf16.msra.mxu3 %v10922_v26  ;;  %v10858_v43 = vor.u32 %v13742_v32, %v10857_v31  ;;  %4038 = vmatpush.bf16.msra.mxu1 %v9834_v35  ;;  %v13670_v24 = vld [vmem:[#allocation6 + $0xab4] sm:$0xf]  ;;  %v10094_v30 = vor.u32 %v13542_v27, %v10091_v22 }
 0x217   : > { %v9769_v38 = vld [vmem:[#allocation6 + $0x430] sm:$0xf]  ;;  %v9258_v52 = vor.u32 %v13342_v23, %v9257_v34  ;;  %v13798_v26 = vld [vmem:[#allocation6 + $0xeb4] sm:$0xf]  ;;  %v10606_v31 = vor.u32 %v13670_v24, %v10603_v25 }
 0x218   : > { %v13470_v39 = vld [vmem:[#allocation6 + $0x46c] sm:$0xf0]  ;;  %4051 = vmatpush.bf16.msra.mxu2 %v10346_v36  ;;  %v11115_v28 = vld [vmem:[#allocation6 + $0xef0] sm:$0xf0] }
 0x219   : > { %v10281_v40 = vld [vmem:[#allocation6 + $0x830] sm:$0xf]  ;;  %v9770_v58 = vor.u32 %v13470_v39, %v9769_v38  ;;  %4026 = vmatpush.bf16.msra.mxu0 %v9258_v52  ;;  %v13398_v32 = vld [vmem:[#allocation6 + $0x234] sm:$0xf]  ;;  %v11118_v23 = vor.u32 %v13798_v26, %v11115_v28 }
 0x21a   : > { %v13598_v44 = vld [vmem:[#allocation6 + $0x86c] sm:$0xf0]  ;;  %4064 = vmatpush.bf16.msra.mxu3 %v10858_v43  ;;  %v9515_v33 = vld [vmem:[#allocation6 + $0x270] sm:$0xf0]  ;;  %v3820_v43 = vpop.f32.mrf.mxu0 }
 0x21b   : > { %v10793_v45 = vld [vmem:[#allocation6 + $0xc30] sm:$0xf]  ;;  %v10282_v59 = vor.u32 %v13598_v44, %v10281_v40  ;;  %4039 = vmatpush.bf16.msra.mxu1 %v9770_v58  ;;  %v13526_v34 = vld [vmem:[#allocation6 + $0x634] sm:$0xf]  ;;  %v9518_v42 = vor.u32 %v13398_v32, %v9515_v33  ;;  %v3834_v53 = vadd.f32 %v3833_v48, %v3820_v43  ;;  %v13583_v48 = vld [vmem:[#allocation6 + $0x7f4] sm:$0xf0] }
 0x21c   : > { %v13726_v46 = vld [vmem:[#allocation6 + $0xc6c] sm:$0xf0]  ;;  %4027 = vmatmul.bf16.vlgmr.msra.gmra.mxu0 %v15096_v8  ;;  %v10027_v35 = vld [vmem:[#allocation6 + $0x670] sm:$0xf0] }
 0x21d   : > { %v10794_v55 = vor.u32 %v13726_v46, %v10793_v45  ;;  %4052 = vmatpush.bf16.msra.mxu2 %v10282_v59  ;;  %4071 = vmatpush.bf16.msrb.mxu0 %v9710_v62  ;;  %v13654_v36 = vld [vmem:[#allocation6 + $0xa34] sm:$0xf]  ;;  %v10030_v44 = vor.u32 %v13526_v34, %v10027_v35  ;;  %v3859_v9 = vpop.f32.mrf.mxu3 }
 0x21e   : > { %4040 = vmatmul.bf16.vlgmr.msra.gmra.mxu1 %v15098_v14  ;;  %v10539_v38 = vld [vmem:[#allocation6 + $0xa70] sm:$0xf0] }
 0x21f   : > { %4065 = vmatpush.bf16.msra.mxu3 %v10794_v55  ;;  %4084 = vmatpush.bf16.msrb.mxu1 %v10222_v63  ;;  %v13782_v39 = vld [vmem:[#allocation6 + $0xe34] sm:$0xf]  ;;  %v10542_v45 = vor.u32 %v13654_v36, %v10539_v38  ;;  %v3846_v63 = vpop.f32.mrf.mxu2 }
 0x220   : > { %4053 = vmatmul.bf16.vlgmr.msra.gmra.mxu2 %v15091_v1  ;;  %v11051_v40 = vld [vmem:[#allocation6 + $0xe70] sm:$0xf0] }
 0x221   : > { %4097 = vmatpush.bf16.msrb.mxu2 %v10734_v0  ;;  %4072 = vmatpush.bf16.msrb.mxu0 %v9646_v15  ;;  %v13382_v46 = vld [vmem:[#allocation6 + $0x1b4] sm:$0xf]  ;;  %v11054_v49 = vor.u32 %v13782_v39, %v11051_v40 }
 0x222   : > { %4066 = vmatmul.bf16.vlgmr.msra.gmra.mxu3 %v15093_v5  ;;  %v13510_v47 = vld [vmem:[#allocation6 + $0x5b4] sm:$0xf]  ;;  %v9454_v58 = vor.u32 %v13382_v46, %v9451_v37  ;;  %v3822_v15 = vpop.f32.mrf.mxu0  ;;  %v13455_v46 = vld [vmem:[#allocation6 + $0x3f4] sm:$0xf0] }
 0x223   : > { %4110 = vmatpush.bf16.msrb.mxu3 %v11246_v7  ;;  %4085 = vmatpush.bf16.msrb.mxu1 %v10158_v16  ;;  %v9963_v50 = vld [vmem:[#allocation6 + $0x5f0] sm:$0xf0]  ;;  %v3847_v7 = vadd.f32 %v3846_v63, %v3834_v53  ;;  %v10225_v37 = vld [vmem:[#allocation6 + $0x7b8] sm:$0xf] }
 0x224   : > { %v13638_v51 = vld [vmem:[#allocation6 + $0x9b4] sm:$0xf]  ;;  %v9966_v59 = vor.u32 %v13510_v47, %v9963_v50  ;;  %v13711_v50 = vld [vmem:[#allocation6 + $0xbf4] sm:$0xf0] }
 0x225   : > { %4098 = vmatpush.bf16.msrb.mxu2 %v10670_v17  ;;  %4073 = vmatpush.bf16.msrb.mxu0 %v9582_v29  ;;  %v10475_v52 = vld [vmem:[#allocation6 + $0x9f0] sm:$0xf0]  ;;  %v15171_v13 = vadd.f32 %v3859_v9, %v3847_v7  ;;  %v11249_v53 = vld [vmem:[#allocation6 + $0xfb8] sm:$0xf] }
 0x226   : > { %v10987_v56 = vld [vmem:[#allocation6 + $0xdf0] sm:$0xf0]  ;;  %v10478_v60 = vor.u32 %v13638_v51, %v10475_v52  ;;  %v13823_v7 = vld [vmem:[#allocation6 + $0xf74] sm:$0xf0] }
 0x227   : > { %4111 = vmatpush.bf16.msrb.mxu3 %v11182_v20  ;;  %4086 = vmatpush.bf16.msrb.mxu1 %v10094_v30  ;;  %v13366_v61 = vld [vmem:[#allocation6 + $0x134] sm:$0xf]  ;;  %v10990_v0 = vor.u32 %v13766_v54, %v10987_v56  ;;  %v3835_v20 = vpop.f32.mrf.mxu1  ;;  %v3848_v38 = vpop.f32.mrf.mxu2  ;;  %v13839_v54 = vld [vmem:[#allocation6 + $0xff4] sm:$0xf0]  ;;  %14505 = vtanh.f32 %v15171_v13 }
 0x228   : > { %v9387_v55 = vld [vmem:[#allocation6 + $0x170] sm:$0xf0]  ;;  %v11250_v63 = vor.u32 %v13839_v54, %v11249_v53  ;;  %v13423_v15 = vld [vmem:[#allocation6 + $0x2f4] sm:$0xf0] }
 0x229   : > { %4099 = vmatpush.bf16.msrb.mxu2 %v10606_v31  ;;  %4074 = vmatpush.bf16.msrb.mxu0 %v9518_v42  ;;  %v13494_v62 = vld [vmem:[#allocation6 + $0x534] sm:$0xf]  ;;  %v9390_v12 = vor.u32 %v13366_v61, %v9387_v55  ;;  %v9649_v61 = vld [vmem:[#allocation6 + $0x338] sm:$0xf] }
 0x22a   : > { %v9899_v2 = vld [vmem:[#allocation6 + $0x570] sm:$0xf0]  ;;  %v13439_v55 = vld [vmem:[#allocation6 + $0x374] sm:$0xf0] }
 0x22b   : > { %4112 = vmatpush.bf16.msrb.mxu3 %v11118_v23  ;;  %4087 = vmatpush.bf16.msrb.mxu1 %v10030_v44  ;;  %v13622_v3 = vld [vmem:[#allocation6 + $0x934] sm:$0xf]  ;;  %v9902_v16 = vor.u32 %v13494_v62, %v9899_v2  ;;  %v3861_v44 = vpop.f32.mrf.mxu3  ;;  %v10161_v62 = vld [vmem:[#allocation6 + $0x738] sm:$0xf]  ;;  %v9650_v9 = vor.u32 %v13439_v55, %v9649_v61 }
 0x22c   : > { %v10411_v6 = vld [vmem:[#allocation6 + $0x970] sm:$0xf0]  ;;  %v10673_v2 = vld [vmem:[#allocation6 + $0xb38] sm:$0xf] }
 0x22d   : > { %4100 = vmatpush.bf16.msrb.mxu2 %v10542_v45  ;;  %v13750_v10 = vld [vmem:[#allocation6 + $0xd34] sm:$0xf]  ;;  %4075 = vmatpush.bf16.msrb.mxu0 %v9454_v58  ;;  %v10414_v17 = vor.u32 %v13622_v3, %v10411_v6  ;;  %v9713_v45 = vld [vmem:[#allocation6 + $0x3b8] sm:$0xf] }
 0x22e   : > { %v10923_v11 = vld [vmem:[#allocation6 + $0xd70] sm:$0xf0]  ;;  %v9714_v58 = vor.u32 %v13455_v46, %v9713_v45  ;;  %v13695_v3 = vld [vmem:[#allocation6 + $0xb74] sm:$0xf0] }
 0x22f   : > { %4113 = vmatpush.bf16.msrb.mxu3 %v11054_v49  ;;  %4088 = vmatpush.bf16.msrb.mxu1 %v9966_v59  ;;  %v13350_v18 = vld [vmem:[#allocation6 + $0xb4] sm:$0xf]  ;;  %v10926_v22 = vor.u32 %v13750_v10, %v10923_v11  ;;  %v10737_v49 = vld [vmem:[#allocation6 + $0xbb8] sm:$0xf]  ;;  %v10226_v59 = vor.u32 %v13583_v48, %v10225_v37  ;;  %v10674_v11 = vor.u32 %v13695_v3, %v10673_v2 }
 0x230   : > { %v9323_v19 = vld [vmem:[#allocation6 + $0xf0] sm:$0xf0]  ;;  %v11185_v6 = vld [vmem:[#allocation6 + $0xf38] sm:$0xf] }
 0x231   : > { %4101 = vmatpush.bf16.msrb.mxu2 %v10478_v60  ;;  %v13478_v27 = vld [vmem:[#allocation6 + $0x4b4] sm:$0xf]  ;;  %4076 = vmatpush.bf16.msrb.mxu0 %v9390_v12  ;;  %v9326_v30 = vor.u32 %v13350_v18, %v9323_v19  ;;  %v10738_v60 = vor.u32 %v13711_v50, %v10737_v49  ;;  %v9585_v12 = vld [vmem:[#allocation6 + $0x2b8] sm:$0xf] }
 0x232   : > { %v9835_v24 = vld [vmem:[#allocation6 + $0x4f0] sm:$0xf0]  ;;  %v13551_v18 = vld [vmem:[#allocation6 + $0x6f4] sm:$0xf0] }
 0x233   : > { %4114 = vmatpush.bf16.msrb.mxu3 %v10990_v0  ;;  %v13606_v25 = vld [vmem:[#allocation6 + $0x8b4] sm:$0xf]  ;;  %4089 = vmatpush.bf16.msrb.mxu1 %v9902_v16  ;;  %v9838_v33 = vor.u32 %v13478_v27, %v9835_v24  ;;  %v13567_v0 = vld [vmem:[#allocation6 + $0x774] sm:$0xf0]  ;;  %v9586_v24 = vor.u32 %v13423_v15, %v9585_v12  ;;  %v3872_v38 = vpop.f32.mrf.mxu0 }
 0x234   : > { %v10347_v26 = vld [vmem:[#allocation6 + $0x8f0] sm:$0xf0]  ;;  %v10162_v10 = vor.u32 %v13567_v0, %v10161_v62  ;;  %v10097_v16 = vld [vmem:[#allocation6 + $0x6b8] sm:$0xf] }
 0x235   : > { %v13734_v28 = vld [vmem:[#allocation6 + $0xcb4] sm:$0xf]  ;;  %4102 = vmatpush.bf16.msrb.mxu2 %v10414_v17  ;;  %v10350_v34 = vor.u32 %v13606_v25, %v10347_v26  ;;  %4077 = vmatpush.bf16.msrb.mxu0 %v9326_v30  ;;  %v11186_v17 = vor.u32 %v13823_v7, %v11185_v6  ;;  %v10609_v19 = vld [vmem:[#allocation6 + $0xab8] sm:$0xf]  ;;  %v10098_v25 = vor.u32 %v13551_v18, %v10097_v16 }
 0x236   : > { %v10859_v29 = vld [vmem:[#allocation6 + $0xcf0] sm:$0xf0]  ;;  %v13679_v27 = vld [vmem:[#allocation6 + $0xaf4] sm:$0xf0] }
 0x237   : > { %v13334_v31 = vld [vmem:[#allocation6 + $0x34] sm:$0xf]  ;;  %4115 = vmatpush.bf16.msrb.mxu3 %v10926_v22  ;;  %v10862_v39 = vor.u32 %v13734_v28, %v10859_v29  ;;  %4090 = vmatpush.bf16.msrb.mxu1 %v9838_v33  ;;  %v11121_v20 = vld [vmem:[#allocation6 + $0xeb8] sm:$0xf]  ;;  %v10610_v26 = vor.u32 %v13679_v27, %v10609_v19 }
 0x238   : > { %v9259_v32 = vld [vmem:[#allocation6 + $0x70] sm:$0xf0]  ;;  %v13807_v22 = vld [vmem:[#allocation6 + $0xef4] sm:$0xf0] }
 0x239   : > { %v13462_v23 = vld [vmem:[#allocation6 + $0x434] sm:$0xf]  ;;  %v9262_v47 = vor.u32 %v13334_v31, %v9259_v32  ;;  %4103 = vmatpush.bf16.msrb.mxu2 %v10350_v34  ;;  %v9521_v28 = vld [vmem:[#allocation6 + $0x238] sm:$0xf]  ;;  %v11122_v31 = vor.u32 %v13807_v22, %v11121_v20 }
 0x23a   : > { %v9771_v35 = vld [vmem:[#allocation6 + $0x470] sm:$0xf0]  ;;  %v13407_v29 = vld [vmem:[#allocation6 + $0x274] sm:$0xf0] }
 0x23b   : > { %v13590_v36 = vld [vmem:[#allocation6 + $0x834] sm:$0xf]  ;;  %v9774_v51 = vor.u32 %v13462_v23, %v9771_v35  ;;  %4116 = vmatpush.bf16.msrb.mxu3 %v10862_v39  ;;  %4078 = vmatpush.bf16.msrb.mxu0 %v9262_v47  ;;  %v10033_v30 = vld [vmem:[#allocation6 + $0x638] sm:$0xf] }
 0x23c   : > { %v10283_v40 = vld [vmem:[#allocation6 + $0x870] sm:$0xf0]  ;;  %v13535_v32 = vld [vmem:[#allocation6 + $0x674] sm:$0xf0] }
 0x23d   : > { %v13718_v42 = vld [vmem:[#allocation6 + $0xc34] sm:$0xf]  ;;  %v10286_v52 = vor.u32 %v13590_v36, %v10283_v40  ;;  %4091 = vmatpush.bf16.msrb.mxu1 %v9774_v51  ;;  %v10545_v33 = vld [vmem:[#allocation6 + $0xa38] sm:$0xf]  ;;  %v9522_v36 = vor.u32 %v13407_v29, %v9521_v28  ;;  %v10034_v39 = vor.u32 %v13535_v32, %v10033_v30 }
 0x23e   : > { %v10795_v43 = vld [vmem:[#allocation6 + $0xc70] sm:$0xf0]  ;;  %4079 = vmatmul.bf16.vlgmr.msrb.gmra.mxu0 %v15096_v8  ;;  %v13663_v34 = vld [vmem:[#allocation6 + $0xa74] sm:$0xf0] }
 0x23f   : > { %v10798_v56 = vor.u32 %v13718_v42, %v10795_v43  ;;  %4104 = vmatpush.bf16.msrb.mxu2 %v10286_v52  ;;  %4123 = vmatpush.bf16.msra.mxu0 %v9714_v58  ;;  %v11057_v23 = vld [vmem:[#allocation6 + $0xe38] sm:$0xf]  ;;  %v10546_v40 = vor.u32 %v13663_v34, %v10545_v33  ;;  %v3885_v42 = vpop.f32.mrf.mxu1  ;;  %v3911_v62 = vpop.f32.mrf.mxu3 }
 0x240   : > { %4092 = vmatmul.bf16.vlgmr.msrb.gmra.mxu1 %v15098_v14  ;;  %v13791_v35 = vld [vmem:[#allocation6 + $0xe74] sm:$0xf0]  ;;  %v3886_v37 = vadd.f32 %v3885_v42, %v3872_v38  ;;  %v13447_v42 = vld [vmem:[#allocation6 + $0x3bc] sm:$0xf] }
 0x241   : > { %4117 = vmatpush.bf16.msrb.mxu3 %v10798_v56  ;;  %4136 = vmatpush.bf16.msra.mxu1 %v10226_v59  ;;  %v9457_v43 = vld [vmem:[#allocation6 + $0x1b8] sm:$0xf]  ;;  %v11058_v46 = vor.u32 %v13791_v35, %v11057_v23  ;;  %v3898_v56 = vpop.f32.mrf.mxu2 }
 0x242   : > { %4105 = vmatmul.bf16.vlgmr.msrb.gmra.mxu2 %v15091_v1  ;;  %v13391_v44 = vld [vmem:[#allocation6 + $0x1f4] sm:$0xf0]  ;;  %v3899_v55 = vadd.f32 %v3898_v56, %v3886_v37  ;;  %v10227_v37 = vld [vmem:[#allocation6 + $0x7f8] sm:$0xf0] }
 0x243   : > { %4149 = vmatpush.bf16.msra.mxu2 %v10738_v60  ;;  %4124 = vmatpush.bf16.msra.mxu0 %v9650_v9  ;;  %v9969_v45 = vld [vmem:[#allocation6 + $0x5b8] sm:$0xf]  ;;  %v9458_v52 = vor.u32 %v13391_v44, %v9457_v43  ;;  %v9715_v43 = vld [vmem:[#allocation6 + $0x3f8] sm:$0xf0] }
 0x244   : > { %4118 = vmatmul.bf16.vlgmr.msrb.gmra.mxu3 %v15093_v5  ;;  %v13519_v47 = vld [vmem:[#allocation6 + $0x5f4] sm:$0xf0]  ;;  %v3912_v7 = vadd.f32 %v3911_v62, %v3899_v55  ;;  %v13575_v44 = vld [vmem:[#allocation6 + $0x7bc] sm:$0xf]  ;;  %v9718_v56 = vor.u32 %v13447_v42, %v9715_v43 }
 0x245   : > { %4162 = vmatpush.bf16.msra.mxu3 %v11250_v63  ;;  %4137 = vmatpush.bf16.msra.mxu1 %v10162_v10  ;;  %v10481_v48 = vld [vmem:[#allocation6 + $0x9b8] sm:$0xf]  ;;  %v9970_v53 = vor.u32 %v13519_v47, %v9969_v45  ;;  %v3874_v10 = vpop.f32.mrf.mxu0  ;;  %v13703_v47 = vld [vmem:[#allocation6 + $0xbbc] sm:$0xf] }
 0x246   : > { %v13647_v49 = vld [vmem:[#allocation6 + $0x9f4] sm:$0xf0]  ;;  %14507 = vtanh.f32 %v3912_v7  ;;  %v13559_v55 = vld [vmem:[#allocation6 + $0x73c] sm:$0xf] }
 0x247   : > { %4150 = vmatpush.bf16.msra.mxu2 %v10674_v11  ;;  %4125 = vmatpush.bf16.msra.mxu0 %v9586_v24  ;;  %v10993_v50 = vld [vmem:[#allocation6 + $0xdb8] sm:$0xf]  ;;  %v10482_v54 = vor.u32 %v13647_v49, %v10481_v48  ;;  %v3887_v18 = vpop.f32.mrf.mxu1  ;;  %v10739_v48 = vld [vmem:[#allocation6 + $0xbf8] sm:$0xf0] }
 0x248   : > { %v13775_v51 = vld [vmem:[#allocation6 + $0xdf4] sm:$0xf0]  ;;  %v13671_v18 = vld [vmem:[#allocation6 + $0xabc] sm:$0xf] }
 0x249   : > { %4163 = vmatpush.bf16.msra.mxu3 %v11186_v17  ;;  %4138 = vmatpush.bf16.msra.mxu1 %v10098_v25  ;;  %v9393_v58 = vld [vmem:[#allocation6 + $0x138] sm:$0xf]  ;;  %v10994_v61 = vor.u32 %v13775_v51, %v10993_v50  ;;  %v3900_v34 = vpop.f32.mrf.mxu2  ;;  %v13511_v42 = vld [vmem:[#allocation6 + $0x5bc] sm:$0xf] }
 0x24a   : > { %v13375_v59 = vld [vmem:[#allocation6 + $0x174] sm:$0xf0]  ;;  %v11059_v34 = vld [vmem:[#allocation6 + $0xe78] sm:$0xf0] }
 0x24b   : > { %4151 = vmatpush.bf16.msra.mxu2 %v10610_v26  ;;  %4126 = vmatpush.bf16.msra.mxu0 %v9522_v36  ;;  %v9905_v60 = vld [vmem:[#allocation6 + $0x538] sm:$0xf]  ;;  %v9394_v9 = vor.u32 %v13375_v59, %v9393_v58  ;;  %v10230_v58 = vor.u32 %v13575_v44, %v10227_v37  ;;  %v10742_v59 = vor.u32 %v13703_v47, %v10739_v48  ;;  %v10483_v37 = vld [vmem:[#allocation6 + $0x9f8] sm:$0xf0] }
 0x24c   : > { %v13503_v63 = vld [vmem:[#allocation6 + $0x574] sm:$0xf0]  ;;  %v13767_v48 = vld [vmem:[#allocation6 + $0xdbc] sm:$0xf] }
 0x24d   : > { %4164 = vmatpush.bf16.msra.mxu3 %v11122_v31  ;;  %4139 = vmatpush.bf16.msra.mxu1 %v10034_v39  ;;  %v10417_v0 = vld [vmem:[#allocation6 + $0x938] sm:$0xf]  ;;  %v9906_v11 = vor.u32 %v13503_v63, %v9905_v60  ;;  %v3913_v39 = vpop.f32.mrf.mxu3  ;;  %v13431_v60 = vld [vmem:[#allocation6 + $0x33c] sm:$0xf] }
 0x24e   : > { %v13631_v2 = vld [vmem:[#allocation6 + $0x974] sm:$0xf0]  ;;  %v10163_v63 = vld [vmem:[#allocation6 + $0x778] sm:$0xf0] }
 0x24f   : > { %4152 = vmatpush.bf16.msra.mxu2 %v10546_v40  ;;  %v10929_v3 = vld [vmem:[#allocation6 + $0xd38] sm:$0xf]  ;;  %4127 = vmatpush.bf16.msra.mxu0 %v9458_v52  ;;  %v10418_v12 = vor.u32 %v13631_v2, %v10417_v0  ;;  %v14506_v40 = vpop.eup %14505  ;;  %v13831_v52 = vld [vmem:[#allocation6 + $0xfbc] sm:$0xf] }
 0x250   : > { %v13759_v6 = vld [vmem:[#allocation6 + $0xd74] sm:$0xf0]  ;;  %v14508_v45 = vpop.eup %14507  ;;  %v13687_v0 = vld [vmem:[#allocation6 + $0xb3c] sm:$0xf] }
 0x251   : > { %4165 = vmatpush.bf16.msra.mxu3 %v11058_v46  ;;  %4140 = vmatpush.bf16.msra.mxu1 %v9970_v53  ;;  %v9329_v15 = vld [vmem:[#allocation6 + $0xb8] sm:$0xf]  ;;  %v10930_v19 = vor.u32 %v13759_v6, %v10929_v3  ;;  %v15178_v49 = vpack.c.bf16 %v14508_v45, %v14506_v40  ;;  %v11251_v53 = vld [vmem:[#allocation6 + $0xff8] sm:$0xf0] }
 0x252   : > { %v13359_v16 = vld [vmem:[#allocation6 + $0xf4] sm:$0xf0]  ;;  %v11254_v62 = vor.u32 %v13831_v52, %v11251_v53  ;;  %v10675_v2 = vld [vmem:[#allocation6 + $0xb78] sm:$0xf0] }
 0x253   : > { %4153 = vmatpush.bf16.msra.mxu2 %v10482_v54  ;;  %v9841_v17 = vld [vmem:[#allocation6 + $0x4b8] sm:$0xf]  ;;  %4128 = vmatpush.bf16.msra.mxu0 %v9394_v9  ;;  %v9330_v26 = vor.u32 %v13359_v16, %v9329_v15  ;;  %v13815_v3 = vld [vmem:[#allocation6 + $0xf3c] sm:$0xf]  ;;  %v10166_v9 = vor.u32 %v13559_v55, %v10163_v63  ;;  %v10678_v10 = vor.u32 %v13687_v0, %v10675_v2 }
 0x254   : > { %v13487_v27 = vld [vmem:[#allocation6 + $0x4f4] sm:$0xf0]  ;;  %v11187_v6 = vld [vmem:[#allocation6 + $0xf78] sm:$0xf0] }
 0x255   : > { %4166 = vmatpush.bf16.msra.mxu3 %v10994_v61  ;;  %v10353_v20 = vld [vmem:[#allocation6 + $0x8b8] sm:$0xf]  ;;  %4141 = vmatpush.bf16.msra.mxu1 %v9906_v11  ;;  %v9842_v29 = vor.u32 %v13487_v27, %v9841_v17  ;;  %v9651_v61 = vld [vmem:[#allocation6 + $0x378] sm:$0xf0]  ;;  %v11190_v16 = vor.u32 %v13815_v3, %v11187_v6 }
 0x256   : > { %v13615_v22 = vld [vmem:[#allocation6 + $0x8f4] sm:$0xf0]  ;;  %v9654_v7 = vor.u32 %v13431_v60, %v9651_v61  ;;  %v13415_v11 = vld [vmem:[#allocation6 + $0x2bc] sm:$0xf] }
 0x257   : > { %v10865_v24 = vld [vmem:[#allocation6 + $0xcb8] sm:$0xf]  ;;  %4154 = vmatpush.bf16.msra.mxu2 %v10418_v12  ;;  %v10354_v30 = vor.u32 %v13615_v22, %v10353_v20  ;;  %4129 = vmatpush.bf16.msra.mxu0 %v9330_v26  ;;  %v9587_v12 = vld [vmem:[#allocation6 + $0x2f8] sm:$0xf0]  ;;  %v3937_v43 = vpop.f32.mrf.mxu1 }
 0x258   : > { %v13743_v25 = vld [vmem:[#allocation6 + $0xcf4] sm:$0xf0]  ;;  %v13543_v15 = vld [vmem:[#allocation6 + $0x6bc] sm:$0xf]  ;;  %v9590_v22 = vor.u32 %v13415_v11, %v9587_v12 }
 0x259   : > { %v9265_v28 = vld [vmem:[#allocation6 + $0x38] sm:$0xf]  ;;  %4167 = vmatpush.bf16.msra.mxu3 %v10930_v19  ;;  %v10866_v23 = vor.u32 %v13743_v25, %v10865_v24  ;;  %4142 = vmatpush.bf16.msra.mxu1 %v9842_v29  ;;  %v10099_v17 = vld [vmem:[#allocation6 + $0x6f8] sm:$0xf0] }
 0x25a   : > { %v13343_v13 = vld [vmem:[#allocation6 + $0x74] sm:$0xf0]  ;;  %v10611_v19 = vld [vmem:[#allocation6 + $0xaf8] sm:$0xf0]  ;;  %v10102_v24 = vor.u32 %v13543_v15, %v10099_v17 }
 0x25b   : > { %v9777_v31 = vld [vmem:[#allocation6 + $0x438] sm:$0xf]  ;;  %v9266_v46 = vor.u32 %v13343_v13, %v9265_v28  ;;  %4155 = vmatpush.bf16.msra.mxu2 %v10354_v30  ;;  %v13799_v27 = vld [vmem:[#allocation6 + $0xebc] sm:$0xf]  ;;  %v10614_v25 = vor.u32 %v13671_v18, %v10611_v19 }
 0x25c   : > { %v13471_v32 = vld [vmem:[#allocation6 + $0x474] sm:$0xf0]  ;;  %v11123_v20 = vld [vmem:[#allocation6 + $0xef8] sm:$0xf0] }
 0x25d   : > { %v10289_v33 = vld [vmem:[#allocation6 + $0x838] sm:$0xf]  ;;  %v9778_v50 = vor.u32 %v13471_v32, %v9777_v31  ;;  %4168 = vmatpush.bf16.msra.mxu3 %v10866_v23  ;;  %4130 = vmatpush.bf16.msra.mxu0 %v9266_v46  ;;  %v13399_v26 = vld [vmem:[#allocation6 + $0x23c] sm:$0xf]  ;;  %v11126_v29 = vor.u32 %v13799_v27, %v11123_v20 }
 0x25e   : > { %v13599_v35 = vld [vmem:[#allocation6 + $0x874] sm:$0xf0]  ;;  %v9523_v28 = vld [vmem:[#allocation6 + $0x278] sm:$0xf0] }
 0x25f   : > { %v10801_v36 = vld [vmem:[#allocation6 + $0xc38] sm:$0xf]  ;;  %v10290_v51 = vor.u32 %v13599_v35, %v10289_v33  ;;  %4143 = vmatpush.bf16.msra.mxu1 %v9778_v50  ;;  %v13527_v13 = vld [vmem:[#allocation6 + $0x63c] sm:$0xf]  ;;  %v9526_v23 = vor.u32 %v13399_v26, %v9523_v28  ;;  %v3924_v35 = vpop.f32.mrf.mxu0  ;;  %v3939_v17 = vpop.f32.mrf.mxu1 }
 0x260   : > { %v13727_v38 = vld [vmem:[#allocation6 + $0xc74] sm:$0xf0]  ;;  %4131 = vmatmul.bf16.vlgmr.msra.gmra.mxu0 %v15096_v8  ;;  %v10035_v30 = vld [vmem:[#allocation6 + $0x678] sm:$0xf0]  ;;  %v3938_v47 = vadd.f32 %v3937_v43, %v3924_v35  ;;  %v13926_v17 = vld [vmem:[#allocation8 + $0x2ac] sm:$0xf0] }
 0x261   : > { %v10802_v54 = vor.u32 %v13727_v38, %v10801_v36  ;;  %4156 = vmatpush.bf16.msra.mxu2 %v10290_v51  ;;  %4175 = vmatpush.bf16.msrb.mxu0 %v9718_v56  ;;  %v13655_v31 = vld [vmem:[#allocation6 + $0xa3c] sm:$0xf]  ;;  %v10038_v36 = vor.u32 %v13527_v13, %v10035_v30  ;;  %v3963_v0 = vpop.f32.mrf.mxu3 }
 0x262   : > { %4144 = vmatmul.bf16.vlgmr.msra.gmra.mxu1 %v15098_v14  ;;  %v10547_v32 = vld [vmem:[#allocation6 + $0xa78] sm:$0xf0] }
 0x263   : > { %4169 = vmatpush.bf16.msra.mxu3 %v10802_v54  ;;  %4188 = vmatpush.bf16.msrb.mxu1 %v10230_v58  ;;  %v13783_v33 = vld [vmem:[#allocation6 + $0xe3c] sm:$0xf]  ;;  %v10550_v38 = vor.u32 %v13655_v31, %v10547_v32 }
 0x264   : > { %4157 = vmatmul.bf16.vlgmr.msra.gmra.mxu2 %v15091_v1  ;;  %v13383_v39 = vld [vmem:[#allocation6 + $0x1bc] sm:$0xf]  ;;  %v11062_v44 = vor.u32 %v13783_v33, %v11059_v34 }
 0x265   : > { %4201 = vmatpush.bf16.msrb.mxu2 %v10742_v59  ;;  %4176 = vmatpush.bf16.msrb.mxu0 %v9654_v7  ;;  %v9459_v40 = vld [vmem:[#allocation6 + $0x1f8] sm:$0xf0]  ;;  %v3950_v59 = vpop.f32.mrf.mxu2 }
 0x266   : > { %4170 = vmatmul.bf16.vlgmr.msra.gmra.mxu3 %v15093_v5  ;;  %v9971_v45 = vld [vmem:[#allocation6 + $0x5f8] sm:$0xf0]  ;;  %v9462_v51 = vor.u32 %v13383_v39, %v9459_v40  ;;  %v3951_v63 = vadd.f32 %v3950_v59, %v3938_v47  ;;  %v11369_v39 = vld [vmem:[#allocation8 + $0xe0] sm:$0xf]  ;;  %v13870_v40 = vld [vmem:[#allocation8 + $0xec] sm:$0xf0] }
 0x267   : > { %4214 = vmatpush.bf16.msrb.mxu3 %v11254_v62  ;;  %4189 = vmatpush.bf16.msrb.mxu1 %v10166_v9  ;;  %v13639_v46 = vld [vmem:[#allocation6 + $0x9bc] sm:$0xf]  ;;  %v9974_v52 = vor.u32 %v13511_v42, %v9971_v45  ;;  %v3926_v9 = vpop.f32.mrf.mxu0  ;;  %v11497_v42 = vld [vmem:[#allocation8 + $0x1e0] sm:$0xf] }
 0x268   : > { %v10995_v50 = vld [vmem:[#allocation6 + $0xdf8] sm:$0xf0]  ;;  %v10486_v53 = vor.u32 %v13639_v46, %v10483_v37  ;;  %v15184_v7 = vadd.f32 %v3963_v0, %v3951_v63  ;;  %v11625_v45 = vld [vmem:[#allocation8 + $0x2e0] sm:$0xf]  ;;  %v13934_v46 = vld [vmem:[#allocation8 + $0x2ec] sm:$0xf0] }
 0x269   : > { %4202 = vmatpush.bf16.msrb.mxu2 %v10678_v10  ;;  %4177 = vmatpush.bf16.msrb.mxu0 %v9590_v22  ;;  %v13367_v54 = vld [vmem:[#allocation6 + $0x13c] sm:$0xf]  ;;  %v10998_v60 = vor.u32 %v13767_v48, %v10995_v50  ;;  %v11753_v48 = vld [vmem:[#allocation8 + $0x3e0] sm:$0xf]  ;;  %v13966_v50 = vld [vmem:[#allocation8 + $0x3ec] sm:$0xf0] }
 0x26a   : > { %v9395_v56 = vld [vmem:[#allocation6 + $0x178] sm:$0xf0]  ;;  %v11481_v59 = vld [vmem:[#allocation8 + $0x1c0] sm:$0xf]  ;;  %v13962_v0 = vld [vmem:[#allocation8 + $0x3cc] sm:$0xf0]  ;;  %14509 = vtanh.f32 %v15184_v7 }
 0x26b   : > { %4215 = vmatpush.bf16.msrb.mxu3 %v11190_v16  ;;  %4190 = vmatpush.bf16.msrb.mxu1 %v10102_v24  ;;  %v13495_v58 = vld [vmem:[#allocation6 + $0x53c] sm:$0xf]  ;;  %v9398_v6 = vor.u32 %v13367_v54, %v9395_v56  ;;  %v11626_v54 = vor.u32 %v13934_v46, %v11625_v45  ;;  %v11353_v56 = vld [vmem:[#allocation8 + $0xc0] sm:$0xf]  ;;  %v13842_v7 = vld [vmem:[#allocation8 + $0xc] sm:$0xf0] }
 0x26c   : > { %v9907_v61 = vld [vmem:[#allocation6 + $0x578] sm:$0xf0]  ;;  %v11737_v63 = vld [vmem:[#allocation8 + $0x3c0] sm:$0xf] }
 0x26d   : > { %4203 = vmatpush.bf16.msrb.mxu2 %v10614_v25  ;;  %4178 = vmatpush.bf16.msrb.mxu0 %v9526_v23  ;;  %v13623_v55 = vld [vmem:[#allocation6 + $0x93c] sm:$0xf]  ;;  %v9910_v10 = vor.u32 %v13495_v58, %v9907_v61  ;;  %v3952_v33 = vpop.f32.mrf.mxu2  ;;  %v13866_v58 = vld [vmem:[#allocation8 + $0xcc] sm:$0xf0]  ;;  %v11337_v9 = vld [vmem:[#allocation8 + $0xa0] sm:$0xf] }
 0x26e   : > { %v10419_v62 = vld [vmem:[#allocation6 + $0x978] sm:$0xf0]  ;;  %v13898_v61 = vld [vmem:[#allocation8 + $0x1cc] sm:$0xf0] }
 0x26f   : > { %4216 = vmatpush.bf16.msrb.mxu3 %v11126_v29  ;;  %4191 = vmatpush.bf16.msrb.mxu1 %v10038_v36  ;;  %v13751_v2 = vld [vmem:[#allocation6 + $0xd3c] sm:$0xf]  ;;  %v10422_v11 = vor.u32 %v13623_v55, %v10419_v62  ;;  %v11609_v55 = vld [vmem:[#allocation8 + $0x2c0] sm:$0xf]  ;;  %v13930_v62 = vld [vmem:[#allocation8 + $0x2cc] sm:$0xf0] }
 0x270   : > { %v10931_v3 = vld [vmem:[#allocation6 + $0xd78] sm:$0xf0] }
 0x271   : > { %4204 = vmatpush.bf16.msrb.mxu2 %v10550_v38  ;;  %4179 = vmatpush.bf16.msrb.mxu0 %v9462_v51  ;;  %v13351_v12 = vld [vmem:[#allocation6 + $0xbc] sm:$0xf]  ;;  %v10934_v18 = vor.u32 %v13751_v2, %v10931_v3  ;;  %v3965_v38 = vpop.f32.mrf.mxu3  ;;  %v11354_v2 = vor.u32 %v13866_v58, %v11353_v56  ;;  %v11482_v3 = vor.u32 %v13898_v61, %v11481_v59  ;;  %v13882_v56 = vld [vmem:[#allocation8 + $0x14c] sm:$0xf0]  ;;  %v11545_v58 = vld [vmem:[#allocation8 + $0x240] sm:$0xf] }
 0x272   : > { %v9331_v15 = vld [vmem:[#allocation6 + $0xf8] sm:$0xf0]  ;;  %v13914_v59 = vld [vmem:[#allocation8 + $0x24c] sm:$0xf0] }
 0x273   : > { %4217 = vmatpush.bf16.msrb.mxu3 %v11062_v44  ;;  %4192 = vmatpush.bf16.msrb.mxu1 %v9974_v52  ;;  %v13479_v16 = vld [vmem:[#allocation6 + $0x4bc] sm:$0xf]  ;;  %v9334_v25 = vor.u32 %v13351_v12, %v9331_v15  ;;  %v13902_v44 = vld [vmem:[#allocation8 + $0x1ec] sm:$0xf0]  ;;  %v11370_v52 = vor.u32 %v13870_v40, %v11369_v39  ;;  %v11738_v12 = vor.u32 %v13962_v0, %v11737_v63  ;;  %v11561_v40 = vld [vmem:[#allocation8 + $0x260] sm:$0xf] }
 0x274   : > { %v9843_v19 = vld [vmem:[#allocation6 + $0x4f8] sm:$0xf0]  ;;  %v13894_v15 = vld [vmem:[#allocation8 + $0x1ac] sm:$0xf0] }
 0x275   : > { %4205 = vmatpush.bf16.msrb.mxu2 %v10486_v53  ;;  %v13607_v27 = vld [vmem:[#allocation6 + $0x8bc] sm:$0xf]  ;;  %4180 = vmatpush.bf16.msrb.mxu0 %v9398_v6  ;;  %v9846_v13 = vor.u32 %v13479_v16, %v9843_v19  ;;  %v11498_v53 = vor.u32 %v13902_v44, %v11497_v42  ;;  %v11610_v6 = vor.u32 %v13930_v62, %v11609_v55  ;;  %v11593_v16 = vld [vmem:[#allocation8 + $0x2a0] sm:$0xf]  ;;  %v13958_v19 = vld [vmem:[#allocation8 + $0x3ac] sm:$0xf0] }
 0x276   : > { %v10355_v20 = vld [vmem:[#allocation6 + $0x8f8] sm:$0xf0]  ;;  %v13886_v39 = vld [vmem:[#allocation8 + $0x16c] sm:$0xf0] }
 0x277   : > { %4218 = vmatpush.bf16.msrb.mxu3 %v10998_v60  ;;  %v13735_v22 = vld [vmem:[#allocation6 + $0xcbc] sm:$0xf]  ;;  %4193 = vmatpush.bf16.msrb.mxu1 %v9910_v10  ;;  %v10358_v29 = vor.u32 %v13607_v27, %v10355_v20  ;;  %v11754_v60 = vor.u32 %v13966_v50, %v11753_v48  ;;  %v13862_v10 = vld [vmem:[#allocation8 + $0xac] sm:$0xf0]  ;;  %v11289_v48 = vld [vmem:[#allocation8 + $0x40] sm:$0xf] }
 0x278   : > { %v10867_v24 = vld [vmem:[#allocation6 + $0xcf8] sm:$0xf0]  ;;  %v11338_v27 = vor.u32 %v13862_v10, %v11337_v9  ;;  %v13918_v42 = vld [vmem:[#allocation8 + $0x26c] sm:$0xf0]  ;;  %v11401_v9 = vld [vmem:[#allocation8 + $0x120] sm:$0xf] }
 0x279   : > { %v13335_v26 = vld [vmem:[#allocation6 + $0x3c] sm:$0xf]  ;;  %4206 = vmatpush.bf16.msrb.mxu2 %v10422_v11  ;;  %v10870_v34 = vor.u32 %v13735_v22, %v10867_v24  ;;  %4181 = vmatpush.bf16.msrb.mxu0 %v9334_v25  ;;  %v11465_v11 = vld [vmem:[#allocation8 + $0x1a0] sm:$0xf]  ;;  %v11594_v22 = vor.u32 %v13926_v17, %v11593_v16  ;;  %v13950_v44 = vld [vmem:[#allocation8 + $0x36c] sm:$0xf0] }
 0x27a   : > { %v9267_v28 = vld [vmem:[#allocation6 + $0x78] sm:$0xf0]  ;;  %v11466_v20 = vor.u32 %v13894_v15, %v11465_v11  ;;  %v11321_v24 = vld [vmem:[#allocation8 + $0x80] sm:$0xf]  ;;  %v3989_v33 = vpop.f32.mrf.mxu1  ;;  %v13850_v50 = vld [vmem:[#allocation8 + $0x4c] sm:$0xf0] }
 0x27b   : > { %v13463_v30 = vld [vmem:[#allocation6 + $0x43c] sm:$0xf]  ;;  %4219 = vmatpush.bf16.msrb.mxu3 %v10934_v18  ;;  %v9270_v43 = vor.u32 %v13335_v26, %v9267_v28  ;;  %4194 = vmatpush.bf16.msrb.mxu1 %v9846_v13  ;;  %v11721_v18 = vld [vmem:[#allocation8 + $0x3a0] sm:$0xf]  ;;  %v13890_v28 = vld [vmem:[#allocation8 + $0x18c] sm:$0xf0]  ;;  %v11290_v62 = vor.u32 %v13850_v50, %v11289_v48 }
 0x27c   : > { %v9779_v31 = vld [vmem:[#allocation6 + $0x478] sm:$0xf0]  ;;  %v11449_v25 = vld [vmem:[#allocation8 + $0x180] sm:$0xf]  ;;  %v11722_v26 = vor.u32 %v13958_v19, %v11721_v18  ;;  %v13946_v61 = vld [vmem:[#allocation8 + $0x34c] sm:$0xf0] }
 0x27d   : > { %v13591_v32 = vld [vmem:[#allocation6 + $0x83c] sm:$0xf]  ;;  %4207 = vmatpush.bf16.msrb.mxu2 %v10358_v29  ;;  %v9782_v37 = vor.u32 %v13463_v30, %v9779_v31  ;;  %4182 = vmatpush.bf16.msrb.mxu0 %v9270_v43  ;;  %v11577_v13 = vld [vmem:[#allocation8 + $0x280] sm:$0xf]  ;;  %v3976_v31 = vpop.f32.mrf.mxu0  ;;  %v13910_v16 = vld [vmem:[#allocation8 + $0x22c] sm:$0xf0] }
 0x27e   : > { %v10291_v23 = vld [vmem:[#allocation6 + $0x878] sm:$0xf0]  ;;  %v11705_v29 = vld [vmem:[#allocation8 + $0x380] sm:$0xf]  ;;  %v3990_v38 = vadd.f32 %v3989_v33, %v3976_v31  ;;  %v13942_v18 = vld [vmem:[#allocation8 + $0x32c] sm:$0xf0] }
 0x27f   : > { %v13719_v35 = vld [vmem:[#allocation6 + $0xc3c] sm:$0xf]  ;;  %v10294_v47 = vor.u32 %v13591_v32, %v10291_v23  ;;  %4220 = vmatpush.bf16.msrb.mxu3 %v10870_v34  ;;  %4195 = vmatpush.bf16.msrb.mxu1 %v9782_v37  ;;  %v11305_v34 = vld [vmem:[#allocation8 + $0x60] sm:$0xf]  ;;  %v13854_v23 = vld [vmem:[#allocation8 + $0x6c] sm:$0xf0]  ;;  %v11562_v37 = vor.u32 %v13918_v42, %v11561_v40 }
 0x280   : > { %v10803_v36 = vld [vmem:[#allocation6 + $0xc78] sm:$0xf0]  ;;  %4183 = vmatmul.bf16.vlgmr.msrb.gmra.mxu0 %v15096_v8  ;;  %v13954_v8 = vld [vmem:[#allocation8 + $0x38c] sm:$0xf0]  ;;  %v11689_v43 = vld [vmem:[#allocation8 + $0x360] sm:$0xf]  ;;  %v11306_v45 = vor.u32 %v13854_v23, %v11305_v34 }
 0x281   : > { %v10806_v51 = vor.u32 %v13719_v35, %v10803_v36  ;;  %4208 = vmatpush.bf16.msrb.mxu2 %v10294_v47  ;;  %5037 = vmatpush.bf16.msra.mxu0 %v11370_v52  ;;  %v11433_v35 = vld [vmem:[#allocation8 + $0x160] sm:$0xf]  ;;  %v11706_v36 = vor.u32 %v13954_v8, %v11705_v29  ;;  %v11690_v52 = vor.u32 %v13950_v44, %v11689_v43  ;;  %v13938_v29 = vld [vmem:[#allocation8 + $0x30c] sm:$0xf0]  ;;  %v13868_v31 = vld [vmem:[#allocation8 + $0xe4] sm:$0xf]  ;;  %v4385_v44 = vunpack.c.l.b16 %v15126_v41 }
 0x282   : > { %4196 = vmatmul.bf16.vlgmr.msrb.gmra.mxu1 %v15098_v14  ;;  %v11450_v14 = vor.u32 %v13890_v28, %v11449_v25  ;;  %v11434_v46 = vor.u32 %v13886_v39, %v11433_v35  ;;  %v4002_v47 = vpop.f32.mrf.mxu2  ;;  %v3991_v10 = vpop.f32.mrf.mxu1  ;;  %v11529_v15 = vld [vmem:[#allocation8 + $0x220] sm:$0xf]  ;;  %v11499_v23 = vld [vmem:[#allocation8 + $0x1f0] sm:$0xf0]  ;;  %v13932_v35 = vld [vmem:[#allocation8 + $0x2e4] sm:$0xf] }
 0x283   : > { %4221 = vmatpush.bf16.msrb.mxu3 %v10806_v51  ;;  %5050 = vmatpush.bf16.msra.mxu1 %v11498_v53  ;;  %v11417_v51 = vld [vmem:[#allocation8 + $0x140] sm:$0xf]  ;;  %v4003_v53 = vadd.f32 %v4002_v47, %v3990_v38  ;;  %v13964_v42 = vld [vmem:[#allocation8 + $0x3e4] sm:$0xf]  ;;  %v11755_v43 = vld [vmem:[#allocation8 + $0x3f0] sm:$0xf0]  ;;  %v4387_v47 = vunpack.c.l.b16 %v15139_v21 }
 0x284   : > { %4209 = vmatmul.bf16.vlgmr.msrb.gmra.mxu2 %v15091_v1  ;;  %v13858_v1 = vld [vmem:[#allocation8 + $0x8c] sm:$0xf0]  ;;  %v11418_v0 = vor.u32 %v13882_v56, %v11417_v51  ;;  %v11657_v17 = vld [vmem:[#allocation8 + $0x320] sm:$0xf]  ;;  %v13864_v51 = vld [vmem:[#allocation8 + $0xc4] sm:$0xf]  ;;  %v11758_v56 = vor.u32 %v13964_v42, %v11755_v43 }
 0x285   : > { %5063 = vmatpush.bf16.msra.mxu2 %v11626_v54  ;;  %5038 = vmatpush.bf16.msra.mxu0 %v11354_v2  ;;  %v11322_v30 = vor.u32 %v13858_v1, %v11321_v24  ;;  %v4015_v54 = vpop.f32.mrf.mxu3  ;;  %v3978_v63 = vpop.f32.mrf.mxu0  ;;  %v11546_v2 = vor.u32 %v13914_v59, %v11545_v58  ;;  %v11385_v24 = vld [vmem:[#allocation8 + $0x100] sm:$0xf]  ;;  %v13874_v1 = vld [vmem:[#allocation8 + $0x10c] sm:$0xf0]  ;;  %v11658_v28 = vor.u32 %v13942_v18, %v11657_v17  ;;  %v11483_v58 = vld [vmem:[#allocation8 + $0x1d0] sm:$0xf0] }
 0x286   : > { %4222 = vmatmul.bf16.vlgmr.msrb.gmra.mxu3 %v15093_v5  ;;  %v13922_v5 = vld [vmem:[#allocation8 + $0x28c] sm:$0xf0]  ;;  %v4016_v55 = vadd.f32 %v4015_v54, %v4003_v53  ;;  %v11513_v25 = vld [vmem:[#allocation8 + $0x200] sm:$0xf]  ;;  %v11386_v39 = vor.u32 %v13874_v1, %v11385_v24  ;;  %v13896_v53 = vld [vmem:[#allocation8 + $0x1c4] sm:$0xf]  ;;  %v4388_v54 = vunpack.c.h.b16 %v15139_v21 }
 0x287   : > { %5076 = vmatpush.bf16.msra.mxu3 %v11754_v60  ;;  %5051 = vmatpush.bf16.msra.mxu1 %v11482_v3  ;;  %v11578_v32 = vor.u32 %v13922_v5, %v11577_v13  ;;  %v11673_v60 = vld [vmem:[#allocation8 + $0x340] sm:$0xf]  ;;  %v13906_v13 = vld [vmem:[#allocation8 + $0x20c] sm:$0xf0]  ;;  %v13928_v59 = vld [vmem:[#allocation8 + $0x2c4] sm:$0xf]  ;;  %v11486_v21 = vor.u32 %v13896_v53, %v11483_v58 }
 0x288   : > { %v11273_v3 = vld [vmem:[#allocation8 + $0x20] sm:$0xf]  ;;  %14511 = vtanh.f32 %v4016_v55  ;;  %v11674_v11 = vor.u32 %v13946_v61, %v11673_v60  ;;  %v11514_v40 = vor.u32 %v13906_v13, %v11513_v25  ;;  %v11611_v60 = vld [vmem:[#allocation8 + $0x2d0] sm:$0xf0]  ;;  %v15197_v55 = vpack.c.b16 %v4385_v44, %v4385_v44  ;;  %v13956_v17 = vld [vmem:[#allocation8 + $0x3a4] sm:$0xf] }
 0x289   : > { %5064 = vmatpush.bf16.msra.mxu2 %v11610_v6  ;;  %5039 = vmatpush.bf16.msra.mxu0 %v11338_v27  ;;  %v13846_v6 = vld [vmem:[#allocation8 + $0x2c] sm:$0xf0]  ;;  %v11257_v27 = vld [vmem:[#allocation8] sm:$0xf]  ;;  %v11739_v61 = vld [vmem:[#allocation8 + $0x3d0] sm:$0xf0]  ;;  %v15203_v10 = vpack.c.b16 %v4388_v54, %v4388_v54 }
 0x28a   : > { %v11274_v19 = vor.u32 %v13846_v6, %v11273_v3  ;;  %v11641_v5 = vld [vmem:[#allocation8 + $0x300] sm:$0xf]  ;;  %v11258_v34 = vor.u32 %v13842_v7, %v11257_v27  ;;  %v13860_v3 = vld [vmem:[#allocation8 + $0xa4] sm:$0xf]  ;;  %v11339_v6 = vld [vmem:[#allocation8 + $0xb0] sm:$0xf0] }
 0x28b   : > { %5077 = vmatpush.bf16.msra.mxu3 %v11738_v12  ;;  %5052 = vmatpush.bf16.msra.mxu1 %v11466_v20  ;;  %v13878_v12 = vld [vmem:[#allocation8 + $0x12c] sm:$0xf0]  ;;  %v11723_v18 = vld [vmem:[#allocation8 + $0x3b0] sm:$0xf0]  ;;  %v13888_v24 = vld [vmem:[#allocation8 + $0x184] sm:$0xf] }
 0x28c   : > { %v11402_v20 = vor.u32 %v13878_v12, %v11401_v9  ;;  %v13892_v9 = vld [vmem:[#allocation8 + $0x1a4] sm:$0xf]  ;;  %v11467_v12 = vld [vmem:[#allocation8 + $0x1b0] sm:$0xf0]  ;;  %v11726_v1 = vor.u32 %v13956_v17, %v11723_v18 }
 0x28d   : > { %5065 = vmatpush.bf16.msra.mxu2 %v11594_v22  ;;  %5040 = vmatpush.bf16.msra.mxu0 %v11322_v30  ;;  %v11530_v22 = vor.u32 %v13910_v16, %v11529_v15  ;;  %v4017_v8 = vpop.f32.mrf.mxu3  ;;  %v14510_v30 = vpop.eup %14509  ;;  %v13924_v15 = vld [vmem:[#allocation8 + $0x2a4] sm:$0xf]  ;;  %v11595_v16 = vld [vmem:[#allocation8 + $0x2b0] sm:$0xf0]  ;;  %v11470_v27 = vor.u32 %v13892_v9, %v11467_v12 }
 0x28e   : > { %v14512_v33 = vpop.eup %14511  ;;  %v11598_v7 = vor.u32 %v13924_v15, %v11595_v16  ;;  %v11451_v25 = vld [vmem:[#allocation8 + $0x190] sm:$0xf0]  ;;  %v13952_v13 = vld [vmem:[#allocation8 + $0x384] sm:$0xf] }
 0x28f   : > { %5078 = vmatpush.bf16.msra.mxu3 %v11722_v26  ;;  %5053 = vmatpush.bf16.msra.mxu1 %v11450_v14  ;;  %v4004_v26 = vpop.f32.mrf.mxu2  ;;  %v11371_v14 = vld [vmem:[#allocation8 + $0xf0] sm:$0xf0]  ;;  %v15191_v38 = vpack.c.bf16 %v14512_v33, %v14510_v30  ;;  %v11454_v30 = vor.u32 %v13888_v24, %v11451_v25  ;;  %v13884_v33 = vld [vmem:[#allocation8 + $0x164] sm:$0xf] }
 0x290   : > { %v13920_v26 = vld [vmem:[#allocation8 + $0x284] sm:$0xf]  ;;  %v11691_v43 = vld [vmem:[#allocation8 + $0x370] sm:$0xf0] }
 0x291   : > { %5066 = vmatpush.bf16.msra.mxu2 %v11578_v32  ;;  %5041 = vmatpush.bf16.msra.mxu0 %v11306_v45  ;;  %v13900_v32 = vld [vmem:[#allocation8 + $0x1e4] sm:$0xf]  ;;  %v4386_v45 = vunpack.c.h.b16 %v15126_v41  ;;  %v11547_v54 = vld [vmem:[#allocation8 + $0x250] sm:$0xf0] }
 0x292   : > { %v11502_v48 = vor.u32 %v13900_v32, %v11499_v23  ;;  %v13960_v41 = vld [vmem:[#allocation8 + $0x3c4] sm:$0xf]  ;;  %v11307_v32 = vld [vmem:[#allocation8 + $0x70] sm:$0xf0] }
 0x293   : > { %5079 = vmatpush.bf16.msra.mxu3 %v11706_v36  ;;  %5054 = vmatpush.bf16.msra.mxu1 %v11434_v46  ;;  %v11627_v36 = vld [vmem:[#allocation8 + $0x2f0] sm:$0xf0]  ;;  %v11642_v46 = vor.u32 %v13938_v29, %v11641_v5  ;;  %v13948_v42 = vld [vmem:[#allocation8 + $0x364] sm:$0xf] }
 0x294   : > { %v11630_v50 = vor.u32 %v13932_v35, %v11627_v36  ;;  %v11707_v5 = vld [vmem:[#allocation8 + $0x390] sm:$0xf0]  ;;  %v13916_v36 = vld [vmem:[#allocation8 + $0x264] sm:$0xf] }
 0x295   : > { %5067 = vmatpush.bf16.msra.mxu2 %v11562_v37  ;;  %5042 = vmatpush.bf16.msra.mxu0 %v11290_v62  ;;  %v11374_v37 = vor.u32 %v13868_v31, %v11371_v14  ;;  %v15199_v62 = vpack.c.b16 %v4386_v45, %v4386_v45  ;;  %v13852_v14 = vld [vmem:[#allocation8 + $0x64] sm:$0xf]  ;;  %v11710_v23 = vor.u32 %v13952_v13, %v11707_v5  ;;  %v11435_v35 = vld [vmem:[#allocation8 + $0x170] sm:$0xf0] }
 0x296   : > { %v11310_v44 = vor.u32 %v13852_v14, %v11307_v32  ;;  %v11438_v45 = vor.u32 %v13884_v33, %v11435_v35  ;;  %v13912_v53 = vld [vmem:[#allocation8 + $0x244] sm:$0xf]  ;;  %v11403_v15 = vld [vmem:[#allocation8 + $0x130] sm:$0xf0]  ;;  %v13871_v14 = vld [vmem:[#allocation8 + $0xf4] sm:$0xf0] }
 0x297   : > { %5080 = vmatpush.bf16.msra.mxu3 %v11690_v52  ;;  %5055 = vmatpush.bf16.msra.mxu1 %v11418_v0  ;;  %v11355_v52 = vld [vmem:[#allocation8 + $0xd0] sm:$0xf0]  ;;  %v15201_v0 = vpack.c.b16 %v4387_v47, %v4387_v47  ;;  %v13876_v9 = vld [vmem:[#allocation8 + $0x124] sm:$0xf]  ;;  %v11505_v32 = vld [vmem:[#allocation8 + $0x1e8] sm:$0xf] }
 0x298   : > { %v11358_v63 = vor.u32 %v13864_v51, %v11355_v52  ;;  %v11291_v47 = vld [vmem:[#allocation8 + $0x50] sm:$0xf0]  ;;  %v11694_v51 = vor.u32 %v13948_v42, %v11691_v43  ;;  %v13908_v16 = vld [vmem:[#allocation8 + $0x224] sm:$0xf]  ;;  %v13935_v35 = vld [vmem:[#allocation8 + $0x2f4] sm:$0xf0] }
 0x299   : > { %5068 = vmatpush.bf16.msra.mxu2 %v11546_v2  ;;  %5043 = vmatpush.bf16.msra.mxu0 %v11274_v19  ;;  %v11614_v2 = vor.u32 %v13928_v59, %v11611_v60  ;;  %v11342_v19 = vor.u32 %v13860_v3, %v11339_v6  ;;  %v4028_v8 = vpop.f32.mrf.mxu0  ;;  %v11419_v52 = vld [vmem:[#allocation8 + $0x150] sm:$0xf0]  ;;  %v13944_v59 = vld [vmem:[#allocation8 + $0x344] sm:$0xf]  ;;  %v13967_v42 = vld [vmem:[#allocation8 + $0x3f4] sm:$0xf0] }
 0x29a   : > { %v11675_v60 = vld [vmem:[#allocation8 + $0x350] sm:$0xf0]  ;;  %v13844_v3 = vld [vmem:[#allocation8 + $0x24] sm:$0xf] }
 0x29b   : > { %5081 = vmatpush.bf16.msra.mxu3 %v11674_v11  ;;  %5056 = vmatpush.bf16.msra.mxu1 %v11402_v20  ;;  %v11742_v11 = vor.u32 %v13960_v41, %v11739_v61  ;;  %v13856_v20 = vld [vmem:[#allocation8 + $0x84] sm:$0xf]  ;;  %v11275_v6 = vld [vmem:[#allocation8 + $0x30] sm:$0xf0]  ;;  %v11678_v12 = vor.u32 %v13944_v59, %v11675_v60 }
 0x29c   : > { %v11531_v17 = vld [vmem:[#allocation8 + $0x230] sm:$0xf0]  ;;  %v13940_v18 = vld [vmem:[#allocation8 + $0x324] sm:$0xf] }
 0x29d   : > { %5069 = vmatpush.bf16.msra.mxu2 %v11530_v22  ;;  %5044 = vmatpush.bf16.msra.mxu0 %v11258_v34  ;;  %v11323_v22 = vld [vmem:[#allocation8 + $0x90] sm:$0xf0]  ;;  %v4041_v34 = vpop.f32.mrf.mxu1  ;;  %v11534_v24 = vor.u32 %v13908_v16, %v11531_v17 }
 0x29e   : > { %v11326_v29 = vor.u32 %v13856_v20, %v11323_v22  ;;  %v11259_v20 = vld [vmem:[#allocation8 + $0x10] sm:$0xf0]  ;;  %v11406_v22 = vor.u32 %v13876_v9, %v11403_v15  ;;  %v13927_v9 = vld [vmem:[#allocation8 + $0x2b4] sm:$0xf0] }
 0x29f   : > { %5082 = vmatpush.bf16.msra.mxu3 %v11658_v28  ;;  %5057 = vmatpush.bf16.msra.mxu1 %v11386_v39  ;;  %v11579_v28 = vld [vmem:[#allocation8 + $0x290] sm:$0xf0] }
 0x2a0   : > { %5045 = vmatmul.bf16.vlgmr.msra.gmra.mxu0 %v15197_v55  ;;  %v11582_v31 = vor.u32 %v13920_v26, %v11579_v28  ;;  %v11563_v39 = vld [vmem:[#allocation8 + $0x270] sm:$0xf0]  ;;  %v13904_v26 = vld [vmem:[#allocation8 + $0x204] sm:$0xf] }
 0x2a1   : > { %5070 = vmatpush.bf16.msra.mxu2 %v11514_v40  ;;  %5089 = vmatpush.bf16.msrb.mxu0 %v11374_v37  ;;  %v4042_v40 = vadd.f32 %v4041_v34, %v4028_v8  ;;  %v13848_v37 = vld [vmem:[#allocation8 + $0x44] sm:$0xf]  ;;  %v11387_v25 = vld [vmem:[#allocation8 + $0x110] sm:$0xf0]  ;;  %v13903_v34 = vld [vmem:[#allocation8 + $0x1f4] sm:$0xf0] }
 0x2a2   : > { %5058 = vmatmul.bf16.vlgmr.msra.gmra.mxu1 %v15199_v62  ;;  %v11294_v41 = vor.u32 %v13848_v37, %v11291_v47  ;;  %v11515_v5 = vld [vmem:[#allocation8 + $0x210] sm:$0xf0]  ;;  %v11361_v37 = vld [vmem:[#allocation8 + $0xc8] sm:$0xf]  ;;  %v13867_v47 = vld [vmem:[#allocation8 + $0xd4] sm:$0xf0] }
 0x2a3   : > { %5083 = vmatpush.bf16.msra.mxu3 %v11642_v46  ;;  %5102 = vmatpush.bf16.msrb.mxu1 %v11502_v48  ;;  %v11566_v46 = vor.u32 %v13916_v36, %v11563_v39  ;;  %v13880_v48 = vld [vmem:[#allocation8 + $0x144] sm:$0xf]  ;;  %v11643_v8 = vld [vmem:[#allocation8 + $0x310] sm:$0xf0]  ;;  %v11518_v39 = vor.u32 %v13904_v26, %v11515_v5 }
 0x2a4   : > { %5071 = vmatmul.bf16.vlgmr.msra.gmra.mxu2 %v15201_v0 }
 0x2a5   : > { %5115 = vmatpush.bf16.msrb.mxu2 %v11630_v50  ;;  %5090 = vmatpush.bf16.msrb.mxu0 %v11358_v63  ;;  %v4054_v50 = vpop.f32.mrf.mxu2  ;;  %v4067_v58 = vpop.f32.mrf.mxu3 }
 0x2a6   : > { %5084 = vmatmul.bf16.vlgmr.msra.gmra.mxu3 %v15203_v10  ;;  %v4030_v63 = vpop.f32.mrf.mxu0 }
 0x2a7   : > { %5128 = vmatpush.bf16.msrb.mxu3 %v11758_v56  ;;  %5103 = vmatpush.bf16.msrb.mxu1 %v11486_v21  ;;  %v4055_v56 = vadd.f32 %v4054_v50, %v4042_v40  ;;  %v11422_v21 = vor.u32 %v13880_v48, %v11419_v52  ;;  %v11761_v40 = vld [vmem:[#allocation8 + $0x3e8] sm:$0xf]  ;;  %v13863_v63 = vld [vmem:[#allocation8 + $0xb4] sm:$0xf0] }
 0x2a8   : > { %v11489_v48 = vld [vmem:[#allocation8 + $0x1c8] sm:$0xf]  ;;  %v11762_v50 = vor.u32 %v13967_v42, %v11761_v40 }
 0x2a9   : > { %5116 = vmatpush.bf16.msrb.mxu2 %v11614_v2  ;;  %5091 = vmatpush.bf16.msrb.mxu0 %v11342_v19  ;;  %v15209_v61 = vadd.f32 %v4067_v58, %v4055_v56  ;;  %v11550_v2 = vor.u32 %v13912_v53, %v11547_v54  ;;  %v11659_v19 = vld [vmem:[#allocation8 + $0x330] sm:$0xf0]  ;;  %v11617_v52 = vld [vmem:[#allocation8 + $0x2c8] sm:$0xf]  ;;  %v13931_v53 = vld [vmem:[#allocation8 + $0x2d4] sm:$0xf0]  ;;  %v11362_v58 = vor.u32 %v13867_v47, %v11361_v37 }
 0x2aa   : > { %v11662_v13 = vor.u32 %v13940_v18, %v11659_v19  ;;  %v11745_v54 = vld [vmem:[#allocation8 + $0x3c8] sm:$0xf]  ;;  %v13963_v56 = vld [vmem:[#allocation8 + $0x3d4] sm:$0xf0]  ;;  %v11618_v60 = vor.u32 %v13931_v53, %v11617_v52 }
 0x2ab   : > { %5129 = vmatpush.bf16.msrb.mxu3 %v11742_v11  ;;  %5104 = vmatpush.bf16.msrb.mxu1 %v11470_v27  ;;  %v4043_v11 = vpop.f32.mrf.mxu1  ;;  %v11278_v27 = vor.u32 %v13844_v3, %v11275_v6  ;;  %v13895_v3 = vld [vmem:[#allocation8 + $0x1b4] sm:$0xf0]  ;;  %v11601_v6 = vld [vmem:[#allocation8 + $0x2a8] sm:$0xf]  ;;  %14513 = vtanh.f32 %v15209_v61 }
 0x2ac   : > { %v11729_v11 = vld [vmem:[#allocation8 + $0x3a8] sm:$0xf]  ;;  %v11602_v17 = vor.u32 %v13927_v9, %v11601_v6  ;;  %v13859_v19 = vld [vmem:[#allocation8 + $0x94] sm:$0xf0] }
 0x2ad   : > { %5117 = vmatpush.bf16.msrb.mxu2 %v11598_v7  ;;  %5092 = vmatpush.bf16.msrb.mxu0 %v11326_v29  ;;  %v13840_v7 = vld [vmem:[#allocation8 + $0x4] sm:$0xf]  ;;  %v4056_v28 = vpop.f32.mrf.mxu2  ;;  %v11329_v18 = vld [vmem:[#allocation8 + $0x88] sm:$0xf]  ;;  %v13915_v52 = vld [vmem:[#allocation8 + $0x254] sm:$0xf0] }
 0x2ae   : > { %v13936_v29 = vld [vmem:[#allocation8 + $0x304] sm:$0xf]  ;;  %v11262_v33 = vor.u32 %v13840_v7, %v11259_v20  ;;  %v13891_v20 = vld [vmem:[#allocation8 + $0x194] sm:$0xf0]  ;;  %v11330_v26 = vor.u32 %v13859_v19, %v11329_v18  ;;  %v11681_v53 = vld [vmem:[#allocation8 + $0x348] sm:$0xf] }
 0x2af   : > { %5130 = vmatpush.bf16.msrb.mxu3 %v11726_v1  ;;  %5105 = vmatpush.bf16.msrb.mxu1 %v11454_v30  ;;  %v13872_v1 = vld [vmem:[#allocation8 + $0x104] sm:$0xf]  ;;  %v4069_v30 = vpop.f32.mrf.mxu3  ;;  %v11646_v43 = vor.u32 %v13936_v29, %v11643_v8  ;;  %v11313_v8 = vld [vmem:[#allocation8 + $0x68] sm:$0xf]  ;;  %v13879_v9 = vld [vmem:[#allocation8 + $0x134] sm:$0xf0] }
 0x2b0   : > { %v11390_v36 = vor.u32 %v13872_v1, %v11387_v25  ;;  %v11713_v1 = vld [vmem:[#allocation8 + $0x388] sm:$0xf]  ;;  %v13955_v25 = vld [vmem:[#allocation8 + $0x394] sm:$0xf0] }
 0x2b1   : > { %5118 = vmatpush.bf16.msrb.mxu2 %v11582_v31  ;;  %5093 = vmatpush.bf16.msrb.mxu0 %v11310_v44  ;;  %v11377_v31 = vld [vmem:[#allocation8 + $0xe8] sm:$0xf]  ;;  %v13855_v30 = vld [vmem:[#allocation8 + $0x74] sm:$0xf0] }
 0x2b2   : > { %v11378_v44 = vor.u32 %v13871_v14, %v11377_v31  ;;  %v11441_v31 = vld [vmem:[#allocation8 + $0x168] sm:$0xf]  ;;  %v11714_v14 = vor.u32 %v13955_v25, %v11713_v1  ;;  %v13843_v61 = vld [vmem:[#allocation8 + $0x14] sm:$0xf0] }
 0x2b3   : > { %5131 = vmatpush.bf16.msrb.mxu3 %v11710_v23  ;;  %5106 = vmatpush.bf16.msrb.mxu1 %v11438_v45  ;;  %v11633_v23 = vld [vmem:[#allocation8 + $0x2e8] sm:$0xf]  ;;  %v11506_v45 = vor.u32 %v13903_v34, %v11505_v32  ;;  %v13907_v25 = vld [vmem:[#allocation8 + $0x214] sm:$0xf0] }
 0x2b4   : > { %v11569_v34 = vld [vmem:[#allocation8 + $0x268] sm:$0xf] }
 0x2b5   : > { %5119 = vmatpush.bf16.msrb.mxu2 %v11566_v46  ;;  %5094 = vmatpush.bf16.msrb.mxu0 %v11294_v41  ;;  %v11634_v46 = vor.u32 %v13935_v35, %v11633_v23  ;;  %v11345_v41 = vld [vmem:[#allocation8 + $0xa8] sm:$0xf]  ;;  %v13919_v23 = vld [vmem:[#allocation8 + $0x274] sm:$0xf0] }
 0x2b6   : > { %v11346_v15 = vor.u32 %v13863_v63, %v11345_v41  ;;  %v11697_v35 = vld [vmem:[#allocation8 + $0x368] sm:$0xf]  ;;  %v11570_v42 = vor.u32 %v13919_v23, %v11569_v34  ;;  %v11635_v34 = vld [vmem:[#allocation8 + $0x2f8] sm:$0xf0] }
 0x2b7   : > { %5132 = vmatpush.bf16.msrb.mxu3 %v11694_v51  ;;  %5107 = vmatpush.bf16.msrb.mxu1 %v11422_v21  ;;  %v13899_v51 = vld [vmem:[#allocation8 + $0x1d4] sm:$0xf0]  ;;  %v11473_v21 = vld [vmem:[#allocation8 + $0x1a8] sm:$0xf] }
 0x2b8   : > { %v11490_v59 = vor.u32 %v13899_v51, %v11489_v48  ;;  %v11474_v16 = vor.u32 %v13895_v3, %v11473_v21  ;;  %v11553_v51 = vld [vmem:[#allocation8 + $0x248] sm:$0xf]  ;;  %v13847_v21 = vld [vmem:[#allocation8 + $0x34] sm:$0xf0] }
 0x2b9   : > { %5120 = vmatpush.bf16.msrb.mxu2 %v11550_v2  ;;  %5095 = vmatpush.bf16.msrb.mxu0 %v11278_v27  ;;  %v11746_v2 = vor.u32 %v13963_v56, %v11745_v54  ;;  %v11457_v27 = vld [vmem:[#allocation8 + $0x188] sm:$0xf]  ;;  %v13947_v54 = vld [vmem:[#allocation8 + $0x354] sm:$0xf0]  ;;  %v11554_v41 = vor.u32 %v13915_v52, %v11553_v51  ;;  %v13929_v51 = vld [vmem:[#allocation8 + $0x2cc] sm:$0xf] }
 0x2ba   : > { %v11281_v63 = vld [vmem:[#allocation8 + $0x28] sm:$0xf]  ;;  %v11682_v6 = vor.u32 %v13947_v54, %v11681_v53  ;;  %v11619_v52 = vld [vmem:[#allocation8 + $0x2d8] sm:$0xf0]  ;;  %v13961_v53 = vld [vmem:[#allocation8 + $0x3cc] sm:$0xf] }
 0x2bb   : > { %5133 = vmatpush.bf16.msrb.mxu3 %v11678_v12  ;;  %5108 = vmatpush.bf16.msrb.mxu1 %v11406_v22  ;;  %v13959_v12 = vld [vmem:[#allocation8 + $0x3b4] sm:$0xf0]  ;;  %v11585_v22 = vld [vmem:[#allocation8 + $0x288] sm:$0xf]  ;;  %v4080_v28 = vpop.f32.mrf.mxu0  ;;  %v11747_v54 = vld [vmem:[#allocation8 + $0x3d8] sm:$0xf0] }
 0x2bc   : > { %v11730_v7 = vor.u32 %v13959_v12, %v11729_v11  ;;  %v11537_v11 = vld [vmem:[#allocation8 + $0x228] sm:$0xf]  ;;  %v13911_v12 = vld [vmem:[#allocation8 + $0x234] sm:$0xf0] }
 0x2bd   : > { %5121 = vmatpush.bf16.msrb.mxu2 %v11534_v24  ;;  %5096 = vmatpush.bf16.msrb.mxu0 %v11262_v33  ;;  %v13923_v24 = vld [vmem:[#allocation8 + $0x294] sm:$0xf0]  ;;  %v4093_v29 = vpop.f32.mrf.mxu1  ;;  %v11265_v18 = vld [vmem:[#allocation8 + $0x8] sm:$0xf] }
 0x2be   : > { %v11586_v5 = vor.u32 %v13923_v24, %v11585_v22  ;;  %v4094_v32 = vadd.f32 %v4093_v29, %v4080_v28  ;;  %v13887_v33 = vld [vmem:[#allocation8 + $0x174] sm:$0xf0]  ;;  %v11521_v22 = vld [vmem:[#allocation8 + $0x208] sm:$0xf]  ;;  %v13869_v29 = vld [vmem:[#allocation8 + $0xec] sm:$0xf] }
 0x2bf   : > { %5134 = vmatpush.bf16.msrb.mxu3 %v11662_v13  ;;  %5109 = vmatpush.bf16.msrb.mxu1 %v11390_v36  ;;  %v11458_v13 = vor.u32 %v13891_v20, %v11457_v27  ;;  %v13951_v36 = vld [vmem:[#allocation8 + $0x374] sm:$0xf0]  ;;  %v11442_v40 = vor.u32 %v13887_v33, %v11441_v31  ;;  %v11538_v27 = vor.u32 %v13911_v12, %v11537_v11  ;;  %v13933_v33 = vld [vmem:[#allocation8 + $0x2ec] sm:$0xf]  ;;  %v11731_v11 = vld [vmem:[#allocation8 + $0x3b8] sm:$0xf0] }
 0x2c0   : > { %5097 = vmatmul.bf16.vlgmr.msrb.gmra.mxu0 %v15197_v55  ;;  %v11698_v37 = vor.u32 %v13951_v36, %v11697_v35  ;;  %v13875_v20 = vld [vmem:[#allocation8 + $0x114] sm:$0xf0]  ;;  %v11522_v36 = vor.u32 %v13907_v25, %v11521_v22  ;;  %v13953_v22 = vld [vmem:[#allocation8 + $0x38c] sm:$0xf] }
 0x2c1   : > { %5122 = vmatpush.bf16.msrb.mxu2 %v11518_v39  ;;  %5141 = vmatpush.bf16.msra.mxu0 %v11378_v44  ;;  %v11314_v39 = vor.u32 %v13855_v30, %v11313_v8  ;;  %v11297_v44 = vld [vmem:[#allocation8 + $0x48] sm:$0xf]  ;;  %v13939_v28 = vld [vmem:[#allocation8 + $0x314] sm:$0xf0]  ;;  %v11379_v8 = vld [vmem:[#allocation8 + $0xf8] sm:$0xf0] }
 0x2c2   : > { %5110 = vmatmul.bf16.vlgmr.msrb.gmra.mxu1 %v15199_v62  ;;  %v13901_v30 = vld [vmem:[#allocation8 + $0x1ec] sm:$0xf] }
 0x2c3   : > { %5135 = vmatpush.bf16.msrb.mxu3 %v11646_v43  ;;  %5154 = vmatpush.bf16.msra.mxu1 %v11506_v45  ;;  %v13851_v45 = vld [vmem:[#allocation8 + $0x54] sm:$0xf0] }
 0x2c4   : > { %5123 = vmatmul.bf16.vlgmr.msrb.gmra.mxu2 %v15201_v0 }
 0x2c5   : > { %5167 = vmatpush.bf16.msra.mxu2 %v11634_v46  ;;  %5142 = vmatpush.bf16.msra.mxu0 %v11362_v58  ;;  %v4106_v43 = vpop.f32.mrf.mxu2  ;;  %v11425_v46 = vld [vmem:[#allocation8 + $0x148] sm:$0xf]  ;;  %v11298_v58 = vor.u32 %v13851_v45, %v11297_v44  ;;  %v4095_v3 = vpop.f32.mrf.mxu1  ;;  %v11638_v45 = vor.u32 %v13933_v33, %v11635_v34  ;;  %v13949_v34 = vld [vmem:[#allocation8 + $0x36c] sm:$0xf] }
 0x2c6   : > { %5136 = vmatmul.bf16.vlgmr.msrb.gmra.mxu3 %v15203_v10  ;;  %v4107_v47 = vadd.f32 %v4106_v43, %v4094_v32  ;;  %v11507_v32 = vld [vmem:[#allocation8 + $0x1f8] sm:$0xf0]  ;;  %v11382_v43 = vor.u32 %v13869_v29, %v11379_v8  ;;  %v13925_v3 = vld [vmem:[#allocation8 + $0x2ac] sm:$0xf] }
 0x2c7   : > { %5180 = vmatpush.bf16.msra.mxu3 %v11762_v50  ;;  %5155 = vmatpush.bf16.msra.mxu1 %v11490_v59  ;;  %v4119_v48 = vpop.f32.mrf.mxu3  ;;  %v13883_v50 = vld [vmem:[#allocation8 + $0x154] sm:$0xf0]  ;;  %v4082_v59 = vpop.f32.mrf.mxu0  ;;  %v11510_v44 = vor.u32 %v13901_v30, %v11507_v32  ;;  %v13885_v29 = vld [vmem:[#allocation8 + $0x16c] sm:$0xf]  ;;  %v11571_v32 = vld [vmem:[#allocation8 + $0x278] sm:$0xf0] }
 0x2c8   : > { %v4120_v56 = vadd.f32 %v4119_v48, %v4107_v47  ;;  %v13897_v47 = vld [vmem:[#allocation8 + $0x1cc] sm:$0xf]  ;;  %v11622_v59 = vor.u32 %v13929_v51, %v11619_v52 }
 0x2c9   : > { %5168 = vmatpush.bf16.msra.mxu2 %v11618_v60  ;;  %5143 = vmatpush.bf16.msra.mxu0 %v11346_v15  ;;  %v11426_v60 = vor.u32 %v13883_v50, %v11425_v46  ;;  %v11665_v15 = vld [vmem:[#allocation8 + $0x328] sm:$0xf]  ;;  %v13865_v46 = vld [vmem:[#allocation8 + $0xcc] sm:$0xf]  ;;  %v11491_v50 = vld [vmem:[#allocation8 + $0x1d8] sm:$0xf0] }
 0x2ca   : > { %14515 = vtanh.f32 %v4120_v56  ;;  %v13945_v52 = vld [vmem:[#allocation8 + $0x34c] sm:$0xf] }
 0x2cb   : > { %5181 = vmatpush.bf16.msra.mxu3 %v11746_v2  ;;  %5156 = vmatpush.bf16.msra.mxu1 %v11474_v16  ;;  %v11409_v2 = vld [vmem:[#allocation8 + $0x128] sm:$0xf]  ;;  %v13943_v16 = vld [vmem:[#allocation8 + $0x334] sm:$0xf0] }
 0x2cc   : > { %v11410_v19 = vor.u32 %v13879_v9, %v11409_v2  ;;  %v11666_v1 = vor.u32 %v13943_v16, %v11665_v15  ;;  %v11475_v2 = vld [vmem:[#allocation8 + $0x1b8] sm:$0xf0]  ;;  %v13957_v9 = vld [vmem:[#allocation8 + $0x3ac] sm:$0xf] }
 0x2cd   : > { %5169 = vmatpush.bf16.msra.mxu2 %v11602_v17  ;;  %5144 = vmatpush.bf16.msra.mxu0 %v11330_v26  ;;  %v11282_v17 = vor.u32 %v13847_v21, %v11281_v63  ;;  %v4108_v24 = vpop.f32.mrf.mxu2  ;;  %v11649_v26 = vld [vmem:[#allocation8 + $0x308] sm:$0xf]  ;;  %v13893_v63 = vld [vmem:[#allocation8 + $0x1ac] sm:$0xf]  ;;  %v11750_v21 = vor.u32 %v13961_v53, %v11747_v54  ;;  %v11683_v53 = vld [vmem:[#allocation8 + $0x358] sm:$0xf0] }
 0x2ce   : > { %v11478_v15 = vor.u32 %v13893_v63, %v11475_v2  ;;  %v11715_v24 = vld [vmem:[#allocation8 + $0x398] sm:$0xf0] }
 0x2cf   : > { %5182 = vmatpush.bf16.msra.mxu3 %v11730_v7  ;;  %5157 = vmatpush.bf16.msra.mxu1 %v11458_v13  ;;  %v11393_v7 = vld [vmem:[#allocation8 + $0x108] sm:$0xf]  ;;  %v4121_v13 = vpop.f32.mrf.mxu3  ;;  %v11718_v30 = vor.u32 %v13953_v22, %v11715_v24  ;;  %v11283_v63 = vld [vmem:[#allocation8 + $0x38] sm:$0xf0] }
 0x2d0   : > { %v11394_v35 = vor.u32 %v13875_v20, %v11393_v7  ;;  %v13921_v7 = vld [vmem:[#allocation8 + $0x28c] sm:$0xf]  ;;  %v11587_v20 = vld [vmem:[#allocation8 + $0x298] sm:$0xf0] }
 0x2d1   : > { %5170 = vmatpush.bf16.msra.mxu2 %v11586_v5  ;;  %5145 = vmatpush.bf16.msra.mxu0 %v11314_v39  ;;  %v14514_v5 = vpop.eup %14513  ;;  %v13965_v39 = vld [vmem:[#allocation8 + $0x3ec] sm:$0xf] }
 0x2d2   : > { %v14516_v31 = vpop.eup %14515  ;;  %v13853_v13 = vld [vmem:[#allocation8 + $0x6c] sm:$0xf] }
 0x2d3   : > { %5183 = vmatpush.bf16.msra.mxu3 %v11714_v14  ;;  %5158 = vmatpush.bf16.msra.mxu1 %v11442_v40  ;;  %v11266_v14 = vor.u32 %v13843_v61, %v11265_v18  ;;  %v15216_v23 = vpack.c.bf16 %v14516_v31, %v14514_v5  ;;  %v11763_v40 = vld [vmem:[#allocation8 + $0x3f8] sm:$0xf0]  ;;  %v13889_v61 = vld [vmem:[#allocation8 + $0x18c] sm:$0xf] }
 0x2d4   : > { %v11766_v48 = vor.u32 %v13965_v39, %v11763_v40  ;;  %v11331_v18 = vld [vmem:[#allocation8 + $0x98] sm:$0xf0] }
 0x2d5   : > { %5171 = vmatpush.bf16.msra.mxu2 %v11570_v42  ;;  %5146 = vmatpush.bf16.msra.mxu0 %v11298_v58  ;;  %v11650_v42 = vor.u32 %v13939_v28, %v11649_v26  ;;  %v11494_v58 = vor.u32 %v13897_v47, %v11491_v50  ;;  %v11590_v28 = vor.u32 %v13921_v7, %v11587_v20  ;;  %v11315_v5 = vld [vmem:[#allocation8 + $0x78] sm:$0xf0]  ;;  %v13913_v47 = vld [vmem:[#allocation8 + $0x24c] sm:$0xf] }
 0x2d6   : > { %v11443_v31 = vld [vmem:[#allocation8 + $0x178] sm:$0xf0]  ;;  %v13905_v20 = vld [vmem:[#allocation8 + $0x20c] sm:$0xf] }
 0x2d7   : > { %5184 = vmatpush.bf16.msra.mxu3 %v11698_v37  ;;  %5159 = vmatpush.bf16.msra.mxu1 %v11426_v60  ;;  %v11363_v37 = vld [vmem:[#allocation8 + $0xd8] sm:$0xf0]  ;;  %v13861_v60 = vld [vmem:[#allocation8 + $0xac] sm:$0xf]  ;;  %v11446_v39 = vor.u32 %v13885_v29, %v11443_v31  ;;  %v12013_v29 = vld [vmem:[#allocation8 + $0x5e0] sm:$0xf] }
 0x2d8   : > { %v11366_v56 = vor.u32 %v13865_v46, %v11363_v37  ;;  %v11427_v37 = vld [vmem:[#allocation8 + $0x158] sm:$0xf0]  ;;  %v12141_v31 = vld [vmem:[#allocation8 + $0x6e0] sm:$0xf] }
 0x2d9   : > { %5172 = vmatpush.bf16.msra.mxu2 %v11554_v41  ;;  %5147 = vmatpush.bf16.msra.mxu0 %v11282_v17  ;;  %v11347_v41 = vld [vmem:[#allocation8 + $0xb8] sm:$0xf0]  ;;  %v13857_v17 = vld [vmem:[#allocation8 + $0x8c] sm:$0xf] }
 0x2da   : > { %v11350_v12 = vor.u32 %v13861_v60, %v11347_v41  ;;  %v13845_v41 = vld [vmem:[#allocation8 + $0x2c] sm:$0xf]  ;;  %v11395_v7 = vld [vmem:[#allocation8 + $0x118] sm:$0xf0] }
 0x2db   : > { %5185 = vmatpush.bf16.msra.mxu3 %v11682_v6  ;;  %5160 = vmatpush.bf16.msra.mxu1 %v11410_v19  ;;  %v11603_v6 = vld [vmem:[#allocation8 + $0x2b8] sm:$0xf0]  ;;  %v11734_v19 = vor.u32 %v13957_v9, %v11731_v11  ;;  %v13909_v9 = vld [vmem:[#allocation8 + $0x22c] sm:$0xf] }
 0x2dc   : > { %v11606_v16 = vor.u32 %v13925_v3, %v11603_v6  ;;  %v11686_v3 = vor.u32 %v13945_v52, %v11683_v53  ;;  %v11411_v6 = vld [vmem:[#allocation8 + $0x138] sm:$0xf0] }
 0x2dd   : > { %5173 = vmatpush.bf16.msra.mxu2 %v11538_v27  ;;  %5148 = vmatpush.bf16.msra.mxu0 %v11266_v14  ;;  %v11459_v27 = vld [vmem:[#allocation8 + $0x198] sm:$0xf0]  ;;  %v4132_v25 = vpop.f32.mrf.mxu0  ;;  %v13917_v14 = vld [vmem:[#allocation8 + $0x26c] sm:$0xf] }
 0x2de   : > { %v11462_v26 = vor.u32 %v13889_v61, %v11459_v27  ;;  %v11574_v40 = vor.u32 %v13917_v14, %v11571_v32  ;;  %v11539_v11 = vld [vmem:[#allocation8 + $0x238] sm:$0xf0]  ;;  %v13873_v27 = vld [vmem:[#allocation8 + $0x10c] sm:$0xf]  ;;  %v14062_v14 = vld [vmem:[#allocation8 + $0x6ec] sm:$0xf0] }
 0x2df   : > { %5186 = vmatpush.bf16.msra.mxu3 %v11666_v1  ;;  %5161 = vmatpush.bf16.msra.mxu1 %v11394_v35  ;;  %v11334_v1 = vor.u32 %v13857_v17, %v11331_v18  ;;  %v4145_v8 = vpop.f32.mrf.mxu1  ;;  %v11699_v35 = vld [vmem:[#allocation8 + $0x378] sm:$0xf0]  ;;  %v13841_v17 = vld [vmem:[#allocation8 + $0xc] sm:$0xf]  ;;  %v11398_v32 = vor.u32 %v13873_v27, %v11395_v7 }
 0x2e0   : > { %5149 = vmatmul.bf16.vlgmr.msra.gmra.mxu0 %v15197_v55  ;;  %v4146_v33 = vadd.f32 %v4145_v8, %v4132_v25  ;;  %v11702_v46 = vor.u32 %v13949_v34, %v11699_v35  ;;  %v11267_v18 = vld [vmem:[#allocation8 + $0x18] sm:$0xf0]  ;;  %v13937_v25 = vld [vmem:[#allocation8 + $0x30c] sm:$0xf]  ;;  %v12269_v34 = vld [vmem:[#allocation8 + $0x7e0] sm:$0xf] }
 0x2e1   : > { %5174 = vmatpush.bf16.msra.mxu2 %v11522_v36  ;;  %5193 = vmatpush.bf16.msrb.mxu0 %v11382_v43  ;;  %v11318_v36 = vor.u32 %v13853_v13, %v11315_v5  ;;  %v11299_v43 = vld [vmem:[#allocation8 + $0x58] sm:$0xf0]  ;;  %v11885_v13 = vld [vmem:[#allocation8 + $0x4e0] sm:$0xf]  ;;  %v13998_v5 = vld [vmem:[#allocation8 + $0x4ec] sm:$0xf0]  ;;  %v11270_v8 = vor.u32 %v13841_v17, %v11267_v18 }
 0x2e2   : > { %5162 = vmatmul.bf16.vlgmr.msra.gmra.mxu1 %v15199_v62  ;;  %v14094_v35 = vld [vmem:[#allocation8 + $0x7ec] sm:$0xf0] }
 0x2e3   : > { %5187 = vmatpush.bf16.msra.mxu3 %v11650_v42  ;;  %5206 = vmatpush.bf16.msrb.mxu1 %v11510_v44  ;;  %v13849_v42 = vld [vmem:[#allocation8 + $0x4c] sm:$0xf]  ;;  %v14018_v18 = vld [vmem:[#allocation8 + $0x58c] sm:$0xf0] }
 0x2e4   : > { %5175 = vmatmul.bf16.vlgmr.msra.gmra.mxu2 %v15201_v0  ;;  %v13881_v44 = vld [vmem:[#allocation8 + $0x14c] sm:$0xf]  ;;  %v11302_v54 = vor.u32 %v13849_v42, %v11299_v43  ;;  %v12142_v42 = vor.u32 %v14062_v14, %v12141_v31  ;;  %v11869_v43 = vld [vmem:[#allocation8 + $0x4c0] sm:$0xf] }
 0x2e5   : > { %5219 = vmatpush.bf16.msrb.mxu2 %v11638_v45  ;;  %5194 = vmatpush.bf16.msrb.mxu0 %v11366_v56 }
 0x2e6   : > { %5188 = vmatmul.bf16.vlgmr.msra.gmra.mxu3 %v15203_v10 }
 0x2e7   : > { %5232 = vmatpush.bf16.msrb.mxu3 %v11766_v48  ;;  %5207 = vmatpush.bf16.msrb.mxu1 %v11494_v58  ;;  %v4158_v45 = vpop.f32.mrf.mxu2  ;;  %v11555_v48 = vld [vmem:[#allocation8 + $0x258] sm:$0xf0]  ;;  %v4134_v58 = vpop.f32.mrf.mxu0 }
 0x2e8   : > { %v4159_v50 = vadd.f32 %v4158_v45, %v4146_v33  ;;  %v11558_v60 = vor.u32 %v13913_v47, %v11555_v48  ;;  %v4147_v2 = vpop.f32.mrf.mxu1  ;;  %v11997_v45 = vld [vmem:[#allocation8 + $0x5c0] sm:$0xf]  ;;  %v14058_v48 = vld [vmem:[#allocation8 + $0x6cc] sm:$0xf0] }
 0x2e9   : > { %5220 = vmatpush.bf16.msrb.mxu2 %v11622_v59  ;;  %5195 = vmatpush.bf16.msrb.mxu0 %v11350_v12  ;;  %v4171_v51 = vpop.f32.mrf.mxu3  ;;  %v11430_v59 = vor.u32 %v13881_v44, %v11427_v37  ;;  %v13941_v12 = vld [vmem:[#allocation8 + $0x32c] sm:$0xf]  ;;  %v13994_v44 = vld [vmem:[#allocation8 + $0x4cc] sm:$0xf0]  ;;  %v12125_v47 = vld [vmem:[#allocation8 + $0x6c0] sm:$0xf] }
 0x2ea   : > { %v15222_v56 = vadd.f32 %v4171_v51, %v4159_v50  ;;  %v14026_v37 = vld [vmem:[#allocation8 + $0x5cc] sm:$0xf0]  ;;  %v12253_v50 = vld [vmem:[#allocation8 + $0x7c0] sm:$0xf]  ;;  %v11870_v52 = vor.u32 %v13994_v44, %v11869_v43 }
 0x2eb   : > { %5233 = vmatpush.bf16.msrb.mxu3 %v11750_v21  ;;  %5208 = vmatpush.bf16.msrb.mxu1 %v11478_v15  ;;  %v13877_v21 = vld [vmem:[#allocation8 + $0x12c] sm:$0xf]  ;;  %v11667_v15 = vld [vmem:[#allocation8 + $0x338] sm:$0xf0]  ;;  %v14090_v51 = vld [vmem:[#allocation8 + $0x7cc] sm:$0xf0]  ;;  %v11998_v53 = vor.u32 %v14026_v37, %v11997_v45 }
 0x2ec   : > { %v11414_v61 = vor.u32 %v13877_v21, %v11411_v6  ;;  %v11670_v24 = vor.u32 %v13941_v12, %v11667_v15  ;;  %v11853_v58 = vld [vmem:[#allocation8 + $0x4a0] sm:$0xf]  ;;  %v14054_v2 = vld [vmem:[#allocation8 + $0x6ac] sm:$0xf0]  ;;  %14517 = vtanh.f32 %v15222_v56 }
 0x2ed   : > { %5221 = vmatpush.bf16.msrb.mxu2 %v11606_v16  ;;  %5196 = vmatpush.bf16.msrb.mxu0 %v11334_v1  ;;  %v11286_v16 = vor.u32 %v13845_v41, %v11283_v63  ;;  %v11523_v1 = vld [vmem:[#allocation8 + $0x218] sm:$0xf0]  ;;  %v12254_v41 = vor.u32 %v14090_v51, %v12253_v50  ;;  %v14022_v63 = vld [vmem:[#allocation8 + $0x5ac] sm:$0xf0]  ;;  %v12109_v21 = vld [vmem:[#allocation8 + $0x6a0] sm:$0xf] }
 0x2ee   : > { %v11526_v33 = vor.u32 %v13905_v20, %v11523_v1  ;;  %v14086_v6 = vld [vmem:[#allocation8 + $0x7ac] sm:$0xf0]  ;;  %v12110_v12 = vor.u32 %v14054_v2, %v12109_v21  ;;  %v11837_v15 = vld [vmem:[#allocation8 + $0x480] sm:$0xf] }
 0x2ef   : > { %5234 = vmatpush.bf16.msrb.mxu3 %v11734_v19  ;;  %5209 = vmatpush.bf16.msrb.mxu1 %v11462_v26  ;;  %v11542_v19 = vor.u32 %v13909_v9, %v11539_v11  ;;  %v4160_v22 = vpop.f32.mrf.mxu2  ;;  %v11651_v26 = vld [vmem:[#allocation8 + $0x318] sm:$0xf0]  ;;  %v13982_v1 = vld [vmem:[#allocation8 + $0x46c] sm:$0xf0]  ;;  %v12061_v44 = vld [vmem:[#allocation8 + $0x640] sm:$0xf] }
 0x2f0   : > { %v14010_v43 = vld [vmem:[#allocation8 + $0x54c] sm:$0xf0]  ;;  %v12173_v2 = vld [vmem:[#allocation8 + $0x720] sm:$0xf] }
 0x2f1   : > { %5222 = vmatpush.bf16.msrb.mxu2 %v11590_v28  ;;  %5197 = vmatpush.bf16.msrb.mxu0 %v11318_v36  ;;  %v4173_v28 = vpop.f32.mrf.mxu3  ;;  %v11654_v36 = vor.u32 %v13937_v25, %v11651_v26  ;;  %v11949_v25 = vld [vmem:[#allocation8 + $0x560] sm:$0xf]  ;;  %v14042_v45 = vld [vmem:[#allocation8 + $0x64c] sm:$0xf0] }
 0x2f2   : > { %v14074_v37 = vld [vmem:[#allocation8 + $0x74c] sm:$0xf0] }
 0x2f3   : > { %5235 = vmatpush.bf16.msrb.mxu3 %v11718_v30  ;;  %5210 = vmatpush.bf16.msrb.mxu1 %v11446_v39  ;;  %v14030_v30 = vld [vmem:[#allocation8 + $0x5ec] sm:$0xf0]  ;;  %v11886_v39 = vor.u32 %v13998_v5, %v11885_v13  ;;  %v12077_v5 = vld [vmem:[#allocation8 + $0x660] sm:$0xf] }
 0x2f4   : > { %v14014_v13 = vld [vmem:[#allocation8 + $0x56c] sm:$0xf0] }
 0x2f5   : > { %5223 = vmatpush.bf16.msrb.mxu2 %v11574_v40  ;;  %5198 = vmatpush.bf16.msrb.mxu0 %v11302_v54  ;;  %v12014_v40 = vor.u32 %v14030_v30, %v12013_v29  ;;  %v12126_v54 = vor.u32 %v14058_v48, %v12125_v47  ;;  %v14046_v29 = vld [vmem:[#allocation8 + $0x66c] sm:$0xf0]  ;;  %v11950_v14 = vor.u32 %v14014_v13, %v11949_v25  ;;  %v14060_v25 = vld [vmem:[#allocation8 + $0x6e4] sm:$0xf] }
 0x2f6   : > { %v14078_v30 = vld [vmem:[#allocation8 + $0x76c] sm:$0xf0] }
 0x2f7   : > { %5236 = vmatpush.bf16.msrb.mxu3 %v11702_v46  ;;  %5211 = vmatpush.bf16.msrb.mxu1 %v11430_v59  ;;  %v12270_v46 = vor.u32 %v14094_v35, %v12269_v34  ;;  %v13990_v59 = vld [vmem:[#allocation8 + $0x4ac] sm:$0xf0]  ;;  %v11805_v34 = vld [vmem:[#allocation8 + $0x440] sm:$0xf] }
 0x2f8   : > { %v11854_v9 = vor.u32 %v13990_v59, %v11853_v58  ;;  %v13978_v35 = vld [vmem:[#allocation8 + $0x44c] sm:$0xf0]  ;;  %v11917_v58 = vld [vmem:[#allocation8 + $0x520] sm:$0xf] }
 0x2f9   : > { %5224 = vmatpush.bf16.msrb.mxu2 %v11558_v60  ;;  %5199 = vmatpush.bf16.msrb.mxu0 %v11286_v16  ;;  %v11981_v60 = vld [vmem:[#allocation8 + $0x5a0] sm:$0xf]  ;;  %v11806_v48 = vor.u32 %v13978_v35, %v11805_v34  ;;  %v14038_v21 = vld [vmem:[#allocation8 + $0x62c] sm:$0xf0] }
 0x2fa   : > { %v11982_v11 = vor.u32 %v14022_v63, %v11981_v60  ;;  %v11965_v16 = vld [vmem:[#allocation8 + $0x580] sm:$0xf]  ;;  %v13970_v56 = vld [vmem:[#allocation8 + $0x40c] sm:$0xf0] }
 0x2fb   : > { %5237 = vmatpush.bf16.msrb.mxu3 %v11686_v3  ;;  %5212 = vmatpush.bf16.msrb.mxu1 %v11414_v61  ;;  %v12237_v3 = vld [vmem:[#allocation8 + $0x7a0] sm:$0xf] }
 0x2fc   : > { %v12238_v17 = vor.u32 %v14086_v6, %v12237_v3  ;;  %v12093_v61 = vld [vmem:[#allocation8 + $0x680] sm:$0xf]  ;;  %v14070_v3 = vld [vmem:[#allocation8 + $0x72c] sm:$0xf0] }
 0x2fd   : > { %5225 = vmatpush.bf16.msrb.mxu2 %v11542_v19  ;;  %5200 = vmatpush.bf16.msrb.mxu0 %v11270_v8  ;;  %v12221_v19 = vld [vmem:[#allocation8 + $0x780] sm:$0xf]  ;;  %v4184_v7 = vpop.f32.mrf.mxu0 }
 0x2fe   : > { %v12205_v8 = vld [vmem:[#allocation8 + $0x760] sm:$0xf] }
 0x2ff   : > { %5238 = vmatpush.bf16.msrb.mxu3 %v11670_v24  ;;  %5213 = vmatpush.bf16.msrb.mxu1 %v11398_v32  ;;  %v4197_v22 = vpop.f32.mrf.mxu1  ;;  %v11821_v24 = vld [vmem:[#allocation8 + $0x460] sm:$0xf]  ;;  %v12078_v32 = vor.u32 %v14046_v29, %v12077_v5  ;;  %v14092_v29 = vld [vmem:[#allocation8 + $0x7e4] sm:$0xf] }
 0x300   : > { %5201 = vmatmul.bf16.vlgmr.msrb.gmra.mxu0 %v15197_v55  ;;  %v13986_v55 = vld [vmem:[#allocation8 + $0x48c] sm:$0xf0]  ;;  %v4198_v28 = vadd.f32 %v4197_v22, %v4184_v7  ;;  %v11822_v31 = vor.u32 %v13982_v1, %v11821_v24  ;;  %v12045_v63 = vld [vmem:[#allocation8 + $0x620] sm:$0xf]  ;;  %v13996_v7 = vld [vmem:[#allocation8 + $0x4e4] sm:$0xf] }
 0x301   : > { %5226 = vmatpush.bf16.msrb.mxu2 %v11526_v33  ;;  %6128 = vmatpush.bf16.msra.mxu0 %v11886_v39  ;;  %v11838_v27 = vor.u32 %v13986_v55, %v11837_v15  ;;  %v12206_v39 = vor.u32 %v14078_v30, %v12205_v8  ;;  %v11901_v15 = vld [vmem:[#allocation8 + $0x500] sm:$0xf]  ;;  %v14002_v55 = vld [vmem:[#allocation8 + $0x50c] sm:$0xf0]  ;;  %v12015_v1 = vld [vmem:[#allocation8 + $0x5f0] sm:$0xf0]  ;;  %v5476_v30 = vunpack.c.l.b16 %v15152_v4 }
 0x302   : > { %5214 = vmatmul.bf16.vlgmr.msrb.gmra.mxu1 %v15199_v62  ;;  %v14050_v62 = vld [vmem:[#allocation8 + $0x68c] sm:$0xf0]  ;;  %v11902_v13 = vor.u32 %v14002_v55, %v11901_v15  ;;  %v12271_v8 = vld [vmem:[#allocation8 + $0x7f0] sm:$0xf0]  ;;  %v14016_v15 = vld [vmem:[#allocation8 + $0x584] sm:$0xf] }
 0x303   : > { %5239 = vmatpush.bf16.msrb.mxu3 %v11654_v36  ;;  %6141 = vmatpush.bf16.msra.mxu1 %v12014_v40  ;;  %v12094_v20 = vor.u32 %v14050_v62, %v12093_v61  ;;  %v11933_v36 = vld [vmem:[#allocation8 + $0x540] sm:$0xf]  ;;  %v14034_v61 = vld [vmem:[#allocation8 + $0x60c] sm:$0xf0] }
 0x304   : > { %5227 = vmatmul.bf16.vlgmr.msrb.gmra.mxu2 %v15201_v0  ;;  %v14082_v0 = vld [vmem:[#allocation8 + $0x78c] sm:$0xf0]  ;;  %v11934_v51 = vor.u32 %v14010_v43, %v11933_v36  ;;  %v12157_v62 = vld [vmem:[#allocation8 + $0x700] sm:$0xf]  ;;  %v13992_v36 = vld [vmem:[#allocation8 + $0x4c4] sm:$0xf]  ;;  %v12274_v43 = vor.u32 %v14092_v29, %v12271_v8 }
 0x305   : > { %6154 = vmatpush.bf16.msra.mxu2 %v12142_v42  ;;  %6129 = vmatpush.bf16.msra.mxu0 %v11870_v52  ;;  %v12222_v26 = vor.u32 %v14082_v0, %v12221_v19  ;;  %v4186_v50 = vpop.f32.mrf.mxu0  ;;  %v12062_v52 = vor.u32 %v14042_v45, %v12061_v44  ;;  %v14066_v19 = vld [vmem:[#allocation8 + $0x70c] sm:$0xf0]  ;;  %v11999_v44 = vld [vmem:[#allocation8 + $0x5d0] sm:$0xf0]  ;;  %v14056_v45 = vld [vmem:[#allocation8 + $0x6c4] sm:$0xf] }
 0x306   : > { %5240 = vmatmul.bf16.vlgmr.msrb.gmra.mxu3 %v15203_v10  ;;  %v11966_v10 = vor.u32 %v14018_v18, %v11965_v16  ;;  %v12029_v16 = vld [vmem:[#allocation8 + $0x600] sm:$0xf]  ;;  %v12174_v18 = vor.u32 %v14070_v3, %v12173_v2  ;;  %v14084_v2 = vld [vmem:[#allocation8 + $0x7a4] sm:$0xf]  ;;  %v12239_v3 = vld [vmem:[#allocation8 + $0x7b0] sm:$0xf0] }
 0x307   : > { %6167 = vmatpush.bf16.msra.mxu3 %v12270_v46  ;;  %6142 = vmatpush.bf16.msra.mxu1 %v11998_v53  ;;  %v4210_v33 = vpop.f32.mrf.mxu2  ;;  %v12189_v46 = vld [vmem:[#allocation8 + $0x740] sm:$0xf]  ;;  %v4199_v59 = vpop.f32.mrf.mxu1  ;;  %v12030_v5 = vor.u32 %v14034_v61, %v12029_v16  ;;  %v12242_v55 = vor.u32 %v14084_v2, %v12239_v3  ;;  %v11967_v16 = vld [vmem:[#allocation8 + $0x590] sm:$0xf0]  ;;  %v14076_v29 = vld [vmem:[#allocation8 + $0x764] sm:$0xf] }
 0x308   : > { %v4211_v40 = vadd.f32 %v4210_v33, %v4198_v28  ;;  %v11789_v53 = vld [vmem:[#allocation8 + $0x420] sm:$0xf]  ;;  %v12190_v60 = vor.u32 %v14074_v37, %v12189_v46  ;;  %v5478_v33 = vunpack.c.l.b16 %v15165_v57  ;;  %v12127_v46 = vld [vmem:[#allocation8 + $0x6d0] sm:$0xf0]  ;;  %v14068_v3 = vld [vmem:[#allocation8 + $0x724] sm:$0xf] }
 0x309   : > { %6155 = vmatpush.bf16.msra.mxu2 %v12126_v54  ;;  %6130 = vmatpush.bf16.msra.mxu0 %v11854_v9  ;;  %v4223_v42 = vpop.f32.mrf.mxu3  ;;  %v13974_v54 = vld [vmem:[#allocation8 + $0x42c] sm:$0xf0]  ;;  %v11773_v9 = vld [vmem:[#allocation8 + $0x400] sm:$0xf]  ;;  %v12255_v37 = vld [vmem:[#allocation8 + $0x7d0] sm:$0xf0] }
 0x30a   : > { %v4224_v47 = vadd.f32 %v4223_v42, %v4211_v40  ;;  %v11790_v6 = vor.u32 %v13974_v54, %v11789_v53  ;;  %v11774_v24 = vor.u32 %v13970_v56, %v11773_v9  ;;  %v14024_v40 = vld [vmem:[#allocation8 + $0x5c4] sm:$0xf]  ;;  %v5479_v42 = vunpack.c.h.b16 %v15165_v57  ;;  %v11855_v54 = vld [vmem:[#allocation8 + $0x4b0] sm:$0xf0] }
 0x30b   : > { %6168 = vmatpush.bf16.msra.mxu3 %v12254_v41  ;;  %6143 = vmatpush.bf16.msra.mxu1 %v11982_v11  ;;  %v14006_v41 = vld [vmem:[#allocation8 + $0x52c] sm:$0xf0]  ;;  %v12002_v57 = vor.u32 %v14024_v40, %v11999_v44  ;;  %v13988_v53 = vld [vmem:[#allocation8 + $0x4a4] sm:$0xf]  ;;  %v12207_v8 = vld [vmem:[#allocation8 + $0x770] sm:$0xf0] }
 0x30c   : > { %14519 = vtanh.f32 %v4224_v47  ;;  %v11918_v11 = vor.u32 %v14006_v41, %v11917_v58  ;;  %v15235_v47 = vpack.c.b16 %v5476_v30, %v5476_v30  ;;  %v14020_v58 = vld [vmem:[#allocation8 + $0x5a4] sm:$0xf]  ;;  %v15241_v59 = vpack.c.b16 %v5479_v42, %v5479_v42  ;;  %v11983_v41 = vld [vmem:[#allocation8 + $0x5b0] sm:$0xf0] }
 0x30d   : > { %6156 = vmatpush.bf16.msra.mxu2 %v12110_v12  ;;  %6131 = vmatpush.bf16.msra.mxu0 %v11838_v27  ;;  %v12046_v12 = vor.u32 %v14038_v21, %v12045_v63  ;;  %v14518_v27 = vpop.eup %14517  ;;  %v14052_v63 = vld [vmem:[#allocation8 + $0x6a4] sm:$0xf]  ;;  %v12111_v21 = vld [vmem:[#allocation8 + $0x6b0] sm:$0xf0]  ;;  %v11986_v9 = vor.u32 %v14020_v58, %v11983_v41 }
 0x30e   : > { %v12114_v56 = vor.u32 %v14052_v63, %v12111_v21  ;;  %v14040_v40 = vld [vmem:[#allocation8 + $0x644] sm:$0xf]  ;;  %v12063_v42 = vld [vmem:[#allocation8 + $0x650] sm:$0xf0] }
 0x30f   : > { %6169 = vmatpush.bf16.msra.mxu3 %v12238_v17  ;;  %6144 = vmatpush.bf16.msra.mxu1 %v11966_v10  ;;  %v4212_v17 = vpop.f32.mrf.mxu2  ;;  %v11887_v10 = vld [vmem:[#allocation8 + $0x4f0] sm:$0xf0]  ;;  %v14036_v21 = vld [vmem:[#allocation8 + $0x624] sm:$0xf] }
 0x310   : > { %v14048_v17 = vld [vmem:[#allocation8 + $0x684] sm:$0xf]  ;;  %v11791_v58 = vld [vmem:[#allocation8 + $0x430] sm:$0xf0] }
 0x311   : > { %6157 = vmatpush.bf16.msra.mxu2 %v12094_v20  ;;  %6132 = vmatpush.bf16.msra.mxu0 %v11822_v31  ;;  %v4225_v0 = vpop.f32.mrf.mxu3  ;;  %v14028_v20 = vld [vmem:[#allocation8 + $0x5e4] sm:$0xf]  ;;  %v5477_v31 = vunpack.c.h.b16 %v15152_v4  ;;  %v11919_v63 = vld [vmem:[#allocation8 + $0x530] sm:$0xf0] }
 0x312   : > { %v14520_v22 = vpop.eup %14519  ;;  %v12018_v34 = vor.u32 %v14028_v20, %v12015_v1  ;;  %v14088_v4 = vld [vmem:[#allocation8 + $0x7c4] sm:$0xf]  ;;  %v12047_v2 = vld [vmem:[#allocation8 + $0x630] sm:$0xf0] }
 0x313   : > { %6170 = vmatpush.bf16.msra.mxu3 %v12222_v26  ;;  %6145 = vmatpush.bf16.msra.mxu1 %v11950_v14  ;;  %v12143_v26 = vld [vmem:[#allocation8 + $0x6f0] sm:$0xf0]  ;;  %v15229_v28 = vpack.c.bf16 %v14520_v22, %v14518_v27  ;;  %v12158_v14 = vor.u32 %v14066_v19, %v12157_v62  ;;  %v14080_v62 = vld [vmem:[#allocation8 + $0x784] sm:$0xf] }
 0x314   : > { %v12146_v35 = vor.u32 %v14060_v25, %v12143_v26  ;;  %v12223_v19 = vld [vmem:[#allocation8 + $0x790] sm:$0xf0]  ;;  %v13980_v22 = vld [vmem:[#allocation8 + $0x464] sm:$0xf] }
 0x315   : > { %6158 = vmatpush.bf16.msra.mxu2 %v12078_v32  ;;  %6133 = vmatpush.bf16.msra.mxu0 %v11806_v48  ;;  %v11890_v32 = vor.u32 %v13996_v7, %v11887_v10  ;;  %v15237_v48 = vpack.c.b16 %v5477_v31, %v5477_v31  ;;  %v11970_v10 = vor.u32 %v14016_v15, %v11967_v16  ;;  %v14012_v1 = vld [vmem:[#allocation8 + $0x564] sm:$0xf]  ;;  %v11951_v26 = vld [vmem:[#allocation8 + $0x570] sm:$0xf0] }
 0x316   : > { %v12226_v25 = vor.u32 %v14080_v62, %v12223_v19  ;;  %v11954_v31 = vor.u32 %v14012_v1, %v11951_v26  ;;  %v12050_v15 = vor.u32 %v14036_v21, %v12047_v2  ;;  %v11903_v16 = vld [vmem:[#allocation8 + $0x510] sm:$0xf0]  ;;  %v14064_v19 = vld [vmem:[#allocation8 + $0x704] sm:$0xf]  ;;  %v12149_v1 = vld [vmem:[#allocation8 + $0x6e8] sm:$0xf] }
 0x317   : > { %6171 = vmatpush.bf16.msra.mxu3 %v12206_v39  ;;  %6146 = vmatpush.bf16.msra.mxu1 %v11934_v51  ;;  %v11871_v39 = vld [vmem:[#allocation8 + $0x4d0] sm:$0xf0]  ;;  %v15239_v51 = vpack.c.b16 %v5478_v33, %v5478_v33 }
 0x318   : > { %v11874_v50 = vor.u32 %v13992_v36, %v11871_v39  ;;  %v11807_v33 = vld [vmem:[#allocation8 + $0x450] sm:$0xf0] }
 0x319   : > { %6159 = vmatpush.bf16.msra.mxu2 %v12062_v52  ;;  %6134 = vmatpush.bf16.msra.mxu0 %v11790_v6  ;;  %v12130_v52 = vor.u32 %v14056_v45, %v12127_v46  ;;  %v11858_v6 = vor.u32 %v13988_v53, %v11855_v54  ;;  %v11935_v39 = vld [vmem:[#allocation8 + $0x550] sm:$0xf0]  ;;  %v14072_v46 = vld [vmem:[#allocation8 + $0x744] sm:$0xf]  ;;  %v12066_v53 = vor.u32 %v14040_v40, %v12063_v42  ;;  %v12133_v40 = vld [vmem:[#allocation8 + $0x6c8] sm:$0xf] }
 0x31a   : > { %v13972_v54 = vld [vmem:[#allocation8 + $0x424] sm:$0xf]  ;;  %v12031_v62 = vld [vmem:[#allocation8 + $0x610] sm:$0xf0]  ;;  %v14059_v42 = vld [vmem:[#allocation8 + $0x6d4] sm:$0xf0] }
 0x31b   : > { %6172 = vmatpush.bf16.msra.mxu3 %v12190_v60  ;;  %6147 = vmatpush.bf16.msra.mxu1 %v11918_v11  ;;  %v12258_v60 = vor.u32 %v14088_v4, %v12255_v37  ;;  %v13984_v11 = vld [vmem:[#allocation8 + $0x484] sm:$0xf]  ;;  %v12191_v4 = vld [vmem:[#allocation8 + $0x750] sm:$0xf0] }
 0x31c   : > { %v12194_v41 = vor.u32 %v14072_v46, %v12191_v4  ;;  %v12134_v4 = vor.u32 %v14059_v42, %v12133_v40 }
 0x31d   : > { %6160 = vmatpush.bf16.msra.mxu2 %v12046_v12  ;;  %6135 = vmatpush.bf16.msra.mxu0 %v11774_v24  ;;  %v11839_v12 = vld [vmem:[#allocation8 + $0x490] sm:$0xf0]  ;;  %v5046_v61 = vpop.f32.mrf.mxu0 }
 0x31e   : > { %v11842_v27 = vor.u32 %v13984_v11, %v11839_v12  ;;  %v11823_v24 = vld [vmem:[#allocation8 + $0x470] sm:$0xf0] }
 0x31f   : > { %6173 = vmatpush.bf16.msra.mxu3 %v12174_v18  ;;  %6148 = vmatpush.bf16.msra.mxu1 %v11902_v13  ;;  %v12095_v18 = vld [vmem:[#allocation8 + $0x690] sm:$0xf0]  ;;  %v5059_v0 = vpop.f32.mrf.mxu1  ;;  %v14044_v13 = vld [vmem:[#allocation8 + $0x664] sm:$0xf]  ;;  %v11826_v30 = vor.u32 %v13980_v22, %v11823_v24  ;;  %v14031_v24 = vld [vmem:[#allocation8 + $0x5f4] sm:$0xf0] }
 0x320   : > { %6136 = vmatmul.bf16.vlgmr.msra.gmra.mxu0 %v15235_v47  ;;  %v5060_v7 = vadd.f32 %v5059_v0, %v5046_v61  ;;  %v12098_v20 = vor.u32 %v14048_v17, %v12095_v18  ;;  %v11775_v11 = vld [vmem:[#allocation8 + $0x410] sm:$0xf0]  ;;  %v14032_v17 = vld [vmem:[#allocation8 + $0x604] sm:$0xf] }
 0x321   : > { %6161 = vmatpush.bf16.msra.mxu2 %v12030_v5  ;;  %6180 = vmatpush.bf16.msrb.mxu0 %v11890_v32  ;;  %v12079_v5 = vld [vmem:[#allocation8 + $0x670] sm:$0xf0]  ;;  %v13976_v32 = vld [vmem:[#allocation8 + $0x444] sm:$0xf] }
 0x322   : > { %6149 = vmatmul.bf16.vlgmr.msra.gmra.mxu1 %v15237_v48  ;;  %v12159_v0 = vld [vmem:[#allocation8 + $0x710] sm:$0xf0] }
 0x323   : > { %6174 = vmatpush.bf16.msra.mxu3 %v12158_v14  ;;  %6193 = vmatpush.bf16.msrb.mxu1 %v12018_v34  ;;  %v12082_v14 = vor.u32 %v14044_v13, %v12079_v5  ;;  %v14008_v34 = vld [vmem:[#allocation8 + $0x544] sm:$0xf]  ;;  %v12034_v13 = vor.u32 %v14032_v17, %v12031_v62  ;;  %v12277_v5 = vld [vmem:[#allocation8 + $0x7e8] sm:$0xf] }
 0x324   : > { %6162 = vmatmul.bf16.vlgmr.msra.gmra.mxu2 %v15239_v51  ;;  %v12229_v17 = vld [vmem:[#allocation8 + $0x788] sm:$0xf] }
 0x325   : > { %6206 = vmatpush.bf16.msrb.mxu2 %v12146_v35  ;;  %6181 = vmatpush.bf16.msrb.mxu0 %v11874_v50  ;;  %v12210_v35 = vor.u32 %v14076_v29, %v12207_v8  ;;  %v5048_v45 = vpop.f32.mrf.mxu0  ;;  %v11810_v50 = vor.u32 %v13976_v32, %v11807_v33  ;;  %v14095_v29 = vld [vmem:[#allocation8 + $0x7f4] sm:$0xf0]  ;;  %v12162_v8 = vor.u32 %v14064_v19, %v12159_v0  ;;  %v11829_v19 = vld [vmem:[#allocation8 + $0x468] sm:$0xf] }
 0x326   : > { %6175 = vmatmul.bf16.vlgmr.msra.gmra.mxu3 %v15241_v59 }
 0x327   : > { %6219 = vmatpush.bf16.msrb.mxu3 %v12274_v43  ;;  %6194 = vmatpush.bf16.msrb.mxu1 %v12002_v57  ;;  %v5072_v36 = vpop.f32.mrf.mxu2  ;;  %v5061_v37 = vpop.f32.mrf.mxu1 }
 0x328   : > { %v5073_v43 = vadd.f32 %v5072_v36, %v5060_v7  ;;  %v11893_v7 = vld [vmem:[#allocation8 + $0x4e8] sm:$0xf]  ;;  %v12278_v36 = vor.u32 %v14095_v29, %v12277_v5  ;;  %v14079_v5 = vld [vmem:[#allocation8 + $0x774] sm:$0xf0] }
 0x329   : > { %6207 = vmatpush.bf16.msrb.mxu2 %v12130_v52  ;;  %6182 = vmatpush.bf16.msrb.mxu0 %v11858_v6  ;;  %v5085_v44 = vpop.f32.mrf.mxu3  ;;  %v11938_v52 = vor.u32 %v14008_v34, %v11935_v39  ;;  %v12175_v6 = vld [vmem:[#allocation8 + $0x730] sm:$0xf0]  ;;  %v13995_v34 = vld [vmem:[#allocation8 + $0x4d4] sm:$0xf0]  ;;  %v11861_v37 = vld [vmem:[#allocation8 + $0x4a8] sm:$0xf] }
 0x32a   : > { %v5086_v57 = vadd.f32 %v5085_v44, %v5073_v43  ;;  %v12178_v18 = vor.u32 %v14068_v3, %v12175_v6  ;;  %v14027_v39 = vld [vmem:[#allocation8 + $0x5d4] sm:$0xf0]  ;;  %v12261_v43 = vld [vmem:[#allocation8 + $0x7c8] sm:$0xf] }
 0x32b   : > { %6220 = vmatpush.bf16.msrb.mxu3 %v12258_v60  ;;  %6195 = vmatpush.bf16.msrb.mxu1 %v11986_v9  ;;  %v14004_v60 = vld [vmem:[#allocation8 + $0x524] sm:$0xf]  ;;  %v11794_v9 = vor.u32 %v13972_v54, %v11791_v58  ;;  %v14091_v44 = vld [vmem:[#allocation8 + $0x7d4] sm:$0xf0]  ;;  %v12117_v54 = vld [vmem:[#allocation8 + $0x6a8] sm:$0xf] }
 0x32c   : > { %v11922_v12 = vor.u32 %v14004_v60, %v11919_v63  ;;  %v14055_v58 = vld [vmem:[#allocation8 + $0x6b4] sm:$0xf0]  ;;  %v12245_v60 = vld [vmem:[#allocation8 + $0x7a8] sm:$0xf] }
 0x32d   : > { %6208 = vmatpush.bf16.msrb.mxu2 %v12114_v56  ;;  %6183 = vmatpush.bf16.msrb.mxu0 %v11842_v27  ;;  %v13968_v56 = vld [vmem:[#allocation8 + $0x404] sm:$0xf]  ;;  %v12118_v2 = vor.u32 %v14055_v58, %v12117_v54  ;;  %v11845_v3 = vld [vmem:[#allocation8 + $0x488] sm:$0xf]  ;;  %v13987_v6 = vld [vmem:[#allocation8 + $0x494] sm:$0xf0] }
 0x32e   : > { %v11778_v22 = vor.u32 %v13968_v56, %v11775_v11  ;;  %v14019_v11 = vld [vmem:[#allocation8 + $0x594] sm:$0xf0]  ;;  %v11846_v62 = vor.u32 %v13987_v6, %v11845_v3  ;;  %v11925_v54 = vld [vmem:[#allocation8 + $0x528] sm:$0xf] }
 0x32f   : > { %6221 = vmatpush.bf16.msrb.mxu3 %v12242_v55  ;;  %6196 = vmatpush.bf16.msrb.mxu1 %v11970_v10  ;;  %v14000_v55 = vld [vmem:[#allocation8 + $0x504] sm:$0xf]  ;;  %v5074_v61 = vpop.f32.mrf.mxu2  ;;  %v13999_v10 = vld [vmem:[#allocation8 + $0x4f4] sm:$0xf0] }
 0x330   : > { %v11906_v26 = vor.u32 %v14000_v55, %v11903_v16  ;;  %v14071_v3 = vld [vmem:[#allocation8 + $0x734] sm:$0xf0] }
 0x331   : > { %6209 = vmatpush.bf16.msrb.mxu2 %v12098_v20  ;;  %6184 = vmatpush.bf16.msrb.mxu0 %v11826_v30  ;;  %v5087_v27 = vpop.f32.mrf.mxu3  ;;  %v12021_v20 = vld [vmem:[#allocation8 + $0x5e8] sm:$0xf]  ;;  %v11894_v30 = vor.u32 %v13999_v10, %v11893_v7  ;;  %v13983_v10 = vld [vmem:[#allocation8 + $0x474] sm:$0xf0] }
 0x332   : > { %v12022_v32 = vor.u32 %v14031_v24, %v12021_v20  ;;  %v11957_v20 = vld [vmem:[#allocation8 + $0x568] sm:$0xf]  ;;  %v11830_v29 = vor.u32 %v13983_v10, %v11829_v19  ;;  %v13997_v10 = vld [vmem:[#allocation8 + $0x4ec] sm:$0xf] }
 0x333   : > { %6222 = vmatpush.bf16.msrb.mxu3 %v12226_v25  ;;  %6197 = vmatpush.bf16.msrb.mxu1 %v11954_v31  ;;  %v14063_v25 = vld [vmem:[#allocation8 + $0x6f4] sm:$0xf0]  ;;  %v11877_v31 = vld [vmem:[#allocation8 + $0x4c8] sm:$0xf] }
 0x334   : > { %v12150_v33 = vor.u32 %v14063_v25, %v12149_v1  ;;  %v11878_v45 = vor.u32 %v13995_v34, %v11877_v31  ;;  %v12085_v25 = vld [vmem:[#allocation8 + $0x668] sm:$0xf] }
 0x335   : > { %6210 = vmatpush.bf16.msrb.mxu2 %v12082_v14  ;;  %6185 = vmatpush.bf16.msrb.mxu0 %v11810_v50  ;;  %v11767_v14 = vmul.f32 -1.442695, %v5086_v57  ;;  %v13991_v50 = vld [vmem:[#allocation8 + $0x4b4] sm:$0xf0]  ;;  %v11989_v57 = vld [vmem:[#allocation8 + $0x5a8] sm:$0xf] }
 0x336   : > { %v11862_v63 = vor.u32 %v13991_v50, %v11861_v37  ;;  %v11813_v31 = vld [vmem:[#allocation8 + $0x448] sm:$0xf] }
 0x337   : > { %6223 = vmatpush.bf16.msrb.mxu3 %v12210_v35  ;;  %6198 = vmatpush.bf16.msrb.mxu1 %v11938_v52  ;;  %v12005_v35 = vld [vmem:[#allocation8 + $0x5c8] sm:$0xf]  ;;  %14521 = vpow2.f32 %v11767_v14  ;;  %v12262_v52 = vor.u32 %v14091_v44, %v12261_v43  ;;  %v13979_v14 = vld [vmem:[#allocation8 + $0x454] sm:$0xf0] }
 0x338   : > { %v12006_v46 = vor.u32 %v14027_v39, %v12005_v35  ;;  %v14011_v35 = vld [vmem:[#allocation8 + $0x554] sm:$0xf0]  ;;  %v12197_v44 = vld [vmem:[#allocation8 + $0x748] sm:$0xf] }
 0x339   : > { %6211 = vmatpush.bf16.msrb.mxu2 %v12066_v53  ;;  %6186 = vmatpush.bf16.msrb.mxu0 %v11794_v9  ;;  %v14023_v53 = vld [vmem:[#allocation8 + $0x5b4] sm:$0xf0]  ;;  %v11973_v9 = vld [vmem:[#allocation8 + $0x588] sm:$0xf] }
 0x33a   : > { %v11990_v21 = vor.u32 %v14023_v53, %v11989_v57  ;;  %v11974_v27 = vor.u32 %v14019_v11, %v11973_v9  ;;  %v14043_v39 = vld [vmem:[#allocation8 + $0x654] sm:$0xf0]  ;;  %v12165_v19 = vld [vmem:[#allocation8 + $0x708] sm:$0xf] }
 0x33b   : > { %6224 = vmatpush.bf16.msrb.mxu3 %v12194_v41  ;;  %6199 = vmatpush.bf16.msrb.mxu1 %v11922_v12  ;;  %v14087_v41 = vld [vmem:[#allocation8 + $0x7b4] sm:$0xf0]  ;;  %v12101_v12 = vld [vmem:[#allocation8 + $0x688] sm:$0xf] }
 0x33c   : > { %v12246_v56 = vor.u32 %v14087_v41, %v12245_v60  ;;  %v13975_v53 = vld [vmem:[#allocation8 + $0x434] sm:$0xf0]  ;;  %v12053_v41 = vld [vmem:[#allocation8 + $0x628] sm:$0xf] }
 0x33d   : > { %6212 = vmatpush.bf16.msrb.mxu2 %v12050_v15  ;;  %6187 = vmatpush.bf16.msrb.mxu0 %v11778_v22  ;;  %v14051_v15 = vld [vmem:[#allocation8 + $0x694] sm:$0xf0]  ;;  %v14522_v55 = vpop.eup %14521  ;;  %v5098_v16 = vpop.f32.mrf.mxu0 }
 0x33e   : > { %v12102_v7 = vor.u32 %v14051_v15, %v12101_v12  ;;  %v14015_v22 = vld [vmem:[#allocation8 + $0x574] sm:$0xf0]  ;;  %v15251_v24 = vadd.f32 1.0, %v14522_v55  ;;  %v11909_v55 = vld [vmem:[#allocation8 + $0x508] sm:$0xf] }
 0x33f   : > { %6225 = vmatpush.bf16.msrb.mxu3 %v12178_v18  ;;  %6200 = vmatpush.bf16.msrb.mxu1 %v11906_v26  ;;  %v14083_v18 = vld [vmem:[#allocation8 + $0x794] sm:$0xf0]  ;;  %v5111_v61 = vpop.f32.mrf.mxu1 }
 0x340   : > { %6188 = vmatmul.bf16.vlgmr.msrb.gmra.mxu0 %v15235_v47  ;;  %v5112_v0 = vadd.f32 %v5111_v61, %v5098_v16  ;;  %v12230_v1 = vor.u32 %v14083_v18, %v12229_v17  ;;  %v14047_v26 = vld [vmem:[#allocation8 + $0x674] sm:$0xf0]  ;;  %14523 = vrcp.f32 %v15251_v24  ;;  %v12037_v17 = vld [vmem:[#allocation8 + $0x608] sm:$0xf]  ;;  %vm5266_vm1 = vweird.f32 %v15251_v24 }
 0x341   : > { %6213 = vmatpush.bf16.msrb.mxu2 %v12034_v13  ;;  %6232 = vmatpush.bf16.msra.mxu0 %v11894_v30  ;;  %v12213_v13 = vld [vmem:[#allocation8 + $0x768] sm:$0xf]  ;;  %v12086_v30 = vor.u32 %v14047_v26, %v12085_v25  ;;  %v14007_v60 = vld [vmem:[#allocation8 + $0x534] sm:$0xf0]  ;;  %v12023_v25 = vld [vmem:[#allocation8 + $0x5f8] sm:$0xf0] }
 0x342   : > { %6201 = vmatmul.bf16.vlgmr.msrb.gmra.mxu1 %v15237_v48  ;;  %v13971_v11 = vld [vmem:[#allocation8 + $0x414] sm:$0xf0]  ;;  %v11926_v12 = vor.u32 %v14007_v60, %v11925_v54  ;;  %v14061_v26 = vld [vmem:[#allocation8 + $0x6ec] sm:$0xf] }
 0x343   : > { %6226 = vmatpush.bf16.msrb.mxu3 %v12162_v8  ;;  %6245 = vmatpush.bf16.msra.mxu1 %v12022_v32  ;;  %v11958_v8 = vor.u32 %v14015_v22, %v11957_v20  ;;  %v11941_v32 = vld [vmem:[#allocation8 + $0x548] sm:$0xf]  ;;  %v14003_v16 = vld [vmem:[#allocation8 + $0x514] sm:$0xf0]  ;;  %v11895_v20 = vld [vmem:[#allocation8 + $0x4f8] sm:$0xf0] }
 0x344   : > { %6214 = vmatmul.bf16.vlgmr.msrb.gmra.mxu2 %v15239_v51  ;;  %v11942_v50 = vor.u32 %v14011_v35, %v11941_v32  ;;  %v14029_v22 = vld [vmem:[#allocation8 + $0x5ec] sm:$0xf] }
 0x345   : > { %6258 = vmatpush.bf16.msra.mxu2 %v12150_v33  ;;  %6233 = vmatpush.bf16.msra.mxu0 %v11878_v45  ;;  %v12214_v33 = vor.u32 %v14079_v5, %v12213_v13  ;;  %v5100_v43 = vpop.f32.mrf.mxu0  ;;  %v14075_v45 = vld [vmem:[#allocation8 + $0x754] sm:$0xf0]  ;;  %v12151_v13 = vld [vmem:[#allocation8 + $0x6f8] sm:$0xf0]  ;;  %v11910_v5 = vor.u32 %v14003_v16, %v11909_v55  ;;  %v13993_v32 = vld [vmem:[#allocation8 + $0x4cc] sm:$0xf] }
 0x346   : > { %6227 = vmatmul.bf16.vlgmr.msrb.gmra.mxu3 %v15241_v59  ;;  %v12198_v58 = vor.u32 %v14075_v45, %v12197_v44  ;;  %v15254_v6 = vpop.eup %14523  ;;  %v14057_v45 = vld [vmem:[#allocation8 + $0x6cc] sm:$0xf] }
 0x347   : > { %6271 = vmatpush.bf16.msra.mxu3 %v12278_v36  ;;  %6246 = vmatpush.bf16.msra.mxu1 %v12006_v46  ;;  %v5124_v34 = vpop.f32.mrf.mxu2  ;;  %v12069_v36 = vld [vmem:[#allocation8 + $0x648] sm:$0xf]  ;;  %v5113_v46 = vpop.f32.mrf.mxu1  ;;  %v13989_v54 = vld [vmem:[#allocation8 + $0x4ac] sm:$0xf]  ;;  %vm5267_vm0 = vweird.f32 %v15254_v6 }
 0x348   : > { %v5125_v40 = vadd.f32 %v5124_v34, %v5112_v0  ;;  %v12070_v57 = vor.u32 %v14043_v39, %v12069_v36  ;;  %v14067_v0 = vld [vmem:[#allocation8 + $0x714] sm:$0xf0]  ;;  %v12026_v36 = vor.u32 %v14029_v22, %v12023_v25  ;;  %v12154_v39 = vor.u32 %v14061_v26, %v12151_v13  ;;  %v12135_v46 = vld [vmem:[#allocation8 + $0x6d8] sm:$0xf0]  ;;  %v14021_v60 = vld [vmem:[#allocation8 + $0x5ac] sm:$0xf] }
 0x349   : > { %6259 = vmatpush.bf16.msra.mxu2 %v12134_v4  ;;  %6234 = vmatpush.bf16.msra.mxu0 %v11862_v63  ;;  %v5137_v42 = vpop.f32.mrf.mxu3  ;;  %v11814_v4 = vor.u32 %v13979_v14, %v11813_v31  ;;  %v14039_v63 = vld [vmem:[#allocation8 + $0x634] sm:$0xf0]  ;;  %v12166_v31 = vor.u32 %v14067_v0, %v12165_v19  ;;  %v11898_v14 = vor.u32 %v13997_v10, %v11895_v20  ;;  %v11975_v0 = vld [vmem:[#allocation8 + $0x598] sm:$0xf0]  ;;  %v14081_v22 = vld [vmem:[#allocation8 + $0x78c] sm:$0xf] }
 0x34a   : > { %v5138_v37 = vadd.f32 %v5137_v42, %v5125_v40  ;;  %v12054_v15 = vor.u32 %v14039_v63, %v12053_v41  ;;  %v14025_v40 = vld [vmem:[#allocation8 + $0x5cc] sm:$0xf]  ;;  %v12007_v42 = vld [vmem:[#allocation8 + $0x5d8] sm:$0xf0]  ;;  %vm15277_vm2 = vmor %vm5266_vm1, %vm5267_vm0  ;;  %vm5334_vm0 = vcmask 1042434  }
 0x34b   : > { %6272 = vmatpush.bf16.msra.mxu3 %v12262_v52  ;;  %6247 = vmatpush.bf16.msra.mxu1 %v11990_v21  ;;  %v11797_v52 = vld [vmem:[#allocation8 + $0x428] sm:$0xf]  ;;  %v11991_v63 = vld [vmem:[#allocation8 + $0x5b8] sm:$0xf0]  ;;  %v14069_v26 = vld [vmem:[#allocation8 + $0x72c] sm:$0xf] }
 0x34c   : > { %v11768_v21 = vmul.f32 -1.442695, %v5138_v37  ;;  %v11798_v9 = vor.u32 %v13975_v53, %v11797_v52  ;;  %v12263_v37 = vld [vmem:[#allocation8 + $0x7d8] sm:$0xf0]  ;;  %v12010_v52 = vor.u32 %v14025_v40, %v12007_v42  ;;  %v12138_v53 = vor.u32 %v14057_v45, %v12135_v46 }
 0x34d   : > { %6260 = vmatpush.bf16.msra.mxu2 %v12118_v2  ;;  %6235 = vmatpush.bf16.msra.mxu0 %v11846_v62  ;;  %v12181_v2 = vld [vmem:[#allocation8 + $0x728] sm:$0xf]  ;;  %v14035_v62 = vld [vmem:[#allocation8 + $0x614] sm:$0xf0]  ;;  %v11994_v55 = vor.u32 %v14021_v60, %v11991_v63  ;;  %v12087_v40 = vld [vmem:[#allocation8 + $0x678] sm:$0xf0] }
 0x34e   : > { %14525 = vpow2.f32 %v11768_v21  ;;  %v12182_v18 = vor.u32 %v14071_v3, %v12181_v2  ;;  %v14053_v21 = vld [vmem:[#allocation8 + $0x6ac] sm:$0xf]  ;;  %v12119_v2 = vld [vmem:[#allocation8 + $0x6b8] sm:$0xf0] }
 0x34f   : > { %6273 = vmatpush.bf16.msra.mxu3 %v12246_v56  ;;  %6248 = vmatpush.bf16.msra.mxu1 %v11974_v27  ;;  %v11781_v56 = vld [vmem:[#allocation8 + $0x408] sm:$0xf]  ;;  %v5126_v61 = vpop.f32.mrf.mxu2  ;;  %v5262_v27 = vmul.f32 %v15254_v6, %v15251_v24  ;;  %v14085_v3 = vld [vmem:[#allocation8 + $0x7ac] sm:$0xf]  ;;  %v12122_v16 = vor.u32 %v14053_v21, %v12119_v2  ;;  %v12215_v45 = vld [vmem:[#allocation8 + $0x778] sm:$0xf0] }
 0x350   : > { %v14017_v61 = vld [vmem:[#allocation8 + $0x58c] sm:$0xf] }
 0x351   : > { %6261 = vmatpush.bf16.msra.mxu2 %v12102_v7  ;;  %6236 = vmatpush.bf16.msra.mxu0 %v11830_v29  ;;  %v5139_v7 = vpop.f32.mrf.mxu3  ;;  %v12038_v29 = vor.u32 %v14035_v62, %v12037_v17  ;;  %v5263_v35 = vsub.f32 1.0, %v5262_v27  ;;  %v13985_v17 = vld [vmem:[#allocation8 + $0x48c] sm:$0xf] }
 0x352   : > { %v14049_v27 = vld [vmem:[#allocation8 + $0x68c] sm:$0xf]  ;;  %v12103_v7 = vld [vmem:[#allocation8 + $0x698] sm:$0xf0] }
 0x353   : > { %6274 = vmatpush.bf16.msra.mxu3 %v12230_v1  ;;  %6249 = vmatpush.bf16.msra.mxu1 %v11958_v8  ;;  %v11782_v1 = vor.u32 %v13971_v11, %v11781_v56  ;;  %v14093_v8 = vld [vmem:[#allocation8 + $0x7ec] sm:$0xf]  ;;  %v5270_v56 = vand.u32 2147483647, %v15251_v24  ;;  %v5272_v11 = vand.u32 2147483648, %v15251_v24 }
 0x354   : > { %v14526_v34 = vpop.eup %14525  ;;  %v13981_v24 = vld [vmem:[#allocation8 + $0x46c] sm:$0xf] }
 0x355   : > { %6262 = vmatpush.bf16.msra.mxu2 %v12086_v30  ;;  %6237 = vmatpush.bf16.msra.mxu0 %v11814_v4  ;;  %v12279_v30 = vld [vmem:[#allocation8 + $0x7f8] sm:$0xf0]  ;;  %v15258_v43 = vadd.f32 1.0, %v14526_v34  ;;  %v14089_v4 = vld [vmem:[#allocation8 + $0x7cc] sm:$0xf]  ;;  %vm15281_vm3 = vcmp.eq.f32.partialorder %v5270_v56, 8.507059e+37 }
 0x356   : > { %v12282_v44 = vor.u32 %v14093_v8, %v12279_v30  ;;  %v12266_v41 = vor.u32 %v14089_v4, %v12263_v37  ;;  %v5273_v34 = vor.u32 1.1754944e-38, %v5272_v11  ;;  %v13977_v37 = vld [vmem:[#allocation8 + $0x44c] sm:$0xf] }
 0x357   : > { %6275 = vmatpush.bf16.msra.mxu3 %v12214_v33  ;;  %6250 = vmatpush.bf16.msra.mxu1 %v11942_v50  ;;  %v11879_v33 = vld [vmem:[#allocation8 + $0x4d8] sm:$0xf0]  ;;  %14527 = vrcp.f32 %v15258_v43  ;;  %vm5281_vm5 = vweird.f32 %v15258_v43  ;;  %v14041_v60 = vld [vmem:[#allocation8 + $0x64c] sm:$0xf] }
 0x358   : > { %v11882_v50 = vor.u32 %v13993_v32, %v11879_v33  ;;  %v14013_v32 = vld [vmem:[#allocation8 + $0x56c] sm:$0xf]  ;;  %v11959_v33 = vld [vmem:[#allocation8 + $0x578] sm:$0xf0] }
 0x359   : > { %6263 = vmatpush.bf16.msra.mxu2 %v12070_v57  ;;  %6238 = vmatpush.bf16.msra.mxu0 %v11798_v9  ;;  %v5264_v57 = vmul.f32 %v15254_v6, %v5263_v35  ;;  %v12247_v9 = vld [vmem:[#allocation8 + $0x7b8] sm:$0xf0]  ;;  %v5287_v35 = vand.u32 2147483648, %v15258_v43 }
 0x35a   : > { %v12250_v19 = vor.u32 %v14085_v3, %v12247_v9  ;;  %v12071_v9 = vld [vmem:[#allocation8 + $0x658] sm:$0xf0] }
 0x35b   : > { %6276 = vmatpush.bf16.msra.mxu3 %v12198_v58  ;;  %6251 = vmatpush.bf16.msra.mxu1 %v11926_v12  ;;  %v11863_v58 = vld [vmem:[#allocation8 + $0x4b8] sm:$0xf0]  ;;  %v5288_v63 = vor.u32 1.1754944e-38, %v5287_v35 }
 0x35c   : > { %v11866_v12 = vor.u32 %v13989_v54, %v11863_v58  ;;  %v14009_v54 = vld [vmem:[#allocation8 + $0x54c] sm:$0xf]  ;;  %v11943_v58 = vld [vmem:[#allocation8 + $0x558] sm:$0xf0] }
 0x35d   : > { %6264 = vmatpush.bf16.msra.mxu2 %v12054_v15  ;;  %6239 = vmatpush.bf16.msra.mxu0 %v11782_v1  ;;  %v5265_v15 = vadd.f32 %v15254_v6, %v5264_v57  ;;  %v15270_v62 = vpop.eup %14527  ;;  %v5150_v20 = vpop.f32.mrf.mxu0  ;;  %v12231_v1 = vld [vmem:[#allocation8 + $0x798] sm:$0xf0] }
 0x35e   : > { %v5277_v10 = vmul.f32 %v15270_v62, %v15258_v43  ;;  %vm5282_vm4 = vweird.f32 %v15270_v62 }
 0x35f   : > { %6277 = vmatpush.bf16.msra.mxu3 %v12182_v18  ;;  %6252 = vmatpush.bf16.msra.mxu1 %v11910_v5  ;;  %v11847_v18 = vld [vmem:[#allocation8 + $0x498] sm:$0xf0]  ;;  %v5163_v13 = vpop.f32.mrf.mxu1  ;;  %v5269_v8 = vsel %vm15277_vm2, %v15254_v6, %v5265_v15  ;;  %v5285_v6 = vand.u32 2147483647, %v15258_v43  ;;  %vm15298_vm6 = vmor %vm5281_vm5, %vm5282_vm4  ;;  %v14073_v43 = vld [vmem:[#allocation8 + $0x74c] sm:$0xf] }
 0x360   : > { %6240 = vmatmul.bf16.vlgmr.msra.gmra.mxu0 %v15235_v47  ;;  %v11850_v5 = vor.u32 %v13985_v17, %v11847_v18  ;;  %v5278_v30 = vsub.f32 1.0, %v5277_v10  ;;  %v5274_v46 = vsel %vm15281_vm3, %v5273_v34, %v5269_v8  ;;  %v5164_v21 = vadd.f32 %v5163_v13, %v5150_v20  ;;  %v12183_v13 = vld [vmem:[#allocation8 + $0x738] sm:$0xf0] }
 0x361   : > { %6265 = vmatpush.bf16.msra.mxu2 %v12038_v29  ;;  %6284 = vmatpush.bf16.msrb.mxu0 %v11898_v14  ;;  %v11831_v29 = vld [vmem:[#allocation8 + $0x478] sm:$0xf0]  ;;  %v12106_v14 = vor.u32 %v14049_v27, %v12103_v7  ;;  %v5321_v56 = vmul.f32 0.001953125, %v5274_v46  ;;  %vm5286_vm7 = vcmp.eq.f32.partialorder %v5285_v6, 8.507059e+37  ;;  %v14005_v27 = vld [vmem:[#allocation8 + $0x52c] sm:$0xf]  ;;  %v11946_v20 = vor.u32 %v14009_v54, %v11943_v58 }
 0x362   : > { %6253 = vmatmul.bf16.vlgmr.msra.gmra.mxu1 %v15237_v48  ;;  %v5279_v42 = vmul.f32 %v15270_v62, %v5278_v30  ;;  %v11834_v4 = vor.u32 %v13981_v24, %v11831_v29  ;;  %v11927_v7 = vld [vmem:[#allocation8 + $0x538] sm:$0xf0]  ;;  %v13969_v29 = vld [vmem:[#allocation8 + $0x40c] sm:$0xf]  ;;  %v14190_v54 = vld [vmem:[#allocation8 + $0xaec] sm:$0xf0] }
 0x363   : > { %6278 = vmatpush.bf16.msra.mxu3 %v12166_v31  ;;  %6297 = vmatpush.bf16.msrb.mxu1 %v12026_v36  ;;  %v11978_v31 = vor.u32 %v14017_v61, %v11975_v0  ;;  %v12234_v36 = vor.u32 %v14081_v22, %v12231_v1  ;;  %v11799_v0 = vld [vmem:[#allocation8 + $0x438] sm:$0xf0]  ;;  %v12074_v22 = vor.u32 %v14041_v60, %v12071_v9  ;;  %v14037_v1 = vld [vmem:[#allocation8 + $0x62c] sm:$0xf]  ;;  %vm5336_vm2 = vcmask 1041408  }
 0x364   : > { %6266 = vmatmul.bf16.vlgmr.msra.gmra.mxu2 %v15239_v51  ;;  %v5280_v57 = vadd.f32 %v15270_v62, %v5279_v42  ;;  %v11783_v8 = vld [vmem:[#allocation8 + $0x418] sm:$0xf0]  ;;  %v11930_v34 = vor.u32 %v14005_v27, %v11927_v7  ;;  %v14065_v6 = vld [vmem:[#allocation8 + $0x70c] sm:$0xf]  ;;  %v12369_v27 = vld [vmem:[#allocation8 + $0x8a0] sm:$0xf] }
 0x365   : > { %6310 = vmatpush.bf16.msrb.mxu2 %v12154_v39  ;;  %6285 = vmatpush.bf16.msrb.mxu0 %v11882_v50  ;;  %v14045_v39 = vld [vmem:[#allocation8 + $0x66c] sm:$0xf]  ;;  %v11815_v50 = vld [vmem:[#allocation8 + $0x458] sm:$0xf0]  ;;  %v5152_v15 = vpop.f32.mrf.mxu0  ;;  %v14118_v7 = vld [vmem:[#allocation8 + $0x8ac] sm:$0xf0] }
 0x366   : > { %6279 = vmatmul.bf16.vlgmr.msra.gmra.mxu3 %v15241_v59  ;;  %v5284_v11 = vsel %vm15298_vm6, %v15270_v62, %v5280_v57  ;;  %v12055_v62 = vld [vmem:[#allocation8 + $0x638] sm:$0xf0]  ;;  %v14154_v15 = vld [vmem:[#allocation8 + $0x9cc] sm:$0xf0] }
 0x367   : > { %6323 = vmatpush.bf16.msrb.mxu3 %v12282_v44  ;;  %6298 = vmatpush.bf16.msrb.mxu1 %v12010_v52  ;;  %v14077_v44 = vld [vmem:[#allocation8 + $0x76c] sm:$0xf]  ;;  %v11962_v52 = vor.u32 %v14013_v32, %v11959_v33  ;;  %v5176_v3 = vpop.f32.mrf.mxu2  ;;  %v5289_v17 = vsel %vm5286_vm7, %v5288_v63, %v5284_v11  ;;  %v5165_v61 = vpop.f32.mrf.mxu1  ;;  %v11911_v32 = vld [vmem:[#allocation8 + $0x518] sm:$0xf0]  ;;  %v12058_v35 = vor.u32 %v14037_v1, %v12055_v62  ;;  %v14222_v63 = vld [vmem:[#allocation8 + $0xbec] sm:$0xf0] }
 0x368   : > { %v12218_v2 = vor.u32 %v14077_v44, %v12215_v45  ;;  %v5177_v18 = vadd.f32 %v5176_v3, %v5164_v21  ;;  %v5322_v10 = vmul.f32 0.001953125, %v5289_v17  ;;  %v12167_v44 = vld [vmem:[#allocation8 + $0x718] sm:$0xf0]  ;;  %v12401_v45 = vld [vmem:[#allocation8 + $0x8e0] sm:$0xf] }
 0x369   : > { %6311 = vmatpush.bf16.msrb.mxu2 %v12138_v53  ;;  %6286 = vmatpush.bf16.msrb.mxu0 %v11866_v12  ;;  %v12090_v53 = vor.u32 %v14045_v39, %v12087_v40  ;;  %v5189_v12 = vpop.f32.mrf.mxu3  ;;  %v12039_v39 = vld [vmem:[#allocation8 + $0x618] sm:$0xf0]  ;;  %v12186_v40 = vor.u32 %v14069_v26, %v12183_v13  ;;  %v12170_v21 = vor.u32 %v14065_v6, %v12167_v44  ;;  %v12513_v11 = vld [vmem:[#allocation8 + $0x9c0] sm:$0xf]  ;;  %v14182_v62 = vld [vmem:[#allocation8 + $0xaac] sm:$0xf0] }
 0x36a   : > { %v5329_v24 = vrot.slane %v5322_v10, 7  ;;  %v5190_v30 = vadd.f32 %v5189_v12, %v5177_v18  ;;  %v12769_v17 = vld [vmem:[#allocation8 + $0xbc0] sm:$0xf]  ;;  %v14218_v18 = vld [vmem:[#allocation8 + $0xbcc] sm:$0xf0] }
 0x36b   : > { %6324 = vmatpush.bf16.msrb.mxu3 %v12266_v41  ;;  %6299 = vmatpush.bf16.msrb.mxu1 %v11994_v55  ;;  %v12199_v55 = vld [vmem:[#allocation8 + $0x758] sm:$0xf0]  ;;  %v12785_v41 = vld [vmem:[#allocation8 + $0xbe0] sm:$0xf]  ;;  %v14214_v26 = vld [vmem:[#allocation8 + $0xbac] sm:$0xf0] }
 0x36c   : > { %v12202_v25 = vor.u32 %v14073_v43, %v12199_v55  ;;  %v15306_v33 = vsel %vm5332_vm8, %v5321_v56, %v5329_v24  ;;  %v11769_v57 = vmul.f32 -1.442695, %v5190_v30  ;;  %v12385_v43 = vld [vmem:[#allocation8 + $0x8c0] sm:$0xf]  ;;  %v14122_v56 = vld [vmem:[#allocation8 + $0x8cc] sm:$0xf0]  ;;  %v12786_v12 = vor.u32 %v14222_v63, %v12785_v41 }
 0x36d   : > { %6312 = vmatpush.bf16.msrb.mxu2 %v12122_v16  ;;  %6287 = vmatpush.bf16.msrb.mxu0 %v11850_v5  ;;  %v13973_v16 = vld [vmem:[#allocation8 + $0x42c] sm:$0xf]  ;;  %v14853_v5 = vmov 0.0   ;;  %v12641_v55 = vld [vmem:[#allocation8 + $0xac0] sm:$0xf]  ;;  %v12386_v61 = vor.u32 %v14122_v56, %v12385_v43 }
 0x36e   : > { %4251 = vst [vmem:[#allocation2] sm:$0xff] %v14853_v5  ;;  %14529 = vpow2.f32 %v11769_v57  ;;  %v12497_v10 = vld [vmem:[#allocation8 + $0x9a0] sm:$0xf]  ;;  %v14110_v44 = vld [vmem:[#allocation8 + $0x86c] sm:$0xf0] }
 0x36f   : > { %6325 = vmatpush.bf16.msrb.mxu3 %v12250_v19  ;;  %6300 = vmatpush.bf16.msrb.mxu1 %v11978_v31  ;;  %v11818_v19 = vor.u32 %v13977_v37, %v11815_v50  ;;  %4252 = vst [vmem:[#allocation2 + $0x8] sm:$0xff] %v14853_v5  ;;  %v11802_v31 = vor.u32 %v13973_v16, %v11799_v0  ;;  %v5178_v42 = vpop.f32.mrf.mxu2  ;;  %v12529_v37 = vld [vmem:[#allocation8 + $0x9e0] sm:$0xf]  ;;  %v14158_v50 = vld [vmem:[#allocation8 + $0x9ec] sm:$0xf0] }
 0x370   : > { %4253 = vst [vmem:[#allocation2 + $0x10] sm:$0xff] %v14853_v5  ;;  %v12530_v3 = vor.u32 %v14158_v50, %v12529_v37  ;;  %v14186_v16 = vld [vmem:[#allocation8 + $0xacc] sm:$0xf0]  ;;  %v12625_v1 = vld [vmem:[#allocation8 + $0xaa0] sm:$0xf] }
 0x371   : > { %6313 = vmatpush.bf16.msrb.mxu2 %v12106_v14  ;;  %6288 = vmatpush.bf16.msrb.mxu0 %v11834_v4  ;;  %v14001_v14 = vld [vmem:[#allocation8 + $0x50c] sm:$0xf]  ;;  %4254 = vst [vmem:[#allocation2 + $0x18] sm:$0xff] %v14853_v5  ;;  %v5191_v46 = vpop.f32.mrf.mxu3  ;;  %v14126_v4 = vld [vmem:[#allocation8 + $0x8ec] sm:$0xf0]  ;;  %v12642_v0 = vor.u32 %v14186_v16, %v12641_v55  ;;  %v12370_v5 = vor.u32 %v14118_v7, %v12369_v27 }
 0x372   : > { %v11914_v58 = vor.u32 %v14001_v14, %v11911_v32  ;;  %v12481_v30 = vld [vmem:[#allocation8 + $0x980] sm:$0xf]  ;;  %v14146_v14 = vld [vmem:[#allocation8 + $0x98c] sm:$0xf0] }
 0x373   : > { %6326 = vmatpush.bf16.msrb.mxu3 %v12234_v36  ;;  %6301 = vmatpush.bf16.msrb.mxu1 %v11962_v52  ;;  %v14033_v36 = vld [vmem:[#allocation8 + $0x60c] sm:$0xf]  ;;  %v11786_v52 = vor.u32 %v13969_v29, %v11783_v8  ;;  %v12626_v29 = vor.u32 %v14182_v62, %v12625_v1  ;;  %v14114_v8 = vld [vmem:[#allocation8 + $0x88c] sm:$0xf0]  ;;  %v12337_v6 = vld [vmem:[#allocation8 + $0x860] sm:$0xf] }
 0x374   : > { %v12042_v60 = vor.u32 %v14033_v36, %v12039_v39  ;;  %v14530_v13 = vpop.eup %14529  ;;  %v14178_v32 = vld [vmem:[#allocation8 + $0xa8c] sm:$0xf0]  ;;  %v12593_v37 = vld [vmem:[#allocation8 + $0xa60] sm:$0xf] }
 0x375   : > { %6314 = vmatpush.bf16.msrb.mxu2 %v12090_v53  ;;  %6289 = vmatpush.bf16.msrb.mxu0 %v11818_v19  ;;  %v12657_v53 = vld [vmem:[#allocation8 + $0xae0] sm:$0xf]  ;;  %v12514_v19 = vor.u32 %v14154_v15, %v12513_v11  ;;  %v14210_v36 = vld [vmem:[#allocation8 + $0xb8c] sm:$0xf0] }
 0x376   : > { %v12658_v9 = vor.u32 %v14190_v54, %v12657_v53  ;;  %v14174_v50 = vld [vmem:[#allocation8 + $0xa6c] sm:$0xf0]  ;;  %v12721_v57 = vld [vmem:[#allocation8 + $0xb60] sm:$0xf]  ;;  %v12338_v53 = vor.u32 %v14110_v44, %v12337_v6  ;;  %v12403_v6 = vld [vmem:[#allocation8 + $0x8f0] sm:$0xf0] }
 0x377   : > { %6327 = vmatpush.bf16.msrb.mxu3 %v12218_v2  ;;  %6302 = vmatpush.bf16.msrb.mxu1 %v11946_v20  ;;  %v12402_v2 = vor.u32 %v14126_v4, %v12401_v45  ;;  %v12770_v20 = vor.u32 %v14218_v18, %v12769_v17  ;;  %v12465_v45 = vld [vmem:[#allocation8 + $0x960] sm:$0xf]  ;;  %v14142_v4 = vld [vmem:[#allocation8 + $0x96c] sm:$0xf0]  ;;  %v14156_v44 = vld [vmem:[#allocation8 + $0x9e4] sm:$0xf] }
 0x378   : > { %v12321_v41 = vld [vmem:[#allocation8 + $0x840] sm:$0xf]  ;;  %v14106_v63 = vld [vmem:[#allocation8 + $0x84c] sm:$0xf0] }
 0x379   : > { %6315 = vmatpush.bf16.msrb.mxu2 %v12074_v22  ;;  %6290 = vmatpush.bf16.msrb.mxu0 %v11802_v31  ;;  %v14150_v22 = vld [vmem:[#allocation8 + $0x9ac] sm:$0xf0]  ;;  %v12577_v43 = vld [vmem:[#allocation8 + $0xa40] sm:$0xf]  ;;  %v12322_v18 = vor.u32 %v14106_v63, %v12321_v41 }
 0x37a   : > { %v12498_v24 = vor.u32 %v14150_v22, %v12497_v10  ;;  %v14170_v56 = vld [vmem:[#allocation8 + $0xa4c] sm:$0xf0]  ;;  %v12705_v55 = vld [vmem:[#allocation8 + $0xb40] sm:$0xf] }
 0x37b   : > { %6328 = vmatpush.bf16.msrb.mxu3 %v12202_v25  ;;  %6303 = vmatpush.bf16.msrb.mxu1 %v11930_v34  ;;  %v12753_v25 = vld [vmem:[#allocation8 + $0xba0] sm:$0xf]  ;;  %v14202_v16 = vld [vmem:[#allocation8 + $0xb4c] sm:$0xf0]  ;;  %v12578_v27 = vor.u32 %v14170_v56, %v12577_v43  ;;  %v12387_v56 = vld [vmem:[#allocation8 + $0x8d0] sm:$0xf0] }
 0x37c   : > { %v12754_v31 = vor.u32 %v14214_v26, %v12753_v25  ;;  %v12305_v7 = vld [vmem:[#allocation8 + $0x820] sm:$0xf]  ;;  %v14102_v10 = vld [vmem:[#allocation8 + $0x82c] sm:$0xf0]  ;;  %v12706_v22 = vor.u32 %v14202_v16, %v12705_v55 }
 0x37d   : > { %6316 = vmatpush.bf16.msrb.mxu2 %v12058_v35  ;;  %6291 = vmatpush.bf16.msrb.mxu0 %v11786_v52  ;;  %v5202_v34 = vpop.f32.mrf.mxu0  ;;  %v12737_v35 = vld [vmem:[#allocation8 + $0xb80] sm:$0xf]  ;;  %v14206_v52 = vld [vmem:[#allocation8 + $0xb6c] sm:$0xf0] }
 0x37e   : > { %v12738_v46 = vor.u32 %v14210_v36, %v12737_v35  ;;  %v14134_v1 = vld [vmem:[#allocation8 + $0x92c] sm:$0xf0]  ;;  %v12561_v62 = vld [vmem:[#allocation8 + $0xa20] sm:$0xf] }
 0x37f   : > { %6329 = vmatpush.bf16.msrb.mxu3 %v12186_v40  ;;  %6304 = vmatpush.bf16.msrb.mxu1 %v11914_v58  ;;  %v12482_v40 = vor.u32 %v14146_v14, %v12481_v30  ;;  %v12466_v58 = vor.u32 %v14142_v4, %v12465_v45  ;;  %v14166_v25 = vld [vmem:[#allocation8 + $0xa2c] sm:$0xf0]  ;;  %v12417_v30 = vld [vmem:[#allocation8 + $0x900] sm:$0xf]  ;;  %v12531_v45 = vld [vmem:[#allocation8 + $0x9f0] sm:$0xf0] }
 0x380   : > { %6292 = vmatmul.bf16.vlgmr.msrb.gmra.mxu0 %v15235_v47  ;;  %v12353_v47 = vld [vmem:[#allocation8 + $0x880] sm:$0xf]  ;;  %v12562_v14 = vor.u32 %v14166_v25, %v12561_v62  ;;  %v12371_v62 = vld [vmem:[#allocation8 + $0x8b0] sm:$0xf0]  ;;  %v14148_v25 = vld [vmem:[#allocation8 + $0x9a4] sm:$0xf] }
 0x381   : > { %6317 = vmatpush.bf16.msrb.mxu2 %v12042_v60  ;;  %7213 = vmatpush.bf16.msra.mxu0 %v12402_v2  ;;  %v12354_v39 = vor.u32 %v14114_v8, %v12353_v47  ;;  %v12594_v60 = vor.u32 %v14174_v50, %v12593_v37  ;;  %v12722_v2 = vor.u32 %v14206_v52, %v12721_v57  ;;  %v12289_v47 = vld [vmem:[#allocation8 + $0x800] sm:$0xf]  ;;  %v14098_v8 = vld [vmem:[#allocation8 + $0x80c] sm:$0xf0]  ;;  %v14188_v37 = vld [vmem:[#allocation8 + $0xae4] sm:$0xf] }
 0x382   : > { %6305 = vmatmul.bf16.vlgmr.msrb.gmra.mxu1 %v15237_v48  ;;  %v12609_v48 = vld [vmem:[#allocation8 + $0xa80] sm:$0xf]  ;;  %v12290_v4 = vor.u32 %v14098_v8, %v12289_v47  ;;  %v12659_v50 = vld [vmem:[#allocation8 + $0xaf0] sm:$0xf0] }
 0x383   : > { %6330 = vmatpush.bf16.msrb.mxu3 %v12170_v21  ;;  %7226 = vmatpush.bf16.msra.mxu1 %v12530_v3  ;;  %v12610_v42 = vor.u32 %v14178_v32, %v12609_v48  ;;  %v12449_v21 = vld [vmem:[#allocation8 + $0x940] sm:$0xf]  ;;  %v14130_v48 = vld [vmem:[#allocation8 + $0x90c] sm:$0xf0]  ;;  %v12662_v43 = vor.u32 %v14188_v37, %v12659_v50  ;;  %v12627_v47 = vld [vmem:[#allocation8 + $0xab0] sm:$0xf0] }
 0x384   : > { %6318 = vmatmul.bf16.vlgmr.msrb.gmra.mxu2 %v15239_v51  ;;  %v15312_v51 = vadd.f32 1.0, %v14530_v13  ;;  %v12689_v13 = vld [vmem:[#allocation8 + $0xb20] sm:$0xf]  ;;  %v12418_v57 = vor.u32 %v14130_v48, %v12417_v30  ;;  %v14212_v30 = vld [vmem:[#allocation8 + $0xba4] sm:$0xf] }
 0x385   : > { %7239 = vmatpush.bf16.msra.mxu2 %v12658_v9  ;;  %7214 = vmatpush.bf16.msra.mxu0 %v12386_v61  ;;  %v14138_v9 = vld [vmem:[#allocation8 + $0x94c] sm:$0xf0]  ;;  %v5204_v15 = vpop.f32.mrf.mxu0  ;;  %v12545_v32 = vld [vmem:[#allocation8 + $0xa00] sm:$0xf]  ;;  %v14208_v50 = vld [vmem:[#allocation8 + $0xb84] sm:$0xf] }
 0x386   : > { %6331 = vmatmul.bf16.vlgmr.msrb.gmra.mxu3 %v15241_v59  ;;  %v5215_v59 = vpop.f32.mrf.mxu1  ;;  %14531 = vrcp.f32 %v15312_v51  ;;  %v6564_v15 = vunpack.c.h.b16 %v15191_v38  ;;  %vm5296_vm10 = vweird.f32 %v15312_v51  ;;  %v5302_v8 = vand.u32 2147483648, %v15312_v51 }
 0x387   : > { %7252 = vmatpush.bf16.msra.mxu3 %v12786_v12  ;;  %7227 = vmatpush.bf16.msra.mxu1 %v12514_v19  ;;  %v5216_v54 = vadd.f32 %v5215_v59, %v5202_v34  ;;  %v5228_v3 = vpop.f32.mrf.mxu2  ;;  %v14162_v34 = vld [vmem:[#allocation8 + $0xa0c] sm:$0xf0]  ;;  %v12673_v59 = vld [vmem:[#allocation8 + $0xb00] sm:$0xf]  ;;  %v5300_v48 = vand.u32 2147483647, %v15312_v51 }
 0x388   : > { %v12546_v52 = vor.u32 %v14162_v34, %v12545_v32  ;;  %v14112_v34 = vld [vmem:[#allocation8 + $0x884] sm:$0xf] }
 0x389   : > { %7240 = vmatpush.bf16.msra.mxu2 %v12642_v0  ;;  %7215 = vmatpush.bf16.msra.mxu0 %v12370_v5  ;;  %v5229_v11 = vadd.f32 %v5228_v3, %v5216_v54  ;;  %v5241_v12 = vpop.f32.mrf.mxu3  ;;  %v12450_v0 = vor.u32 %v14138_v9, %v12449_v21  ;;  %v14198_v5 = vld [vmem:[#allocation8 + $0xb2c] sm:$0xf0]  ;;  %v12787_v54 = vld [vmem:[#allocation8 + $0xbf0] sm:$0xf0]  ;;  %v14120_v21 = vld [vmem:[#allocation8 + $0x8c4] sm:$0xf]  ;;  %v6563_v3 = vunpack.c.l.b16 %v15191_v38  ;;  %v12534_v9 = vor.u32 %v14156_v44, %v12531_v45 }
 0x38a   : > { %v12690_v35 = vor.u32 %v14198_v5, %v12689_v13  ;;  %v12390_v38 = vor.u32 %v14120_v21, %v12387_v56  ;;  %v14176_v44 = vld [vmem:[#allocation8 + $0xa84] sm:$0xf]  ;;  %v12611_v45 = vld [vmem:[#allocation8 + $0xa90] sm:$0xf0]  ;;  %vm5301_vm12 = vcmp.eq.f32.partialorder %v5300_v48, 8.507059e+37 }
 0x38b   : > { %7253 = vmatpush.bf16.msra.mxu3 %v12770_v20  ;;  %7228 = vmatpush.bf16.msra.mxu1 %v12498_v24  ;;  %v5242_v19 = vadd.f32 %v5241_v12, %v5229_v11  ;;  %v12433_v20 = vld [vmem:[#allocation8 + $0x920] sm:$0xf]  ;;  %v14152_v11 = vld [vmem:[#allocation8 + $0x9c4] sm:$0xf]  ;;  %v12515_v12 = vld [vmem:[#allocation8 + $0x9d0] sm:$0xf0]  ;;  %v12614_v21 = vor.u32 %v14176_v44, %v12611_v45 }
 0x38c   : > { %v15315_v61 = vpop.eup %14531  ;;  %v14172_v56 = vld [vmem:[#allocation8 + $0xa64] sm:$0xf] }
 0x38d   : > { %7241 = vmatpush.bf16.msra.mxu2 %v12626_v29  ;;  %7216 = vmatpush.bf16.msra.mxu0 %v12354_v39  ;;  %v11770_v26 = vmul.f32 -1.442695, %v5242_v19  ;;  %v5292_v24 = vmul.f32 %v15315_v61, %v15312_v51  ;;  %v12306_v29 = vor.u32 %v14102_v10, %v12305_v7  ;;  %v14194_v39 = vld [vmem:[#allocation8 + $0xb0c] sm:$0xf0]  ;;  %v14216_v19 = vld [vmem:[#allocation8 + $0xbc4] sm:$0xf]  ;;  %v15331_v10 = vpack.c.b16 %v6563_v3, %v6563_v3 }
 0x38e   : > { %v5217_v17 = vpop.f32.mrf.mxu1  ;;  %v12674_v41 = vor.u32 %v14194_v39, %v12673_v59  ;;  %vm5297_vm9 = vweird.f32 %v15315_v61  ;;  %v12355_v59 = vld [vmem:[#allocation8 + $0x890] sm:$0xf0]  ;;  %v14144_v39 = vld [vmem:[#allocation8 + $0x984] sm:$0xf] }
 0x38f   : > { %7254 = vmatpush.bf16.msra.mxu3 %v12754_v31  ;;  %7229 = vmatpush.bf16.msra.mxu1 %v12482_v40  ;;  %14533 = vpow2.f32 %v11770_v26  ;;  %v12434_v31 = vor.u32 %v14134_v1, %v12433_v20  ;;  %v5230_v36 = vpop.f32.mrf.mxu2  ;;  %v14124_v40 = vld [vmem:[#allocation8 + $0x8e4] sm:$0xf]  ;;  %v12518_v20 = vor.u32 %v14152_v11, %v12515_v12  ;;  %v15334_v26 = vpack.c.b16 %v6564_v15, %v6564_v15  ;;  %vm15344_vm11 = vmor %vm5296_vm10, %vm5297_vm9  ;;  %v12467_v3 = vld [vmem:[#allocation8 + $0x970] sm:$0xf0] }
 0x390   : > { %v12406_v63 = vor.u32 %v14124_v40, %v12403_v6  ;;  %v14184_v17 = vld [vmem:[#allocation8 + $0xac4] sm:$0xf]  ;;  %v12483_v40 = vld [vmem:[#allocation8 + $0x990] sm:$0xf0] }
 0x391   : > { %7242 = vmatpush.bf16.msra.mxu2 %v12610_v42  ;;  %7217 = vmatpush.bf16.msra.mxu0 %v12338_v53  ;;  %v5243_v42 = vpop.f32.mrf.mxu3  ;;  %v14220_v53 = vld [vmem:[#allocation8 + $0xbe4] sm:$0xf]  ;;  %v12595_v11 = vld [vmem:[#allocation8 + $0xa70] sm:$0xf0] }
 0x392   : > { %v14116_v1 = vld [vmem:[#allocation8 + $0x8a4] sm:$0xf] }
 0x393   : > { %7255 = vmatpush.bf16.msra.mxu3 %v12738_v46  ;;  %7230 = vmatpush.bf16.msra.mxu1 %v12466_v58  ;;  %v5293_v46 = vsub.f32 1.0, %v5292_v24  ;;  %v6561_v58 = vunpack.c.l.b16 %v15178_v49  ;;  %v12499_v24 = vld [vmem:[#allocation8 + $0x9b0] sm:$0xf0]  ;;  %v12374_v32 = vor.u32 %v14116_v1, %v12371_v62  ;;  %v14136_v1 = vld [vmem:[#allocation8 + $0x944] sm:$0xf] }
 0x394   : > { %v12451_v62 = vld [vmem:[#allocation8 + $0x950] sm:$0xf0]  ;;  %v14200_v48 = vld [vmem:[#allocation8 + $0xb44] sm:$0xf] }
 0x395   : > { %7243 = vmatpush.bf16.msra.mxu2 %v12594_v60  ;;  %7218 = vmatpush.bf16.msra.mxu0 %v12322_v18  ;;  %v6562_v60 = vunpack.c.h.b16 %v15178_v49  ;;  %v5294_v55 = vmul.f32 %v15315_v61, %v5293_v46  ;;  %v12790_v49 = vor.u32 %v14220_v53, %v12787_v54  ;;  %v12643_v18 = vld [vmem:[#allocation8 + $0xad0] sm:$0xf0]  ;;  %v5303_v46 = vor.u32 1.1754944e-38, %v5302_v8  ;;  %v14132_v45 = vld [vmem:[#allocation8 + $0x924] sm:$0xf] }
 0x396   : > { %v12358_v53 = vor.u32 %v14112_v34, %v12355_v59  ;;  %v12486_v54 = vor.u32 %v14144_v39, %v12483_v40  ;;  %v5339_v8 = vlaneseq  ;;  %v14100_v39 = vld [vmem:[#allocation8 + $0x824] sm:$0xf]  ;;  %v12307_v40 = vld [vmem:[#allocation8 + $0x830] sm:$0xf0] }
 0x397   : > { %7256 = vmatpush.bf16.msra.mxu3 %v12722_v2  ;;  %7231 = vmatpush.bf16.msra.mxu1 %v12450_v0  ;;  %v14534_v2 = vpop.eup %14533  ;;  %v12771_v0 = vld [vmem:[#allocation8 + $0xbd0] sm:$0xf0]  ;;  %v15328_v7 = vpack.c.b16 %v6562_v60, %v6562_v60  ;;  %v5295_v13 = vadd.f32 %v15315_v61, %v5294_v55  ;;  %v14204_v55 = vld [vmem:[#allocation8 + $0xb64] sm:$0xf] }
 0x398   : > { %v15324_v16 = vadd.f32 1.0, %v14534_v2  ;;  %v12774_v5 = vor.u32 %v14216_v19, %v12771_v0  ;;  %v12339_v60 = vld [vmem:[#allocation8 + $0x870] sm:$0xf0]  ;;  %v14140_v2 = vld [vmem:[#allocation8 + $0x964] sm:$0xf]  ;;  %vm15374_vm3 = vcmp.lt.s32.totalorder %v5339_v8, 512 }
 0x399   : > { %7244 = vmatpush.bf16.msra.mxu2 %v12578_v27  ;;  %7219 = vmatpush.bf16.msra.mxu0 %v12306_v29  ;;  %v15326_v27 = vpack.c.b16 %v6561_v58, %v6561_v58  ;;  %v14180_v29 = vld [vmem:[#allocation8 + $0xaa4] sm:$0xf]  ;;  %v5299_v6 = vsel %vm15344_vm11, %v15315_v61, %v5295_v13  ;;  %v12521_v8 = vld [vmem:[#allocation8 + $0x9c8] sm:$0xf] }
 0x39a   : > { %14535 = vrcp.f32 %v15324_v16  ;;  %v12630_v36 = vor.u32 %v14180_v29, %v12627_v47  ;;  %v14108_v58 = vld [vmem:[#allocation8 + $0x864] sm:$0xf]  ;;  %v5315_v15 = vand.u32 2147483647, %v15324_v16  ;;  %vm5311_vm14 = vweird.f32 %v15324_v16 }
 0x39b   : > { %7257 = vmatpush.bf16.msra.mxu3 %v12706_v22  ;;  %7232 = vmatpush.bf16.msra.mxu1 %v12434_v31  ;;  %v12646_v22 = vor.u32 %v14184_v17, %v12643_v18  ;;  %v12755_v31 = vld [vmem:[#allocation8 + $0xbb0] sm:$0xf0]  ;;  %v12342_v18 = vor.u32 %v14108_v58, %v12339_v60  ;;  %v14104_v19 = vld [vmem:[#allocation8 + $0x844] sm:$0xf]  ;;  %v12310_v60 = vor.u32 %v14100_v39, %v12307_v40  ;;  %v12377_v40 = vld [vmem:[#allocation8 + $0x8a8] sm:$0xf] }
 0x39c   : > { %v12758_v51 = vor.u32 %v14212_v30, %v12755_v31  ;;  %v14168_v29 = vld [vmem:[#allocation8 + $0xa44] sm:$0xf]  ;;  %vm5316_vm1 = vcmp.eq.f32.partialorder %v5315_v15, 8.507059e+37 }
 0x39d   : > { %7245 = vmatpush.bf16.msra.mxu2 %v12562_v14  ;;  %7220 = vmatpush.bf16.msra.mxu0 %v12290_v4  ;;  %v6137_v37 = vpop.f32.mrf.mxu0  ;;  %v14096_v58 = vld [vmem:[#allocation8 + $0x804] sm:$0xf] }
 0x39f   : > { %7258 = vmatpush.bf16.msra.mxu3 %v12690_v35  ;;  %7233 = vmatpush.bf16.msra.mxu1 %v12418_v57  ;;  %v12502_v35 = vor.u32 %v14148_v25, %v12499_v24  ;;  %v12739_v57 = vld [vmem:[#allocation8 + $0xb90] sm:$0xf0]  ;;  %v14223_v25 = vld [vmem:[#allocation8 + $0xbf4] sm:$0xf0] }
 0x3a0   : > { %7221 = vmatmul.bf16.vlgmr.msra.gmra.mxu0 %v15326_v27  ;;  %v15350_v42 = vpop.eup %14535 }
 0x3a1   : > { %7246 = vmatpush.bf16.msra.mxu2 %v12546_v52  ;;  %7265 = vmatpush.bf16.msrb.mxu0 %v12406_v63  ;;  %v5307_v4 = vmul.f32 %v15350_v42, %v15324_v16  ;;  %v6150_v52 = vpop.f32.mrf.mxu1  ;;  %vm5312_vm13 = vweird.f32 %v15350_v42 }
 0x3a2   : > { %7234 = vmatmul.bf16.vlgmr.msra.gmra.mxu1 %v15328_v7  ;;  %v6151_v63 = vadd.f32 %v6150_v52, %v6137_v37  ;;  %vm15365_vm15 = vmor %vm5311_vm14, %vm5312_vm13  ;;  %v14164_v37 = vld [vmem:[#allocation8 + $0xa24] sm:$0xf] }
 0x3a3   : > { %7259 = vmatpush.bf16.msra.mxu3 %v12674_v41  ;;  %7278 = vmatpush.bf16.msrb.mxu1 %v12534_v9  ;;  %v5304_v41 = vsel %vm5301_vm12, %v5303_v46, %v5299_v6  ;;  %v5308_v61 = vsub.f32 1.0, %v5307_v4  ;;  %v5317_v9 = vand.u32 2147483648, %v15324_v16  ;;  %v12579_v16 = vld [vmem:[#allocation8 + $0xa50] sm:$0xf0] }
 0x3a4   : > { %7247 = vmatmul.bf16.vlgmr.msra.gmra.mxu2 %v15331_v10  ;;  %v5323_v17 = vmul.f32 0.001953125, %v5304_v41  ;;  %v12582_v44 = vor.u32 %v14168_v29, %v12579_v16  ;;  %v12435_v46 = vld [vmem:[#allocation8 + $0x930] sm:$0xf0]  ;;  %v12393_v16 = vld [vmem:[#allocation8 + $0x8c8] sm:$0xf] }
 0x3a5   : > { %7291 = vmatpush.bf16.msrb.mxu2 %v12662_v43  ;;  %7266 = vmatpush.bf16.msrb.mxu0 %v12390_v38  ;;  %v12742_v43 = vor.u32 %v14208_v50, %v12739_v57  ;;  %v5309_v12 = vmul.f32 %v15350_v42, %v5308_v61  ;;  %v12470_v38 = vor.u32 %v14140_v2, %v12467_v3  ;;  %v5318_v13 = vor.u32 1.1754944e-38, %v5317_v9  ;;  %v6139_v14 = vpop.f32.mrf.mxu0  ;;  %v12563_v50 = vld [vmem:[#allocation8 + $0xa30] sm:$0xf0]  ;;  %v14196_v57 = vld [vmem:[#allocation8 + $0xb24] sm:$0xf] }
 0x3a6   : > { %7260 = vmatmul.bf16.vlgmr.msra.gmra.mxu3 %v15334_v26  ;;  %v5330_v34 = vrot.slane %v5323_v17, 6  ;;  %v12291_v41 = vld [vmem:[#allocation8 + $0x810] sm:$0xf0]  ;;  %v14128_v61 = vld [vmem:[#allocation8 + $0x904] sm:$0xf]  ;;  %v12438_v2 = vor.u32 %v14132_v45, %v12435_v46  ;;  %v12566_v3 = vor.u32 %v14164_v37, %v12563_v50 }
 0x3a7   : > { %7304 = vmatpush.bf16.msrb.mxu3 %v12790_v49  ;;  %7279 = vmatpush.bf16.msrb.mxu1 %v12518_v20  ;;  %v12723_v49 = vld [vmem:[#allocation8 + $0xb70] sm:$0xf0]  ;;  %v5310_v0 = vadd.f32 %v15350_v42, %v5309_v12  ;;  %v12598_v20 = vor.u32 %v14172_v56, %v12595_v11  ;;  %v6163_v24 = vpop.f32.mrf.mxu2  ;;  %v14160_v9 = vld [vmem:[#allocation8 + $0xa04] sm:$0xf]  ;;  %v14127_v17 = vld [vmem:[#allocation8 + $0x8f4] sm:$0xf0] }
 0x3a8   : > { %v6164_v30 = vadd.f32 %v6163_v24, %v6151_v63  ;;  %v12419_v63 = vld [vmem:[#allocation8 + $0x910] sm:$0xf0]  ;;  %v14192_v56 = vld [vmem:[#allocation8 + $0xb04] sm:$0xf]  ;;  %v12649_v14 = vld [vmem:[#allocation8 + $0xac8] sm:$0xf] }
 0x3a9   : > { %7292 = vmatpush.bf16.msrb.mxu2 %v12646_v22  ;;  %7267 = vmatpush.bf16.msrb.mxu0 %v12374_v32  ;;  %v12323_v22 = vld [vmem:[#allocation8 + $0x850] sm:$0xf0]  ;;  %v5314_v47 = vsel %vm15365_vm15, %v15350_v42, %v5310_v0  ;;  %v6176_v31 = vpop.f32.mrf.mxu3  ;;  %v12454_v42 = vor.u32 %v14136_v1, %v12451_v62  ;;  %v12294_v0 = vor.u32 %v14096_v58, %v12291_v41  ;;  %v12793_v62 = vld [vmem:[#allocation8 + $0xbe8] sm:$0xf]  ;;  %v14151_v45 = vld [vmem:[#allocation8 + $0x9b4] sm:$0xf0] }
 0x3aa   : > { %v12707_v32 = vld [vmem:[#allocation8 + $0xb50] sm:$0xf0]  ;;  %v12326_v59 = vor.u32 %v14104_v19, %v12323_v22  ;;  %v12537_v19 = vld [vmem:[#allocation8 + $0x9e8] sm:$0xf]  ;;  %v14191_v22 = vld [vmem:[#allocation8 + $0xaf4] sm:$0xf0]  ;;  %v12422_v1 = vor.u32 %v14128_v61, %v12419_v63 }
 0x3ab   : > { %7305 = vmatpush.bf16.msrb.mxu3 %v12774_v5  ;;  %7280 = vmatpush.bf16.msrb.mxu1 %v12502_v35  ;;  %v12726_v5 = vor.u32 %v14204_v55, %v12723_v49  ;;  %v5319_v35 = vsel %vm5316_vm1, %v5318_v13, %v5314_v47  ;;  %v12710_v4 = vor.u32 %v14200_v48, %v12707_v32  ;;  %v12675_v55 = vld [vmem:[#allocation8 + $0xb10] sm:$0xf0]  ;;  %v12409_v49 = vld [vmem:[#allocation8 + $0x8e8] sm:$0xf]  ;;  %v14123_v47 = vld [vmem:[#allocation8 + $0x8d4] sm:$0xf0] }
 0x3ac   : > { %v5324_v6 = vmul.f32 0.001953125, %v5319_v35  ;;  %v12678_v13 = vor.u32 %v14192_v56, %v12675_v55  ;;  %v14187_v48 = vld [vmem:[#allocation8 + $0xad4] sm:$0xf0]  ;;  %v12777_v32 = vld [vmem:[#allocation8 + $0xbc8] sm:$0xf] }
 0x3ad   : > { %7293 = vmatpush.bf16.msrb.mxu2 %v12630_v36  ;;  %7268 = vmatpush.bf16.msrb.mxu0 %v12358_v53  ;;  %v6152_v36 = vpop.f32.mrf.mxu1  ;;  %v12650_v39 = vor.u32 %v14187_v48, %v12649_v14  ;;  %v12633_v46 = vld [vmem:[#allocation8 + $0xaa8] sm:$0xf]  ;;  %v14215_v37 = vld [vmem:[#allocation8 + $0xbb4] sm:$0xf0] }
 0x3ae   : > { %v5331_v52 = vrot.slane %v5324_v6, 5  ;;  %v12394_v36 = vor.u32 %v14123_v47, %v12393_v16  ;;  %v14119_v6 = vld [vmem:[#allocation8 + $0x8b4] sm:$0xf0]  ;;  %v12617_v63 = vld [vmem:[#allocation8 + $0xa88] sm:$0xf] }
 0x3af   : > { %7306 = vmatpush.bf16.msrb.mxu3 %v12758_v51  ;;  %7281 = vmatpush.bf16.msrb.mxu1 %v12486_v54  ;;  %v15372_v51 = vadd.f32 %v6176_v31, %v6164_v30  ;;  %v12691_v54 = vld [vmem:[#allocation8 + $0xb30] sm:$0xf0]  ;;  %v6165_v15 = vpop.f32.mrf.mxu2  ;;  %v12794_v30 = vor.u32 %v14223_v25, %v12793_v62  ;;  %v14155_v31 = vld [vmem:[#allocation8 + $0x9d4] sm:$0xf0]  ;;  %v12378_v50 = vor.u32 %v14119_v6, %v12377_v40  ;;  %v12345_v55 = vld [vmem:[#allocation8 + $0x868] sm:$0xf] }
 0x3b0   : > { %v12694_v12 = vor.u32 %v14196_v57, %v12691_v54  ;;  %v12361_v54 = vld [vmem:[#allocation8 + $0x888] sm:$0xf]  ;;  %v14115_v58 = vld [vmem:[#allocation8 + $0x894] sm:$0xf0] }
 0x3b1   : > { %7294 = vmatpush.bf16.msrb.mxu2 %v12614_v21  ;;  %7269 = vmatpush.bf16.msrb.mxu0 %v12342_v18  ;;  %v5335_v21 = vsel %vm5334_vm0, %v5330_v34, %v5331_v52  ;;  %v6178_v18 = vpop.f32.mrf.mxu3  ;;  %v14219_v34 = vld [vmem:[#allocation8 + $0xbd4] sm:$0xf0]  ;;  %v12283_v35 = vmul.f32 -1.442695, %v15372_v51  ;;  %v12761_v51 = vld [vmem:[#allocation8 + $0xba8] sm:$0xf]  ;;  %v12362_v56 = vor.u32 %v14115_v58, %v12361_v54 }
 0x3b2   : > { %v5337_v11 = vsel %vm5336_vm2, %v15306_v33, %v5335_v21  ;;  %v12762_v41 = vor.u32 %v14215_v37, %v12761_v51  ;;  %v14147_v61 = vld [vmem:[#allocation8 + $0x994] sm:$0xf0]  ;;  %v12329_v62 = vld [vmem:[#allocation8 + $0x848] sm:$0xf] }
 0x3b3   : > { %7307 = vmatpush.bf16.msrb.mxu3 %v12742_v43  ;;  %7282 = vmatpush.bf16.msrb.mxu1 %v12470_v38  ;;  %v12547_v43 = vld [vmem:[#allocation8 + $0xa10] sm:$0xf0]  ;;  %5343 = vst.msk [vmem:[#allocation2] ss:$8 sm:$0xf] %vm15374_vm3, %v5337_v11  ;;  %14537 = vpow2.f32 %v12283_v35 }
 0x3b4   : > { %v14159_v38 = vld [vmem:[#allocation8 + $0x9f4] sm:$0xf0]  ;;  %v12550_v33 = vor.u32 %v14160_v9, %v12547_v43  ;;  %v12569_v51 = vld [vmem:[#allocation8 + $0xa28] sm:$0xf] }
 0x3b5   : > { %7295 = vmatpush.bf16.msrb.mxu2 %v12598_v20  ;;  %7270 = vmatpush.bf16.msrb.mxu0 %v12326_v59  ;;  %v12665_v20 = vld [vmem:[#allocation8 + $0xae8] sm:$0xf]  ;;  %v12538_v24 = vor.u32 %v14159_v38, %v12537_v19  ;;  %v12522_v59 = vor.u32 %v14155_v31, %v12521_v8  ;;  %v14179_v21 = vld [vmem:[#allocation8 + $0xa94] sm:$0xf0] }
 0x3b6   : > { %v12666_v29 = vor.u32 %v14191_v22, %v12665_v20  ;;  %v14211_v9 = vld [vmem:[#allocation8 + $0xb94] sm:$0xf0]  ;;  %v12618_v15 = vor.u32 %v14179_v21, %v12617_v63  ;;  %v12601_v38 = vld [vmem:[#allocation8 + $0xa68] sm:$0xf] }
 0x3b7   : > { %7308 = vmatpush.bf16.msrb.mxu3 %v12726_v5  ;;  %7283 = vmatpush.bf16.msrb.mxu1 %v12454_v42  ;;  %v12410_v5 = vor.u32 %v14127_v17, %v12409_v49  ;;  %v12505_v42 = vld [vmem:[#allocation8 + $0x9a8] sm:$0xf]  ;;  %v14111_v49 = vld [vmem:[#allocation8 + $0x874] sm:$0xf0] }
 0x3b8   : > { %v12506_v57 = vor.u32 %v14151_v45, %v12505_v42  ;;  %v12473_v17 = vld [vmem:[#allocation8 + $0x968] sm:$0xf]  ;;  %v14175_v20 = vld [vmem:[#allocation8 + $0xa74] sm:$0xf0] }
 0x3b9   : > { %7296 = vmatpush.bf16.msrb.mxu2 %v12582_v44  ;;  %7271 = vmatpush.bf16.msrb.mxu0 %v12310_v60  ;;  %v12778_v44 = vor.u32 %v14219_v34, %v12777_v32  ;;  %v12489_v60 = vld [vmem:[#allocation8 + $0x988] sm:$0xf]  ;;  %v14538_v18 = vpop.eup %14537  ;;  %v14139_v8 = vld [vmem:[#allocation8 + $0x954] sm:$0xf0] }
 0x3ba   : > { %v12729_v22 = vld [vmem:[#allocation8 + $0xb68] sm:$0xf]  ;;  %v15388_v25 = vadd.f32 1.0, %v14538_v18  ;;  %v14171_v31 = vld [vmem:[#allocation8 + $0xa54] sm:$0xf0] }
 0x3bb   : > { %7309 = vmatpush.bf16.msrb.mxu3 %v12710_v4  ;;  %7284 = vmatpush.bf16.msrb.mxu1 %v12438_v2  ;;  %v14183_v4 = vld [vmem:[#allocation8 + $0xab4] sm:$0xf0]  ;;  %v12713_v34 = vld [vmem:[#allocation8 + $0xb48] sm:$0xf] }
 0x3bc   : > { %v12634_v52 = vor.u32 %v14183_v4, %v12633_v46  ;;  %v14203_v35 = vld [vmem:[#allocation8 + $0xb54] sm:$0xf0]  ;;  %14539 = vrcp.f32 %v15388_v25  ;;  %v12313_v42 = vld [vmem:[#allocation8 + $0x828] sm:$0xf]  ;;  %vm6357_vm5 = vweird.f32 %v15388_v25 }
 0x3bd   : > { %7297 = vmatpush.bf16.msrb.mxu2 %v12566_v3  ;;  %7272 = vmatpush.bf16.msrb.mxu0 %v12294_v0  ;;  %v6189_v2 = vpop.f32.mrf.mxu0  ;;  %v12745_v3 = vld [vmem:[#allocation8 + $0xb88] sm:$0xf]  ;;  %v14143_v0 = vld [vmem:[#allocation8 + $0x974] sm:$0xf0]  ;;  %v12714_v46 = vor.u32 %v14203_v35, %v12713_v34  ;;  %v12651_v34 = vld [vmem:[#allocation8 + $0xad8] sm:$0xf0] }
 0x3be   : > { %v12746_v19 = vor.u32 %v14211_v9, %v12745_v3  ;;  %v12441_v45 = vld [vmem:[#allocation8 + $0x928] sm:$0xf]  ;;  %v14135_v4 = vld [vmem:[#allocation8 + $0x934] sm:$0xf0]  ;;  %v14217_v35 = vld [vmem:[#allocation8 + $0xbcc] sm:$0xf] }
 0x3bf   : > { %7310 = vmatpush.bf16.msrb.mxu3 %v12694_v12  ;;  %7285 = vmatpush.bf16.msrb.mxu1 %v12422_v1  ;;  %v6202_v43 = vpop.f32.mrf.mxu1  ;;  %v12490_v12 = vor.u32 %v14147_v61, %v12489_v60  ;;  %v14207_v1 = vld [vmem:[#allocation8 + $0xb74] sm:$0xf0]  ;;  %v12297_v58 = vld [vmem:[#allocation8 + $0x808] sm:$0xf] }
 0x3c0   : > { %7273 = vmatmul.bf16.vlgmr.msrb.gmra.mxu0 %v15326_v27  ;;  %v6203_v11 = vadd.f32 %v6202_v43, %v6189_v2  ;;  %v12730_v16 = vor.u32 %v14207_v1, %v12729_v22  ;;  %v14167_v37 = vld [vmem:[#allocation8 + $0xa34] sm:$0xf0]  ;;  %v12425_v63 = vld [vmem:[#allocation8 + $0x908] sm:$0xf]  ;;  %v14221_v1 = vld [vmem:[#allocation8 + $0xbec] sm:$0xf] }
 0x3c1   : > { %7298 = vmatpush.bf16.msrb.mxu2 %v12550_v33  ;;  %7317 = vmatpush.bf16.msra.mxu0 %v12410_v5  ;;  %v12346_v33 = vor.u32 %v14111_v49, %v12345_v55  ;;  %v12602_v5 = vor.u32 %v14175_v20, %v12601_v38  ;;  %v14099_v60 = vld [vmem:[#allocation8 + $0x814] sm:$0xf0]  ;;  %v12570_v61 = vor.u32 %v14167_v37, %v12569_v51  ;;  %v12553_v2 = vld [vmem:[#allocation8 + $0xa08] sm:$0xf]  ;;  %v14125_v55 = vld [vmem:[#allocation8 + $0x8ec] sm:$0xf] }
 0x3c2   : > { %7286 = vmatmul.bf16.vlgmr.msrb.gmra.mxu1 %v15328_v7  ;;  %v14131_v21 = vld [vmem:[#allocation8 + $0x914] sm:$0xf0]  ;;  %v12411_v49 = vld [vmem:[#allocation8 + $0x8f8] sm:$0xf0]  ;;  %v12298_v18 = vor.u32 %v14099_v60, %v12297_v58  ;;  %v14181_v51 = vld [vmem:[#allocation8 + $0xaac] sm:$0xf] }
 0x3c3   : > { %7311 = vmatpush.bf16.msrb.mxu3 %v12678_v13  ;;  %7330 = vmatpush.bf16.msra.mxu1 %v12538_v24  ;;  %v12474_v13 = vor.u32 %v14143_v0, %v12473_v17  ;;  %v14107_v24 = vld [vmem:[#allocation8 + $0x854] sm:$0xf0]  ;;  %v14157_v17 = vld [vmem:[#allocation8 + $0x9ec] sm:$0xf]  ;;  %v12667_v38 = vld [vmem:[#allocation8 + $0xaf8] sm:$0xf0]  ;;  %v12426_v20 = vor.u32 %v14131_v21, %v12425_v63 }
 0x3c4   : > { %7299 = vmatmul.bf16.vlgmr.msrb.gmra.mxu2 %v15331_v10  ;;  %v14163_v43 = vld [vmem:[#allocation8 + $0xa14] sm:$0xf0]  ;;  %v14189_v0 = vld [vmem:[#allocation8 + $0xaec] sm:$0xf]  ;;  %v12635_v37 = vld [vmem:[#allocation8 + $0xab8] sm:$0xf0] }
 0x3c5   : > { %7343 = vmatpush.bf16.msra.mxu2 %v12666_v29  ;;  %7318 = vmatpush.bf16.msra.mxu0 %v12394_v36  ;;  %v12457_v29 = vld [vmem:[#allocation8 + $0x948] sm:$0xf]  ;;  %v6191_v32 = vpop.f32.mrf.mxu0  ;;  %v12554_v22 = vor.u32 %v14163_v43, %v12553_v2  ;;  %v12638_v60 = vor.u32 %v14181_v51, %v12635_v37  ;;  %v14145_v63 = vld [vmem:[#allocation8 + $0x98c] sm:$0xf]  ;;  %v12619_v43 = vld [vmem:[#allocation8 + $0xa98] sm:$0xf0] }
 0x3c6   : > { %7312 = vmatmul.bf16.vlgmr.msrb.gmra.mxu3 %v15334_v26  ;;  %v12458_v40 = vor.u32 %v14139_v8, %v12457_v29  ;;  %v12395_v8 = vld [vmem:[#allocation8 + $0x8d8] sm:$0xf0]  ;;  %v14185_v32 = vld [vmem:[#allocation8 + $0xacc] sm:$0xf] }
 0x3c7   : > { %7356 = vmatpush.bf16.msra.mxu3 %v12794_v30  ;;  %7331 = vmatpush.bf16.msra.mxu1 %v12522_v59  ;;  %v6215_v47 = vpop.f32.mrf.mxu2  ;;  %v12585_v30 = vld [vmem:[#allocation8 + $0xa48] sm:$0xf]  ;;  %v6204_v36 = vpop.f32.mrf.mxu1  ;;  %v12330_v59 = vor.u32 %v14107_v24, %v12329_v62  ;;  %v14121_v24 = vld [vmem:[#allocation8 + $0x8cc] sm:$0xf] }
 0x3c8   : > { %v6216_v14 = vadd.f32 %v6215_v47, %v6203_v11  ;;  %v12586_v6 = vor.u32 %v14171_v31, %v12585_v30  ;;  %v14195_v11 = vld [vmem:[#allocation8 + $0xb14] sm:$0xf0]  ;;  %v12670_v47 = vor.u32 %v14189_v0, %v12667_v38  ;;  %v14153_v30 = vld [vmem:[#allocation8 + $0x9cc] sm:$0xf]  ;;  %v12523_v31 = vld [vmem:[#allocation8 + $0x9d8] sm:$0xf0] }
 0x3c9   : > { %7344 = vmatpush.bf16.msra.mxu2 %v12650_v39  ;;  %7319 = vmatpush.bf16.msra.mxu0 %v12378_v50  ;;  %v6228_v48 = vpop.f32.mrf.mxu3  ;;  %v12779_v36 = vld [vmem:[#allocation8 + $0xbd8] sm:$0xf0]  ;;  %v14109_v0 = vld [vmem:[#allocation8 + $0x86c] sm:$0xf] }
 0x3ca   : > { %v6229_v39 = vadd.f32 %v6228_v48, %v6216_v14  ;;  %v12347_v38 = vld [vmem:[#allocation8 + $0x878] sm:$0xf0] }
 0x3cb   : > { %7357 = vmatpush.bf16.msra.mxu3 %v12778_v44  ;;  %7332 = vmatpush.bf16.msra.mxu1 %v12506_v57  ;;  %v14103_v44 = vld [vmem:[#allocation8 + $0x834] sm:$0xf0]  ;;  %v12697_v57 = vld [vmem:[#allocation8 + $0xb28] sm:$0xf] }
 0x3cc   : > { %v12284_v50 = vmul.f32 -1.442695, %v6229_v39  ;;  %v12314_v54 = vor.u32 %v14103_v44, %v12313_v42  ;;  %v12398_v39 = vor.u32 %v14121_v24, %v12395_v8  ;;  %v14117_v42 = vld [vmem:[#allocation8 + $0x8ac] sm:$0xf]  ;;  %v12379_v44 = vld [vmem:[#allocation8 + $0x8b8] sm:$0xf0] }
 0x3cd   : > { %7345 = vmatpush.bf16.msra.mxu2 %v12634_v52  ;;  %7320 = vmatpush.bf16.msra.mxu0 %v12362_v56  ;;  %v14199_v52 = vld [vmem:[#allocation8 + $0xb34] sm:$0xf0]  ;;  %v12681_v56 = vld [vmem:[#allocation8 + $0xb08] sm:$0xf] }
 0x3ce   : > { %14541 = vpow2.f32 %v12284_v50  ;;  %v12698_v3 = vor.u32 %v14199_v52, %v12697_v57  ;;  %v14213_v50 = vld [vmem:[#allocation8 + $0xbac] sm:$0xf]  ;;  %v12763_v57 = vld [vmem:[#allocation8 + $0xbb8] sm:$0xf0] }
 0x3cf   : > { %7358 = vmatpush.bf16.msra.mxu3 %v12762_v41  ;;  %7333 = vmatpush.bf16.msra.mxu1 %v12490_v12  ;;  %v12442_v41 = vor.u32 %v14135_v4, %v12441_v45  ;;  %v6217_v9 = vpop.f32.mrf.mxu2  ;;  %v15391_v12 = vpop.eup %14539  ;;  %v14149_v45 = vld [vmem:[#allocation8 + $0x9ac] sm:$0xf]  ;;  %v12507_v4 = vld [vmem:[#allocation8 + $0x9b8] sm:$0xf0]  ;;  %v12766_v2 = vor.u32 %v14213_v50, %v12763_v57 }
 0x3d0   : > { %v6353_v62 = vmul.f32 %v15391_v12, %v15388_v25  ;;  %v12510_v58 = vor.u32 %v14149_v45, %v12507_v4  ;;  %v14177_v9 = vld [vmem:[#allocation8 + $0xa8c] sm:$0xf]  ;;  %vm6358_vm4 = vweird.f32 %v15391_v12 }
 0x3d1   : > { %7346 = vmatpush.bf16.msra.mxu2 %v12618_v15  ;;  %7321 = vmatpush.bf16.msra.mxu0 %v12346_v33  ;;  %v6230_v15 = vpop.f32.mrf.mxu3  ;;  %v12795_v33 = vld [vmem:[#allocation8 + $0xbf8] sm:$0xf0]  ;;  %vm15417_vm6 = vmor %vm6357_vm5, %vm6358_vm4  ;;  %v14169_v4 = vld [vmem:[#allocation8 + $0xa4c] sm:$0xf] }
 0x3d2   : > { %v12798_v48 = vor.u32 %v14221_v1, %v12795_v33  ;;  %v14209_v15 = vld [vmem:[#allocation8 + $0xb8c] sm:$0xf]  ;;  %v12622_v1 = vor.u32 %v14177_v9, %v12619_v43  ;;  %v12315_v43 = vld [vmem:[#allocation8 + $0x838] sm:$0xf0] }
 0x3d3   : > { %7359 = vmatpush.bf16.msra.mxu3 %v12746_v19  ;;  %7334 = vmatpush.bf16.msra.mxu1 %v12474_v13  ;;  %v12539_v19 = vld [vmem:[#allocation8 + $0x9f8] sm:$0xf0]  ;;  %v12682_v13 = vor.u32 %v14195_v11, %v12681_v56  ;;  %v14141_v33 = vld [vmem:[#allocation8 + $0x96c] sm:$0xf] }
 0x3d4   : > { %v14542_v29 = vpop.eup %14541  ;;  %v14201_v57 = vld [vmem:[#allocation8 + $0xb4c] sm:$0xf] }
 0x3d5   : > { %7347 = vmatpush.bf16.msra.mxu2 %v12602_v5  ;;  %7322 = vmatpush.bf16.msra.mxu0 %v12330_v59  ;;  %v12414_v5 = vor.u32 %v14125_v55, %v12411_v49  ;;  %v15395_v14 = vadd.f32 1.0, %v14542_v29  ;;  %v6354_v59 = vsub.f32 1.0, %v6353_v62  ;;  %v12747_v55 = vld [vmem:[#allocation8 + $0xb98] sm:$0xf0]  ;;  %v14173_v29 = vld [vmem:[#allocation8 + $0xa6c] sm:$0xf] }
 0x3d6   : > { %v12475_v62 = vld [vmem:[#allocation8 + $0x978] sm:$0xf0]  ;;  %v12750_v24 = vor.u32 %v14209_v15, %v12747_v55  ;;  %v14165_v55 = vld [vmem:[#allocation8 + $0xa2c] sm:$0xf] }
 0x3d7   : > { %7360 = vmatpush.bf16.msra.mxu3 %v12730_v16  ;;  %7335 = vmatpush.bf16.msra.mxu1 %v12458_v40  ;;  %v12542_v16 = vor.u32 %v14157_v17, %v12539_v19  ;;  %14543 = vrcp.f32 %v15395_v14  ;;  %v12526_v40 = vor.u32 %v14153_v30, %v12523_v31  ;;  %v6355_v52 = vmul.f32 %v15391_v12, %v6354_v59  ;;  %v14205_v31 = vld [vmem:[#allocation8 + $0xb6c] sm:$0xf]  ;;  %v12443_v15 = vld [vmem:[#allocation8 + $0x938] sm:$0xf0] }
 0x3d8   : > { %v6361_v17 = vand.u32 2147483647, %v15388_v25  ;;  %v6376_v30 = vand.u32 2147483647, %v15395_v14  ;;  %vm6372_vm9 = vweird.f32 %v15395_v14 }
 0x3d9   : > { %7348 = vmatpush.bf16.msra.mxu2 %v12586_v6  ;;  %7323 = vmatpush.bf16.msra.mxu0 %v12314_v54  ;;  %v12654_v6 = vor.u32 %v14185_v32, %v12651_v34  ;;  %v12382_v54 = vor.u32 %v14117_v42, %v12379_v44  ;;  %v6356_v49 = vadd.f32 %v15391_v12, %v6355_v52  ;;  %v14105_v34 = vld [vmem:[#allocation8 + $0x84c] sm:$0xf]  ;;  %v12715_v52 = vld [vmem:[#allocation8 + $0xb58] sm:$0xf0]  ;;  %v14350_v44 = vld [vmem:[#allocation8 + $0xfec] sm:$0xf0] }
 0x3da   : > { %v12350_v32 = vor.u32 %v14109_v0, %v12347_v38  ;;  %vm6362_vm11 = vcmp.eq.f32.partialorder %v6361_v17, 8.507059e+37  ;;  %vm6377_vm12 = vcmp.eq.f32.partialorder %v6376_v30, 8.507059e+37  ;;  %v14197_v38 = vld [vmem:[#allocation8 + $0xb2c] sm:$0xf]  ;;  %v12683_v30 = vld [vmem:[#allocation8 + $0xb18] sm:$0xf0] }
 0x3db   : > { %7361 = vmatpush.bf16.msra.mxu3 %v12714_v46  ;;  %7336 = vmatpush.bf16.msra.mxu1 %v12442_v41  ;;  %v12782_v46 = vor.u32 %v14217_v35, %v12779_v36  ;;  %v14113_v41 = vld [vmem:[#allocation8 + $0x88c] sm:$0xf]  ;;  %v12478_v36 = vor.u32 %v14141_v33, %v12475_v62 }
 0x3dd   : > { %7349 = vmatpush.bf16.msra.mxu2 %v12570_v61  ;;  %7324 = vmatpush.bf16.msra.mxu0 %v12298_v18  ;;  %v12363_v61 = vld [vmem:[#allocation8 + $0x898] sm:$0xf0]  ;;  %v15403_v21 = vpop.eup %14543  ;;  %v15407_v11 = vpop.f32.mrf.mxu0 }
 0x3de   : > { %v6368_v56 = vmul.f32 %v15403_v21, %v15395_v14  ;;  %v12366_v19 = vor.u32 %v14113_v41, %v12363_v61  ;;  %vm6373_vm7 = vweird.f32 %v15403_v21  ;;  %v14101_v61 = vld [vmem:[#allocation8 + $0x82c] sm:$0xf] }
 0x3df   : > { %7362 = vmatpush.bf16.msra.mxu3 %v12698_v3  ;;  %7337 = vmatpush.bf16.msra.mxu1 %v12426_v20  ;;  %v12491_v3 = vld [vmem:[#allocation8 + $0x998] sm:$0xf0]  ;;  %v6254_v18 = vpop.f32.mrf.mxu1  ;;  %vm15431_vm10 = vmor %vm6372_vm9, %vm6373_vm7 }
 0x3e0   : > { %7325 = vmatmul.bf16.vlgmr.msra.gmra.mxu0 %v15326_v27  ;;  %v6369_v20 = vsub.f32 1.0, %v6368_v56  ;;  %v12718_v56 = vor.u32 %v14201_v57, %v12715_v52  ;;  %v14282_v52 = vld [vmem:[#allocation8 + $0xdcc] sm:$0xf0] }
 0x3e1   : > { %7350 = vmatpush.bf16.msra.mxu2 %v12554_v22  ;;  %7369 = vmatpush.bf16.msrb.mxu0 %v12414_v5  ;;  %v12494_v22 = vor.u32 %v14145_v63, %v12491_v3  ;;  %v6378_v5 = vand.u32 2147483648, %v15395_v14  ;;  %v12587_v14 = vld [vmem:[#allocation8 + $0xa58] sm:$0xf0] }
 0x3e2   : > { %7338 = vmatmul.bf16.vlgmr.msra.gmra.mxu1 %v15328_v7  ;;  %v6370_v8 = vmul.f32 %v15403_v21, %v6369_v20  ;;  %v12590_v9 = vor.u32 %v14169_v4, %v12587_v14  ;;  %v12699_v20 = vld [vmem:[#allocation8 + $0xb38] sm:$0xf0] }
 0x3e3   : > { %7363 = vmatpush.bf16.msra.mxu3 %v12682_v13  ;;  %7382 = vmatpush.bf16.msrb.mxu1 %v12542_v16  ;;  %v6363_v13 = vand.u32 2147483648, %v15388_v25  ;;  %v12603_v16 = vld [vmem:[#allocation8 + $0xa78] sm:$0xf0] }
 0x3e4   : > { %7351 = vmatmul.bf16.vlgmr.msra.gmra.mxu2 %v15331_v10  ;;  %v12731_v25 = vld [vmem:[#allocation8 + $0xb78] sm:$0xf0]  ;;  %v6371_v35 = vadd.f32 %v15403_v21, %v6370_v8  ;;  %v12606_v59 = vor.u32 %v14173_v29, %v12603_v16  ;;  %v12702_v29 = vor.u32 %v14197_v38, %v12699_v20  ;;  %v14193_v8 = vld [vmem:[#allocation8 + $0xb0c] sm:$0xf]  ;;  %v12869_v20 = vld [vmem:[#allocation8 + $0xc80] sm:$0xf] }
 0x3e5   : > { %7395 = vmatpush.bf16.msrb.mxu2 %v12670_v47  ;;  %7370 = vmatpush.bf16.msrb.mxu0 %v12398_v39  ;;  %v12331_v39 = vld [vmem:[#allocation8 + $0x858] sm:$0xf0]  ;;  %v6364_v42 = vor.u32 1.1754944e-38, %v6363_v13  ;;  %v12734_v45 = vor.u32 %v14205_v31, %v12731_v25  ;;  %v6243_v50 = vpop.f32.mrf.mxu0  ;;  %v14129_v13 = vld [vmem:[#allocation8 + $0x90c] sm:$0xf] }
 0x3e6   : > { %7364 = vmatmul.bf16.vlgmr.msra.gmra.mxu3 %v15334_v26  ;;  %v6375_v51 = vsel %vm15431_vm10, %v15403_v21, %v6371_v35  ;;  %v12334_v41 = vor.u32 %v14105_v34, %v12331_v39  ;;  %v14133_v21 = vld [vmem:[#allocation8 + $0x92c] sm:$0xf]  ;;  %v12555_v47 = vld [vmem:[#allocation8 + $0xa18] sm:$0xf0]  ;;  %v13045_v34 = vld [vmem:[#allocation8 + $0xde0] sm:$0xf] }
 0x3e7   : > { %7408 = vmatpush.bf16.msrb.mxu3 %v12798_v48  ;;  %7383 = vmatpush.bf16.msrb.mxu1 %v12526_v40  ;;  %v6360_v48 = vsel %vm15417_vm6, %v15391_v12, %v6356_v49  ;;  %v14137_v40 = vld [vmem:[#allocation8 + $0x94c] sm:$0xf]  ;;  %v6379_v12 = vor.u32 1.1754944e-38, %v6378_v5  ;;  %v12571_v49 = vld [vmem:[#allocation8 + $0xa38] sm:$0xf0]  ;;  %v12446_v33 = vor.u32 %v14133_v21, %v12443_v15 }
 0x3e8   : > { %v12574_v62 = vor.u32 %v14165_v55, %v12571_v49  ;;  %v12427_v5 = vld [vmem:[#allocation8 + $0x918] sm:$0xf0]  ;;  %v14318_v39 = vld [vmem:[#allocation8 + $0xeec] sm:$0xf0]  ;;  %v13029_v50 = vld [vmem:[#allocation8 + $0xdc0] sm:$0xf] }
 0x3e9   : > { %7396 = vmatpush.bf16.msrb.mxu2 %v12654_v6  ;;  %7371 = vmatpush.bf16.msrb.mxu0 %v12382_v54  ;;  %v12459_v6 = vld [vmem:[#allocation8 + $0x958] sm:$0xf0]  ;;  %v6280_v37 = vpop.f32.mrf.mxu3  ;;  %v6365_v54 = vsel %vm6362_vm11, %v6364_v42, %v6360_v48  ;;  %v12917_v48 = vld [vmem:[#allocation8 + $0xce0] sm:$0xf]  ;;  %v14310_v55 = vld [vmem:[#allocation8 + $0xeac] sm:$0xf0] }
 0x3ea   : > { %v12462_v3 = vor.u32 %v14137_v40, %v12459_v6  ;;  %v6412_v17 = vmul.f32 0.001953125, %v6365_v54  ;;  %v12430_v40 = vor.u32 %v14129_v13, %v12427_v5  ;;  %v13301_v42 = vld [vmem:[#allocation8 + $0xfe0] sm:$0xf]  ;;  %v14338_v5 = vld [vmem:[#allocation8 + $0xf8c] sm:$0xf0] }
 0x3eb   : > { %7409 = vmatpush.bf16.msrb.mxu3 %v12782_v46  ;;  %7384 = vmatpush.bf16.msrb.mxu1 %v12510_v58  ;;  %v6267_v46 = vpop.f32.mrf.mxu2  ;;  %v6380_v58 = vsel %vm6377_vm12, %v6379_v12, %v6375_v51  ;;  %v12686_v12 = vor.u32 %v14193_v8, %v12683_v30  ;;  %v13302_v57 = vor.u32 %v14350_v44, %v13301_v42  ;;  %v13157_v54 = vld [vmem:[#allocation8 + $0xec0] sm:$0xf]  ;;  %v14238_v8 = vld [vmem:[#allocation8 + $0xc6c] sm:$0xf0] }
 0x3ec   : > { %v6413_v63 = vmul.f32 0.001953125, %v6380_v58  ;;  %v14314_v58 = vld [vmem:[#allocation8 + $0xecc] sm:$0xf0]  ;;  %v13141_v15 = vld [vmem:[#allocation8 + $0xea0] sm:$0xf] }
 0x3ed   : > { %7397 = vmatpush.bf16.msrb.mxu2 %v12638_v60  ;;  %7372 = vmatpush.bf16.msrb.mxu0 %v12366_v19  ;;  %v6256_v60 = vpop.f32.mrf.mxu1  ;;  %v13269_v49 = vld [vmem:[#allocation8 + $0xfa0] sm:$0xf]  ;;  %v13142_v38 = vor.u32 %v14310_v55, %v13141_v15  ;;  %v14234_v44 = vld [vmem:[#allocation8 + $0xc4c] sm:$0xf0] }
 0x3ee   : > { %v6420_v19 = vrot.slane %v6413_v63, 7  ;;  %v13285_v60 = vld [vmem:[#allocation8 + $0xfc0] sm:$0xf]  ;;  %v13030_v63 = vor.u32 %v14282_v52, %v13029_v50  ;;  %v14294_v15 = vld [vmem:[#allocation8 + $0xe2c] sm:$0xf0] }
 0x3ef   : > { %7410 = vmatpush.bf16.msrb.mxu3 %v12766_v2  ;;  %7385 = vmatpush.bf16.msrb.mxu1 %v12494_v22  ;;  %v6255_v2 = vadd.f32 %v6254_v18, %v15407_v11  ;;  %v12318_v22 = vor.u32 %v14101_v61, %v12315_v43  ;;  %v12299_v11 = vld [vmem:[#allocation8 + $0x818] sm:$0xf0]  ;;  %v13013_v43 = vld [vmem:[#allocation8 + $0xda0] sm:$0xf] }
 0x3f0   : > { %v15440_v18 = vsel %vm5332_vm8, %v6412_v17, %v6420_v19  ;;  %v14342_v17 = vld [vmem:[#allocation8 + $0xfac] sm:$0xf0]  ;;  %v13253_v13 = vld [vmem:[#allocation8 + $0xf80] sm:$0xf] }
 0x3f1   : > { %7398 = vmatpush.bf16.msrb.mxu2 %v12622_v1  ;;  %7373 = vmatpush.bf16.msrb.mxu0 %v12350_v32  ;;  %v6268_v0 = vadd.f32 %v6267_v46, %v6255_v2  ;;  %v14097_v1 = vld [vmem:[#allocation8 + $0x80c] sm:$0xf]  ;;  %v6282_v25 = vpop.f32.mrf.mxu3  ;;  %v14254_v32 = vld [vmem:[#allocation8 + $0xcec] sm:$0xf0]  ;;  %v12901_v46 = vld [vmem:[#allocation8 + $0xcc0] sm:$0xf]  ;;  %v13158_v2 = vor.u32 %v14314_v58, %v13157_v54 }
 0x3f2   : > { %v12302_v35 = vor.u32 %v14097_v1, %v12299_v11  ;;  %v13270_v1 = vor.u32 %v14342_v17, %v13269_v49  ;;  %v14274_v11 = vld [vmem:[#allocation8 + $0xd8c] sm:$0xf0]  ;;  %v12981_v30 = vld [vmem:[#allocation8 + $0xd60] sm:$0xf] }
 0x3f3   : > { %7411 = vmatpush.bf16.msrb.mxu3 %v12750_v24  ;;  %7386 = vmatpush.bf16.msrb.mxu1 %v12478_v36  ;;  %v14161_v24 = vld [vmem:[#allocation8 + $0xa0c] sm:$0xf]  ;;  %v6269_v16 = vpop.f32.mrf.mxu2  ;;  %v6281_v31 = vadd.f32 %v6280_v37, %v6268_v0  ;;  %v14286_v36 = vld [vmem:[#allocation8 + $0xdec] sm:$0xf0]  ;;  %v12837_v42 = vld [vmem:[#allocation8 + $0xc40] sm:$0xf] }
 0x3f4   : > { %v12558_v6 = vor.u32 %v14161_v24, %v12555_v47  ;;  %v13046_v14 = vor.u32 %v14286_v36, %v13045_v34  ;;  %v14250_v37 = vld [vmem:[#allocation8 + $0xccc] sm:$0xf0]  ;;  %v13221_v52 = vld [vmem:[#allocation8 + $0xf40] sm:$0xf] }
 0x3f5   : > { %7399 = vmatpush.bf16.msrb.mxu2 %v12606_v59  ;;  %7374 = vmatpush.bf16.msrb.mxu0 %v12334_v41  ;;  %v13173_v59 = vld [vmem:[#allocation8 + $0xee0] sm:$0xf]  ;;  %v12285_v4 = vmul.f32 -1.442695, %v6281_v31  ;;  %v14346_v41 = vld [vmem:[#allocation8 + $0xfcc] sm:$0xf0]  ;;  %v12902_v61 = vor.u32 %v14250_v37, %v12901_v46 }
 0x3f6   : > { %v13174_v51 = vor.u32 %v14318_v39, %v13173_v59  ;;  %v13286_v21 = vor.u32 %v14346_v41, %v13285_v60  ;;  %v14270_v31 = vld [vmem:[#allocation8 + $0xd6c] sm:$0xf0]  ;;  %v12838_v60 = vor.u32 %v14234_v44, %v12837_v42  ;;  %v13205_v49 = vld [vmem:[#allocation8 + $0xf20] sm:$0xf]  ;;  %v14248_v44 = vld [vmem:[#allocation8 + $0xcc4] sm:$0xf] }
 0x3f7   : > { %7412 = vmatpush.bf16.msrb.mxu3 %v12734_v45  ;;  %7387 = vmatpush.bf16.msrb.mxu1 %v12462_v3  ;;  %v12918_v45 = vor.u32 %v14254_v32, %v12917_v48  ;;  %14545 = vpow2.f32 %v12285_v4  ;;  %v12885_v3 = vld [vmem:[#allocation8 + $0xca0] sm:$0xf]  ;;  %v13254_v48 = vor.u32 %v14338_v5, %v13253_v13  ;;  %v14302_v34 = vld [vmem:[#allocation8 + $0xe6c] sm:$0xf0] }
 0x3f8   : > { %v13109_v32 = vld [vmem:[#allocation8 + $0xe60] sm:$0xf]  ;;  %v14334_v36 = vld [vmem:[#allocation8 + $0xf6c] sm:$0xf0] }
 0x3f9   : > { %7400 = vmatpush.bf16.msrb.mxu2 %v12590_v9  ;;  %7375 = vmatpush.bf16.msrb.mxu0 %v12318_v22  ;;  %v14246_v9 = vld [vmem:[#allocation8 + $0xcac] sm:$0xf0]  ;;  %v12997_v22 = vld [vmem:[#allocation8 + $0xd80] sm:$0xf] }
 0x3fa   : > { %v12886_v19 = vor.u32 %v14246_v9, %v12885_v3  ;;  %v12998_v16 = vor.u32 %v14274_v11, %v12997_v22  ;;  %v14266_v4 = vld [vmem:[#allocation8 + $0xd4c] sm:$0xf0]  ;;  %v12949_v9 = vld [vmem:[#allocation8 + $0xd20] sm:$0xf] }
 0x3fb   : > { %7413 = vmatpush.bf16.msrb.mxu3 %v12718_v56  ;;  %7388 = vmatpush.bf16.msrb.mxu1 %v12446_v33  ;;  %v14278_v56 = vld [vmem:[#allocation8 + $0xdac] sm:$0xf0]  ;;  %v13125_v33 = vld [vmem:[#allocation8 + $0xe80] sm:$0xf] }
 0x3fc   : > { %v13014_v0 = vor.u32 %v14278_v56, %v13013_v43  ;;  %v14330_v54 = vld [vmem:[#allocation8 + $0xf4c] sm:$0xf0]  ;;  %v13077_v56 = vld [vmem:[#allocation8 + $0xe20] sm:$0xf] }
 0x3fd   : > { %7401 = vmatpush.bf16.msrb.mxu2 %v12574_v62  ;;  %7376 = vmatpush.bf16.msrb.mxu0 %v12302_v35  ;;  %v14546_v62 = vpop.eup %14545  ;;  %v13237_v35 = vld [vmem:[#allocation8 + $0xf60] sm:$0xf]  ;;  %v14230_v3 = vld [vmem:[#allocation8 + $0xc2c] sm:$0xf0]  ;;  %v13222_v43 = vor.u32 %v14330_v54, %v13221_v52  ;;  %v13078_v22 = vor.u32 %v14294_v15, %v13077_v56  ;;  %v13159_v54 = vld [vmem:[#allocation8 + $0xed0] sm:$0xf0] }
 0x3fe   : > { %v15446_v25 = vadd.f32 1.0, %v14546_v62  ;;  %v14326_v17 = vld [vmem:[#allocation8 + $0xf2c] sm:$0xf0]  ;;  %v13189_v13 = vld [vmem:[#allocation8 + $0xf00] sm:$0xf] }
 0x3ff   : > { %7414 = vmatpush.bf16.msrb.mxu3 %v12702_v29  ;;  %7389 = vmatpush.bf16.msrb.mxu1 %v12430_v40  ;;  %v12853_v29 = vld [vmem:[#allocation8 + $0xc60] sm:$0xf]  ;;  %v12982_v40 = vor.u32 %v14270_v31, %v12981_v30  ;;  %v14258_v11 = vld [vmem:[#allocation8 + $0xd0c] sm:$0xf0]  ;;  %v13047_v30 = vld [vmem:[#allocation8 + $0xdf0] sm:$0xf0] }
 0x400   : > { %7377 = vmatmul.bf16.vlgmr.msrb.gmra.mxu0 %v15326_v27  ;;  %v14242_v27 = vld [vmem:[#allocation8 + $0xc8c] sm:$0xf0]  ;;  %v12854_v59 = vor.u32 %v14238_v8, %v12853_v29  ;;  %14547 = vrcp.f32 %v15446_v25  ;;  %v14252_v29 = vld [vmem:[#allocation8 + $0xce4] sm:$0xf]  ;;  %vm6387_vm14 = vweird.f32 %v15446_v25 }
 0x401   : > { %7402 = vmatpush.bf16.msrb.mxu2 %v12558_v6  ;;  %8298 = vmatpush.bf16.msra.mxu0 %v12918_v45  ;;  %v12870_v24 = vor.u32 %v14242_v27, %v12869_v20  ;;  %v13110_v6 = vor.u32 %v14302_v34, %v13109_v32  ;;  %v13238_v45 = vor.u32 %v14334_v36, %v13237_v35  ;;  %v14226_v20 = vld [vmem:[#allocation8 + $0xc0c] sm:$0xf0]  ;;  %v14316_v31 = vld [vmem:[#allocation8 + $0xee4] sm:$0xf]  ;;  %v7646_v32 = vunpack.c.l.b16 %v15216_v23 }
 0x402   : > { %7390 = vmatmul.bf16.vlgmr.msrb.gmra.mxu1 %v15328_v7  ;;  %v14306_v7 = vld [vmem:[#allocation8 + $0xe8c] sm:$0xf0]  ;;  %v14348_v36 = vld [vmem:[#allocation8 + $0xfe4] sm:$0xf] }
 0x403   : > { %7415 = vmatpush.bf16.msrb.mxu3 %v12686_v12  ;;  %8311 = vmatpush.bf16.msra.mxu1 %v13046_v14  ;;  %v13126_v47 = vor.u32 %v14306_v7, %v13125_v33  ;;  %v12965_v12 = vld [vmem:[#allocation8 + $0xd40] sm:$0xf]  ;;  %v13206_v7 = vor.u32 %v14326_v17, %v13205_v49  ;;  %v14322_v5 = vld [vmem:[#allocation8 + $0xf0c] sm:$0xf0]  ;;  %v14276_v56 = vld [vmem:[#allocation8 + $0xda4] sm:$0xf] }
 0x404   : > { %7403 = vmatmul.bf16.vlgmr.msrb.gmra.mxu2 %v15331_v10  ;;  %v6293_v10 = vpop.f32.mrf.mxu0  ;;  %v13093_v14 = vld [vmem:[#allocation8 + $0xe40] sm:$0xf]  ;;  %v13015_v49 = vld [vmem:[#allocation8 + $0xdb0] sm:$0xf0]  ;;  %v14308_v17 = vld [vmem:[#allocation8 + $0xea4] sm:$0xf] }
 0x405   : > { %8324 = vmatpush.bf16.msra.mxu2 %v13174_v51  ;;  %8299 = vmatpush.bf16.msra.mxu0 %v12902_v61  ;;  %v14298_v51 = vld [vmem:[#allocation8 + $0xe4c] sm:$0xf0]  ;;  %v12966_v61 = vor.u32 %v14266_v4, %v12965_v12  ;;  %v13061_v33 = vld [vmem:[#allocation8 + $0xe00] sm:$0xf]  ;;  %v12903_v12 = vld [vmem:[#allocation8 + $0xcd0] sm:$0xf0] }
 0x406   : > { %7416 = vmatmul.bf16.vlgmr.msrb.gmra.mxu3 %v15334_v26  ;;  %v6306_v26 = vpop.f32.mrf.mxu1 }
 0x407   : > { %8337 = vmatpush.bf16.msra.mxu3 %v13302_v57  ;;  %8312 = vmatpush.bf16.msra.mxu1 %v13030_v63  ;;  %v6307_v39 = vadd.f32 %v6306_v26, %v6293_v10  ;;  %v6319_v46 = vpop.f32.mrf.mxu2  ;;  %v13094_v63 = vor.u32 %v14298_v51, %v13093_v14  ;;  %v14290_v10 = vld [vmem:[#allocation8 + $0xe0c] sm:$0xf0]  ;;  %v14280_v51 = vld [vmem:[#allocation8 + $0xdc4] sm:$0xf] }
 0x408   : > { %v13062_v35 = vor.u32 %v14290_v10, %v13061_v33  ;;  %v13018_v33 = vor.u32 %v14276_v56, %v13015_v49  ;;  %v14272_v10 = vld [vmem:[#allocation8 + $0xd84] sm:$0xf] }
 0x409   : > { %8325 = vmatpush.bf16.msra.mxu2 %v13158_v2  ;;  %8300 = vmatpush.bf16.msra.mxu0 %v12886_v19  ;;  %v6320_v37 = vadd.f32 %v6319_v46, %v6307_v39  ;;  %v6332_v50 = vpop.f32.mrf.mxu3  ;;  %v12821_v2 = vld [vmem:[#allocation8 + $0xc20] sm:$0xf]  ;;  %v15449_v19 = vpop.eup %14547  ;;  %v7647_v39 = vunpack.c.h.b16 %v15216_v23  ;;  %v14312_v23 = vld [vmem:[#allocation8 + $0xec4] sm:$0xf] }
 0x40a   : > { %v6383_v26 = vmul.f32 %v15449_v19, %v15446_v25  ;;  %vm6388_vm13 = vweird.f32 %v15449_v19 }
 0x40b   : > { %8338 = vmatpush.bf16.msra.mxu3 %v13286_v21  ;;  %8313 = vmatpush.bf16.msra.mxu1 %v13014_v0  ;;  %v6333_v41 = vadd.f32 %v6332_v50, %v6320_v37  ;;  %v14262_v21 = vld [vmem:[#allocation8 + $0xd2c] sm:$0xf0]  ;;  %v12822_v0 = vor.u32 %v14230_v3, %v12821_v2  ;;  %v13031_v37 = vld [vmem:[#allocation8 + $0xdd0] sm:$0xf0]  ;;  %v7649_v50 = vunpack.c.h.b16 %v15229_v28  ;;  %vm15484_vm15 = vmor %vm6387_vm14, %vm6388_vm13 }
 0x40c   : > { %v6295_v57 = vpop.f32.mrf.mxu0  ;;  %v12950_v27 = vor.u32 %v14262_v21, %v12949_v9  ;;  %v6384_v46 = vsub.f32 1.0, %v6383_v26  ;;  %v13034_v3 = vor.u32 %v14280_v51, %v13031_v37  ;;  %v13162_v9 = vor.u32 %v14312_v23, %v13159_v54  ;;  %v12887_v21 = vld [vmem:[#allocation8 + $0xcb0] sm:$0xf0] }
 0x40d   : > { %8326 = vmatpush.bf16.msra.mxu2 %v13142_v38  ;;  %8301 = vmatpush.bf16.msra.mxu0 %v12870_v24  ;;  %v12286_v55 = vmul.f32 -1.442695, %v6333_v41  ;;  %v12805_v38 = vld [vmem:[#allocation8 + $0xc00] sm:$0xf]  ;;  %v13287_v41 = vld [vmem:[#allocation8 + $0xfd0] sm:$0xf0]  ;;  %v15467_v15 = vpack.c.b16 %v7649_v50, %v7649_v50 }
 0x40e   : > { %v6308_v58 = vpop.f32.mrf.mxu1  ;;  %v12806_v8 = vor.u32 %v14226_v20, %v12805_v38  ;;  %v6385_v2 = vmul.f32 %v15449_v19, %v6384_v46  ;;  %v14340_v38 = vld [vmem:[#allocation8 + $0xfa4] sm:$0xf]  ;;  %v13271_v20 = vld [vmem:[#allocation8 + $0xfb0] sm:$0xf0]  ;;  %v6393_v26 = vand.u32 2147483648, %v15446_v25 }
 0x40f   : > { %8339 = vmatpush.bf16.msra.mxu3 %v13270_v1  ;;  %8314 = vmatpush.bf16.msra.mxu1 %v12998_v16  ;;  %14549 = vpow2.f32 %v12286_v55  ;;  %v12933_v1 = vld [vmem:[#allocation8 + $0xd00] sm:$0xf]  ;;  %v6321_v62 = vpop.f32.mrf.mxu2  ;;  %v12919_v16 = vld [vmem:[#allocation8 + $0xcf0] sm:$0xf0]  ;;  %v15459_v58 = vpack.c.b16 %v7646_v32, %v7646_v32  ;;  %v14332_v50 = vld [vmem:[#allocation8 + $0xf64] sm:$0xf] }
 0x410   : > { %v12934_v34 = vor.u32 %v14258_v11, %v12933_v1  ;;  %v12922_v42 = vor.u32 %v14252_v29, %v12919_v16  ;;  %v14240_v1 = vld [vmem:[#allocation8 + $0xc84] sm:$0xf]  ;;  %v6386_v11 = vadd.f32 %v15449_v19, %v6385_v2  ;;  %v12871_v62 = vld [vmem:[#allocation8 + $0xc90] sm:$0xf0] }
 0x411   : > { %8327 = vmatpush.bf16.msra.mxu2 %v13126_v47  ;;  %8302 = vmatpush.bf16.msra.mxu0 %v12854_v59  ;;  %v6334_v24 = vpop.f32.mrf.mxu3  ;;  %v14284_v47 = vld [vmem:[#allocation8 + $0xde4] sm:$0xf]  ;;  %v13303_v59 = vld [vmem:[#allocation8 + $0xff0] sm:$0xf0] }
 0x412   : > { %v13050_v4 = vor.u32 %v14284_v47, %v13047_v30  ;;  %v13306_v52 = vor.u32 %v14348_v36, %v13303_v59  ;;  %v13274_v24 = vor.u32 %v14340_v38, %v13271_v20  ;;  %v14304_v29 = vld [vmem:[#allocation8 + $0xe84] sm:$0xf]  ;;  %v13127_v16 = vld [vmem:[#allocation8 + $0xe90] sm:$0xf0] }
 0x413   : > { %8340 = vmatpush.bf16.msra.mxu3 %v13254_v48  ;;  %8315 = vmatpush.bf16.msra.mxu1 %v12982_v40  ;;  %v13175_v48 = vld [vmem:[#allocation8 + $0xef0] sm:$0xf0]  ;;  %v7648_v40 = vunpack.c.l.b16 %v15229_v28  ;;  %v12906_v28 = vor.u32 %v14248_v44, %v12903_v12  ;;  %v14336_v30 = vld [vmem:[#allocation8 + $0xf84] sm:$0xf] }
 0x414   : > { %v13178_v14 = vor.u32 %v14316_v31, %v13175_v48  ;;  %v13255_v31 = vld [vmem:[#allocation8 + $0xf90] sm:$0xf0]  ;;  %v14236_v36 = vld [vmem:[#allocation8 + $0xc64] sm:$0xf] }
 0x415   : > { %8328 = vmatpush.bf16.msra.mxu2 %v13110_v6  ;;  %8303 = vmatpush.bf16.msra.mxu0 %v12838_v60  ;;  %v13190_v6 = vor.u32 %v14322_v5, %v13189_v13  ;;  %v14344_v60 = vld [vmem:[#allocation8 + $0xfc4] sm:$0xf]  ;;  %v12999_v13 = vld [vmem:[#allocation8 + $0xd90] sm:$0xf0] }
 0x416   : > { %v13290_v55 = vor.u32 %v14344_v60, %v13287_v41  ;;  %v12855_v59 = vld [vmem:[#allocation8 + $0xc70] sm:$0xf0]  ;;  %v14268_v44 = vld [vmem:[#allocation8 + $0xd64] sm:$0xf] }
 0x417   : > { %8341 = vmatpush.bf16.msra.mxu3 %v13238_v45  ;;  %8316 = vmatpush.bf16.msra.mxu1 %v12966_v61  ;;  %v14550_v45 = vpop.eup %14549  ;;  %v15461_v61 = vpack.c.b16 %v7647_v39, %v7647_v39  ;;  %v6390_v39 = vsel %vm15484_vm15, %v15449_v19, %v6386_v11  ;;  %v12983_v12 = vld [vmem:[#allocation8 + $0xd70] sm:$0xf0]  ;;  %v12858_v54 = vor.u32 %v14236_v36, %v12855_v59  ;;  %v14232_v60 = vld [vmem:[#allocation8 + $0xc44] sm:$0xf] }
 0x418   : > { %v15457_v57 = vadd.f32 1.0, %v14550_v45  ;;  %v6394_v45 = vor.u32 1.1754944e-38, %v6393_v26  ;;  %v13111_v51 = vld [vmem:[#allocation8 + $0xe70] sm:$0xf0]  ;;  %v14324_v48 = vld [vmem:[#allocation8 + $0xf24] sm:$0xf] }
 0x419   : > { %8329 = vmatpush.bf16.msra.mxu2 %v13094_v63  ;;  %8304 = vmatpush.bf16.msra.mxu0 %v12822_v0  ;;  %v15463_v63 = vpack.c.b16 %v7648_v40, %v7648_v40  ;;  %v13143_v0 = vld [vmem:[#allocation8 + $0xeb0] sm:$0xf0] }
 0x41a   : > { %14551 = vrcp.f32 %v15457_v57  ;;  %v6408_v46 = vand.u32 2147483648, %v15457_v57  ;;  %v6406_v19 = vand.u32 2147483647, %v15457_v57  ;;  %vm6402_vm5 = vweird.f32 %v15457_v57  ;;  %v13223_v11 = vld [vmem:[#allocation8 + $0xf50] sm:$0xf0] }
 0x41b   : > { %8342 = vmatpush.bf16.msra.mxu3 %v13222_v43  ;;  %8317 = vmatpush.bf16.msra.mxu1 %v12950_v27  ;;  %v14244_v43 = vld [vmem:[#allocation8 + $0xca4] sm:$0xf]  ;;  %v6391_v27 = vand.u32 2147483647, %v15446_v25  ;;  %v13002_v25 = vor.u32 %v14272_v10, %v12999_v13  ;;  %v12823_v13 = vld [vmem:[#allocation8 + $0xc30] sm:$0xf0] }
 0x41c   : > { %v6409_v56 = vor.u32 1.1754944e-38, %v6408_v46  ;;  %vm6407_vm7 = vcmp.eq.f32.partialorder %v6406_v19, 8.507059e+37  ;;  %v14228_v10 = vld [vmem:[#allocation8 + $0xc24] sm:$0xf]  ;;  %v12807_v59 = vld [vmem:[#allocation8 + $0xc10] sm:$0xf0] }
 0x41d   : > { %8330 = vmatpush.bf16.msra.mxu2 %v13078_v22  ;;  %8305 = vmatpush.bf16.msra.mxu0 %v12806_v8  ;;  %v12890_v22 = vor.u32 %v14244_v43, %v12887_v21  ;;  %v7222_v8 = vpop.f32.mrf.mxu0  ;;  %vm15488_vm1 = vcmp.eq.f32.partialorder %v6391_v27, 8.507059e+37  ;;  %v12967_v43 = vld [vmem:[#allocation8 + $0xd50] sm:$0xf0]  ;;  %v12826_v36 = vor.u32 %v14228_v10, %v12823_v13  ;;  %v14320_v46 = vld [vmem:[#allocation8 + $0xf04] sm:$0xf] }
 0x41e   : > { %v6395_v23 = vsel %vm15488_vm1, %v6394_v45, %v6390_v39  ;;  %v14256_v39 = vld [vmem:[#allocation8 + $0xd04] sm:$0xf]  ;;  %v13063_v45 = vld [vmem:[#allocation8 + $0xe10] sm:$0xf0]  ;;  %v12925_v19 = vld [vmem:[#allocation8 + $0xce8] sm:$0xf] }
 0x41f   : > { %8343 = vmatpush.bf16.msra.mxu3 %v13206_v7  ;;  %8318 = vmatpush.bf16.msra.mxu1 %v12934_v34  ;;  %v13146_v7 = vor.u32 %v14308_v17, %v13143_v0  ;;  %v7235_v34 = vpop.f32.mrf.mxu1  ;;  %v14296_v17 = vld [vmem:[#allocation8 + $0xe44] sm:$0xf]  ;;  %v13095_v0 = vld [vmem:[#allocation8 + $0xe50] sm:$0xf0]  ;;  %v12893_v10 = vld [vmem:[#allocation8 + $0xca8] sm:$0xf] }
 0x420   : > { %8306 = vmatmul.bf16.vlgmr.msra.gmra.mxu0 %v15459_v58  ;;  %v15476_v5 = vpop.eup %14551  ;;  %v14247_v13 = vld [vmem:[#allocation8 + $0xcb4] sm:$0xf0] }
 0x421   : > { %8331 = vmatpush.bf16.msra.mxu2 %v13062_v35  ;;  %8350 = vmatpush.bf16.msrb.mxu0 %v12922_v42  ;;  %v6398_v47 = vmul.f32 %v15476_v5, %v15457_v57  ;;  %v12874_v35 = vor.u32 %v14240_v1, %v12871_v62  ;;  %v13130_v42 = vor.u32 %v14304_v29, %v13127_v16  ;;  %vm6403_vm4 = vweird.f32 %v15476_v5  ;;  %v14328_v1 = vld [vmem:[#allocation8 + $0xf44] sm:$0xf] }
 0x422   : > { %8319 = vmatmul.bf16.vlgmr.msra.gmra.mxu1 %v15461_v61  ;;  %vm15505_vm6 = vmor %vm6402_vm5, %vm6403_vm4  ;;  %v6414_v57 = vmul.f32 0.001953125, %v6395_v23  ;;  %v13098_v16 = vor.u32 %v14296_v17, %v13095_v0  ;;  %v13053_v23 = vld [vmem:[#allocation8 + $0xde8] sm:$0xf]  ;;  %v14251_v17 = vld [vmem:[#allocation8 + $0xcd4] sm:$0xf0] }
 0x423   : > { %8344 = vmatpush.bf16.msra.mxu3 %v13190_v6  ;;  %8363 = vmatpush.bf16.msrb.mxu1 %v13050_v4  ;;  %v6399_v40 = vsub.f32 1.0, %v6398_v47  ;;  %v7236_v6 = vadd.f32 %v7235_v34, %v7222_v8  ;;  %v13258_v4 = vor.u32 %v14336_v30, %v13255_v31  ;;  %v12951_v47 = vld [vmem:[#allocation8 + $0xd30] sm:$0xf0]  ;;  %v13226_v8 = vor.u32 %v14328_v1, %v13223_v11  ;;  %v14292_v30 = vld [vmem:[#allocation8 + $0xe24] sm:$0xf] }
 0x424   : > { %8332 = vmatmul.bf16.vlgmr.msra.gmra.mxu2 %v15463_v63  ;;  %v13079_v31 = vld [vmem:[#allocation8 + $0xe30] sm:$0xf0]  ;;  %v6421_v32 = vrot.slane %v6414_v57, 6  ;;  %v13037_v0 = vld [vmem:[#allocation8 + $0xdc8] sm:$0xf] }
 0x425   : > { %8376 = vmatpush.bf16.msrb.mxu2 %v13178_v14  ;;  %8351 = vmatpush.bf16.msrb.mxu0 %v12906_v28  ;;  %v14300_v14 = vld [vmem:[#allocation8 + $0xe64] sm:$0xf]  ;;  %v6400_v37 = vmul.f32 %v15476_v5, %v6399_v40  ;;  %v12986_v28 = vor.u32 %v14268_v44, %v12983_v12  ;;  %v12935_v40 = vld [vmem:[#allocation8 + $0xd10] sm:$0xf0]  ;;  %v13082_v44 = vor.u32 %v14292_v30, %v13079_v31  ;;  %v14347_v1 = vld [vmem:[#allocation8 + $0xfd4] sm:$0xf0] }
 0x426   : > { %8345 = vmatmul.bf16.vlgmr.msra.gmra.mxu3 %v15467_v15  ;;  %v13114_v2 = vor.u32 %v14300_v14, %v13111_v51  ;;  %v14288_v12 = vld [vmem:[#allocation8 + $0xe04] sm:$0xf]  ;;  %v12894_v30 = vor.u32 %v14247_v13, %v12893_v10  ;;  %v12829_v10 = vld [vmem:[#allocation8 + $0xc28] sm:$0xf]  ;;  %v14231_v13 = vld [vmem:[#allocation8 + $0xc34] sm:$0xf0] }
 0x427   : > { %8389 = vmatpush.bf16.msrb.mxu3 %v13306_v52  ;;  %8364 = vmatpush.bf16.msrb.mxu1 %v13034_v3  ;;  %v13239_v52 = vld [vmem:[#allocation8 + $0xf70] sm:$0xf0]  ;;  %v6401_v41 = vadd.f32 %v15476_v5, %v6400_v37  ;;  %v7248_v49 = vpop.f32.mrf.mxu2 }
 0x428   : > { %v12839_v3 = vld [vmem:[#allocation8 + $0xc50] sm:$0xf0]  ;;  %v7249_v20 = vadd.f32 %v7248_v49, %v7236_v6  ;;  %v12909_v49 = vld [vmem:[#allocation8 + $0xcc8] sm:$0xf] }
 0x429   : > { %8377 = vmatpush.bf16.msrb.mxu2 %v13162_v9  ;;  %8352 = vmatpush.bf16.msrb.mxu0 %v12890_v22  ;;  %v14264_v9 = vld [vmem:[#allocation8 + $0xd44] sm:$0xf]  ;;  %v6405_v38 = vsel %vm15505_vm6, %v15476_v5, %v6401_v41  ;;  %v7261_v27 = vpop.f32.mrf.mxu3  ;;  %v7224_v22 = vpop.f32.mrf.mxu0  ;;  %v12842_v62 = vor.u32 %v14232_v60, %v12839_v3  ;;  %v13191_v37 = vld [vmem:[#allocation8 + $0xf10] sm:$0xf0]  ;;  %v14287_v60 = vld [vmem:[#allocation8 + $0xdf4] sm:$0xf0] }
 0x42a   : > { %v12970_v29 = vor.u32 %v14264_v9, %v12967_v43  ;;  %v14260_v5 = vld [vmem:[#allocation8 + $0xd24] sm:$0xf]  ;;  %v13181_v41 = vld [vmem:[#allocation8 + $0xee8] sm:$0xf]  ;;  %v14351_v9 = vld [vmem:[#allocation8 + $0xff4] sm:$0xf0]  ;;  %v13194_v43 = vor.u32 %v14320_v46, %v13191_v37 }
 0x42b   : > { %8390 = vmatpush.bf16.msrb.mxu3 %v13290_v55  ;;  %8365 = vmatpush.bf16.msrb.mxu1 %v13018_v33  ;;  %v13242_v55 = vor.u32 %v14332_v50, %v13239_v52  ;;  %v6410_v33 = vsel %vm6407_vm7, %v6409_v56, %v6405_v38  ;;  %v14255_v50 = vld [vmem:[#allocation8 + $0xcf4] sm:$0xf0]  ;;  %v13309_v3 = vld [vmem:[#allocation8 + $0xfe8] sm:$0xf]  ;;  %v13054_v56 = vor.u32 %v14287_v60, %v13053_v23 }
 0x42c   : > { %v6415_v26 = vmul.f32 0.001953125, %v6410_v33  ;;  %v12926_v21 = vor.u32 %v14255_v50, %v12925_v19  ;;  %v13310_v57 = vor.u32 %v14351_v9, %v13309_v3  ;;  %v14283_v38 = vld [vmem:[#allocation8 + $0xdd4] sm:$0xf0]  ;;  %v13293_v22 = vld [vmem:[#allocation8 + $0xfc8] sm:$0xf]  ;;  %v12910_v33 = vor.u32 %v14251_v17, %v12909_v49 }
 0x42d   : > { %8378 = vmatpush.bf16.msrb.mxu2 %v13146_v7  ;;  %8353 = vmatpush.bf16.msrb.mxu0 %v12874_v35  ;;  %v7237_v7 = vpop.f32.mrf.mxu1  ;;  %v13207_v35 = vld [vmem:[#allocation8 + $0xf30] sm:$0xf0]  ;;  %v12989_v37 = vld [vmem:[#allocation8 + $0xd68] sm:$0xf]  ;;  %v14267_v49 = vld [vmem:[#allocation8 + $0xd54] sm:$0xf0] }
 0x42e   : > { %v6422_v34 = vrot.slane %v6415_v26, 5  ;;  %v13210_v14 = vor.u32 %v14324_v48, %v13207_v35  ;;  %v13038_v7 = vor.u32 %v14283_v38, %v13037_v0  ;;  %v13021_v26 = vld [vmem:[#allocation8 + $0xda8] sm:$0xf]  ;;  %v14299_v0 = vld [vmem:[#allocation8 + $0xe54] sm:$0xf0] }
 0x42f   : > { %8391 = vmatpush.bf16.msrb.mxu3 %v13274_v24  ;;  %8366 = vmatpush.bf16.msrb.mxu1 %v13002_v25  ;;  %v15512_v24 = vadd.f32 %v7261_v27, %v7249_v20  ;;  %v14224_v25 = vld [vmem:[#allocation8 + $0xc04] sm:$0xf]  ;;  %v7250_v51 = vpop.f32.mrf.mxu2  ;;  %v13165_v20 = vld [vmem:[#allocation8 + $0xec8] sm:$0xf]  ;;  %v14315_v27 = vld [vmem:[#allocation8 + $0xed4] sm:$0xf0] }
 0x430   : > { %v6424_v6 = vsel %vm5334_vm0, %v6421_v32, %v6422_v34  ;;  %v12877_v32 = vld [vmem:[#allocation8 + $0xc88] sm:$0xf]  ;;  %v14243_v34 = vld [vmem:[#allocation8 + $0xc94] sm:$0xf0] }
 0x431   : > { %8379 = vmatpush.bf16.msrb.mxu2 %v13130_v42  ;;  %8354 = vmatpush.bf16.msrb.mxu0 %v12858_v54  ;;  %v12954_v42 = vor.u32 %v14260_v5, %v12951_v47  ;;  %v7263_v52 = vpop.f32.mrf.mxu3  ;;  %v12810_v54 = vor.u32 %v14224_v25, %v12807_v59  ;;  %v12799_v11 = vmul.f32 -1.442695, %v15512_v24  ;;  %v13149_v5 = vld [vmem:[#allocation8 + $0xea8] sm:$0xf]  ;;  %v14311_v47 = vld [vmem:[#allocation8 + $0xeb4] sm:$0xf0] }
 0x432   : > { %v13277_v24 = vld [vmem:[#allocation8 + $0xfa8] sm:$0xf]  ;;  %v13150_v48 = vor.u32 %v14311_v47, %v13149_v5  ;;  %v14239_v51 = vld [vmem:[#allocation8 + $0xc74] sm:$0xf0] }
 0x433   : > { %8392 = vmatpush.bf16.msrb.mxu3 %v13258_v4  ;;  %8367 = vmatpush.bf16.msrb.mxu1 %v12986_v28  ;;  %v6425_v4 = vsel %vm5336_vm2, %v15440_v18, %v6424_v6  ;;  %v14319_v28 = vld [vmem:[#allocation8 + $0xef4] sm:$0xf0]  ;;  %v13066_v18 = vor.u32 %v14288_v12, %v13063_v45  ;;  %14553 = vpow2.f32 %v12799_v11  ;;  %v13005_v35 = vld [vmem:[#allocation8 + $0xd88] sm:$0xf]  ;;  %v12878_v12 = vor.u32 %v14243_v34, %v12877_v32 }
 0x434   : > { %6428 = vst.msk [vmem:[#allocation2 + $0x1] ss:$8 sm:$0xf] %vm15374_vm3, %v6425_v4  ;;  %v13133_v59 = vld [vmem:[#allocation8 + $0xe88] sm:$0xf] }
 0x435   : > { %8380 = vmatpush.bf16.msrb.mxu2 %v13114_v2  ;;  %8355 = vmatpush.bf16.msrb.mxu0 %v12842_v62  ;;  %v12938_v2 = vor.u32 %v14256_v39, %v12935_v40  ;;  %v13166_v62 = vor.u32 %v14315_v27, %v13165_v20  ;;  %v14307_v39 = vld [vmem:[#allocation8 + $0xe94] sm:$0xf0]  ;;  %v13261_v6 = vld [vmem:[#allocation8 + $0xf88] sm:$0xf] }
 0x436   : > { %v13134_v4 = vor.u32 %v14307_v39, %v13133_v59  ;;  %v14271_v52 = vld [vmem:[#allocation8 + $0xd74] sm:$0xf0]  ;;  %v13117_v23 = vld [vmem:[#allocation8 + $0xe68] sm:$0xf] }
 0x437   : > { %8393 = vmatpush.bf16.msrb.mxu3 %v13242_v55  ;;  %8368 = vmatpush.bf16.msrb.mxu1 %v12970_v29  ;;  %v13182_v55 = vor.u32 %v14319_v28, %v13181_v41  ;;  %v13294_v29 = vor.u32 %v14347_v1, %v13293_v22  ;;  %v13245_v60 = vld [vmem:[#allocation8 + $0xf68] sm:$0xf]  ;;  %v14335_v41 = vld [vmem:[#allocation8 + $0xf74] sm:$0xf0]  ;;  %v12990_v3 = vor.u32 %v14271_v52, %v12989_v37  ;;  %v13055_v37 = vld [vmem:[#allocation8 + $0xdf8] sm:$0xf0] }
 0x438   : > { %v13101_v17 = vld [vmem:[#allocation8 + $0xe48] sm:$0xf]  ;;  %v14331_v22 = vld [vmem:[#allocation8 + $0xf54] sm:$0xf0] }
 0x439   : > { %8381 = vmatpush.bf16.msrb.mxu2 %v13098_v16  ;;  %8356 = vmatpush.bf16.msrb.mxu0 %v12826_v36  ;;  %v14279_v16 = vld [vmem:[#allocation8 + $0xdb4] sm:$0xf0]  ;;  %v14554_v19 = vpop.eup %14553  ;;  %v13229_v27 = vld [vmem:[#allocation8 + $0xf48] sm:$0xf] }
 0x43a   : > { %v13022_v31 = vor.u32 %v14279_v16, %v13021_v26  ;;  %v14275_v36 = vld [vmem:[#allocation8 + $0xd94] sm:$0xf0]  ;;  %v12957_v26 = vld [vmem:[#allocation8 + $0xd28] sm:$0xf] }
 0x43b   : > { %8394 = vmatpush.bf16.msrb.mxu3 %v13226_v8  ;;  %8369 = vmatpush.bf16.msrb.mxu1 %v12954_v42  ;;  %v14343_v8 = vld [vmem:[#allocation8 + $0xfb4] sm:$0xf0]  ;;  %v13006_v46 = vor.u32 %v14275_v36, %v13005_v35  ;;  %v13085_v5 = vld [vmem:[#allocation8 + $0xe28] sm:$0xf] }
 0x43c   : > { %v13278_v25 = vor.u32 %v14343_v8, %v13277_v24  ;;  %v14339_v42 = vld [vmem:[#allocation8 + $0xf94] sm:$0xf0]  ;;  %v13213_v8 = vld [vmem:[#allocation8 + $0xf28] sm:$0xf] }
 0x43d   : > { %8382 = vmatpush.bf16.msrb.mxu2 %v13082_v44  ;;  %8357 = vmatpush.bf16.msrb.mxu0 %v12810_v54  ;;  %v7274_v40 = vpop.f32.mrf.mxu0  ;;  %v13262_v50 = vor.u32 %v14339_v42, %v13261_v6  ;;  %v14303_v54 = vld [vmem:[#allocation8 + $0xe74] sm:$0xf0]  ;;  %v13069_v59 = vld [vmem:[#allocation8 + $0xe08] sm:$0xf] }
 0x43e   : > { %v13118_v9 = vor.u32 %v14303_v54, %v13117_v23  ;;  %v14263_v16 = vld [vmem:[#allocation8 + $0xd34] sm:$0xf0]  ;;  %v13197_v42 = vld [vmem:[#allocation8 + $0xf08] sm:$0xf]  ;;  %v14349_v54 = vld [vmem:[#allocation8 + $0xfec] sm:$0xf] }
 0x43f   : > { %8395 = vmatpush.bf16.msrb.mxu3 %v13210_v14  ;;  %8370 = vmatpush.bf16.msrb.mxu1 %v12938_v2  ;;  %v7287_v44 = vpop.f32.mrf.mxu1  ;;  %v12861_v14 = vld [vmem:[#allocation8 + $0xc68] sm:$0xf]  ;;  %v14295_v47 = vld [vmem:[#allocation8 + $0xe34] sm:$0xf0]  ;;  %v12958_v34 = vor.u32 %v14263_v16, %v12957_v26  ;;  %v13023_v26 = vld [vmem:[#allocation8 + $0xdb8] sm:$0xf0] }
 0x440   : > { %8358 = vmatmul.bf16.vlgmr.msrb.gmra.mxu0 %v15459_v58  ;;  %v7288_v45 = vadd.f32 %v7287_v44, %v7274_v40  ;;  %v12862_v28 = vor.u32 %v14239_v51, %v12861_v14  ;;  %v12845_v2 = vld [vmem:[#allocation8 + $0xc48] sm:$0xf]  ;;  %v14227_v32 = vld [vmem:[#allocation8 + $0xc14] sm:$0xf0]  ;;  %v13086_v35 = vor.u32 %v14295_v47, %v13085_v5  ;;  %v14285_v14 = vld [vmem:[#allocation8 + $0xdec] sm:$0xf] }
 0x441   : > { %8383 = vmatpush.bf16.msrb.mxu2 %v13066_v18  ;;  %8402 = vmatpush.bf16.msra.mxu0 %v12926_v21  ;;  %v15524_v18 = vadd.f32 1.0, %v14554_v19  ;;  %v12973_v21 = vld [vmem:[#allocation8 + $0xd48] sm:$0xf]  ;;  %v14259_v36 = vld [vmem:[#allocation8 + $0xd14] sm:$0xf0] }
 0x442   : > { %8371 = vmatmul.bf16.vlgmr.msrb.gmra.mxu1 %v15461_v61  ;;  %v14291_v6 = vld [vmem:[#allocation8 + $0xe14] sm:$0xf0]  ;;  %v14317_v19 = vld [vmem:[#allocation8 + $0xeec] sm:$0xf]  ;;  %v13151_v16 = vld [vmem:[#allocation8 + $0xeb8] sm:$0xf0] }
 0x443   : > { %8396 = vmatpush.bf16.msrb.mxu3 %v13194_v43  ;;  %8415 = vmatpush.bf16.msra.mxu1 %v13054_v56  ;;  %v14235_v43 = vld [vmem:[#allocation8 + $0xc54] sm:$0xf0]  ;;  %v13246_v56 = vor.u32 %v14335_v41, %v13245_v60  ;;  %14555 = vrcp.f32 %v15524_v18  ;;  %v13070_v23 = vor.u32 %v14291_v6, %v13069_v59  ;;  %v13311_v60 = vld [vmem:[#allocation8 + $0xff8] sm:$0xf0]  ;;  %v14341_v5 = vld [vmem:[#allocation8 + $0xfac] sm:$0xf]  ;;  %vm7442_vm10 = vweird.f32 %v15524_v18 }
 0x444   : > { %8384 = vmatmul.bf16.vlgmr.msrb.gmra.mxu2 %v15463_v63  ;;  %v12846_v11 = vor.u32 %v14235_v43, %v12845_v2  ;;  %v14323_v44 = vld [vmem:[#allocation8 + $0xf14] sm:$0xf0]  ;;  %v13058_v43 = vor.u32 %v14285_v14, %v13055_v37  ;;  %v13279_v47 = vld [vmem:[#allocation8 + $0xfb8] sm:$0xf0]  ;;  %v14305_v59 = vld [vmem:[#allocation8 + $0xe8c] sm:$0xf] }
 0x445   : > { %8428 = vmatpush.bf16.msra.mxu2 %v13182_v55  ;;  %8403 = vmatpush.bf16.msra.mxu0 %v12910_v33  ;;  %v7276_v20 = vpop.f32.mrf.mxu0  ;;  %v12863_v37 = vld [vmem:[#allocation8 + $0xc78] sm:$0xf0] }
 0x446   : > { %8397 = vmatmul.bf16.vlgmr.msrb.gmra.mxu3 %v15467_v15  ;;  %v14345_v20 = vld [vmem:[#allocation8 + $0xfcc] sm:$0xf] }
 0x447   : > { %8441 = vmatpush.bf16.msra.mxu3 %v13310_v57  ;;  %8416 = vmatpush.bf16.msra.mxu1 %v13038_v7  ;;  %v7300_v55 = vpop.f32.mrf.mxu2  ;;  %v7289_v1 = vpop.f32.mrf.mxu1  ;;  %v12974_v7 = vor.u32 %v14267_v49, %v12973_v21  ;;  %v13039_v49 = vld [vmem:[#allocation8 + $0xdd8] sm:$0xf0] }
 0x448   : > { %v7301_v57 = vadd.f32 %v7300_v55, %v7288_v45  ;;  %v14281_v55 = vld [vmem:[#allocation8 + $0xdcc] sm:$0xf] }
 0x449   : > { %8429 = vmatpush.bf16.msra.mxu2 %v13166_v62  ;;  %8404 = vmatpush.bf16.msra.mxu0 %v12894_v30  ;;  %v7313_v38 = vpop.f32.mrf.mxu3  ;;  %v13102_v62 = vor.u32 %v14299_v0, %v13101_v17  ;;  %v14327_v30 = vld [vmem:[#allocation8 + $0xf34] sm:$0xf0]  ;;  %v13314_v0 = vor.u32 %v14349_v54, %v13311_v60  ;;  %v12991_v54 = vld [vmem:[#allocation8 + $0xd78] sm:$0xf0]  ;;  %v7448_v60 = vand.u32 2147483648, %v15524_v18 }
 0x44a   : > { %v7314_v33 = vadd.f32 %v7313_v38, %v7301_v57  ;;  %v13214_v39 = vor.u32 %v14327_v30, %v13213_v8  ;;  %v14313_v57 = vld [vmem:[#allocation8 + $0xecc] sm:$0xf]  ;;  %v13167_v38 = vld [vmem:[#allocation8 + $0xed8] sm:$0xf0] }
 0x44b   : > { %8442 = vmatpush.bf16.msra.mxu3 %v13294_v29  ;;  %8417 = vmatpush.bf16.msra.mxu1 %v13022_v31  ;;  %v13230_v29 = vor.u32 %v14331_v22, %v13229_v27  ;;  %v12830_v31 = vor.u32 %v14231_v13, %v12829_v10  ;;  %v13295_v27 = vld [vmem:[#allocation8 + $0xfd8] sm:$0xf0]  ;;  %v14277_v10 = vld [vmem:[#allocation8 + $0xdac] sm:$0xf] }
 0x44c   : > { %v12800_v24 = vmul.f32 -1.442695, %v7314_v33  ;;  %v13170_v33 = vor.u32 %v14313_v57, %v13167_v38  ;;  %v13298_v13 = vor.u32 %v14345_v20, %v13295_v27  ;;  %v13026_v30 = vor.u32 %v14277_v10, %v13023_v26  ;;  %v12847_v27 = vld [vmem:[#allocation8 + $0xc58] sm:$0xf0]  ;;  %v14297_v10 = vld [vmem:[#allocation8 + $0xe4c] sm:$0xf] }
 0x44d   : > { %8430 = vmatpush.bf16.msra.mxu2 %v13150_v48  ;;  %8405 = vmatpush.bf16.msra.mxu0 %v12878_v12  ;;  %v12813_v48 = vld [vmem:[#allocation8 + $0xc08] sm:$0xf]  ;;  %v15527_v12 = vpop.eup %14555 }
 0x44e   : > { %14557 = vpow2.f32 %v12800_v24  ;;  %v12814_v51 = vor.u32 %v14227_v32, %v12813_v48  ;;  %v7438_v41 = vmul.f32 %v15527_v12, %v15524_v18  ;;  %v14241_v48 = vld [vmem:[#allocation8 + $0xc8c] sm:$0xf]  ;;  %v12879_v32 = vld [vmem:[#allocation8 + $0xc98] sm:$0xf0]  ;;  %vm7443_vm9 = vweird.f32 %v15527_v12 }
 0x44f   : > { %8443 = vmatpush.bf16.msra.mxu3 %v13278_v25  ;;  %8418 = vmatpush.bf16.msra.mxu1 %v13006_v46  ;;  %v12941_v25 = vld [vmem:[#allocation8 + $0xd08] sm:$0xf]  ;;  %v7302_v40 = vpop.f32.mrf.mxu2  ;;  %v14253_v46 = vld [vmem:[#allocation8 + $0xcec] sm:$0xf]  ;;  %v12882_v14 = vor.u32 %v14241_v48, %v12879_v32  ;;  %vm15553_vm11 = vmor %vm7442_vm10, %vm7443_vm9 }
 0x450   : > { %v12942_v52 = vor.u32 %v14259_v36, %v12941_v25  ;;  %v7439_v22 = vsub.f32 1.0, %v7438_v41  ;;  %v13282_v25 = vor.u32 %v14341_v5, %v13279_v47  ;;  %v13007_v36 = vld [vmem:[#allocation8 + $0xd98] sm:$0xf0] }
 0x451   : > { %8431 = vmatpush.bf16.msra.mxu2 %v13134_v4  ;;  %8406 = vmatpush.bf16.msra.mxu0 %v12862_v28  ;;  %v7315_v45 = vpop.f32.mrf.mxu3  ;;  %v12927_v4 = vld [vmem:[#allocation8 + $0xcf8] sm:$0xf0]  ;;  %v13198_v28 = vor.u32 %v14323_v44, %v13197_v42  ;;  %v14337_v42 = vld [vmem:[#allocation8 + $0xf8c] sm:$0xf] }
 0x452   : > { %v12930_v2 = vor.u32 %v14253_v46, %v12927_v4  ;;  %v7440_v24 = vmul.f32 %v15527_v12, %v7439_v22  ;;  %v13263_v44 = vld [vmem:[#allocation8 + $0xf98] sm:$0xf0]  ;;  %v7446_v46 = vand.u32 2147483647, %v15524_v18  ;;  %v14265_v22 = vld [vmem:[#allocation8 + $0xd4c] sm:$0xf] }
 0x453   : > { %8444 = vmatpush.bf16.msra.mxu3 %v13262_v50  ;;  %8419 = vmatpush.bf16.msra.mxu1 %v12990_v3  ;;  %v13183_v50 = vld [vmem:[#allocation8 + $0xef8] sm:$0xf0]  ;;  %v14249_v3 = vld [vmem:[#allocation8 + $0xccc] sm:$0xf] }
 0x454   : > { %v13186_v21 = vor.u32 %v14317_v19, %v13183_v50  ;;  %v7441_v45 = vadd.f32 %v15527_v12, %v7440_v24  ;;  %v13247_v18 = vld [vmem:[#allocation8 + $0xf78] sm:$0xf0]  ;;  %vm7447_vm15 = vcmp.eq.f32.partialorder %v7446_v46, 8.507059e+37 }
 0x455   : > { %8432 = vmatpush.bf16.msra.mxu2 %v13118_v9  ;;  %8407 = vmatpush.bf16.msra.mxu0 %v12846_v11  ;;  %v14558_v9 = vpop.eup %14557  ;;  %v13042_v11 = vor.u32 %v14281_v55, %v13039_v49  ;;  %v13231_v5 = vld [vmem:[#allocation8 + $0xf58] sm:$0xf0] }
 0x456   : > { %v15531_v17 = vadd.f32 1.0, %v14558_v9  ;;  %v7445_v55 = vsel %vm15553_vm11, %v15527_v12, %v7441_v45 }
 0x457   : > { %8445 = vmatpush.bf16.msra.mxu3 %v13246_v56  ;;  %8420 = vmatpush.bf16.msra.mxu1 %v12974_v7  ;;  %v12911_v56 = vld [vmem:[#allocation8 + $0xcd8] sm:$0xf0]  ;;  %v14245_v7 = vld [vmem:[#allocation8 + $0xcac] sm:$0xf] }
 0x458   : > { %14559 = vrcp.f32 %v15531_v17  ;;  %v12914_v1 = vor.u32 %v14249_v3, %v12911_v56  ;;  %v7463_v41 = vand.u32 2147483648, %v15531_v17  ;;  %v13119_v3 = vld [vmem:[#allocation8 + $0xe78] sm:$0xf0]  ;;  %v14333_v56 = vld [vmem:[#allocation8 + $0xf6c] sm:$0xf]  ;;  %vm7457_vm13 = vweird.f32 %v15531_v17 }
 0x459   : > { %8433 = vmatpush.bf16.msra.mxu2 %v13102_v62  ;;  %8408 = vmatpush.bf16.msra.mxu0 %v12830_v31  ;;  %v12895_v62 = vld [vmem:[#allocation8 + $0xcb8] sm:$0xf0] }
 0x45a   : > { %v12898_v8 = vor.u32 %v14245_v7, %v12895_v62  ;;  %v7464_v12 = vor.u32 1.1754944e-38, %v7463_v41  ;;  %v13250_v7 = vor.u32 %v14333_v56, %v13247_v18  ;;  %v12943_v41 = vld [vmem:[#allocation8 + $0xd18] sm:$0xf0] }
 0x45b   : > { %8446 = vmatpush.bf16.msra.mxu3 %v13230_v29  ;;  %8421 = vmatpush.bf16.msra.mxu1 %v12958_v34  ;;  %v14309_v29 = vld [vmem:[#allocation8 + $0xeac] sm:$0xf] }
 0x45c   : > { %v13154_v31 = vor.u32 %v14309_v29, %v13151_v16  ;;  %v14273_v34 = vld [vmem:[#allocation8 + $0xd8c] sm:$0xf] }
 0x45d   : > { %8434 = vmatpush.bf16.msra.mxu2 %v13086_v35  ;;  %8409 = vmatpush.bf16.msra.mxu0 %v12814_v51  ;;  %v15543_v6 = vpop.f32.mrf.mxu0  ;;  %v14237_v51 = vld [vmem:[#allocation8 + $0xc6c] sm:$0xf]  ;;  %v13010_v50 = vor.u32 %v14273_v34, %v13007_v36  ;;  %v12831_v36 = vld [vmem:[#allocation8 + $0xc38] sm:$0xf0] }
 0x45e   : > { %v15539_v35 = vpop.eup %14559  ;;  %v12866_v49 = vor.u32 %v14237_v51, %v12863_v37  ;;  %v14329_v16 = vld [vmem:[#allocation8 + $0xf4c] sm:$0xf]  ;;  %v13215_v51 = vld [vmem:[#allocation8 + $0xf38] sm:$0xf0] }
 0x45f   : > { %8447 = vmatpush.bf16.msra.mxu3 %v13214_v39  ;;  %8422 = vmatpush.bf16.msra.mxu1 %v12942_v52  ;;  %v13135_v39 = vld [vmem:[#allocation8 + $0xe98] sm:$0xf0]  ;;  %v7453_v40 = vmul.f32 %v15539_v35, %v15531_v17  ;;  %v7339_v4 = vpop.f32.mrf.mxu1  ;;  %vm7458_vm12 = vweird.f32 %v15539_v35 }
 0x460   : > { %8410 = vmatmul.bf16.vlgmr.msra.gmra.mxu0 %v15459_v58  ;;  %v13138_v52 = vor.u32 %v14305_v59, %v13135_v39  ;;  %vm15567_vm14 = vmor %vm7457_vm13, %vm7458_vm12  ;;  %v7340_v32 = vadd.f32 %v7339_v4, %v15543_v6  ;;  %v13234_v59 = vor.u32 %v14329_v16, %v13231_v5  ;;  %v12959_v39 = vld [vmem:[#allocation8 + $0xd38] sm:$0xf0] }
 0x461   : > { %8435 = vmatpush.bf16.msra.mxu2 %v13070_v23  ;;  %8454 = vmatpush.bf16.msrb.mxu0 %v12930_v2  ;;  %v7454_v19 = vsub.f32 1.0, %v7453_v40  ;;  %v14269_v23 = vld [vmem:[#allocation8 + $0xd6c] sm:$0xf] }
 0x462   : > { %8423 = vmatmul.bf16.vlgmr.msra.gmra.mxu1 %v15461_v61  ;;  %v14301_v2 = vld [vmem:[#allocation8 + $0xe6c] sm:$0xf]  ;;  %v12994_v38 = vor.u32 %v14269_v23, %v12991_v54 }
 0x463   : > { %8448 = vmatpush.bf16.msra.mxu3 %v13198_v28  ;;  %8467 = vmatpush.bf16.msrb.mxu1 %v13058_v43  ;;  %v13266_v28 = vor.u32 %v14337_v42, %v13263_v44  ;;  %v7455_v43 = vmul.f32 %v15539_v35, %v7454_v19  ;;  %v13122_v20 = vor.u32 %v14301_v2, %v13119_v3  ;;  %v14293_v40 = vld [vmem:[#allocation8 + $0xe2c] sm:$0xf]  ;;  %v13087_v42 = vld [vmem:[#allocation8 + $0xe38] sm:$0xf0] }
 0x464   : > { %8436 = vmatmul.bf16.vlgmr.msra.gmra.mxu2 %v15463_v63  ;;  %v13090_v19 = vor.u32 %v14293_v40, %v13087_v42  ;;  %v14257_v23 = vld [vmem:[#allocation8 + $0xd0c] sm:$0xf]  ;;  %v13071_v2 = vld [vmem:[#allocation8 + $0xe18] sm:$0xf0] }
 0x465   : > { %8480 = vmatpush.bf16.msrb.mxu2 %v13186_v21  ;;  %8455 = vmatpush.bf16.msrb.mxu0 %v12914_v1  ;;  %v7461_v21 = vand.u32 2147483647, %v15531_v17  ;;  %v7456_v57 = vadd.f32 %v15539_v35, %v7455_v43  ;;  %v12975_v1 = vld [vmem:[#allocation8 + $0xd58] sm:$0xf0]  ;;  %v7328_v29 = vpop.f32.mrf.mxu0  ;;  %v14321_v43 = vld [vmem:[#allocation8 + $0xf0c] sm:$0xf]  ;;  %v12946_v18 = vor.u32 %v14257_v23, %v12943_v41 }
 0x466   : > { %8449 = vmatmul.bf16.vlgmr.msra.gmra.mxu3 %v15467_v15  ;;  %v13103_v17 = vld [vmem:[#allocation8 + $0xe58] sm:$0xf0]  ;;  %v12978_v34 = vor.u32 %v14265_v22, %v12975_v1 }
 0x467   : > { %8493 = vmatpush.bf16.msrb.mxu3 %v13314_v0  ;;  %8468 = vmatpush.bf16.msrb.mxu1 %v13042_v11  ;;  %v14233_v0 = vld [vmem:[#allocation8 + $0xc4c] sm:$0xf]  ;;  %v7449_v11 = vor.u32 1.1754944e-38, %v7448_v60  ;;  %v7352_v62 = vpop.f32.mrf.mxu2  ;;  %vm7462_vm1 = vcmp.eq.f32.partialorder %v7461_v21, 8.507059e+37  ;;  %v13199_v21 = vld [vmem:[#allocation8 + $0xf18] sm:$0xf0] }
 0x468   : > { %v7353_v46 = vadd.f32 %v7352_v62, %v7340_v32 }
 0x469   : > { %8481 = vmatpush.bf16.msrb.mxu2 %v13170_v33  ;;  %8456 = vmatpush.bf16.msrb.mxu0 %v12898_v8  ;;  %v7365_v26 = vpop.f32.mrf.mxu3  ;;  %v7450_v47 = vsel %vm7447_vm15, %v7449_v11, %v7445_v55  ;;  %v7341_v8 = vpop.f32.mrf.mxu1 }
 0x46a   : > { %v7497_v44 = vmul.f32 0.001953125, %v7450_v47  ;;  %v7366_v3 = vadd.f32 %v7365_v26, %v7353_v46 }
 0x46b   : > { %8494 = vmatpush.bf16.msrb.mxu3 %v13298_v13  ;;  %8469 = vmatpush.bf16.msrb.mxu1 %v13026_v30  ;;  %v7460_v13 = vsel %vm15567_vm14, %v15539_v35, %v7456_v57  ;;  %v12850_v30 = vor.u32 %v14233_v0, %v12847_v27  ;;  %v14261_v35 = vld [vmem:[#allocation8 + $0xd2c] sm:$0xf] }
 0x46c   : > { %v7465_v24 = vsel %vm7462_vm1, %v7464_v12, %v7460_v13  ;;  %v12962_v4 = vor.u32 %v14261_v35, %v12959_v39  ;;  %v12801_v0 = vmul.f32 -1.442695, %v7366_v3 }
 0x46d   : > { %8482 = vmatpush.bf16.msrb.mxu2 %v13154_v31  ;;  %8457 = vmatpush.bf16.msrb.mxu0 %v12882_v14  ;;  %v14229_v31 = vld [vmem:[#allocation8 + $0xc2c] sm:$0xf]  ;;  %v7498_v48 = vmul.f32 0.001953125, %v7465_v24 }
 0x46e   : > { %v14325_v14 = vld [vmem:[#allocation8 + $0xf2c] sm:$0xf]  ;;  %v12834_v37 = vor.u32 %v14229_v31, %v12831_v36  ;;  %14561 = vpow2.f32 %v12801_v0 }
 0x46f   : > { %8495 = vmatpush.bf16.msrb.mxu3 %v13282_v25  ;;  %8470 = vmatpush.bf16.msrb.mxu1 %v13010_v50  ;;  %v13106_v25 = vor.u32 %v14297_v10, %v13103_v17  ;;  %v7505_v45 = vrot.slane %v7498_v48, 7  ;;  %v14225_v50 = vld [vmem:[#allocation8 + $0xc0c] sm:$0xf]  ;;  %v13218_v54 = vor.u32 %v14325_v14, %v13215_v51  ;;  %v7354_v60 = vpop.f32.mrf.mxu2 }
 0x471   : > { %8483 = vmatpush.bf16.msrb.mxu2 %v13138_v52  ;;  %8458 = vmatpush.bf16.msrb.mxu0 %v12866_v49  ;;  %v15576_v6 = vsel %vm5332_vm8, %v7497_v44, %v7505_v45  ;;  %v12815_v52 = vld [vmem:[#allocation8 + $0xc18] sm:$0xf0]  ;;  %v7367_v9 = vpop.f32.mrf.mxu3  ;;  %v13202_v49 = vor.u32 %v14321_v43, %v13199_v21 }
 0x472   : > { %v12818_v56 = vor.u32 %v14225_v50, %v12815_v52 }
 0x473   : > { %8496 = vmatpush.bf16.msrb.mxu3 %v13266_v28  ;;  %8471 = vmatpush.bf16.msrb.mxu1 %v12994_v38  ;;  %v14289_v28 = vld [vmem:[#allocation8 + $0xe0c] sm:$0xf] }
 0x474   : > { %v13074_v55 = vor.u32 %v14289_v28, %v13071_v2  ;;  %v14562_v57 = vpop.eup %14561 }
 0x475   : > { %8484 = vmatpush.bf16.msrb.mxu2 %v13122_v20  ;;  %8459 = vmatpush.bf16.msrb.mxu0 %v12850_v30  ;;  %v7435_v27 = vadd.f32 1.0, %v14562_v57 }
 0x477   : > { %8497 = vmatpush.bf16.msrb.mxu3 %v13250_v7  ;;  %8472 = vmatpush.bf16.msrb.mxu1 %v12978_v34  ;;  %14563 = vrcp.f32 %v7435_v27  ;;  %v7478_v47 = vand.u32 2147483648, %v7435_v27  ;;  %vm7472_vm5 = vweird.f32 %v7435_v27  ;;  %v7476_v24 = vand.u32 2147483647, %v7435_v27 }
 0x479   : > { %8485 = vmatpush.bf16.msrb.mxu2 %v13106_v25  ;;  %8460 = vmatpush.bf16.msrb.mxu0 %v12834_v37  ;;  %v7479_v25 = vor.u32 1.1754944e-38, %v7478_v47  ;;  %vm7477_vm7 = vcmp.eq.f32.partialorder %v7476_v24, 8.507059e+37 }
 0x47b   : > { %8498 = vmatpush.bf16.msrb.mxu3 %v13234_v59  ;;  %8473 = vmatpush.bf16.msrb.mxu1 %v12962_v4 }
 0x47d   : > { %8486 = vmatpush.bf16.msrb.mxu2 %v13090_v19  ;;  %8461 = vmatpush.bf16.msrb.mxu0 %v12818_v56  ;;  %v7378_v38 = vpop.f32.mrf.mxu0 }
 0x47f   : > { %8499 = vmatpush.bf16.msrb.mxu3 %v13218_v54  ;;  %8474 = vmatpush.bf16.msrb.mxu1 %v12946_v18  ;;  %v7391_v20 = vpop.f32.mrf.mxu1 }
 0x480   : > { %8462 = vmatmul.bf16.vlgmr.msrb.gmra.mxu0 %v15459_v58  ;;  %v7392_v22 = vadd.f32 %v7391_v20, %v7378_v38  ;;  %v14564_v58 = vpop.eup %14563 }
 0x481   : > { %8487 = vmatpush.bf16.msrb.mxu2 %v13074_v55  ;;  %v7468_v17 = vmul.f32 %v14564_v58, %v7435_v27  ;;  %vm7473_vm4 = vweird.f32 %v14564_v58 }
 0x482   : > { %8475 = vmatmul.bf16.vlgmr.msrb.gmra.mxu1 %v15461_v61  ;;  %vm7474_vm6 = vmor %vm7472_vm5, %vm7473_vm4 }
 0x483   : > { %8500 = vmatpush.bf16.msrb.mxu3 %v13202_v49 }
 0x484   : > { %8488 = vmatmul.bf16.vlgmr.msrb.gmra.mxu2 %v15463_v63 }
 0x485   : > { %v7380_v12 = vpop.f32.mrf.mxu0 }
 0x486   : > { %8501 = vmatmul.bf16.vlgmr.msrb.gmra.mxu3 %v15467_v15  ;;  %v7469_v15 = vsub.f32 1.0, %v7468_v17 }
 0x487   : > { %v7404_v1 = vpop.f32.mrf.mxu2  ;;  %v7393_v7 = vpop.f32.mrf.mxu1 }
 0x488   : > { %v7405_v11 = vadd.f32 %v7404_v1, %v7392_v22  ;;  %v7470_v29 = vmul.f32 %v14564_v58, %v7469_v15 }
 0x489   : > { %v7417_v33 = vpop.f32.mrf.mxu3 }
 0x48a   : > { %v7418_v62 = vadd.f32 %v7417_v33, %v7405_v11  ;;  %v7471_v16 = vadd.f32 %v14564_v58, %v7470_v29 }
 0x48c   : > { %v12802_v10 = vmul.f32 -1.442695, %v7418_v62  ;;  %v7475_v48 = vsel %vm7474_vm6, %v14564_v58, %v7471_v16 }
 0x48d   : > { %v7480_v39 = vsel %vm7477_vm7, %v7479_v25, %v7475_v48 }
 0x48e   : > { %14565 = vpow2.f32 %v12802_v10  ;;  %v7499_v45 = vmul.f32 0.001953125, %v7480_v39 }
 0x48f   : > { %v7406_v61 = vpop.f32.mrf.mxu2 }
 0x490   : > { %v7506_v23 = vrot.slane %v7499_v45, 6 }
 0x491   : > { %v7419_v63 = vpop.f32.mrf.mxu3 }
 0x494   : > { %v14566_v13 = vpop.eup %14565 }
 0x495   : > { %v7436_v26 = vadd.f32 1.0, %v14566_v13 }
 0x497   : > { %14567 = vrcp.f32 %v7436_v26  ;;  %v7493_v36 = vand.u32 2147483648, %v7436_v26  ;;  %v7491_v59 = vand.u32 2147483647, %v7436_v26  ;;  %vm7487_vm10 = vweird.f32 %v7436_v26 }
 0x499   : > { %v7494_v42 = vor.u32 1.1754944e-38, %v7493_v36  ;;  %vm7492_vm12 = vcmp.eq.f32.partialorder %v7491_v59, 8.507059e+37 }
 0x49d   : > { %v14568_v5 = vpop.eup %14567  ;;  %v8307_v30 = vpop.f32.mrf.mxu0 }
 0x49e   : > { %v7483_v8 = vmul.f32 %v14568_v5, %v7436_v26  ;;  %vm7488_vm9 = vweird.f32 %v14568_v5 }
 0x49f   : > { %v8320_v31 = vpop.f32.mrf.mxu1  ;;  %vm7489_vm11 = vmor %vm7487_vm10, %vm7488_vm9 }
 0x4a0   : > { %v7484_v32 = vsub.f32 1.0, %v7483_v8  ;;  %v8321_v34 = vadd.f32 %v8320_v31, %v8307_v30 }
 0x4a2   : > { %v7485_v35 = vmul.f32 %v14568_v5, %v7484_v32 }
 0x4a4   : > { %v7486_v40 = vadd.f32 %v14568_v5, %v7485_v35 }
 0x4a5   : > { %v8309_v37 = vpop.f32.mrf.mxu0 }
 0x4a6   : > { %v7490_v46 = vsel %vm7489_vm11, %v14568_v5, %v7486_v40 }
 0x4a7   : > { %v8333_v44 = vpop.f32.mrf.mxu2  ;;  %v7495_v4 = vsel %vm7492_vm12, %v7494_v42, %v7490_v46  ;;  %v8322_v19 = vpop.f32.mrf.mxu1 }
 0x4a8   : > { %v8334_v14 = vadd.f32 %v8333_v44, %v8321_v34  ;;  %v7500_v50 = vmul.f32 0.001953125, %v7495_v4 }
 0x4a9   : > { %v8346_v51 = vpop.f32.mrf.mxu3 }
 0x4aa   : > { %v8347_v52 = vadd.f32 %v8346_v51, %v8334_v14  ;;  %v7507_v54 = vrot.slane %v7500_v50, 5 }
 0x4ac   : > { %v7509_v60 = vsel %vm5334_vm0, %v7506_v23, %v7507_v54  ;;  %v13315_v3 = vmul.f32 -1.442695, %v8347_v52 }
 0x4ad   : > { %v7510_v41 = vsel %vm5336_vm2, %v15576_v6, %v7509_v60 }
 0x4ae   : > { %7513 = vst.msk [vmem:[#allocation2 + $0x2] ss:$8 sm:$0xf] %vm15374_vm3, %v7510_v41  ;;  %14569 = vpow2.f32 %v13315_v3 }
 0x4af   : > { %v8335_v28 = vpop.f32.mrf.mxu2 }
 0x4b1   : > { %v8348_v2 = vpop.f32.mrf.mxu3 }
 0x4b4   : > { %v14570_v21 = vpop.eup %14569 }
 0x4b5   : > { %v8518_v18 = vadd.f32 1.0, %v14570_v21 }
 0x4b7   : > { %14571 = vrcp.f32 %v8518_v18  ;;  %vm8527_vm14 = vweird.f32 %v8518_v18  ;;  %v8533_v15 = vand.u32 2147483648, %v8518_v18  ;;  %v8531_v29 = vand.u32 2147483647, %v8518_v18 }
 0x4b9   : > { %v8534_v8 = vor.u32 1.1754944e-38, %v8533_v15  ;;  %vm8532_vm6 = vcmp.eq.f32.partialorder %v8531_v29, 8.507059e+37 }
 0x4bd   : > { %v8359_v9 = vpop.f32.mrf.mxu0  ;;  %v14572_v1 = vpop.eup %14571 }
 0x4be   : > { %v8523_v33 = vmul.f32 %v14572_v1, %v8518_v18  ;;  %vm8528_vm13 = vweird.f32 %v14572_v1 }
 0x4bf   : > { %v8372_v43 = vpop.f32.mrf.mxu1  ;;  %vm8529_vm1 = vmor %vm8527_vm14, %vm8528_vm13 }
 0x4c0   : > { %v8373_v56 = vadd.f32 %v8372_v43, %v8359_v9  ;;  %v8524_v7 = vsub.f32 1.0, %v8523_v33 }
 0x4c2   : > { %v8525_v62 = vmul.f32 %v14572_v1, %v8524_v7 }
 0x4c4   : > { %v8526_v63 = vadd.f32 %v14572_v1, %v8525_v62 }
 0x4c5   : > { %v8361_v57 = vpop.f32.mrf.mxu0 }
 0x4c6   : > { %v8530_v47 = vsel %vm8529_vm1, %v14572_v1, %v8526_v63 }
 0x4c7   : > { %v8385_v55 = vpop.f32.mrf.mxu2  ;;  %v8374_v38 = vpop.f32.mrf.mxu1  ;;  %v8535_v25 = vsel %vm8532_vm6, %v8534_v8, %v8530_v47 }
 0x4c8   : > { %v8386_v49 = vadd.f32 %v8385_v55, %v8373_v56  ;;  %v8582_v42 = vmul.f32 0.001953125, %v8535_v25 }
 0x4c9   : > { %v8398_v0 = vpop.f32.mrf.mxu3 }
 0x4ca   : > { %v8399_v20 = vadd.f32 %v8398_v0, %v8386_v49 }
 0x4cc   : > { %v13316_v6 = vmul.f32 -1.442695, %v8399_v20 }
 0x4ce   : > { %14573 = vpow2.f32 %v13316_v6 }
 0x4cf   : > { %v8387_v27 = vpop.f32.mrf.mxu2 }
 0x4d1   : > { %v8400_v22 = vpop.f32.mrf.mxu3 }
 0x4d4   : > { %v14574_v11 = vpop.eup %14573 }
 0x4d5   : > { %v8519_v12 = vadd.f32 1.0, %v14574_v11 }
 0x4d7   : > { %14575 = vrcp.f32 %v8519_v12  ;;  %v8548_v26 = vand.u32 2147483648, %v8519_v12  ;;  %v8546_v5 = vand.u32 2147483647, %v8519_v12  ;;  %vm8542_vm4 = vweird.f32 %v8519_v12 }
 0x4d9   : > { %v8549_v30 = vor.u32 1.1754944e-38, %v8548_v26  ;;  %vm8547_vm7 = vcmp.eq.f32.partialorder %v8546_v5, 8.507059e+37 }
 0x4dd   : > { %v14576_v10 = vpop.eup %14575  ;;  %v8411_v61 = vpop.f32.mrf.mxu0 }
 0x4de   : > { %v8538_v58 = vmul.f32 %v14576_v10, %v8519_v12  ;;  %vm8543_vm15 = vweird.f32 %v14576_v10 }
 0x4df   : > { %v8424_v17 = vpop.f32.mrf.mxu1  ;;  %vm8544_vm5 = vmor %vm8542_vm4, %vm8543_vm15 }
 0x4e0   : > { %v8539_v13 = vsub.f32 1.0, %v8538_v58  ;;  %v8425_v35 = vadd.f32 %v8424_v17, %v8411_v61 }
 0x4e2   : > { %v8540_v16 = vmul.f32 %v14576_v10, %v8539_v13 }
 0x4e4   : > { %v8541_v24 = vadd.f32 %v14576_v10, %v8540_v16 }
 0x4e5   : > { %v8413_v34 = vpop.f32.mrf.mxu0 }
 0x4e6   : > { %v8545_v48 = vsel %vm8544_vm5, %v14576_v10, %v8541_v24 }
 0x4e7   : > { %v8437_v31 = vpop.f32.mrf.mxu2  ;;  %v8550_v36 = vsel %vm8547_vm7, %v8549_v30, %v8545_v48  ;;  %v8426_v59 = vpop.f32.mrf.mxu1 }
 0x4e8   : > { %v8583_v39 = vmul.f32 0.001953125, %v8550_v36  ;;  %v8438_v40 = vadd.f32 %v8437_v31, %v8425_v35 }
 0x4e9   : > { %v8450_v32 = vpop.f32.mrf.mxu3 }
 0x4ea   : > { %v8590_v44 = vrot.slane %v8583_v39, 7  ;;  %v8451_v46 = vadd.f32 %v8450_v32, %v8438_v40 }
 0x4ec   : > { %v8593_v45 = vsel %vm5332_vm8, %v8582_v42, %v8590_v44  ;;  %v13317_v37 = vmul.f32 -1.442695, %v8451_v46 }
 0x4ee   : > { %14577 = vpow2.f32 %v13317_v37 }
 0x4ef   : > { %v8439_v14 = vpop.f32.mrf.mxu2 }
 0x4f1   : > { %v8452_v51 = vpop.f32.mrf.mxu3 }
 0x4f4   : > { %v14578_v4 = vpop.eup %14577 }
 0x4f5   : > { %v8520_v52 = vadd.f32 1.0, %v14578_v4 }
 0x4f7   : > { %14579 = vrcp.f32 %v8520_v52  ;;  %v8563_v6 = vand.u32 2147483648, %v8520_v52  ;;  %vm8557_vm9 = vweird.f32 %v8520_v52  ;;  %v8561_v27 = vand.u32 2147483647, %v8520_v52 }
 0x4f9   : > { %v8564_v33 = vor.u32 1.1754944e-38, %v8563_v6  ;;  %vm8562_vm11 = vcmp.eq.f32.partialorder %v8561_v27, 8.507059e+37 }
 0x4fd   : > { %v8463_v19 = vpop.f32.mrf.mxu0  ;;  %v14580_v43 = vpop.eup %14579 }
 0x4fe   : > { %v8553_v56 = vmul.f32 %v14580_v43, %v8520_v52  ;;  %vm8558_vm8 = vweird.f32 %v14580_v43 }
 0x4ff   : > { %v8476_v50 = vpop.f32.mrf.mxu1  ;;  %vm8559_vm10 = vmor %vm8557_vm9, %vm8558_vm8 }
 0x500   : > { %v8477_v23 = vadd.f32 %v8476_v50, %v8463_v19  ;;  %v8554_v49 = vsub.f32 1.0, %v8553_v56 }
 0x502   : > { %v8555_v57 = vmul.f32 %v14580_v43, %v8554_v49 }
 0x504   : > { %v8556_v38 = vadd.f32 %v14580_v43, %v8555_v57 }
 0x505   : > { %v8465_v28 = vpop.f32.mrf.mxu0 }
 0x506   : > { %v8560_v1 = vsel %vm8559_vm10, %v14580_v43, %v8556_v38 }
 0x507   : > { %v8489_v54 = vpop.f32.mrf.mxu2  ;;  %v8478_v2 = vpop.f32.mrf.mxu1  ;;  %v8565_v10 = vsel %vm8562_vm11, %v8564_v33, %v8560_v1 }
 0x508   : > { %v8490_v60 = vadd.f32 %v8489_v54, %v8477_v23  ;;  %v8584_v17 = vmul.f32 0.001953125, %v8565_v10 }
 0x509   : > { %v8502_v41 = vpop.f32.mrf.mxu3 }
 0x50a   : > { %v8503_v3 = vadd.f32 %v8502_v41, %v8490_v60  ;;  %v8591_v26 = vrot.slane %v8584_v17, 6 }
 0x50c   : > { %v13318_v9 = vmul.f32 -1.442695, %v8503_v3 }
 0x50e   : > { %14581 = vpow2.f32 %v13318_v9 }
 0x50f   : > { %v8491_v21 = vpop.f32.mrf.mxu2 }
 0x511   : > { %v8504_v18 = vpop.f32.mrf.mxu3 }
 0x514   : > { %v14582_v55 = vpop.eup %14581 }
 0x515   : > { %v8521_v0 = vadd.f32 1.0, %v14582_v55 }
 0x517   : > { %14583 = vrcp.f32 %v8521_v0  ;;  %v8578_v12 = vand.u32 2147483648, %v8521_v0  ;;  %v8576_v62 = vand.u32 2147483647, %v8521_v0  ;;  %vm8572_vm13 = vweird.f32 %v8521_v0 }
 0x519   : > { %v8579_v61 = vor.u32 1.1754944e-38, %v8578_v12  ;;  %vm8577_vm15 = vcmp.eq.f32.partialorder %v8576_v62, 8.507059e+37 }
 0x51d   : > { %v14584_v20 = vpop.eup %14583 }
 0x51e   : > { %v8568_v22 = vmul.f32 %v14584_v20, %v8521_v0  ;;  %vm8573_vm12 = vweird.f32 %v14584_v20 }
 0x51f   : > { %vm8574_vm14 = vmor %vm8572_vm13, %vm8573_vm12 }
 0x520   : > { %v8569_v11 = vsub.f32 1.0, %v8568_v22 }
 0x522   : > { %v8570_v7 = vmul.f32 %v14584_v20, %v8569_v11 }
 0x524   : > { %v8571_v58 = vadd.f32 %v14584_v20, %v8570_v7 }
 0x526   : > { %v8575_v63 = vsel %vm8574_vm14, %v14584_v20, %v8571_v58 }
 0x527   : > { %v8580_v13 = vsel %vm8577_vm15, %v8579_v61, %v8575_v63 }
 0x528   : > { %v8585_v15 = vmul.f32 0.001953125, %v8580_v13 }
 0x52a   : > { %v8592_v29 = vrot.slane %v8585_v15, 5 }
 0x52c   : > { %v8594_v16 = vsel %vm5334_vm0, %v8591_v26, %v8592_v29 }
 0x52d   : > { %v8595_v5 = vsel %vm5336_vm2, %v8593_v45, %v8594_v16 }
 0x52e   : > { %8598 = vst.msk [vmem:[#allocation2 + $0x3] ss:$8 sm:$0xf] %vm15374_vm3, %v8595_v5 }
 0x52f PF: > { %v8620_v47 = vld [vmem:[%s15080_s20 + $0x70] sm:$0xff]  ;;  %v8621_v24 = vld [vmem:[%s15080_s20 + $0x78] sm:$0xff]  ;;  %v8618_v40 = vld [vmem:[%s15080_s20 + $0x60] sm:$0xff]  ;;  %s13319_s1 = sshll.u32 %s14827_s21, 7  ;;  %p13321_p1 = scmp.ne.s32.totalorder %s14827_s21, 1 }
 0x530   : > { %v8636_v8 = vld [vmem:[%s15080_s20 + $0xf0] sm:$0xff]  ;;  %v8684_v30 = vpack.c.bf16 %v8620_v47, %v8620_v47  ;;  %v8685_v31 = vpack.c.bf16 %v8621_v24, %v8621_v24  ;;  %v8637_v48 = vld [vmem:[%s15080_s20 + $0xf8] sm:$0xff]  ;;  %v8619_v14 = vld [vmem:[%s15080_s20 + $0x68] sm:$0xff]  ;;  %v8682_v41 = vpack.c.bf16 %v8618_v40, %v8618_v40  ;;  %s8993_s27 = sshra.s32 %s13319_s1, 7 }
 0x531   : > { %v8700_v53 = vpack.c.bf16 %v8636_v8, %v8636_v8  ;;  %v8652_v32 = vld [vmem:[%s15080_s20 + $0x170] sm:$0xff]  ;;  %v8653_v34 = vld [vmem:[%s15080_s20 + $0x178] sm:$0xff]  ;;  %v8701_v25 = vpack.c.bf16 %v8637_v48, %v8637_v48  ;;  %v8634_v51 = vld [vmem:[%s15080_s20 + $0xe0] sm:$0xff]  ;;  %v8683_v28 = vpack.c.bf16 %v8619_v14, %v8619_v14  ;;  %s13320_s5 = sshll.u32 %s8993_s27, 2 }
 0x532   : > { %v8716_v36 = vpack.c.bf16 %v8652_v32, %v8652_v32  ;;  %v8717_v35 = vpack.c.bf16 %v8653_v34, %v8653_v34  ;;  %v8668_v59 = vld [vmem:[%s15080_s20 + $0x1f0] sm:$0xff]  ;;  %v8669_v39 = vld [vmem:[%s15080_s20 + $0x1f8] sm:$0xff]  ;;  %v8826_v42 = vunpack.c.l.b16 %v8684_v30  ;;  %v8827_v44 = vunpack.c.l.b16 %v8685_v31  ;;  %v8635_v52 = vld [vmem:[%s15080_s20 + $0xe8] sm:$0xff]  ;;  %s8996_s11 = scalar_lea.vmem %s15087_s26, %s13320_s5 [#allocation11] }
 0x533   : > { %v8842_v45 = vunpack.c.l.b16 %v8700_v53  ;;  %v8732_v46 = vpack.c.bf16 %v8668_v59, %v8668_v59  ;;  %v8843_v37 = vunpack.c.l.b16 %v8701_v25  ;;  %v8733_v50 = vpack.c.bf16 %v8669_v39, %v8669_v39  ;;  %v8650_v23 = vld [vmem:[%s15080_s20 + $0x160] sm:$0xff]  ;;  %v8651_v2 = vld [vmem:[%s15080_s20 + $0x168] sm:$0xff]  ;;  %v8616_v38 = vld [vmem:[%s15080_s20 + $0x50] sm:$0xff] }
 0x534   : > { %v8858_v4 = vunpack.c.l.b16 %v8716_v36  ;;  %v8859_v19 = vunpack.c.l.b16 %v8717_v35  ;;  %v8883_v54 = vpack.c.b16 %v8827_v44, %v8826_v42  ;;  %v8666_v3 = vld [vmem:[%s15080_s20 + $0x1e0] sm:$0xff]  ;;  %v8698_v56 = vpack.c.bf16 %v8634_v51, %v8634_v51  ;;  %v8667_v18 = vld [vmem:[%s15080_s20 + $0x1e8] sm:$0xff]  ;;  %v8617_v20 = vld [vmem:[%s15080_s20 + $0x58] sm:$0xff] }
 0x535   : > { %v8874_v60 = vunpack.c.l.b16 %v8732_v46  ;;  %v8891_v9 = vpack.c.b16 %v8843_v37, %v8842_v45  ;;  %v8875_v21 = vunpack.c.l.b16 %v8733_v50  ;;  %v8824_v55 = vunpack.c.l.b16 %v8682_v41  ;;  %v8632_v11 = vld [vmem:[%s15080_s20 + $0xd0] sm:$0xff]  ;;  %v8633_v33 = vld [vmem:[%s15080_s20 + $0xd8] sm:$0xff]  ;;  %v8614_v53 = vld [vmem:[%s15080_s20 + $0x40] sm:$0xff] }
 0x536   : > { %v8899_v43 = vpack.c.b16 %v8859_v19, %v8858_v4  ;;  %8940 = vmatpush.bf16.msra.mxu0 %v8883_v54  ;;  %v8825_v49 = vunpack.c.l.b16 %v8683_v28  ;;  %v8699_v0 = vpack.c.bf16 %v8635_v52, %v8635_v52  ;;  %v8714_v57 = vpack.c.bf16 %v8650_v23, %v8650_v23  ;;  %v8648_v58 = vld [vmem:[%s15080_s20 + $0x150] sm:$0xff]  ;;  %v8649_v15 = vld [vmem:[%s15080_s20 + $0x158] sm:$0xff]  ;;  %v8615_v32 = vld [vmem:[%s15080_s20 + $0x48] sm:$0xff] }
 0x537   : > { %8953 = vmatpush.bf16.msra.mxu1 %v8891_v9  ;;  %v8907_v6 = vpack.c.b16 %v8875_v21, %v8874_v60  ;;  %v8840_v27 = vunpack.c.l.b16 %v8698_v56  ;;  %v8715_v22 = vpack.c.bf16 %v8651_v2, %v8651_v2  ;;  %v8730_v1 = vpack.c.bf16 %v8666_v3, %v8666_v3  ;;  %v8664_v47 = vld [vmem:[%s15080_s20 + $0x1d0] sm:$0xff]  ;;  %v8665_v24 = vld [vmem:[%s15080_s20 + $0x1d8] sm:$0xff]  ;;  %v8630_v59 = vld [vmem:[%s15080_s20 + $0xc0] sm:$0xff] }
 0x538   : > { %8966 = vmatpush.bf16.msra.mxu2 %v8899_v43  ;;  %v8882_v12 = vpack.c.b16 %v8825_v49, %v8824_v55  ;;  %v8841_v7 = vunpack.c.l.b16 %v8699_v0  ;;  %v8856_v62 = vunpack.c.l.b16 %v8714_v57  ;;  %v8731_v10 = vpack.c.bf16 %v8667_v18, %v8667_v18  ;;  %v8631_v39 = vld [vmem:[%s15080_s20 + $0xc8] sm:$0xff]  ;;  %v8646_v46 = vld [vmem:[%s15080_s20 + $0x140] sm:$0xff]  ;;  %v8612_v43 = vld [vmem:[%s15080_s20 + $0x30] sm:$0xff] }
 0x539   : > { %8979 = vmatpush.bf16.msra.mxu3 %v8907_v6  ;;  %v8857_v61 = vunpack.c.l.b16 %v8715_v22  ;;  %v8872_v17 = vunpack.c.l.b16 %v8730_v1  ;;  %v8680_v63 = vpack.c.bf16 %v8616_v38, %v8616_v38  ;;  %v8681_v13 = vpack.c.bf16 %v8617_v20, %v8617_v20  ;;  %v8647_v19 = vld [vmem:[%s15080_s20 + $0x148] sm:$0xff]  ;;  %v8662_v60 = vld [vmem:[%s15080_s20 + $0x1c0] sm:$0xff]  ;;  %v8613_v21 = vld [vmem:[%s15080_s20 + $0x38] sm:$0xff] }
 0x53a   : > { %8941 = vmatpush.bf16.msra.mxu0 %v8882_v12  ;;  %v8890_v26 = vpack.c.b16 %v8841_v7, %v8840_v27  ;;  %v8873_v29 = vunpack.c.l.b16 %v8731_v10  ;;  %v8696_v16 = vpack.c.bf16 %v8632_v11, %v8632_v11  ;;  %v8697_v5 = vpack.c.bf16 %v8633_v33, %v8633_v33  ;;  %v8663_v41 = vld [vmem:[%s15080_s20 + $0x1c8] sm:$0xff]  ;;  %v8628_v0 = vld [vmem:[%s15080_s20 + $0xb0] sm:$0xff]  ;;  %v8629_v57 = vld [vmem:[%s15080_s20 + $0xb8] sm:$0xff] }
 0x53b   : > { %v8898_v8 = vpack.c.b16 %v8857_v61, %v8856_v62  ;;  %v8822_v30 = vunpack.c.l.b16 %v8680_v63  ;;  %v8823_v31 = vunpack.c.l.b16 %v8681_v13  ;;  %v8712_v48 = vpack.c.bf16 %v8648_v58, %v8648_v58  ;;  %v8644_v22 = vld [vmem:[%s15080_s20 + $0x130] sm:$0xff]  ;;  %v8645_v7 = vld [vmem:[%s15080_s20 + $0x138] sm:$0xff] }
 0x53c   : > { %8954 = vmatpush.bf16.msra.mxu1 %v8890_v26  ;;  %v8906_v34 = vpack.c.b16 %v8873_v29, %v8872_v17  ;;  %v8838_v25 = vunpack.c.l.b16 %v8696_v16  ;;  %v8839_v36 = vunpack.c.l.b16 %v8697_v5  ;;  %v8713_v35 = vpack.c.bf16 %v8649_v15, %v8649_v15  ;;  %v8660_v17 = vld [vmem:[%s15080_s20 + $0x1b0] sm:$0xff]  ;;  %v8661_v63 = vld [vmem:[%s15080_s20 + $0x1b8] sm:$0xff]  ;;  %v8610_v16 = vld [vmem:[%s15080_s20 + $0x20] sm:$0xff] }
 0x53d   : > { %8967 = vmatpush.bf16.msra.mxu2 %v8898_v8  ;;  %v8881_v40 = vpack.c.b16 %v8823_v31, %v8822_v30  ;;  %v8854_v42 = vunpack.c.l.b16 %v8712_v48  ;;  %v8728_v44 = vpack.c.bf16 %v8664_v47, %v8664_v47  ;;  %v8729_v45 = vpack.c.bf16 %v8665_v24, %v8665_v24  ;;  %v8611_v5 = vld [vmem:[%s15080_s20 + $0x28] sm:$0xff]  ;;  %v8626_v31 = vld [vmem:[%s15080_s20 + $0xa0] sm:$0xff] }
 0x53e   : > { %8980 = vmatpush.bf16.msra.mxu3 %v8906_v34  ;;  %v8889_v14 = vpack.c.b16 %v8839_v36, %v8838_v25  ;;  %v8855_v51 = vunpack.c.l.b16 %v8713_v35  ;;  %v8678_v37 = vpack.c.bf16 %v8614_v53, %v8614_v53  ;;  %v8679_v4 = vpack.c.bf16 %v8615_v32, %v8615_v32  ;;  %v8627_v48 = vld [vmem:[%s15080_s20 + $0xa8] sm:$0xff]  ;;  %v8642_v36 = vld [vmem:[%s15080_s20 + $0x120] sm:$0xff] }
 0x53f   : > { %8942 = vmatpush.bf16.msra.mxu0 %v8881_v40  ;;  %v8870_v50 = vunpack.c.l.b16 %v8728_v44  ;;  %v8871_v52 = vunpack.c.l.b16 %v8729_v45  ;;  %v8694_v23 = vpack.c.bf16 %v8630_v59, %v8630_v59  ;;  %v8695_v54 = vpack.c.bf16 %v8631_v39, %v8631_v39 }
 0x540   : > { %8955 = vmatpush.bf16.msra.mxu1 %v8889_v14  ;;  %v8897_v28 = vpack.c.b16 %v8855_v51, %v8854_v42  ;;  %v8820_v2 = vunpack.c.l.b16 %v8678_v37  ;;  %v8821_v3 = vunpack.c.l.b16 %v8679_v4  ;;  %v8710_v9 = vpack.c.bf16 %v8646_v46, %v8646_v46  ;;  %v8643_v42 = vld [vmem:[%s15080_s20 + $0x128] sm:$0xff]  ;;  %v8658_v51 = vld [vmem:[%s15080_s20 + $0x1a0] sm:$0xff] }
 0x541   : > { %v8905_v56 = vpack.c.b16 %v8871_v52, %v8870_v50  ;;  %v8836_v18 = vunpack.c.l.b16 %v8694_v23  ;;  %v8837_v55 = vunpack.c.l.b16 %v8695_v54  ;;  %v8711_v49 = vpack.c.bf16 %v8647_v19, %v8647_v19  ;;  %v8659_v37 = vld [vmem:[%s15080_s20 + $0x1a8] sm:$0xff]  ;;  %v8608_v23 = vld [vmem:[%s15080_s20 + $0x10] sm:$0xff]  ;;  %v8609_v54 = vld [vmem:[%s15080_s20 + $0x18] sm:$0xff] }
 0x542   : > { %8968 = vmatpush.bf16.msra.mxu2 %v8897_v28  ;;  %v8880_v38 = vpack.c.b16 %v8821_v3, %v8820_v2  ;;  %v8852_v20 = vunpack.c.l.b16 %v8710_v9  ;;  %v8726_v6 = vpack.c.bf16 %v8662_v60, %v8662_v60  ;;  %v8727_v27 = vpack.c.bf16 %v8663_v41, %v8663_v41  ;;  %v8624_v3 = vld [vmem:[%s15080_s20 + $0x90] sm:$0xff]  ;;  %v8625_v9 = vld [vmem:[%s15080_s20 + $0x98] sm:$0xff] }
 0x543   : > { %8981 = vmatpush.bf16.msra.mxu3 %v8905_v56  ;;  %v8888_v1 = vpack.c.b16 %v8837_v55, %v8836_v18  ;;  %v8853_v11 = vunpack.c.l.b16 %v8711_v49  ;;  %v8676_v33 = vpack.c.bf16 %v8612_v43, %v8612_v43  ;;  %v8677_v12 = vpack.c.bf16 %v8613_v21, %v8613_v21  ;;  %v8640_v55 = vld [vmem:[%s15080_s20 + $0x110] sm:$0xff] }
 0x544   : > { %8943 = vmatpush.bf16.msra.mxu0 %v8880_v38  ;;  %v8868_v62 = vunpack.c.l.b16 %v8726_v6  ;;  %v8869_v10 = vunpack.c.l.b16 %v8727_v27  ;;  %v8692_v58 = vpack.c.bf16 %v8628_v0, %v8628_v0  ;;  %v8693_v61 = vpack.c.bf16 %v8629_v57, %v8629_v57 }
 0x545   : > { %8956 = vmatpush.bf16.msra.mxu1 %v8888_v1  ;;  %v8896_v13 = vpack.c.b16 %v8853_v11, %v8852_v20  ;;  %v8818_v15 = vunpack.c.l.b16 %v8676_v33  ;;  %v8819_v26 = vunpack.c.l.b16 %v8677_v12  ;;  %v8708_v29 = vpack.c.bf16 %v8644_v22, %v8644_v22  ;;  %v8641_v20 = vld [vmem:[%s15080_s20 + $0x118] sm:$0xff]  ;;  %v8656_v11 = vld [vmem:[%s15080_s20 + $0x190] sm:$0xff] }
 0x546   : > { %v8904_v47 = vpack.c.b16 %v8869_v10, %v8868_v62  ;;  %v8834_v24 = vunpack.c.l.b16 %v8692_v58  ;;  %v8835_v8 = vunpack.c.l.b16 %v8693_v61  ;;  %v8709_v30 = vpack.c.bf16 %v8645_v7, %v8645_v7  ;;  %v8657_v33 = vld [vmem:[%s15080_s20 + $0x198] sm:$0xff]  ;;  %v8606_v58 = vld [vmem:[%s15080_s20] sm:$0xff]  ;;  %v8607_v61 = vld [vmem:[%s15080_s20 + $0x8] sm:$0xff] }
 0x547   : > { %8969 = vmatpush.bf16.msra.mxu2 %v8896_v13  ;;  %v8879_v53 = vpack.c.b16 %v8819_v26, %v8818_v15  ;;  %v8850_v32 = vunpack.c.l.b16 %v8708_v29  ;;  %v8724_v34 = vpack.c.bf16 %v8660_v17, %v8660_v17  ;;  %v8725_v25 = vpack.c.bf16 %v8661_v63, %v8661_v63  ;;  %v8622_v26 = vld [vmem:[%s15080_s20 + $0x80] sm:$0xff]  ;;  %v8623_v29 = vld [vmem:[%s15080_s20 + $0x88] sm:$0xff] }
 0x548   : > { %8982 = vmatpush.bf16.msra.mxu3 %v8904_v47  ;;  %v8887_v35 = vpack.c.b16 %v8835_v8, %v8834_v24  ;;  %v8851_v59 = vunpack.c.l.b16 %v8709_v30  ;;  %v8674_v39 = vpack.c.bf16 %v8610_v16, %v8610_v16  ;;  %v8675_v40 = vpack.c.bf16 %v8611_v5, %v8611_v5  ;;  %v8638_v8 = vld [vmem:[%s15080_s20 + $0x100] sm:$0xff] }
 0x549   : > { %8944 = vmatpush.bf16.msra.mxu0 %v8879_v53  ;;  %v8866_v44 = vunpack.c.l.b16 %v8724_v34  ;;  %v8867_v45 = vunpack.c.l.b16 %v8725_v25  ;;  %v8690_v46 = vpack.c.bf16 %v8626_v31, %v8626_v31  ;;  %v8691_v14 = vpack.c.bf16 %v8627_v48, %v8627_v48 }
 0x54a   : > { %8957 = vmatpush.bf16.msra.mxu1 %v8887_v35  ;;  %v8895_v4 = vpack.c.b16 %v8851_v59, %v8850_v32  ;;  %v8816_v19 = vunpack.c.l.b16 %v8674_v39  ;;  %v8817_v50 = vunpack.c.l.b16 %v8675_v40  ;;  %v8706_v52 = vpack.c.bf16 %v8642_v36, %v8642_v36  ;;  %v8639_v32 = vld [vmem:[%s15080_s20 + $0x108] sm:$0xff]  ;;  %v8654_v59 = vld [vmem:[%s15080_s20 + $0x180] sm:$0xff]  ;;  %v8600_v40 = vld [vmem:[#allocation2] sm:$0xff] }
 0x54b   : > { %v8903_v60 = vpack.c.b16 %v8867_v45, %v8866_v44  ;;  %v8832_v41 = vunpack.c.l.b16 %v8690_v46  ;;  %v8833_v28 = vunpack.c.l.b16 %v8691_v14  ;;  %v8707_v2 = vpack.c.bf16 %v8643_v42, %v8643_v42  ;;  %v8655_v39 = vld [vmem:[%s15080_s20 + $0x188] sm:$0xff]  ;;  %v8601_v14 = vld [vmem:[#allocation2 + $0x8] sm:$0xff] }
 0x54c   : > { %8970 = vmatpush.bf16.msra.mxu2 %v8895_v4  ;;  %v8878_v43 = vpack.c.b16 %v8817_v50, %v8816_v19  ;;  %v8848_v21 = vunpack.c.l.b16 %v8706_v52  ;;  %v8722_v56 = vpack.c.bf16 %v8658_v51, %v8658_v51  ;;  %v8723_v18 = vpack.c.bf16 %v8659_v37, %v8659_v37  ;;  %v8602_v51 = vld [vmem:[#allocation2 + $0x10] sm:$0xff]  ;;  %v8603_v37 = vld [vmem:[#allocation2 + $0x18] sm:$0xff] }
 0x54d   : > { %8983 = vmatpush.bf16.msra.mxu3 %v8903_v60  ;;  %v8886_v49 = vpack.c.b16 %v8833_v28, %v8832_v41  ;;  %v8849_v0 = vunpack.c.l.b16 %v8707_v2  ;;  %v8672_v57 = vpack.c.bf16 %v8608_v23, %v8608_v23  ;;  %v8673_v38 = vpack.c.bf16 %v8609_v54, %v8609_v54 }
 0x54e   : > { %8945 = vmatpush.bf16.msra.mxu0 %v8878_v43  ;;  %v8864_v6 = vunpack.c.l.b16 %v8722_v56  ;;  %v8865_v27 = vunpack.c.l.b16 %v8723_v18  ;;  %v8688_v22 = vpack.c.bf16 %v8624_v3, %v8624_v3  ;;  %v8689_v1 = vpack.c.bf16 %v8625_v9, %v8625_v9 }
 0x54f   : > { %8958 = vmatpush.bf16.msra.mxu1 %v8886_v49  ;;  %v8894_v12 = vpack.c.b16 %v8849_v0, %v8848_v21  ;;  %v8814_v7 = vunpack.c.l.b16 %v8672_v57  ;;  %v8815_v62 = vunpack.c.l.b16 %v8673_v38  ;;  %v8704_v10 = vpack.c.bf16 %v8640_v55, %v8640_v55 }
 0x550   : > { %v8902_v17 = vpack.c.b16 %v8865_v27, %v8864_v6  ;;  %v8830_v63 = vunpack.c.l.b16 %v8688_v22  ;;  %v8831_v13 = vunpack.c.l.b16 %v8689_v1  ;;  %v8705_v15 = vpack.c.bf16 %v8641_v20, %v8641_v20 }
 0x551   : > { %8971 = vmatpush.bf16.msra.mxu2 %v8894_v12  ;;  %v8877_v16 = vpack.c.b16 %v8815_v62, %v8814_v7  ;;  %v8846_v5 = vunpack.c.l.b16 %v8704_v10  ;;  %v8720_v47 = vpack.c.bf16 %v8656_v11, %v8656_v11  ;;  %v8721_v24 = vpack.c.bf16 %v8657_v33, %v8657_v33 }
 0x552   : > { %8984 = vmatpush.bf16.msra.mxu3 %v8902_v17  ;;  %v8885_v30 = vpack.c.b16 %v8831_v13, %v8830_v63  ;;  %v8847_v31 = vunpack.c.l.b16 %v8705_v15  ;;  %v8670_v48 = vpack.c.bf16 %v8606_v58, %v8606_v58  ;;  %v8671_v53 = vpack.c.bf16 %v8607_v61, %v8607_v61 }
 0x553   : > { %8946 = vmatpush.bf16.msra.mxu0 %v8877_v16  ;;  %v8862_v34 = vunpack.c.l.b16 %v8720_v47  ;;  %v8863_v25 = vunpack.c.l.b16 %v8721_v24  ;;  %v8686_v36 = vpack.c.bf16 %v8622_v26, %v8622_v26  ;;  %v8687_v35 = vpack.c.bf16 %v8623_v29, %v8623_v29 }
 0x554   : > { %8959 = vmatpush.bf16.msra.mxu1 %v8885_v30  ;;  %v8893_v42 = vpack.c.b16 %v8847_v31, %v8846_v5  ;;  %v8812_v44 = vunpack.c.l.b16 %v8670_v48  ;;  %v8813_v45 = vunpack.c.l.b16 %v8671_v53  ;;  %v8702_v46 = vpack.c.bf16 %v8638_v8, %v8638_v8 }
 0x555   : > { %v8901_v4 = vpack.c.b16 %v8863_v25, %v8862_v34  ;;  %v8828_v19 = vunpack.c.l.b16 %v8686_v36  ;;  %v8829_v50 = vunpack.c.l.b16 %v8687_v35  ;;  %v8703_v52 = vpack.c.bf16 %v8639_v32, %v8639_v32 }
 0x556   : > { %8972 = vmatpush.bf16.msra.mxu2 %v8893_v42  ;;  %v8876_v23 = vpack.c.b16 %v8813_v45, %v8812_v44  ;;  %v8844_v54 = vunpack.c.l.b16 %v8702_v46  ;;  %v8718_v60 = vpack.c.bf16 %v8654_v59, %v8654_v59  ;;  %v8719_v41 = vpack.c.bf16 %v8655_v39, %v8655_v39 }
 0x557   : > { %8985 = vmatpush.bf16.msra.mxu3 %v8901_v4  ;;  %v8884_v28 = vpack.c.b16 %v8829_v50, %v8828_v19  ;;  %v8845_v2 = vunpack.c.l.b16 %v8703_v52  ;;  %v8604_v3 = vpack.c.bf16 %v8601_v14, %v8600_v40  ;;  %v8605_v9 = vpack.c.bf16 %v8603_v37, %v8602_v51 }
 0x558   : > { %8947 = vmatpush.bf16.msra.mxu0 %v8876_v23  ;;  %v8860_v43 = vunpack.c.l.b16 %v8718_v60  ;;  %v8861_v21 = vunpack.c.l.b16 %v8719_v41 }
 0x559   : > { %8960 = vmatpush.bf16.msra.mxu1 %v8884_v28  ;;  %v8892_v56 = vpack.c.b16 %v8845_v2, %v8844_v54  ;;  %v8736_v18 = vunpack.c.l.b16 %v8604_v3  ;;  %v8737_v55 = vunpack.c.h.b16 %v8604_v3  ;;  %v8738_v49 = vunpack.c.l.b16 %v8605_v9 }
 0x55a   : > { %v8900_v0 = vpack.c.b16 %v8861_v21, %v8860_v43  ;;  %v8739_v57 = vunpack.c.h.b16 %v8605_v9 }
 0x55b   : > { %8973 = vmatpush.bf16.msra.mxu2 %v8892_v56  ;;  %v8740_v38 = vpack.c.b16 %v8736_v18, %v8736_v18  ;;  %v8741_v20 = vpack.c.b16 %v8737_v55, %v8737_v55  ;;  %v8742_v6 = vpack.c.b16 %v8738_v49, %v8738_v49 }
 0x55c   : > { %8986 = vmatpush.bf16.msra.mxu3 %v8900_v0  ;;  %v8743_v27 = vpack.c.b16 %v8739_v57, %v8739_v57 }
 0x55d   : > { %8948 = vmatmul.bf16.vlgmr.msra.gmra.mxu0 %v8740_v38  ;;  %8961 = vmatmul.bf16.vlgmr.msra.gmra.mxu1 %v8741_v20 }
 0x55e   : > { %8974 = vmatmul.bf16.vlgmr.msra.gmra.mxu2 %v8742_v6 }
 0x55f   : > { %8987 = vmatmul.bf16.vlgmr.msra.gmra.mxu3 %v8743_v27 }
 0x5da   : > { %v8949_v22 = vpop.f32.mrf.mxu0  ;;  %v8962_v1 = vpop.f32.mrf.mxu1 }
 0x5db   : > { %v8963_v11 = vadd.f32 %v8962_v1, %v8949_v22 }
 0x5e1   : > { %v8975_v33 = vpop.f32.mrf.mxu2 }
 0x5e2   : > { %v8976_v12 = vadd.f32 %v8975_v33, %v8963_v11  ;;  %v8988_v7 = vpop.f32.mrf.mxu3  ;;  %v8951_v62 = vpop.f32.mrf.mxu0 }
 0x5e3   : > { %v8964_v10 = vpop.f32.mrf.mxu1 }
 0x5e4   : > { %v8989_v58 = vadd.f32 %v8988_v7, %v8976_v12 }
 0x5e6   : > { %8997 = vst [vmem:[%s8996_s11] sm:$0xf] %v8989_v58  ;;  %9001 = sbr.rel (%p13321_p1) target bundleno = 1694 (0x69e), region = 60 }
 0x5e9   : > { %v8977_v61 = vpop.f32.mrf.mxu2 }
 0x5ea   : > { %v8990_v17 = vpop.f32.mrf.mxu3 }
 0x5eb   : > { %vm9030_vm4 = vcmask 1043456   ;;  %v14854_v42 = vmov 839922192  }
 0x5ec   : > { %v9039_v44 = vunpack.c.l.s4 %v14854_v42 }
 0x5ed   : > { %v9002_v63 = vld [vmem:[%s15087_s26] sm:$0xff] }
 0x5ee   : > { %v13322_v13 = vmul.f32 -1.442695, %v9002_v63  ;;  %v9040_v45 = vunpack.c.0.s8 %v9039_v44 }
 0x5f0   : > { %14585 = vpow2.f32 %v13322_v13 }
 0x5f6   : > { %v14586_v15 = vpop.eup %14585 }
 0x5f7   : > { %v9006_v26 = vadd.f32 1.0, %v14586_v15 }
 0x5f9   : > { %14587 = vrcp.f32 %v9006_v26  ;;  %v9018_v5 = vand.u32 2147483648, %v9006_v26  ;;  %vm9012_vm0 = vweird.f32 %v9006_v26  ;;  %v9016_v24 = vand.u32 2147483647, %v9006_v26 }
 0x5fb   : > { %v9019_v30 = vor.u32 1.1754944e-38, %v9018_v5  ;;  %vm9017_vm1 = vcmp.eq.f32.partialorder %v9016_v24, 8.507059e+37 }
 0x5ff   : > { %v14588_v29 = vpop.eup %14587 }
 0x600   : > { %v9008_v16 = vmul.f32 %v14588_v29, %v9006_v26  ;;  %vm9013_vm2 = vweird.f32 %v14588_v29 }
 0x601   : > { %vm9014_vm3 = vmor %vm9012_vm0, %vm9013_vm2 }
 0x602   : > { %v9009_v47 = vsub.f32 1.0, %v9008_v16 }
 0x604   : > { %v9010_v8 = vmul.f32 %v14588_v29, %v9009_v47 }
 0x606   : > { %v9011_v31 = vadd.f32 %v14588_v29, %v9010_v8 }
 0x608   : > { %v9015_v48 = vsel %vm9014_vm3, %v14588_v29, %v9011_v31 }
 0x609   : > { %v9020_v53 = vsel %vm9017_vm1, %v9019_v30, %v9015_v48 }
 0x60a   : > { %v9022_v32 = vmul.f32 1.442695, %v9020_v53 }
 0x60c   : > { %14589 = vpow2.f32 %v9022_v32 }
 0x612   : > { %v14590_v34 = vpop.eup %14589 }
 0x613   : > { %9025 = vst [vmem:[#allocation1] ss:$2 sm:$0xff] %v14590_v34 }
 0x61a   : > { %v9026_v25 = vld.sshfl [vmem:[#allocation1] sm:$0xff pattern:$0x75316420]  ;;  %v9027_v36 = vld.sshfl [vmem:[#allocation1 + $0x8] sm:$0xff pattern:$0x75316420] }
 0x61b   : > { %v9031_v35 = vsel %vm9030_vm4, %v9026_v25, 0.0  ;;  %v9032_v59 = vsel %vm9030_vm4, %v9027_v36, 0.0 }
 0x61c   : > { %v9033_v39 = vadd.f32 %v9032_v59, %v9031_v35 }
 0x61e   : > { %9034 = vadd.xlane.f32.xlu0 %v9033_v39 }
 0x691   : > { %v9035_v40 = vpop.xlane.xlu0 %9034 }
 0x692   : > { %14591 = vrcp.f32 %v9035_v40 }
 0x698   : > { %v14592_v46 = vpop.eup %14591 }
 0x699   : > { %v9041_v14 = vperm.slane %v14592_v46, %v9040_v45 }
 0x69b   : > { %v9043_v51 = vmul.f32 %v14590_v34, %v9041_v14 }
 0x69d   : > { %9044 = vst [vmem:[%s15087_s26] sm:$0xff] %v9043_v51 }
 0x69e PF: > { %s14352_s8 = sshll.u32 %s14831_s22, 3  ;;  %s15787_s14 = sld [smem:[#allocation29_spill]] }
 0x69f   : > { %s9059_s30 = sshll.u32 %s15087_s26, 4  ;;  %s9046_s6 = scalar_lea.sflag [#allocation5], %s15065_s18  ;;  %s9060_s30 = int_to_ptr.vmem [resolvable:$true] %s9059_s30 }
 0x6a4   : > { %s9057_s13 = scalar_lea.hbm %s15787_s14, %s14352_s8  ;;  %s14733_s22 = scalar_lea.hbm %s15787_s14, 16 }
 0x6a5   : > { %s9061_s15 = sshll.u32 %s9057_s13, 4  ;;  %s9062_s15 = int_to_ptr.hbm [resolvable:$true] %s9061_s15 }
 0x6a6   : > { %s14727_s10 = sshra.s32 %s9062_s15, 4  ;;  %s14728_s10 = int_to_ptr.hbm [resolvable:$true] %s14727_s10 }
 0x6a7   : > { %s14729_s29 = scalar_lea.hbm %s14728_s10, 8  ;;  %p14734_p5 = scmp.lt.s32.totalorder %s14728_s10, %s15787_s14 }
 0x6a8   : > { %p14730_p11 = scmp.ne.s32.totalorder %s14728_s10, %s14729_s29  ;;  %p14735_p6 = scmp.lt.s32.totalorder %s14733_s22, %s14729_s29 }
 0x6aa   : > { %p14731_p12 = pnand %p14730_p11, %p15025_p2  ;;  %p14736_p10 = por %p14735_p6, %p14734_p5 }
 0x6ac   : > { %p14732_p0 = pneg %p14731_p12 }
 0x6ae   : > { %p14737_p8 = pnand %p14736_p10, %p14732_p0 }
 0x6b0   : > { %14740 = shalt.err (!%p14737_p8)
}
 0x6b1   : > { %14365 = dma.vmem_to_hbm [thread:$0]  (%p15025_p2), %s9060_s30, 128, %s9062_s15, %s9046_s6  }
 0x6b2 PF: > { %s15788_s18 = sld [smem:[#allocation19_spill]] }
 0x6b3   : > { %s15789_s4 = sld [smem:[#allocation17_spill]] }
 0x6b8   : > { %p14390_p13 = scmp.ge.s32.totalorder %s15788_s18, 2 }
 0x6b9   : > { %s9073_s20 = sand.u32 1, %s15789_s4  }
 0x6ba   : > { %p14382_p7 = pnand %p14390_p13, %p15033_p4  ;;  %s9074_s25 = scalar_lea.sflag [#allocation5], %s9073_s20 }
 0x6bc   : > { %p14383_p9 = pneg %p14382_p7 }
 0x6be   : > { %14798 = dma.done.wait (%p14383_p9), %s9074_s25, 128  }
 0x6bf   : > { %14800 = vsyncadd (%p14383_p9), %s9074_s25, 4294967168  ;;  %s24_s25 = sadd.s32 1, %s15788_s18   ;;  %s15791_s26 = sld [smem:[#allocation16_spill]] }
 0x6c0   : > { %p21_p3 = scmp.ge.s32.totalorder %s24_s25, 6   ;;  %s15792_s17 = sld [smem:[#allocation23_spill]] }
 0x6c1   : > { %s15793_s1 = sld [smem:[#allocation18_spill]]  ;;  %s15797_s15 = smov %s14807_s16 }
 0x6c2   : > { %s15794_s20 = sld [smem:[#allocation22_spill]]  ;;  %s15799_s18 = smov %s14819_s19 }
 0x6c3   : > { %s15795_s27 = sld [smem:[#allocation20_spill]]  ;;  %s15801_s21 = smov %s14835_s23 }
 0x6c4   : > { %s15796_s5 = sld [smem:[#allocation21_spill]]  ;;  %s15802_s22 = smov %s14839_s24 }
 0x6c5   : > { %s15798_s16 = smov %s15791_s26 }
 0x6c6   :  { %23 = sbr.rel (!%p21_p3) target bundleno = 17 (0x11), region = 117 }
 0x6c7   : > { %s15800_s19 = smov %s15793_s1 }
 0x6c9   : > { %s15803_s23 = smov %s15795_s27 }
 0x6ca   : > { %s15804_s24 = smov %s15796_s5 }
 0x6cb   :  { %9080 = vsyncpa [#allocation4], 1 }
 0x6cc   :  { %9082 = vsyncpa [#allocation4 + $0x1], 1 }
 0x6cd   :  { %9083 = vsyncpa [#allocation7], 1 }
 0x6ce   :  { %9084 = vsyncpa [#allocation10], 1 }
 0x6cf   :  { %9086 = vsyncpa [#allocation10 + $0x1], 1 }
 0x6d0   :  { %9087 = vsyncpa [#allocation5], 1 }
 0x6d1   :  { %9089 = vsyncpa [#allocation5 + $0x1], 1 }

</bundles_post_ra>
